<compile_context>
chip_gen: v5e
topology: v5e:2x2
jax: 0.10.0
libtpu: 0.0.40
codegen_flags: <defaults>
</compile_context>

<pallas_src>
import jax
import jax.numpy as jnp
from jax.experimental import pallas as pl
from jax.experimental.pallas import tpu as pltpu

H1 = 1024
H2 = 512


def mlp_kernel(x_ref, w1_ref, b1_ref, w2_ref, b2_ref, w3_ref, b3_ref, o_ref):
    # Fused 3-layer MLP for one batch tile, entirely in VMEM.
    # Matmul operands are bf16 (MXU-native); accumulation, bias add and ReLU are f32.
    x = x_ref[...].astype(jnp.bfloat16)

    h1 = jnp.dot(x, w1_ref[...], preferred_element_type=jnp.float32) + b1_ref[...]
    h1 = jnp.maximum(h1, 0.0)                                    # ReLU(True)

    h2 = jnp.dot(h1.astype(jnp.bfloat16), w2_ref[...],
                 preferred_element_type=jnp.float32) + b2_ref[...]
    h2 = jnp.maximum(h2, 0.0)                                    # ReLU(True)

    out = jnp.dot(h2.astype(jnp.bfloat16), w3_ref[...],
                  preferred_element_type=jnp.float32) + b3_ref[...]
    o_ref[...] = out.astype(o_ref.dtype)


def mlp_forward(x, params, *, tile_b=128):
    """x: (B, in_size) float32. Returns (B, n_classes) float32."""
    w1, b1, w2, b2, w3, b3 = params
    B, in_size = x.shape
    n_classes = w3.shape[1]

    # --- lane-dense last layer: pad n_classes up to a multiple of 128 lanes ---
    nc_pad = pl.cdiv(n_classes, 128) * 128
    w3p = jnp.pad(w3, ((0, 0), (0, nc_pad - n_classes)))
    b3p = jnp.pad(b3, ((0, 0), (0, nc_pad - n_classes)))

    # --- pad batch to a multiple of tile_b (handles ragged batches) ---
    b_pad = pl.cdiv(B, tile_b) * tile_b
    xp = jnp.pad(x, ((0, b_pad - B), (0, 0))) if b_pad != B else x

    # --- bf16 matmul operands (cast once here); biases stay f32 ---
    w1b = w1.astype(jnp.bfloat16)
    w2b = w2.astype(jnp.bfloat16)
    w3b = w3p.astype(jnp.bfloat16)

    grid = (b_pad // tile_b,)

    # Right-sized VMEM budget: double-buffered x/out tiles + (double-buffered) weights,
    # plus slack for intermediates; capped at v7x's 64 MiB physical VMEM.
    weight_bytes = 2 * (w1b.size * 2 + w2b.size * 2 + w3b.size * 2)        # bf16
    tile_bytes = 2 * tile_b * (in_size + nc_pad) * 4                        # f32 x/out tiles
    act_bytes = tile_b * (H1 + H2 + nc_pad) * 4                             # f32 intermediates
    vmem_limit = min(int(weight_bytes + tile_bytes + act_bytes + (8 << 20)), 64 << 20)

    out = pl.pallas_call(
        mlp_kernel,
        out_shape=jax.ShapeDtypeStruct((b_pad, nc_pad), jnp.float32),
        grid_spec=pltpu.PrefetchScalarGridSpec(
            num_scalar_prefetch=0,
            grid=grid,
            in_specs=[
                pl.BlockSpec((tile_b, in_size), lambda i: (i, 0)),   # x tile (marches over batch)
                pl.BlockSpec((in_size, H1), lambda i: (0, 0)),       # W1 (resident, bf16)
                pl.BlockSpec((1, H1), lambda i: (0, 0)),             # b1 (f32)
                pl.BlockSpec((H1, H2), lambda i: (0, 0)),            # W2 (resident, bf16)
                pl.BlockSpec((1, H2), lambda i: (0, 0)),             # b2 (f32)
                pl.BlockSpec((H2, nc_pad), lambda i: (0, 0)),        # W3 (resident, bf16, lane-padded)
                pl.BlockSpec((1, nc_pad), lambda i: (0, 0)),         # b3 (f32, lane-padded)
            ],
            out_specs=pl.BlockSpec((tile_b, nc_pad), lambda i: (i, 0)),
        ),
        compiler_params=pltpu.CompilerParams(
            dimension_semantics=("parallel",),   # megacore-shardable batch axis
            vmem_limit_bytes=vmem_limit,
        ),
    )(xp, w1b, b1, w2b, b2, w3b, b3p)

    return out[:B, :n_classes]


def init_params(key, in_size, n_classes):
    """Deterministic init mimicking torch.nn.Linear default (uniform +/- 1/sqrt(fan_in))."""
    ks = jax.random.split(key, 6)

    def linear(kw, kb, fan_in, fan_out):
        bound = 1.0 / jnp.sqrt(fan_in)
        w = jax.random.uniform(kw, (fan_in, fan_out), jnp.float32, -bound, bound)
        b = jax.random.uniform(kb, (1, fan_out), jnp.float32, -bound, bound)
        return w, b

    w1, b1 = linear(ks[0], ks[1], in_size, H1)
    w2, b2 = linear(ks[2], ks[3], H1, H2)
    w3, b3 = linear(ks[4], ks[5], H2, n_classes)
    return (w1, b1, w2, b2, w3, b3)


def mlp_reference_bf16(x, params):
    """Reference with the same numerics as the kernel: bf16 operands, f32 accumulation."""
    w1, b1, w2, b2, w3, b3 = params
    bf = jnp.bfloat16
    h1 = jnp.maximum(
        jnp.dot(x.astype(bf), w1.astype(bf), preferred_element_type=jnp.float32) + b1, 0.0)
    h2 = jnp.maximum(
        jnp.dot(h1.astype(bf), w2.astype(bf), preferred_element_type=jnp.float32) + b2, 0.0)
    return jnp.dot(h2.astype(bf), w3.astype(bf), preferred_element_type=jnp.float32) + b3


if __name__ == "__main__":
    # Small shapes consistent with the module's forward (in_size is a ctor arg).
    batch = 256          # 2 grid steps at tile_b=128 -> megacore has work to split
    in_size = 512
    n_classes = 11

    key = jax.random.PRNGKey(0)
    k_x, k_p = jax.random.split(key)
    x = jax.random.normal(k_x, (batch, in_size), jnp.float32)
    params = init_params(k_p, in_size, n_classes)

    out = mlp_forward(x, params, tile_b=128)
    out = jax.block_until_ready(out)

    ref = mlp_reference_bf16(x, params)
    assert out.shape == (batch, n_classes)
    assert jnp.allclose(out, ref, atol=1e-2, rtol=1e-2), "mismatch vs JAX bf16 reference"

    print("KERNEL_OK")
</pallas_src>

<mosaic_0001>
module attributes {stable_mosaic.version = 11 : i64} {
  func.func @mlp_kernel(%arg0: i32, %arg1: memref<128x512xf32, #tpu.memory_space<vmem>>, %arg2: memref<512x1024xbf16, #tpu.memory_space<vmem>>, %arg3: memref<1x1024xf32, #tpu.memory_space<vmem>>, %arg4: memref<1024x512xbf16, #tpu.memory_space<vmem>>, %arg5: memref<1x512xf32, #tpu.memory_space<vmem>>, %arg6: memref<512x128xbf16, #tpu.memory_space<vmem>>, %arg7: memref<1x128xf32, #tpu.memory_space<vmem>>, %arg8: memref<128x128xf32, #tpu.memory_space<vmem>>) attributes {dimension_semantics = [#tpu.dimension_semantics<parallel>], iteration_bounds = array<i64: 2>, scalar_prefetch = 0 : i64, scratch_operands = 0 : i64, tpu.core_type = #tpu.core_type<tc>, window_params = [{transform_indices = @transform_0, window_bounds = array<i64: 128, 512>}, {pipeline_mode = #tpu.pipeline_mode<synchronous>, transform_indices = @transform_1, window_bounds = array<i64: 512, 1024>}, {pipeline_mode = #tpu.pipeline_mode<synchronous>, transform_indices = @transform_2, window_bounds = array<i64: 1, 1024>}, {pipeline_mode = #tpu.pipeline_mode<synchronous>, transform_indices = @transform_3, window_bounds = array<i64: 1024, 512>}, {pipeline_mode = #tpu.pipeline_mode<synchronous>, transform_indices = @transform_4, window_bounds = array<i64: 1, 512>}, {pipeline_mode = #tpu.pipeline_mode<synchronous>, transform_indices = @transform_5, window_bounds = array<i64: 512, 128>}, {pipeline_mode = #tpu.pipeline_mode<synchronous>, transform_indices = @transform_6, window_bounds = array<i64: 1, 128>}, {transform_indices = @transform_7, window_bounds = array<i64: 128, 128>}]} {
    %c0 = arith.constant 0 : index
    %c0_0 = arith.constant 0 : index
    %0 = vector.load %arg1[%c0, %c0_0] : memref<128x512xf32, #tpu.memory_space<vmem>>, vector<128x512xf32>
    %1 = arith.truncf %0 : vector<128x512xf32> to vector<128x512xbf16>
    %c0_1 = arith.constant 0 : index
    %c0_2 = arith.constant 0 : index
    %2 = vector.load %arg2[%c0_1, %c0_2] : memref<512x1024xbf16, #tpu.memory_space<vmem>>, vector<512x1024xbf16>
    %cst = arith.constant dense<0.000000e+00> : vector<128x1024xf32>
    %3 = tpu.matmul %1, %2, %cst {dimension_numbers = #tpu.dot_dimension_numbers<[1], [0], [0], [1], [0, 0, 1, 1], [], []>} : vector<128x512xbf16>, vector<512x1024xbf16>, vector<128x1024xf32> -> vector<128x1024xf32>
    %c0_3 = arith.constant 0 : index
    %c0_4 = arith.constant 0 : index
    %4 = vector.load %arg3[%c0_3, %c0_4] : memref<1x1024xf32, #tpu.memory_space<vmem>>, vector<1x1024xf32>
    %5 = vector.broadcast %4 : vector<1x1024xf32> to vector<128x1024xf32>
    %6 = arith.addf %3, %5 : vector<128x1024xf32>
    %cst_5 = arith.constant 0.000000e+00 : f32
    %7 = vector.broadcast %cst_5 : f32 to vector<128x1024xf32>
    %8 = arith.maximumf %6, %7 : vector<128x1024xf32>
    %9 = arith.truncf %8 : vector<128x1024xf32> to vector<128x1024xbf16>
    %c0_6 = arith.constant 0 : index
    %c0_7 = arith.constant 0 : index
    %10 = vector.load %arg4[%c0_6, %c0_7] : memref<1024x512xbf16, #tpu.memory_space<vmem>>, vector<1024x512xbf16>
    %cst_8 = arith.constant dense<0.000000e+00> : vector<128x512xf32>
    %11 = tpu.matmul %9, %10, %cst_8 {dimension_numbers = #tpu.dot_dimension_numbers<[1], [0], [0], [1], [0, 0, 1, 1], [], []>} : vector<128x1024xbf16>, vector<1024x512xbf16>, vector<128x512xf32> -> vector<128x512xf32>
    %c0_9 = arith.constant 0 : index
    %c0_10 = arith.constant 0 : index
    %12 = vector.load %arg5[%c0_9, %c0_10] : memref<1x512xf32, #tpu.memory_space<vmem>>, vector<1x512xf32>
    %13 = vector.broadcast %12 : vector<1x512xf32> to vector<128x512xf32>
    %14 = arith.addf %11, %13 : vector<128x512xf32>
    %cst_11 = arith.constant 0.000000e+00 : f32
    %15 = vector.broadcast %cst_11 : f32 to vector<128x512xf32>
    %16 = arith.maximumf %14, %15 : vector<128x512xf32>
    %17 = arith.truncf %16 : vector<128x512xf32> to vector<128x512xbf16>
    %c0_12 = arith.constant 0 : index
    %c0_13 = arith.constant 0 : index
    %18 = vector.load %arg6[%c0_12, %c0_13] : memref<512x128xbf16, #tpu.memory_space<vmem>>, vector<512x128xbf16>
    %cst_14 = arith.constant dense<0.000000e+00> : vector<128x128xf32>
    %19 = tpu.matmul %17, %18, %cst_14 {dimension_numbers = #tpu.dot_dimension_numbers<[1], [0], [0], [1], [0, 0, 1, 1], [], []>} : vector<128x512xbf16>, vector<512x128xbf16>, vector<128x128xf32> -> vector<128x128xf32>
    %c0_15 = arith.constant 0 : index
    %c0_16 = arith.constant 0 : index
    %20 = vector.load %arg7[%c0_15, %c0_16] : memref<1x128xf32, #tpu.memory_space<vmem>>, vector<1x128xf32>
    %21 = vector.broadcast %20 : vector<1x128xf32> to vector<128x128xf32>
    %22 = arith.addf %19, %21 : vector<128x128xf32>
    %c0_17 = arith.constant 0 : index
    %c0_18 = arith.constant 0 : index
    %23 = vector.load %arg8[%c0_17, %c0_18] : memref<128x128xf32, #tpu.memory_space<vmem>>, vector<128x128xf32>
    tpu.vector_store %arg8[%c0_17, %c0_18], %22 {strides = array<i32>} : memref<128x128xf32, #tpu.memory_space<vmem>>, vector<128x128xf32>,
    return
  }
  func.func @transform_0(%arg0: i32) -> (i32, i32) {
    %c0_i32 = arith.constant 0 : i32
    %c0_i32_0 = arith.constant 0 : i32
    return %arg0, %c0_i32 : i32, i32
  }
  func.func @transform_1(%arg0: i32) -> (i32, i32) {
    %c0_i32 = arith.constant 0 : i32
    %c0_i32_0 = arith.constant 0 : i32
    %c0_i32_1 = arith.constant 0 : i32
    return %c0_i32, %c0_i32_0 : i32, i32
  }
  func.func @transform_2(%arg0: i32) -> (i32, i32) {
    %c0_i32 = arith.constant 0 : i32
    %c0_i32_0 = arith.constant 0 : i32
    %c0_i32_1 = arith.constant 0 : i32
    return %c0_i32, %c0_i32_0 : i32, i32
  }
  func.func @transform_3(%arg0: i32) -> (i32, i32) {
    %c0_i32 = arith.constant 0 : i32
    %c0_i32_0 = arith.constant 0 : i32
    %c0_i32_1 = arith.constant 0 : i32
    return %c0_i32, %c0_i32_0 : i32, i32
  }
  func.func @transform_4(%arg0: i32) -> (i32, i32) {
    %c0_i32 = arith.constant 0 : i32
    %c0_i32_0 = arith.constant 0 : i32
    %c0_i32_1 = arith.constant 0 : i32
    return %c0_i32, %c0_i32_0 : i32, i32
  }
  func.func @transform_5(%arg0: i32) -> (i32, i32) {
    %c0_i32 = arith.constant 0 : i32
    %c0_i32_0 = arith.constant 0 : i32
    %c0_i32_1 = arith.constant 0 : i32
    return %c0_i32, %c0_i32_0 : i32, i32
  }
  func.func @transform_6(%arg0: i32) -> (i32, i32) {
    %c0_i32 = arith.constant 0 : i32
    %c0_i32_0 = arith.constant 0 : i32
    %c0_i32_1 = arith.constant 0 : i32
    return %c0_i32, %c0_i32_0 : i32, i32
  }
  func.func @transform_7(%arg0: i32) -> (i32, i32) {
    %c0_i32 = arith.constant 0 : i32
    %c0_i32_0 = arith.constant 0 : i32
    return %arg0, %c0_i32 : i32, i32
  }
}

</mosaic_0001>

<bundles_post_ra>
// kernel: tpu_custom_call.1
= control target key start
LH: loop header
LB: loop body
LE: loop exit
PB: predicated region body
PF: predicated region fallthrough
CT: control target
= control target key end

     0   :  { %s12278_s0 = inlined_call_operand.hbm [shape: f32[256,512], index: 0, kind: input, shape index: {}]   ;;  %s12279_s1 = inlined_call_operand.hbm [shape: bf16[512,1024], index: 1, kind: input, shape index: {}]   ;;  %s12280_s2 = inlined_call_operand.hbm [shape: f32[1,1024], index: 2, kind: input, shape index: {}]   ;;  %s12281_s3 = inlined_call_operand.hbm [shape: bf16[1024,512], index: 3, kind: input, shape index: {}]   ;;  %s12282_s4 = inlined_call_operand.hbm [shape: f32[1,512], index: 4, kind: input, shape index: {}]   ;;  %s12283_s5 = inlined_call_operand.hbm [shape: bf16[512,128], index: 5, kind: input, shape index: {}]   ;;  %s12284_s6 = inlined_call_operand.vmem [shape: f32[1,128], index: 6, kind: input, shape index: {}]   ;;  %s12285_s7 = inlined_call_operand.hbm [shape: f32[256,128], index: 7, kind: output, shape index: {}]  }
   0x1   :  { %12369 = sst [smem:[#allocation71_spill]] %s12279_s1 }
   0x2   :  { %12 = vsyncpa [#allocation3], 0 }
   0x3   :  { %14 = vsyncpa [#allocation3 + $0x1], 0 }
   0x4   :  { %15 = vsyncpa [#allocation6], 0 }
   0x5   :  { %16 = vsyncpa [#allocation9], 0 }
   0x6   :  { %17 = vsyncpa [#allocation12], 0 }
   0x7   :  { %18 = vsyncpa [#allocation4], 0 }
   0x8   :  { %20 = vsyncpa [#allocation4 + $0x1], 0  ;;  %s10783_s24 = smov 0   ;;  %s10785_s25 = smov 0  }
   0x9   :  { %s10787_s26 = smov 0   ;;  %s10789_s27 = smov 0  }
   0xa LB: > { %s12370_s1 = sld [smem:[#allocation71_spill]]  ;;  %s10807_s8 = sadd.s32 4294967295, %s10728_s27   ;;  %s10728_s27 = sphi %s10789_s27, %s12618_s27   ;;  %s10724_s26 = sphi %s10787_s26, %s12617_s26   ;;  %s10720_s25 = sphi %s10785_s25, %s12616_s25   ;;  %s10716_s24 = sphi %s10783_s24, %s12615_s24  }
   0xb   : > { %p7611_p0 = scmp.ge.s32.totalorder %s10728_s27, 1  ;;  %p47_p1 = scmp.eq.s32.totalorder %s10807_s8, 0 }
   0xc   : > { %p209_p2 = scmp.lt.s32.totalorder %s10728_s27, 3  ;;  %s10730_s10 = smov [#allocation5]  }
   0xd   : > { %s222_s11 = sshll.u32 %s10730_s10, 4  ;;  %s246_s14 = sshll.u32 %s12281_s3, 4  ;;  %s223_s11 = int_to_ptr.vmem [resolvable:$true] %s222_s11  ;;  %s247_s14 = int_to_ptr.hbm [resolvable:$true] %s246_s14 }
   0xe   : > { %p10812_p3 = pnand %p7611_p0, %p209_p2  ;;  %s10731_s16 = smov [#allocation8]  }
   0xf   : > { %s248_s17 = sshll.u32 %s10731_s16, 4  ;;  %s12286_s18 = smov 512   ;;  %s249_s17 = int_to_ptr.vmem [resolvable:$true] %s248_s17 }
  0x10   : > { %s220_s30 = sshll.u32 %s12370_s1, 4  ;;  %p10382_p4 = pneg %p10812_p3  ;;  %s221_s30 = int_to_ptr.hbm [resolvable:$true] %s220_s30 }
  0x11   : > { %s12287_s19 = smov 32   ;;  %s10734_s20 = smov 256  }
  0x12   : > { %p10824_p6 = pnand %p10382_p4, %p47_p1  ;;  %s10735_s21 = smov 16  }
  0x13   : > { %s235_s28 = sshll.u32 %s12280_s2, 4  ;;  %s10736_s29 = smov [#allocation7]   ;;  %s236_s28 = int_to_ptr.hbm [resolvable:$true] %s235_s28 }
  0x14   : > { %10385 = dma.hbm_to_vmem [thread:$0]  (!%p10824_p6), %s221_s30, 32768, %s223_s11, [#allocation6], %s12286_s18, %s12286_s18, %s12287_s19  }
  0x15   : > { %10391 = dma.hbm_to_vmem [thread:$0]  (!%p10824_p6), %s247_s14, 32768, %s249_s17, [#allocation9], %s10734_s20, %s10734_s20, %s10735_s21  }
  0x16   : > { %s237_s10 = sshll.u32 %s10736_s29, 4  ;;  %s261_s30 = sshll.u32 %s12282_s4, 4  ;;  %s238_s10 = int_to_ptr.vmem [resolvable:$true] %s237_s10  ;;  %s262_s30 = int_to_ptr.hbm [resolvable:$true] %s261_s30 }
  0x17   : > { %10388 = dma.hbm_to_vmem [thread:$0]  (!%p10824_p6), %s236_s28, 128, %s238_s10, [#allocation6]  }
  0x18   : > { %s10737_s11 = smov [#allocation10]   ;;  %s272_s20 = sshll.u32 %s12283_s5, 4  ;;  %s273_s20 = int_to_ptr.hbm [resolvable:$true] %s272_s20 }
  0x19   : > { %s263_s14 = sshll.u32 %s10737_s11, 4  ;;  %s10738_s21 = smov [#allocation11]   ;;  %s264_s14 = int_to_ptr.vmem [resolvable:$true] %s263_s14 }
  0x1a   : > { %10394 = dma.hbm_to_vmem [thread:$0]  (!%p10824_p6), %s262_s30, 64, %s264_s14, [#allocation9]  }
  0x1b   : > { %s274_s22 = sshll.u32 %s10738_s21, 4  ;;  %s10739_s23 = smov 64   ;;  %s275_s22 = int_to_ptr.vmem [resolvable:$true] %s274_s22 }
  0x1c   : > { %s10740_s28 = smov 4   ;;  %s7610_s29 = sadd.s32 4294967294, %s10728_s27  }
  0x1d   : > { %10397 = dma.hbm_to_vmem [thread:$0]  (!%p10824_p6), %s273_s20, 4096, %s275_s22, [#allocation12], %s10739_s23, %s10739_s23, %s10740_s28  }
  0x1e   : > { %s10852_s10 = sadd.s32 1, %s10728_s27   ;;  %s33_s12 = sadd.s32 1, %s10724_s26 }
  0x1f   : > { %s30_s13 = ssub.s32 %s10728_s27, %s10852_s10  ;;  %p40_p7 = scmp.ne.s32.totalorder %s10724_s26, %s10720_s25 }
  0x20   : > { %p31_p8 = scmp.eq.s32.totalorder %s30_s13, 0  ;;  %p41_p9 = scmp.eq.s32.totalorder %s10728_s27, 0 }
  0x21   : > { %p46_p10 = scmp.ne.s32.totalorder %s10720_s25, %s10716_s24  ;;  %p196_p11 = scmp.eq.s32.totalorder %s10807_s8, 1 }
  0x22   : > { %s10864_s30 = scalar_select %p31_p8, %s10724_s26, %s33_s12  }
  0x23   : > { %p10868_p12 = por %p47_p1, %p46_p10  ;;  %p10872_p13 = por %p196_p11, %p40_p7 }
  0x24   : > { %p202_p0 = scmp.eq.s32.totalorder %s7610_s29, 1  ;;  %p42_p2 = por %p41_p9, %p40_p7 }
  0x25   : > { %s291_s14 = sand.u32 1, %s10724_s26   ;;  %p10411_p6 = scmp.lt.s32.totalorder %s10728_s27, 2 }
  0x26   : > { %p10877_p4 = por %p202_p0, %p46_p10  ;;  %s7618_s17 = sshll.u32 %s291_s14, 9 }
  0x27   : > { %s9812_s20 = sshll.u32 %s10728_s27, 9  ;;  %s295_s12 = scalar_lea.vmem [#allocation2], %s7618_s17 }
  0x28   : > { %s301_s23 = scalar_lea.hbm %s12278_s0, %s9812_s20  ;;  %s304_s13 = sshll.u32 %s295_s12, 4  ;;  %s305_s13 = int_to_ptr.vmem [resolvable:$true] %s304_s13 }
  0x29   : > { %s302_s28 = sshll.u32 %s301_s23, 4  ;;  %p10886_p8 = pnand %p10411_p6, %p42_p2  ;;  %s303_s28 = int_to_ptr.hbm [resolvable:$true] %s302_s28 }
  0x2a   : > { %s292_s18 = scalar_lea.sflag [#allocation3], %s291_s14  ;;  %s10620_s19 = sshra.s32 %s303_s28, 4  ;;  %s10621_s19 = int_to_ptr.hbm [resolvable:$true] %s10620_s19 }
  0x2b   : > { %s10622_s1 = scalar_lea.hbm %s10621_s19, 512  ;;  %p10624_p9 = pneg %p10886_p8 }
  0x2c   : > { %p10623_p7 = scmp.ne.s32.totalorder %s10621_s19, %s10622_s1  ;;  %s10627_s17 = scalar_lea.hbm %s12278_s0, 1024 }
  0x2d   : > { %p10628_p0 = scmp.lt.s32.totalorder %s10621_s19, %s12278_s0  ;;  %p10629_p2 = scmp.lt.s32.totalorder %s10627_s17, %s10622_s1 }
  0x2e   : > { %p10625_p10 = pnand %p10624_p9, %p10623_p7 }
  0x2f   : > { %p10630_p6 = por %p10629_p2, %p10628_p0 }
  0x30   : > { %p10626_p11 = pneg %p10625_p10 }
  0x32   : > { %p10631_p5 = pnand %p10630_p6, %p10626_p11 }
  0x34   : > { %10634 = shalt.err (!%p10631_p5)
}
  0x35   : > { %s12377_s14 = smov 32   ;;  %s12378_s12 = smov 512  }
  0x36   : > { %10401 = dma.hbm_to_vmem [thread:$0]  (!%p10886_p8), %s303_s28, 8192, %s305_s13, %s292_s18, %s12378_s12, %s12378_s12, %s12377_s14  }
  0x37   : > { %316 = sbr.rel (%p10812_p3) target bundleno = 2463 (0x99f), region = 48 }
  0x3c   : > { %s10906_s20 = sand.u32 1, %s10720_s25  }
  0x3d   : > { %s7623_s19 = sshll.u32 %s10906_s20, 9  ;;  %s319_s1 = scalar_lea.sflag [#allocation3], %s10906_s20 }
  0x3e   : > { %s10910_s21 = scalar_lea.vmem [#allocation2], %s7623_s19 }
  0x3f   : > { %10695 = dma.done.wait (%p10868_p12), %s319_s1, 8192  }
  0x40   : > { %10697 = vsyncadd (%p10868_p12), %s319_s1, 4294959104 }
  0x41   : > { %10699 = dma.done.wait (%p47_p1), [#allocation6], 32896  }
  0x42   : > { %10701 = vsyncadd (%p47_p1), [#allocation6], 4294934400 }
  0x43   : > { %10703 = dma.done.wait (%p47_p1), [#allocation9], 32832  }
  0x44   : > { %10705 = vsyncadd (%p47_p1), [#allocation9], 4294934464 }
  0x45   : > { %10707 = dma.done.wait (%p47_p1), [#allocation12], 4096  }
  0x46   : > { %10709 = vsyncadd (%p47_p1), [#allocation12], 4294963200  ;;  %v7856_v0 = vld [vmem:[#allocation5 + $0x1c0] sm:$0xf]  ;;  %s7629_s15 = sshll.u32 %s10906_s20, 7  ;;  %s10357_s13 = sshll.u32 %s10807_s8, 7 }
  0x47   : > { %v9873_v1 = vld [vmem:[#allocation5 + $0x1dc] sm:$0xf0]  ;;  %s12212_s28 = scalar_lea.vmem [#allocation13], %s7629_s15  ;;  %s7485_s22 = scalar_lea.hbm %s12285_s7, %s10357_s13 }
  0x48   : > { %v8112_v2 = vld [vmem:[#allocation5 + $0x3c0] sm:$0xf]  ;;  %v7857_v3 = vor.u32 %v9873_v1, %v7856_v0  ;;  %s7486_s23 = sshll.u32 %s12212_s28, 4  ;;  %s7488_s14 = sshll.u32 %s7485_s22, 4  ;;  %s7487_s23 = int_to_ptr.vmem [resolvable:$true] %s7486_s23  ;;  %s7489_s14 = int_to_ptr.hbm [resolvable:$true] %s7488_s14 }
  0x49   : > { %v9937_v4 = vld [vmem:[#allocation5 + $0x3dc] sm:$0xf0]  ;;  %s7474_s8 = scalar_lea.sflag [#allocation4], %s10906_s20  ;;  %s10664_s12 = sshra.s32 %s7489_s14, 4  ;;  %s10665_s12 = int_to_ptr.hbm [resolvable:$true] %s10664_s12 }
  0x4a   : > { %v8368_v5 = vld [vmem:[#allocation5 + $0x5c0] sm:$0xf]  ;;  %v8113_v7 = vor.u32 %v9937_v4, %v8112_v2  ;;  %2031 = vmatpush.bf16.msra.mxu0 %v7857_v3  ;;  %s10666_s19 = scalar_lea.hbm %s10665_s12, 128  ;;  %s10670_s9 = scalar_lea.hbm %s12285_s7, 256 }
  0x4b   : > { %v10001_v6 = vld [vmem:[#allocation5 + $0x5dc] sm:$0xf0]  ;;  %p10667_p1 = scmp.ne.s32.totalorder %s10665_s12, %s10666_s19  ;;  %p10671_p12 = scmp.lt.s32.totalorder %s10665_s12, %s12285_s7 }
  0x4c   : > { %v8369_v8 = vor.u32 %v10001_v6, %v8368_v5  ;;  %v8624_v9 = vld [vmem:[#allocation5 + $0x7c0] sm:$0xf]  ;;  %2080 = vmatpush.bf16.msra.mxu1 %v8113_v7  ;;  %p10672_p8 = scmp.lt.s32.totalorder %s10670_s9, %s10666_s19 }
  0x4d   : > { %v10065_v10 = vld [vmem:[#allocation5 + $0x7dc] sm:$0xf0]  ;;  %p10668_p3 = pnand %p10667_p1, %p10872_p13 }
  0x4e   : > { %v7824_v11 = vld [vmem:[#allocation5 + $0x180] sm:$0xf]  ;;  %v8625_v12 = vor.u32 %v10065_v10, %v8624_v9  ;;  %2129 = vmatpush.bf16.msra.mxu2 %v8369_v8  ;;  %p10673_p7 = por %p10672_p8, %p10671_p12 }
  0x4f   : > { %v9865_v13 = vld [vmem:[#allocation5 + $0x19c] sm:$0xf0]  ;;  %p10669_p5 = pneg %p10668_p3 }
  0x50   : > { %v8080_v14 = vld [vmem:[#allocation5 + $0x380] sm:$0xf]  ;;  %v7825_v16 = vor.u32 %v9865_v13, %v7824_v11  ;;  %2178 = vmatpush.bf16.msra.mxu3 %v8625_v12 }
  0x51   : > { %v9929_v15 = vld [vmem:[#allocation5 + $0x39c] sm:$0xf0]  ;;  %p10674_p9 = pnand %p10673_p7, %p10669_p5 }
  0x52   : > { %v8081_v17 = vor.u32 %v9929_v15, %v8080_v14  ;;  %v8336_v18 = vld [vmem:[#allocation5 + $0x580] sm:$0xf]  ;;  %2032 = vmatpush.bf16.msra.mxu0 %v7825_v16 }
  0x53   : > { %v9993_v19 = vld [vmem:[#allocation5 + $0x59c] sm:$0xf0] }
  0x54   : > { %v8592_v20 = vld [vmem:[#allocation5 + $0x780] sm:$0xf]  ;;  %v8337_v21 = vor.u32 %v9993_v19, %v8336_v18  ;;  %2081 = vmatpush.bf16.msra.mxu1 %v8081_v17 }
  0x55   : > { %v10057_v22 = vld [vmem:[#allocation5 + $0x79c] sm:$0xf0] }
  0x56   : > { %v7792_v23 = vld [vmem:[#allocation5 + $0x140] sm:$0xf]  ;;  %v8593_v25 = vor.u32 %v10057_v22, %v8592_v20  ;;  %2130 = vmatpush.bf16.msra.mxu2 %v8337_v21 }
  0x57   : > { %v9857_v24 = vld [vmem:[#allocation5 + $0x15c] sm:$0xf0] }
  0x58   : > { %v8048_v26 = vld [vmem:[#allocation5 + $0x340] sm:$0xf]  ;;  %v7793_v29 = vor.u32 %v9857_v24, %v7792_v23  ;;  %2179 = vmatpush.bf16.msra.mxu3 %v8593_v25 }
  0x59   : > { %v9921_v27 = vld [vmem:[#allocation5 + $0x35c] sm:$0xf0] }
  0x5a   : > { %v8304_v28 = vld [vmem:[#allocation5 + $0x540] sm:$0xf]  ;;  %v8049_v33 = vor.u32 %v9921_v27, %v8048_v26  ;;  %2033 = vmatpush.bf16.msra.mxu0 %v7793_v29 }
  0x5b   : > { %v9985_v30 = vld [vmem:[#allocation5 + $0x55c] sm:$0xf0] }
  0x5c   : > { %v8560_v31 = vld [vmem:[#allocation5 + $0x740] sm:$0xf]  ;;  %v8305_v34 = vor.u32 %v9985_v30, %v8304_v28  ;;  %2082 = vmatpush.bf16.msra.mxu1 %v8049_v33  ;;  %v382_v30 = vld [vmem:[%s10910_s21 + $0x8] sm:$0xff]  ;;  %v8370_v33 = vld [vmem:[#allocation5 + $0x5e0] sm:$0xf0] }
  0x5d   : > { %v10049_v32 = vld [vmem:[#allocation5 + $0x75c] sm:$0xf0] }
  0x5e   : > { %v7760_v35 = vld [vmem:[#allocation5 + $0x100] sm:$0xf]  ;;  %v8561_v38 = vor.u32 %v10049_v32, %v8560_v31  ;;  %2131 = vmatpush.bf16.msra.mxu2 %v8305_v34  ;;  %v386_v31 = vld [vmem:[%s10910_s21 + $0x28] sm:$0xff]  ;;  %v9997_v32 = vld [vmem:[#allocation5 + $0x5c4] sm:$0xf] }
  0x5f   : > { %v9849_v36 = vld [vmem:[#allocation5 + $0x11c] sm:$0xf0] }
  0x60   : > { %v8016_v37 = vld [vmem:[#allocation5 + $0x300] sm:$0xf]  ;;  %v7761_v44 = vor.u32 %v9849_v36, %v7760_v35  ;;  %2180 = vmatpush.bf16.msra.mxu3 %v8561_v38  ;;  %v383_v35 = vld [vmem:[%s10910_s21 + $0x10] sm:$0xff]  ;;  %v10061_v36 = vld [vmem:[#allocation5 + $0x7c4] sm:$0xf] }
  0x61   : > { %v9913_v39 = vld [vmem:[#allocation5 + $0x31c] sm:$0xf0] }
  0x62   : > { %v8272_v40 = vld [vmem:[#allocation5 + $0x500] sm:$0xf]  ;;  %v8017_v45 = vor.u32 %v9913_v39, %v8016_v37  ;;  %2034 = vmatpush.bf16.msra.mxu0 %v7761_v44  ;;  %v8626_v37 = vld [vmem:[#allocation5 + $0x7e0] sm:$0xf0]  ;;  %v8373_v44 = vor.u32 %v9997_v32, %v8370_v33 }
  0x63   : > { %v9977_v41 = vld [vmem:[#allocation5 + $0x51c] sm:$0xf0]  ;;  %v7762_v32 = vld [vmem:[#allocation5 + $0x120] sm:$0xf0] }
  0x64   : > { %v8528_v42 = vld [vmem:[#allocation5 + $0x700] sm:$0xf]  ;;  %v8273_v46 = vor.u32 %v9977_v41, %v8272_v40  ;;  %2083 = vmatpush.bf16.msra.mxu1 %v8017_v45  ;;  %v387_v40 = vld [vmem:[%s10910_s21 + $0x30] sm:$0xff]  ;;  %v384_v41 = vld [vmem:[%s10910_s21 + $0x18] sm:$0xff] }
  0x65   : > { %v10041_v43 = vld [vmem:[#allocation5 + $0x71c] sm:$0xf0]  ;;  %v9869_v45 = vld [vmem:[#allocation5 + $0x1c4] sm:$0xf] }
  0x66   : > { %v7728_v47 = vld [vmem:[#allocation5 + $0xc0] sm:$0xf]  ;;  %v8529_v50 = vor.u32 %v10041_v43, %v8528_v42  ;;  %2132 = vmatpush.bf16.msra.mxu2 %v8273_v46  ;;  %v388_v42 = vld [vmem:[%s10910_s21 + $0x38] sm:$0xff]  ;;  %v7858_v46 = vld [vmem:[#allocation5 + $0x1e0] sm:$0xf0] }
  0x67   : > { %v9841_v48 = vld [vmem:[#allocation5 + $0xdc] sm:$0xf0]  ;;  %v10037_v33 = vld [vmem:[#allocation5 + $0x704] sm:$0xf] }
  0x68   : > { %v7984_v49 = vld [vmem:[#allocation5 + $0x2c0] sm:$0xf]  ;;  %v7729_v56 = vor.u32 %v9841_v48, %v7728_v47  ;;  %2181 = vmatpush.bf16.msra.mxu3 %v8529_v50  ;;  %v9933_v47 = vld [vmem:[#allocation5 + $0x3c4] sm:$0xf] }
  0x69   : > { %v9905_v51 = vld [vmem:[#allocation5 + $0x2dc] sm:$0xf0]  ;;  %v8114_v50 = vld [vmem:[#allocation5 + $0x3e0] sm:$0xf0] }
  0x6a   : > { %v8240_v52 = vld [vmem:[#allocation5 + $0x4c0] sm:$0xf]  ;;  %v7985_v57 = vor.u32 %v9905_v51, %v7984_v49  ;;  %2035 = vmatpush.bf16.msra.mxu0 %v7729_v56  ;;  %v8629_v49 = vor.u32 %v10061_v36, %v8626_v37  ;;  %v9989_v51 = vld [vmem:[#allocation5 + $0x584] sm:$0xf] }
  0x6b   : > { %v9969_v53 = vld [vmem:[#allocation5 + $0x4dc] sm:$0xf0]  ;;  %v8594_v56 = vld [vmem:[#allocation5 + $0x7a0] sm:$0xf0] }
  0x6c   : > { %v8496_v54 = vld [vmem:[#allocation5 + $0x6c0] sm:$0xf]  ;;  %v8241_v58 = vor.u32 %v9969_v53, %v8240_v52  ;;  %2084 = vmatpush.bf16.msra.mxu1 %v7985_v57  ;;  %v8338_v52 = vld [vmem:[#allocation5 + $0x5a0] sm:$0xf0]  ;;  %v10938_v53 = vpack.c.bf16 %v386_v31, %v382_v30  ;;  %v10942_v57 = vpack.c.bf16 %v388_v42, %v384_v41  ;;  %v398_v42 = vld [vmem:[%s10910_s21 + $0x88] sm:$0xff] }
  0x6d   : > { %v10033_v55 = vld [vmem:[#allocation5 + $0x6dc] sm:$0xf0]  ;;  %v9845_v30 = vld [vmem:[#allocation5 + $0x104] sm:$0xf] }
  0x6e   : > { %v7696_v59 = vld [vmem:[#allocation5 + $0x80] sm:$0xf]  ;;  %v8497_v62 = vor.u32 %v10033_v55, %v8496_v54  ;;  %2133 = vmatpush.bf16.msra.mxu2 %v8241_v58  ;;  %v10940_v54 = vpack.c.bf16 %v387_v40, %v383_v35  ;;  %v10053_v55 = vld [vmem:[#allocation5 + $0x784] sm:$0xf]  ;;  %v7861_v58 = vor.u32 %v9869_v45, %v7858_v46  ;;  %v7765_v35 = vor.u32 %v9845_v30, %v7762_v32  ;;  %v403_v45 = vld [vmem:[%s10910_s21 + $0xb0] sm:$0xff] }
  0x6f   : > { %v9833_v60 = vld [vmem:[#allocation5 + $0x9c] sm:$0xf0]  ;;  %v9909_v37 = vld [vmem:[#allocation5 + $0x304] sm:$0xf]  ;;  %v400_v46 = vld [vmem:[%s10910_s21 + $0x98] sm:$0xff] }
  0x70   : > { %v7952_v61 = vld [vmem:[#allocation5 + $0x280] sm:$0xf]  ;;  %v7697_v4 = vor.u32 %v9833_v60, %v7696_v59  ;;  %2182 = vmatpush.bf16.msra.mxu3 %v8497_v62  ;;  %v8117_v59 = vor.u32 %v9933_v47, %v8114_v50  ;;  %v8341_v60 = vor.u32 %v9989_v51, %v8338_v52  ;;  %v7826_v62 = vld [vmem:[#allocation5 + $0x1a0] sm:$0xf0]  ;;  %v404_v47 = vld [vmem:[%s10910_s21 + $0xb8] sm:$0xff] }
  0x71   : > { %v9897_v63 = vld [vmem:[#allocation5 + $0x29c] sm:$0xf0]  ;;  %v10982_v52 = vpack.c.bf16 %v404_v47, %v400_v46  ;;  %v7954_v30 = vld [vmem:[#allocation5 + $0x2a0] sm:$0xf0] }
  0x72   : > { %v8208_v0 = vld [vmem:[#allocation5 + $0x480] sm:$0xf]  ;;  %v7953_v5 = vor.u32 %v9897_v63, %v7952_v61  ;;  %2036 = vmatpush.bf16.msra.mxu0 %v7697_v4  ;;  %v9861_v61 = vld [vmem:[#allocation5 + $0x184] sm:$0xf]  ;;  %v8597_v63 = vor.u32 %v10053_v55, %v8594_v56 }
  0x73   : > { %v9961_v1 = vld [vmem:[#allocation5 + $0x49c] sm:$0xf0]  ;;  %v8306_v4 = vld [vmem:[#allocation5 + $0x560] sm:$0xf0] }
  0x74   : > { %v8464_v2 = vld [vmem:[#allocation5 + $0x680] sm:$0xf]  ;;  %v8209_v6 = vor.u32 %v9961_v1, %v8208_v0  ;;  %2085 = vmatpush.bf16.msra.mxu1 %v7953_v5  ;;  %v9925_v0 = vld [vmem:[#allocation5 + $0x384] sm:$0xf] }
  0x75   : > { %v10025_v3 = vld [vmem:[#allocation5 + $0x69c] sm:$0xf0]  ;;  %v8082_v1 = vld [vmem:[#allocation5 + $0x3a0] sm:$0xf0] }
  0x76   : > { %v7664_v7 = vld [vmem:[#allocation5 + $0x40] sm:$0xf]  ;;  %v8465_v10 = vor.u32 %v10025_v3, %v8464_v2  ;;  %2134 = vmatpush.bf16.msra.mxu2 %v8209_v6  ;;  %v7829_v2 = vor.u32 %v9861_v61, %v7826_v62  ;;  %v9981_v3 = vld [vmem:[#allocation5 + $0x544] sm:$0xf]  ;;  %v8085_v6 = vor.u32 %v9925_v0, %v8082_v1 }
  0x77   : > { %v9825_v8 = vld [vmem:[#allocation5 + $0x5c] sm:$0xf0]  ;;  %v9853_v5 = vld [vmem:[#allocation5 + $0x144] sm:$0xf] }
  0x78   : > { %v7920_v9 = vld [vmem:[#allocation5 + $0x240] sm:$0xf]  ;;  %v7665_v17 = vor.u32 %v9825_v8, %v7664_v7  ;;  %2183 = vmatpush.bf16.msra.mxu3 %v8465_v10  ;;  %v8309_v7 = vor.u32 %v9981_v3, %v8306_v4  ;;  %v7794_v8 = vld [vmem:[#allocation5 + $0x160] sm:$0xf0] }
  0x79   : > { %v9889_v11 = vld [vmem:[#allocation5 + $0x25c] sm:$0xf0]  ;;  %v8562_v10 = vld [vmem:[#allocation5 + $0x760] sm:$0xf0] }
  0x7a   : > { %v8176_v12 = vld [vmem:[#allocation5 + $0x440] sm:$0xf]  ;;  %v7921_v21 = vor.u32 %v9889_v11, %v7920_v9  ;;  %2037 = vmatpush.bf16.msra.mxu0 %v7665_v17  ;;  %v10045_v9 = vld [vmem:[#allocation5 + $0x744] sm:$0xf] }
  0x7b   : > { %v9953_v13 = vld [vmem:[#allocation5 + $0x45c] sm:$0xf0]  ;;  %v8565_v11 = vor.u32 %v10045_v9, %v8562_v10  ;;  %v9965_v55 = vld [vmem:[#allocation5 + $0x4c4] sm:$0xf]  ;;  %v411_v9 = vld [vmem:[%s10910_s21 + $0xf0] sm:$0xff] }
  0x7c   : > { %v8432_v14 = vld [vmem:[#allocation5 + $0x640] sm:$0xf]  ;;  %v8177_v22 = vor.u32 %v9953_v13, %v8176_v12  ;;  %2086 = vmatpush.bf16.msra.mxu1 %v7921_v21  ;;  %v9917_v12 = vld [vmem:[#allocation5 + $0x344] sm:$0xf]  ;;  %v395_v21 = vld [vmem:[%s10910_s21 + $0x70] sm:$0xff] }
  0x7d   : > { %v10017_v15 = vld [vmem:[#allocation5 + $0x65c] sm:$0xf0]  ;;  %v8050_v13 = vld [vmem:[#allocation5 + $0x360] sm:$0xf0]  ;;  %v408_v10 = vld [vmem:[%s10910_s21 + $0xd8] sm:$0xff] }
  0x7e   : > { %v7632_v16 = vld [vmem:[#allocation5] sm:$0xf]  ;;  %v8433_v26 = vor.u32 %v10017_v15, %v8432_v14  ;;  %2135 = vmatpush.bf16.msra.mxu2 %v8177_v22  ;;  %v7797_v14 = vor.u32 %v9853_v5, %v7794_v8  ;;  %v8053_v15 = vor.u32 %v9917_v12, %v8050_v13  ;;  %v392_v22 = vld [vmem:[%s10910_s21 + $0x58] sm:$0xff]  ;;  %v8242_v56 = vld [vmem:[#allocation5 + $0x4e0] sm:$0xf0] }
  0x7f   : > { %v9817_v18 = vld [vmem:[#allocation5 + $0x1c] sm:$0xf0]  ;;  %v10029_v61 = vld [vmem:[#allocation5 + $0x6c4] sm:$0xf]  ;;  %v407_v8 = vld [vmem:[%s10910_s21 + $0xd0] sm:$0xff] }
  0x80   : > { %v7888_v19 = vld [vmem:[#allocation5 + $0x200] sm:$0xf]  ;;  %v7633_v34 = vor.u32 %v9817_v18, %v7632_v16  ;;  %2184 = vmatpush.bf16.msra.mxu3 %v8433_v26  ;;  %v390_v18 = vld [vmem:[%s10910_s21 + $0x48] sm:$0xff]  ;;  %v8498_v62 = vld [vmem:[#allocation5 + $0x6e0] sm:$0xf0] }
  0x81   : > { %v9881_v20 = vld [vmem:[#allocation5 + $0x21c] sm:$0xf0]  ;;  %v8501_v0 = vor.u32 %v10029_v61, %v8498_v62  ;;  %v9901_v1 = vld [vmem:[#allocation5 + $0x2c4] sm:$0xf] }
  0x82   : > { %v8144_v23 = vld [vmem:[#allocation5 + $0x400] sm:$0xf]  ;;  %v7889_v38 = vor.u32 %v9881_v20, %v7888_v19  ;;  %2038 = vmatpush.bf16.msra.mxu0 %v7633_v34  ;;  %v394_v19 = vld [vmem:[%s10910_s21 + $0x68] sm:$0xff]  ;;  %v391_v20 = vld [vmem:[%s10910_s21 + $0x50] sm:$0xff] }
  0x83   : > { %v9945_v24 = vld [vmem:[#allocation5 + $0x41c] sm:$0xf0]  ;;  %v10960_v26 = vpack.c.bf16 %v395_v21, %v391_v20  ;;  %v8530_v34 = vld [vmem:[#allocation5 + $0x720] sm:$0xf0] }
  0x84   : > { %v8400_v25 = vld [vmem:[#allocation5 + $0x600] sm:$0xf]  ;;  %v8145_v39 = vor.u32 %v9945_v24, %v8144_v23  ;;  %2087 = vmatpush.bf16.msra.mxu1 %v7889_v38  ;;  %v396_v23 = vld [vmem:[%s10910_s21 + $0x78] sm:$0xff]  ;;  %v8533_v36 = vor.u32 %v10037_v33, %v8530_v34  ;;  %v8018_v38 = vld [vmem:[#allocation5 + $0x320] sm:$0xf0] }
  0x85   : > { %v10009_v27 = vld [vmem:[#allocation5 + $0x61c] sm:$0xf0]  ;;  %v7698_v20 = vld [vmem:[#allocation5 + $0xa0] sm:$0xf0]  ;;  %v414_v34 = vld [vmem:[%s10910_s21 + $0x108] sm:$0xff] }
  0x86   : > { %v381_v28 = vld [vmem:[%s10910_s21] sm:$0xff]  ;;  %v8401_v43 = vor.u32 %v10009_v27, %v8400_v25  ;;  %2136 = vmatpush.bf16.msra.mxu2 %v8145_v39  ;;  %2227 = vmatpush.bf16.msrb.mxu0 %v7861_v58  ;;  %v10958_v25 = vpack.c.bf16 %v394_v19, %v390_v18  ;;  %v10962_v27 = vpack.c.bf16 %v396_v23, %v392_v22 }
  0x87   : > { %v385_v29 = vld [vmem:[%s10910_s21 + $0x20] sm:$0xff]  ;;  %2088 = vmatmul.bf16.vlgmr.msra.gmra.mxu1 %v10938_v53  ;;  %v8021_v39 = vor.u32 %v9909_v37, %v8018_v38  ;;  %v419_v37 = vld [vmem:[%s10910_s21 + $0x130] sm:$0xff]  ;;  %v416_v38 = vld [vmem:[%s10910_s21 + $0x118] sm:$0xff] }
  0x88   : > { %v10936_v48 = vpack.c.bf16 %v385_v29, %v381_v28  ;;  %2185 = vmatpush.bf16.msra.mxu3 %v8401_v43  ;;  %2276 = vmatpush.bf16.msrb.mxu1 %v8117_v59  ;;  %v389_v16 = vld [vmem:[%s10910_s21 + $0x40] sm:$0xff]  ;;  %v402_v43 = vld [vmem:[%s10910_s21 + $0xa8] sm:$0xff]  ;;  %v8245_v59 = vor.u32 %v9965_v55, %v8242_v56 }
  0x89   : > { %2137 = vmatmul.bf16.vlgmr.msra.gmra.mxu2 %v10940_v54  ;;  %v393_v17 = vld [vmem:[%s10910_s21 + $0x60] sm:$0xff]  ;;  %v10978_v50 = vpack.c.bf16 %v402_v43, %v398_v42 }
  0x8a   : > { %2325 = vmatpush.bf16.msrb.mxu2 %v8373_v44  ;;  %2039 = vmatmul.bf16.vlgmr.msra.gmra.mxu0 %v10936_v48  ;;  %v10956_v24 = vpack.c.bf16 %v393_v17, %v389_v16  ;;  %v9973_v28 = vld [vmem:[#allocation5 + $0x504] sm:$0xf]  ;;  %v399_v44 = vld [vmem:[%s10910_s21 + $0x90] sm:$0xff] }
  0x8b   : > { %2186 = vmatmul.bf16.vlgmr.msra.gmra.mxu3 %v10942_v57  ;;  %2228 = vmatpush.bf16.msrb.mxu0 %v7829_v2  ;;  %v8274_v29 = vld [vmem:[#allocation5 + $0x520] sm:$0xf0]  ;;  %v10980_v51 = vpack.c.bf16 %v403_v45, %v399_v44 }
  0x8c   : > { %2374 = vmatpush.bf16.msrb.mxu3 %v8629_v49  ;;  %2277 = vmatpush.bf16.msrb.mxu1 %v8085_v6  ;;  %v8277_v31 = vor.u32 %v9973_v28, %v8274_v29  ;;  %v397_v40 = vld [vmem:[%s10910_s21 + $0x80] sm:$0xff]  ;;  %v406_v6 = vld [vmem:[%s10910_s21 + $0xc8] sm:$0xff] }
  0x8d   : > { %v401_v41 = vld [vmem:[%s10910_s21 + $0xa0] sm:$0xff] }
  0x8e   : > { %2326 = vmatpush.bf16.msrb.mxu2 %v8341_v60  ;;  %v10976_v49 = vpack.c.bf16 %v401_v41, %v397_v40  ;;  %v9837_v58 = vld [vmem:[#allocation5 + $0xc4] sm:$0xf] }
  0x8f   : > { %2229 = vmatpush.bf16.msrb.mxu0 %v7797_v14  ;;  %v7730_v60 = vld [vmem:[#allocation5 + $0xe0] sm:$0xf0]  ;;  %v11000_v14 = vpack.c.bf16 %v411_v9, %v407_v8 }
  0x90   : > { %2375 = vmatpush.bf16.msrb.mxu3 %v8597_v63  ;;  %2278 = vmatpush.bf16.msrb.mxu1 %v8053_v15  ;;  %v7733_v63 = vor.u32 %v9837_v58, %v7730_v60  ;;  %v7986_v2 = vld [vmem:[#allocation5 + $0x2e0] sm:$0xf0] }
  0x91   : > { %v7989_v3 = vor.u32 %v9901_v1, %v7986_v2  ;;  %v405_v4 = vld [vmem:[%s10910_s21 + $0xc0] sm:$0xff]  ;;  %v422_v2 = vld [vmem:[%s10910_s21 + $0x148] sm:$0xff] }
  0x92   : > { %2327 = vmatpush.bf16.msrb.mxu2 %v8309_v7  ;;  %v409_v5 = vld [vmem:[%s10910_s21 + $0xe0] sm:$0xff]  ;;  %v410_v7 = vld [vmem:[%s10910_s21 + $0xe8] sm:$0xff] }
  0x93   : > { %2230 = vmatpush.bf16.msrb.mxu0 %v7765_v35  ;;  %v10996_v12 = vpack.c.bf16 %v409_v5, %v405_v4  ;;  %v10998_v13 = vpack.c.bf16 %v410_v7, %v406_v6  ;;  %v9957_v16 = vld [vmem:[#allocation5 + $0x484] sm:$0xf]  ;;  %v418_v35 = vld [vmem:[%s10910_s21 + $0x128] sm:$0xff]  ;;  %v423_v4 = vld [vmem:[%s10910_s21 + $0x150] sm:$0xff] }
  0x94   : > { %2376 = vmatpush.bf16.msrb.mxu3 %v8565_v11  ;;  %2279 = vmatpush.bf16.msrb.mxu1 %v8021_v39  ;;  %v412_v11 = vld [vmem:[%s10910_s21 + $0xf8] sm:$0xff]  ;;  %v8210_v17 = vld [vmem:[#allocation5 + $0x4a0] sm:$0xf0]  ;;  %v11018_v41 = vpack.c.bf16 %v418_v35, %v414_v34  ;;  %v427_v5 = vld [vmem:[%s10910_s21 + $0x170] sm:$0xff] }
  0x95   : > { %v11002_v15 = vpack.c.bf16 %v412_v11, %v408_v10  ;;  %v9829_v18 = vld [vmem:[#allocation5 + $0x84] sm:$0xf]  ;;  %v8213_v19 = vor.u32 %v9957_v16, %v8210_v17  ;;  %v420_v39 = vld [vmem:[%s10910_s21 + $0x138] sm:$0xff]  ;;  %v11040_v10 = vpack.c.bf16 %v427_v5, %v423_v4  ;;  %v430_v34 = vld [vmem:[%s10910_s21 + $0x188] sm:$0xff] }
  0x96   : > { %2328 = vmatpush.bf16.msrb.mxu2 %v8277_v31  ;;  %v10021_v21 = vld [vmem:[#allocation5 + $0x684] sm:$0xf]  ;;  %v7701_v23 = vor.u32 %v9829_v18, %v7698_v20  ;;  %v11022_v43 = vpack.c.bf16 %v420_v39, %v416_v38  ;;  %v424_v6 = vld [vmem:[%s10910_s21 + $0x158] sm:$0xff]  ;;  %v434_v35 = vld [vmem:[%s10910_s21 + $0x1a8] sm:$0xff] }
  0x97   : > { %2093 = vmatmul.bf16.gmra.mxu1 %v10958_v25  ;;  %2231 = vmatpush.bf16.msrb.mxu0 %v7733_v63  ;;  %v8466_v22 = vld [vmem:[#allocation5 + $0x6a0] sm:$0xf0]  ;;  %v428_v7 = vld [vmem:[%s10910_s21 + $0x178] sm:$0xff]  ;;  %v8120_v4 = vld [vmem:[#allocation5 + $0x3c8] sm:$0xf] }
  0x98   : > { %2377 = vmatpush.bf16.msrb.mxu3 %v8533_v36  ;;  %2280 = vmatpush.bf16.msrb.mxu1 %v7989_v3  ;;  %v8469_v28 = vor.u32 %v10021_v21, %v8466_v22  ;;  %v9893_v29 = vld [vmem:[#allocation5 + $0x284] sm:$0xf]  ;;  %v415_v36 = vld [vmem:[%s10910_s21 + $0x110] sm:$0xff]  ;;  %v426_v3 = vld [vmem:[%s10910_s21 + $0x168] sm:$0xff]  ;;  %v11042_v11 = vpack.c.bf16 %v428_v7, %v424_v6 }
  0x99   : > { %2142 = vmatmul.bf16.gmra.mxu2 %v10960_v26  ;;  %v7957_v31 = vor.u32 %v9893_v29, %v7954_v30  ;;  %v413_v32 = vld [vmem:[%s10910_s21 + $0x100] sm:$0xff]  ;;  %v11020_v42 = vpack.c.bf16 %v419_v37, %v415_v36  ;;  %v11038_v9 = vpack.c.bf16 %v426_v3, %v422_v2  ;;  %v431_v36 = vld [vmem:[%s10910_s21 + $0x190] sm:$0xff]  ;;  %v432_v38 = vld [vmem:[%s10910_s21 + $0x198] sm:$0xff] }
  0x9a   : > { %2044 = vmatmul.bf16.gmra.mxu0 %v10956_v24  ;;  %2329 = vmatpush.bf16.msrb.mxu2 %v8245_v59  ;;  %v417_v33 = vld [vmem:[%s10910_s21 + $0x120] sm:$0xff]  ;;  %v435_v37 = vld [vmem:[%s10910_s21 + $0x1b0] sm:$0xff]  ;;  %v436_v39 = vld [vmem:[%s10910_s21 + $0x1b8] sm:$0xff] }
  0x9b   : > { %2191 = vmatmul.bf16.gmra.mxu3 %v10962_v27  ;;  %2232 = vmatpush.bf16.msrb.mxu0 %v7701_v23  ;;  %v11016_v40 = vpack.c.bf16 %v417_v33, %v413_v32  ;;  %v9949_v44 = vld [vmem:[#allocation5 + $0x444] sm:$0xf]  ;;  %v438_v3 = vld [vmem:[%s10910_s21 + $0x1c8] sm:$0xff]  ;;  %v439_v7 = vld [vmem:[%s10910_s21 + $0x1d0] sm:$0xff] }
  0x9c   : > { %2378 = vmatpush.bf16.msrb.mxu3 %v8501_v0  ;;  %2281 = vmatpush.bf16.msrb.mxu1 %v7957_v31  ;;  %v8178_v45 = vld [vmem:[#allocation5 + $0x460] sm:$0xf0]  ;;  %v9938_v5 = vld [vmem:[#allocation5 + $0x3e4] sm:$0xf0] }
  0x9d   : > { %v9821_v46 = vld [vmem:[#allocation5 + $0x44] sm:$0xf]  ;;  %v8181_v47 = vor.u32 %v9949_v44, %v8178_v45  ;;  %v11058_v45 = vpack.c.bf16 %v434_v35, %v430_v34  ;;  %v442_v6 = vld [vmem:[%s10910_s21 + $0x1e8] sm:$0xff] }
  0x9e   : > { %2330 = vmatpush.bf16.msrb.mxu2 %v8213_v19  ;;  %v7666_v55 = vld [vmem:[#allocation5 + $0x60] sm:$0xf0]  ;;  %v10058_v34 = vld [vmem:[#allocation5 + $0x7a4] sm:$0xf0] }
  0x9f   : > { %v10013_v56 = vld [vmem:[#allocation5 + $0x644] sm:$0xf]  ;;  %v7669_v59 = vor.u32 %v9821_v46, %v7666_v55  ;;  %v11060_v46 = vpack.c.bf16 %v435_v37, %v431_v36  ;;  %v8376_v55 = vld [vmem:[#allocation5 + $0x5c8] sm:$0xf] }
  0xa0   : > { %2379 = vmatpush.bf16.msrb.mxu3 %v8469_v28  ;;  %v8434_v58 = vld [vmem:[#allocation5 + $0x660] sm:$0xf0] }
  0xa1   : > { %v8437_v60 = vor.u32 %v10013_v56, %v8434_v58  ;;  %v9885_v61 = vld [vmem:[#allocation5 + $0x244] sm:$0xf]  ;;  %2233 = vmatpush.bf16.msrb.mxu0 %v7669_v59  ;;  %v10002_v56 = vld [vmem:[#allocation5 + $0x5e4] sm:$0xf0] }
  0xa2   : > { %v7922_v62 = vld [vmem:[#allocation5 + $0x260] sm:$0xf0]  ;;  %2331 = vmatpush.bf16.msrb.mxu2 %v8181_v47  ;;  %v11062_v47 = vpack.c.bf16 %v436_v39, %v432_v38  ;;  %v7864_v58 = vld [vmem:[#allocation5 + $0x1c8] sm:$0xf]  ;;  %v8377_v59 = vor.u32 %v10002_v56, %v8376_v55 }
  0xa3   : > { %v7925_v63 = vor.u32 %v9885_v61, %v7922_v62  ;;  %v421_v0 = vld [vmem:[%s10910_s21 + $0x140] sm:$0xff]  ;;  %v8632_v61 = vld [vmem:[#allocation5 + $0x7c8] sm:$0xf] }
  0xa4   : > { %2380 = vmatpush.bf16.msrb.mxu3 %v8437_v60  ;;  %v425_v1 = vld [vmem:[%s10910_s21 + $0x160] sm:$0xff]  ;;  %v9874_v60 = vld [vmem:[#allocation5 + $0x1e4] sm:$0xf0] }
  0xa5   : > { %2282 = vmatpush.bf16.msrb.mxu1 %v7925_v63  ;;  %v11036_v8 = vpack.c.bf16 %v425_v1, %v421_v0  ;;  %v9941_v16 = vld [vmem:[#allocation5 + $0x404] sm:$0xf]  ;;  %v10066_v62 = vld [vmem:[#allocation5 + $0x7e4] sm:$0xf0]  ;;  %v7865_v63 = vor.u32 %v9874_v60, %v7864_v58 }
  0xa6   : > { %v8146_v17 = vld [vmem:[#allocation5 + $0x420] sm:$0xf0]  ;;  %v8633_v0 = vor.u32 %v10066_v62, %v8632_v61  ;;  %v8088_v38 = vld [vmem:[#allocation5 + $0x388] sm:$0xf] }
  0xa7   : > { %2098 = vmatmul.bf16.gmra.mxu1 %v10978_v50  ;;  %v9813_v18 = vld [vmem:[#allocation5 + $0x4] sm:$0xf]  ;;  %v8149_v19 = vor.u32 %v9941_v16, %v8146_v17  ;;  %v443_v16 = vld [vmem:[%s10910_s21 + $0x1f0] sm:$0xff]  ;;  %v8121_v17 = vor.u32 %v9938_v5, %v8120_v4  ;;  %v9930_v39 = vld [vmem:[#allocation5 + $0x3a4] sm:$0xf0] }
  0xa8   : > { %v7634_v20 = vld [vmem:[#allocation5 + $0x20] sm:$0xf0]  ;;  %v8089_v56 = vor.u32 %v9930_v39, %v8088_v38  ;;  %v8312_v62 = vld [vmem:[#allocation5 + $0x548] sm:$0xf] }
  0xa9   : > { %2147 = vmatmul.bf16.gmra.mxu2 %v10980_v51  ;;  %v10005_v21 = vld [vmem:[#allocation5 + $0x604] sm:$0xf]  ;;  %v7637_v23 = vor.u32 %v9813_v18, %v7634_v20  ;;  %v440_v18 = vld [vmem:[%s10910_s21 + $0x1d8] sm:$0xff]  ;;  %v8568_v4 = vld [vmem:[#allocation5 + $0x748] sm:$0xf] }
  0xaa   : > { %2049 = vmatmul.bf16.gmra.mxu0 %v10976_v49  ;;  %v8402_v22 = vld [vmem:[#allocation5 + $0x620] sm:$0xf0]  ;;  %2332 = vmatpush.bf16.msrb.mxu2 %v8149_v19  ;;  %v444_v19 = vld [vmem:[%s10910_s21 + $0x1f8] sm:$0xff]  ;;  %v10050_v5 = vld [vmem:[#allocation5 + $0x764] sm:$0xf0] }
  0xab   : > { %2196 = vmatmul.bf16.gmra.mxu3 %v10982_v52  ;;  %v8405_v28 = vor.u32 %v10005_v21, %v8402_v22  ;;  %v9877_v29 = vld [vmem:[#allocation5 + $0x204] sm:$0xf]  ;;  %2234 = vmatpush.bf16.msrb.mxu0 %v7637_v23  ;;  %v11078_v21 = vpack.c.bf16 %v442_v6, %v438_v3  ;;  %v11080_v22 = vpack.c.bf16 %v443_v16, %v439_v7  ;;  %v9858_v3 = vld [vmem:[#allocation5 + $0x164] sm:$0xf0] }
  0xac   : > { %v7890_v30 = vld [vmem:[#allocation5 + $0x220] sm:$0xf0]  ;;  %v11082_v23 = vpack.c.bf16 %v444_v19, %v440_v18  ;;  %v8569_v18 = vor.u32 %v10050_v5, %v8568_v4  ;;  %v9850_v4 = vld [vmem:[#allocation5 + $0x124] sm:$0xf0] }
  0xad   : > { %v7893_v31 = vor.u32 %v9877_v29, %v7890_v30  ;;  %2381 = vmatpush.bf16.msrb.mxu3 %v8405_v28  ;;  %v429_v32 = vld [vmem:[%s10910_s21 + $0x180] sm:$0xff]  ;;  %v8344_v28 = vld [vmem:[#allocation5 + $0x588] sm:$0xf] }
  0xae   : > { %v433_v33 = vld [vmem:[%s10910_s21 + $0x1a0] sm:$0xff]  ;;  %2521 = vmatpush.bf16.msra.mxu2 %v8377_v59  ;;  %v9994_v29 = vld [vmem:[#allocation5 + $0x5a4] sm:$0xf0] }
  0xaf   : > { %2283 = vmatpush.bf16.msrb.mxu1 %v7893_v31  ;;  %v11056_v44 = vpack.c.bf16 %v433_v33, %v429_v32  ;;  %2423 = vmatpush.bf16.msra.mxu0 %v7865_v63  ;;  %v437_v1 = vld [vmem:[%s10910_s21 + $0x1c0] sm:$0xff]  ;;  %v7832_v30 = vld [vmem:[#allocation5 + $0x188] sm:$0xf]  ;;  %v8345_v31 = vor.u32 %v9994_v29, %v8344_v28 }
  0xb0   : > { %v441_v2 = vld [vmem:[%s10910_s21 + $0x1e0] sm:$0xff]  ;;  %v9866_v32 = vld [vmem:[#allocation5 + $0x1a4] sm:$0xf0] }
  0xb1   : > { %2570 = vmatpush.bf16.msra.mxu3 %v8633_v0  ;;  %v11076_v20 = vpack.c.bf16 %v441_v2, %v437_v1  ;;  %v8600_v33 = vld [vmem:[#allocation5 + $0x788] sm:$0xf]  ;;  %v7833_v35 = vor.u32 %v9866_v32, %v7832_v30  ;;  %v11088_v37 = vld [vmem:[#allocation7] sm:$0xff] }
  0xb2   : > { %v8601_v36 = vor.u32 %v10058_v34, %v8600_v33  ;;  %2522 = vmatpush.bf16.msra.mxu2 %v8345_v31  ;;  %v11091_v55 = vperm.slane %v11088_v37, 0  ;;  %v9986_v63 = vld [vmem:[#allocation5 + $0x564] sm:$0xf0] }
  0xb3   : > { %2472 = vmatpush.bf16.msra.mxu1 %v8121_v17  ;;  %2424 = vmatpush.bf16.msra.mxu0 %v7833_v35  ;;  %v7800_v0 = vld [vmem:[#allocation5 + $0x148] sm:$0xf]  ;;  %v8313_v2 = vor.u32 %v9986_v63, %v8312_v62 }
  0xb4   : > { %v7801_v17 = vor.u32 %v9858_v3, %v7800_v0  ;;  %v8056_v31 = vld [vmem:[#allocation5 + $0x348] sm:$0xf] }
  0xb5   : > { %2571 = vmatpush.bf16.msra.mxu3 %v8601_v36  ;;  %v9922_v32 = vld [vmem:[#allocation5 + $0x364] sm:$0xf0] }
  0xb6   : > { %2523 = vmatpush.bf16.msra.mxu2 %v8313_v2  ;;  %v8057_v33 = vor.u32 %v9922_v32, %v8056_v31  ;;  %v8280_v63 = vld [vmem:[#allocation5 + $0x508] sm:$0xf] }
  0xb7   : > { %2103 = vmatmul.bf16.gmra.mxu1 %v10998_v13  ;;  %2425 = vmatpush.bf16.msra.mxu0 %v7801_v17  ;;  %v9978_v0 = vld [vmem:[#allocation5 + $0x524] sm:$0xf0] }
  0xb8   : > { %2473 = vmatpush.bf16.msra.mxu1 %v8089_v56  ;;  %v8281_v3 = vor.u32 %v9978_v0, %v8280_v63  ;;  %v8536_v5 = vld [vmem:[#allocation5 + $0x708] sm:$0xf] }
  0xb9   : > { %2152 = vmatmul.bf16.gmra.mxu2 %v11000_v14  ;;  %2572 = vmatpush.bf16.msra.mxu3 %v8569_v18  ;;  %v8024_v32 = vld [vmem:[#allocation5 + $0x308] sm:$0xf] }
  0xba   : > { %2054 = vmatmul.bf16.gmra.mxu0 %v10996_v12  ;;  %2524 = vmatpush.bf16.msra.mxu2 %v8281_v3  ;;  %v7736_v3 = vld [vmem:[#allocation5 + $0xc8] sm:$0xf] }
  0xbb   : > { %2201 = vmatmul.bf16.gmra.mxu3 %v11002_v15 }
  0xbc   : > { %2474 = vmatpush.bf16.msra.mxu1 %v8057_v33  ;;  %v9914_v33 = vld [vmem:[#allocation5 + $0x324] sm:$0xf0] }
  0xc7   : > { %2108 = vmatmul.bf16.gmra.mxu1 %v11018_v41 }
  0xc9   : > { %2157 = vmatmul.bf16.gmra.mxu2 %v11020_v42 }
  0xca   : > { %2059 = vmatmul.bf16.gmra.mxu0 %v11016_v40 }
  0xcb   : > { %2206 = vmatmul.bf16.gmra.mxu3 %v11022_v43 }
  0xd7   : > { %2113 = vmatmul.bf16.gmra.mxu1 %v11038_v9 }
  0xd9   : > { %2162 = vmatmul.bf16.gmra.mxu2 %v11040_v10 }
  0xda   : > { %2064 = vmatmul.bf16.gmra.mxu0 %v11036_v8 }
  0xdb   : > { %2211 = vmatmul.bf16.gmra.mxu3 %v11042_v11 }
  0xe7   : > { %2118 = vmatmul.bf16.gmra.mxu1 %v11058_v45 }
  0xe9   : > { %2167 = vmatmul.bf16.gmra.mxu2 %v11060_v46 }
  0xea   : > { %2069 = vmatmul.bf16.gmra.mxu0 %v11056_v44 }
  0xeb   : > { %2216 = vmatmul.bf16.gmra.mxu3 %v11062_v47 }
  0xf7   : > { %2123 = vmatmul.bf16.gmra.mxu1 %v11078_v21 }
  0xf9   : > { %2172 = vmatmul.bf16.gmra.mxu2 %v11080_v22 }
  0xfa   : > { %2074 = vmatmul.bf16.gmra.mxu0 %v11076_v20 }
  0xfb   : > { %2221 = vmatmul.bf16.gmra.mxu3 %v11082_v23 }
 0x104   : > { %v2089_v60 = vpop.f32.mrf.mxu1 }
 0x107   : > { %v2040_v58 = vpop.f32.mrf.mxu0  ;;  %2284 = vmatmul.bf16.vlgmr.msrb.gmra.mxu1 %v10938_v53 }
 0x108   : > { %v2041_v59 = vadd.f32 %v2040_v58, %v11091_v55 }
 0x109   : > { %2333 = vmatmul.bf16.vlgmr.msrb.gmra.mxu2 %v10940_v54 }
 0x10a   : > { %v2090_v61 = vadd.f32 %v2089_v60, %v2041_v59  ;;  %2235 = vmatmul.bf16.vlgmr.msrb.gmra.mxu0 %v10936_v48 }
 0x10b   : > { %2382 = vmatmul.bf16.vlgmr.msrb.gmra.mxu3 %v10942_v57 }
 0x10c   : > { %v2138_v1 = vpop.f32.mrf.mxu2  ;;  %v2091_v28 = vpop.f32.mrf.mxu1 }
 0x10d   : > { %v2139_v6 = vadd.f32 %v2138_v1, %v2090_v61  ;;  %v7768_v1 = vld [vmem:[#allocation5 + $0x108] sm:$0xf] }
 0x10e   : > { %v2187_v7 = vpop.f32.mrf.mxu3  ;;  %v7769_v18 = vor.u32 %v9850_v4, %v7768_v1  ;;  %v8248_v1 = vld [vmem:[#allocation5 + $0x4c8] sm:$0xf] }
 0x10f   : > { %v2042_v16 = vpop.f32.mrf.mxu0  ;;  %v2188_v29 = vadd.f32 %v2187_v7, %v2139_v6  ;;  %v10042_v6 = vld [vmem:[#allocation5 + $0x724] sm:$0xf0] }
 0x110   : > { %v2043_v19 = vadd.f32 %v2042_v16, %v11091_v55  ;;  %2426 = vmatpush.bf16.msra.mxu0 %v7769_v18 }
 0x111   : > { %v3599_v60 = vmax.f32 %v2188_v29, 0.0 }
 0x112   : > { %v2092_v30 = vadd.f32 %v2091_v28, %v2043_v19  ;;  %v8537_v19 = vor.u32 %v10042_v6, %v8536_v5  ;;  %v9842_v6 = vld [vmem:[#allocation5 + $0xe4] sm:$0xf0] }
 0x114   : > { %v2140_v34 = vpop.f32.mrf.mxu2  ;;  %v2094_v56 = vpop.f32.mrf.mxu1  ;;  %2573 = vmatpush.bf16.msra.mxu3 %v8537_v19 }
 0x115   : > { %v2141_v35 = vadd.f32 %v2140_v34, %v2092_v30  ;;  %v8025_v34 = vor.u32 %v9914_v33, %v8024_v32 }
 0x116   : > { %v2189_v36 = vpop.f32.mrf.mxu3 }
 0x117   : > { %v2045_v38 = vpop.f32.mrf.mxu0  ;;  %v2190_v58 = vadd.f32 %v2189_v36, %v2141_v35  ;;  %2289 = vmatmul.bf16.gmra.mxu1 %v10958_v25 }
 0x118   : > { %v2046_v39 = vadd.f32 %v2045_v38, %v11091_v55  ;;  %2475 = vmatpush.bf16.msra.mxu1 %v8025_v34  ;;  %v7992_v34 = vld [vmem:[#allocation5 + $0x2c8] sm:$0xf] }
 0x119   : > { %v3607_v61 = vmax.f32 %v2190_v58, 0.0  ;;  %2338 = vmatmul.bf16.gmra.mxu2 %v10960_v26 }
 0x11a   : > { %v2095_v59 = vadd.f32 %v2094_v56, %v2046_v39  ;;  %2240 = vmatmul.bf16.gmra.mxu0 %v10956_v24 }
 0x11b   : > { %2387 = vmatmul.bf16.gmra.mxu3 %v10962_v27  ;;  %v11104_v62 = vpack.c.bf16 %v3607_v61, %v3599_v60 }
 0x11c   : > { %v2143_v2 = vpop.f32.mrf.mxu2  ;;  %v2096_v29 = vpop.f32.mrf.mxu1 }
 0x11d   : > { %v2144_v7 = vadd.f32 %v2143_v2, %v2095_v59  ;;  %v9970_v2 = vld [vmem:[#allocation5 + $0x4e4] sm:$0xf0] }
 0x11e   : > { %v2192_v16 = vpop.f32.mrf.mxu3  ;;  %v8249_v5 = vor.u32 %v9970_v2, %v8248_v1 }
 0x11f   : > { %v2047_v17 = vpop.f32.mrf.mxu0  ;;  %v2193_v30 = vadd.f32 %v2192_v16, %v2144_v7  ;;  %v8504_v7 = vld [vmem:[#allocation5 + $0x6c8] sm:$0xf] }
 0x120   : > { %v2048_v28 = vadd.f32 %v2047_v17, %v11091_v55  ;;  %v10034_v16 = vld [vmem:[#allocation5 + $0x6e4] sm:$0xf0]  ;;  %2525 = vmatpush.bf16.msra.mxu2 %v8249_v5 }
 0x121   : > { %v3615_v61 = vmax.f32 %v2193_v30, 0.0  ;;  %v9962_v5 = vld [vmem:[#allocation5 + $0x4a4] sm:$0xf0] }
 0x122   : > { %v2097_v31 = vadd.f32 %v2096_v29, %v2048_v28  ;;  %v7737_v28 = vor.u32 %v9842_v6, %v7736_v3  ;;  %v8505_v29 = vor.u32 %v10034_v16, %v8504_v7  ;;  %v7704_v6 = vld [vmem:[#allocation5 + $0x88] sm:$0xf] }
 0x124   : > { %v2145_v35 = vpop.f32.mrf.mxu2  ;;  %v2099_v58 = vpop.f32.mrf.mxu1  ;;  %2427 = vmatpush.bf16.msra.mxu0 %v7737_v28  ;;  %2574 = vmatpush.bf16.msra.mxu3 %v8505_v29 }
 0x125   : > { %v2146_v36 = vadd.f32 %v2145_v35, %v2097_v31  ;;  %v9906_v35 = vld [vmem:[#allocation5 + $0x2e4] sm:$0xf0] }
 0x126   : > { %v2194_v38 = vpop.f32.mrf.mxu3 }
 0x127   : > { %v2050_v39 = vpop.f32.mrf.mxu0  ;;  %v2195_v59 = vadd.f32 %v2194_v38, %v2146_v36  ;;  %2294 = vmatmul.bf16.gmra.mxu1 %v10978_v50  ;;  %v7993_v36 = vor.u32 %v9906_v35, %v7992_v34 }
 0x128   : > { %v2051_v56 = vadd.f32 %v2050_v39, %v11091_v55 }
 0x129   : > { %v3623_v63 = vmax.f32 %v2195_v59, 0.0  ;;  %2343 = vmatmul.bf16.gmra.mxu2 %v10980_v51  ;;  %2476 = vmatpush.bf16.msra.mxu1 %v7993_v36 }
 0x12a   : > { %v2100_v60 = vadd.f32 %v2099_v58, %v2051_v56  ;;  %2245 = vmatmul.bf16.gmra.mxu0 %v10976_v49 }
 0x12b   : > { %2392 = vmatmul.bf16.gmra.mxu3 %v10982_v52  ;;  %v11112_v0 = vpack.c.bf16 %v3623_v63, %v3615_v61 }
 0x12c   : > { %v2148_v4 = vpop.f32.mrf.mxu2  ;;  %v2101_v31 = vpop.f32.mrf.mxu1 }
 0x12d   : > { %v2149_v17 = vadd.f32 %v2148_v4, %v2100_v60  ;;  %v8216_v4 = vld [vmem:[#allocation5 + $0x488] sm:$0xf] }
 0x12e   : > { %v2197_v18 = vpop.f32.mrf.mxu3  ;;  %v8217_v16 = vor.u32 %v9962_v5, %v8216_v4 }
 0x12f   : > { %v2052_v19 = vpop.f32.mrf.mxu0  ;;  %v2198_v32 = vadd.f32 %v2197_v18, %v2149_v17  ;;  %v9834_v17 = vld [vmem:[#allocation5 + $0xa4] sm:$0xf0] }
 0x130   : > { %v2053_v30 = vadd.f32 %v2052_v19, %v11091_v55  ;;  %v8472_v18 = vld [vmem:[#allocation5 + $0x688] sm:$0xf]  ;;  %2526 = vmatpush.bf16.msra.mxu2 %v8217_v16 }
 0x131   : > { %v3631_v1 = vmax.f32 %v2198_v32, 0.0  ;;  %v10026_v19 = vld [vmem:[#allocation5 + $0x6a4] sm:$0xf0] }
 0x132   : > { %v2102_v33 = vadd.f32 %v2101_v31, %v2053_v30  ;;  %v7705_v31 = vor.u32 %v9834_v17, %v7704_v6  ;;  %v8473_v32 = vor.u32 %v10026_v19, %v8472_v18  ;;  %v8184_v16 = vld [vmem:[#allocation5 + $0x448] sm:$0xf] }
 0x133   : > { %v9954_v17 = vld [vmem:[#allocation5 + $0x464] sm:$0xf0] }
 0x134   : > { %v2150_v38 = vpop.f32.mrf.mxu2  ;;  %v2104_v60 = vpop.f32.mrf.mxu1  ;;  %2428 = vmatpush.bf16.msra.mxu0 %v7705_v31  ;;  %2575 = vmatpush.bf16.msra.mxu3 %v8473_v32  ;;  %v7672_v18 = vld [vmem:[#allocation5 + $0x48] sm:$0xf] }
 0x135   : > { %v2151_v39 = vadd.f32 %v2150_v38, %v2102_v33  ;;  %v7960_v38 = vld [vmem:[#allocation5 + $0x288] sm:$0xf] }
 0x136   : > { %v2199_v56 = vpop.f32.mrf.mxu3  ;;  %v10018_v31 = vld [vmem:[#allocation5 + $0x664] sm:$0xf0] }
 0x137   : > { %v2055_v58 = vpop.f32.mrf.mxu0  ;;  %v2200_v61 = vadd.f32 %v2199_v56, %v2151_v39  ;;  %2299 = vmatmul.bf16.gmra.mxu1 %v10998_v13  ;;  %v9898_v39 = vld [vmem:[#allocation5 + $0x2a4] sm:$0xf0] }
 0x138   : > { %v2056_v59 = vadd.f32 %v2055_v58, %v11091_v55  ;;  %v7961_v56 = vor.u32 %v9898_v39, %v7960_v38 }
 0x139   : > { %v3639_v2 = vmax.f32 %v2200_v61, 0.0  ;;  %2348 = vmatmul.bf16.gmra.mxu2 %v11000_v14 }
 0x13a   : > { %v2105_v63 = vadd.f32 %v2104_v60, %v2056_v59  ;;  %2250 = vmatmul.bf16.gmra.mxu0 %v10996_v12  ;;  %2477 = vmatpush.bf16.msra.mxu1 %v7961_v56 }
 0x13b   : > { %2397 = vmatmul.bf16.gmra.mxu3 %v11002_v15  ;;  %v11120_v3 = vpack.c.bf16 %v3639_v2, %v3631_v1 }
 0x13c   : > { %v2153_v7 = vpop.f32.mrf.mxu2  ;;  %v2106_v34 = vpop.f32.mrf.mxu1 }
 0x13d   : > { %12379 = vst [vmem:[#allocation19_spill] sm:$0xff] %v11120_v3  ;;  %v2154_v28 = vadd.f32 %v2153_v7, %v2105_v63 }
 0x13e   : > { %v2202_v29 = vpop.f32.mrf.mxu3 }
 0x13f   : > { %v2057_v30 = vpop.f32.mrf.mxu0  ;;  %v2203_v35 = vadd.f32 %v2202_v29, %v2154_v28  ;;  %v8185_v28 = vor.u32 %v9954_v17, %v8184_v16  ;;  %v9826_v29 = vld [vmem:[#allocation5 + $0x64] sm:$0xf0] }
 0x140   : > { %v2058_v33 = vadd.f32 %v2057_v30, %v11091_v55  ;;  %v8440_v30 = vld [vmem:[#allocation5 + $0x648] sm:$0xf] }
 0x141   : > { %v3647_v5 = vmax.f32 %v2203_v35, 0.0  ;;  %v7673_v35 = vor.u32 %v9826_v29, %v7672_v18  ;;  %2527 = vmatpush.bf16.msra.mxu2 %v8185_v28  ;;  %v8152_v29 = vld [vmem:[#allocation5 + $0x408] sm:$0xf] }
 0x142   : > { %v2107_v36 = vadd.f32 %v2106_v34, %v2058_v33 }
 0x143   : > { %2429 = vmatpush.bf16.msra.mxu0 %v7673_v35  ;;  %v8408_v35 = vld [vmem:[#allocation5 + $0x608] sm:$0xf] }
 0x144   : > { %v2155_v58 = vpop.f32.mrf.mxu2  ;;  %v2109_v1 = vpop.f32.mrf.mxu1 }
 0x145   : > { %v2156_v59 = vadd.f32 %v2155_v58, %v2107_v36  ;;  %v8441_v36 = vor.u32 %v10018_v31, %v8440_v30  ;;  %v9946_v30 = vld [vmem:[#allocation5 + $0x424] sm:$0xf0] }
 0x146   : > { %v2204_v60 = vpop.f32.mrf.mxu3  ;;  %v7640_v31 = vld [vmem:[#allocation5 + $0x8] sm:$0xf] }
 0x147   : > { %v2060_v61 = vpop.f32.mrf.mxu0  ;;  %v2205_v2 = vadd.f32 %v2204_v60, %v2156_v59  ;;  %2304 = vmatmul.bf16.gmra.mxu1 %v11018_v41  ;;  %2576 = vmatpush.bf16.msra.mxu3 %v8441_v36  ;;  %v7928_v59 = vld [vmem:[#allocation5 + $0x248] sm:$0xf] }
 0x148   : > { %v2061_v63 = vadd.f32 %v2060_v61, %v11091_v55  ;;  %v9890_v60 = vld [vmem:[#allocation5 + $0x264] sm:$0xf0] }
 0x149   : > { %v3655_v6 = vmax.f32 %v2205_v2, 0.0  ;;  %2353 = vmatmul.bf16.gmra.mxu2 %v11020_v42  ;;  %v7929_v61 = vor.u32 %v9890_v60, %v7928_v59  ;;  %v10010_v36 = vld [vmem:[#allocation5 + $0x624] sm:$0xf0] }
 0x14a   : > { %v2110_v4 = vadd.f32 %v2109_v1, %v2061_v63  ;;  %2255 = vmatmul.bf16.gmra.mxu0 %v11016_v40  ;;  %v8409_v59 = vor.u32 %v10010_v36, %v8408_v35  ;;  %v9998_v35 = vld [vmem:[#allocation5 + $0x5cc] sm:$0xf] }
 0x14b   : > { %2402 = vmatmul.bf16.gmra.mxu3 %v11022_v43  ;;  %v11128_v7 = vpack.c.bf16 %v3655_v6, %v3647_v5  ;;  %2478 = vmatpush.bf16.msra.mxu1 %v7929_v61  ;;  %v8378_v36 = vld [vmem:[#allocation5 + $0x5e8] sm:$0xf0] }
 0x14c   : > { %v2158_v19 = vpop.f32.mrf.mxu2  ;;  %v2111_v39 = vpop.f32.mrf.mxu1  ;;  %2577 = vmatpush.bf16.msra.mxu3 %v8409_v59  ;;  %v10062_v59 = vld [vmem:[#allocation5 + $0x7cc] sm:$0xf] }
 0x14d   : > { %12380 = vst [vmem:[#allocation20_spill] sm:$0xff] %v11128_v7  ;;  %v2159_v32 = vadd.f32 %v2158_v19, %v2110_v4 }
 0x14e   : > { %v2207_v33 = vpop.f32.mrf.mxu3 }
 0x14f   : > { %v2062_v34 = vpop.f32.mrf.mxu0  ;;  %v2208_v56 = vadd.f32 %v2207_v33, %v2159_v32  ;;  %v8153_v33 = vor.u32 %v9946_v30, %v8152_v29 }
 0x150   : > { %v2063_v38 = vadd.f32 %v2062_v34, %v11091_v55  ;;  %v9818_v34 = vld [vmem:[#allocation5 + $0x24] sm:$0xf0] }
 0x151   : > { %v3663_v18 = vmax.f32 %v2208_v56, 0.0  ;;  %2528 = vmatpush.bf16.msra.mxu2 %v8153_v33 }
 0x152   : > { %v2112_v58 = vadd.f32 %v2111_v39, %v2063_v38 }
 0x154   : > { %v2160_v63 = vpop.f32.mrf.mxu2  ;;  %v2114_v6 = vpop.f32.mrf.mxu1 }
 0x155   : > { %v2161_v1 = vadd.f32 %v2160_v63, %v2112_v58  ;;  %v7641_v58 = vor.u32 %v9818_v34, %v7640_v31 }
 0x156   : > { %v2209_v2 = vpop.f32.mrf.mxu3 }
 0x157   : > { %v2065_v4 = vpop.f32.mrf.mxu0  ;;  %v2210_v16 = vadd.f32 %v2209_v2, %v2161_v1  ;;  %2309 = vmatmul.bf16.gmra.mxu1 %v11038_v9  ;;  %2430 = vmatpush.bf16.msra.mxu0 %v7641_v58  ;;  %v7896_v2 = vld [vmem:[#allocation5 + $0x208] sm:$0xf]  ;;  %v7866_v58 = vld [vmem:[#allocation5 + $0x1e8] sm:$0xf0] }
 0x158   : > { %v2066_v5 = vadd.f32 %v2065_v4, %v11091_v55  ;;  %v9882_v4 = vld [vmem:[#allocation5 + $0x224] sm:$0xf0] }
 0x159   : > { %v3671_v19 = vmax.f32 %v2210_v16, 0.0  ;;  %2358 = vmatmul.bf16.gmra.mxu2 %v11040_v10 }
 0x15a   : > { %v2115_v17 = vadd.f32 %v2114_v6, %v2066_v5  ;;  %2260 = vmatmul.bf16.gmra.mxu0 %v11036_v8  ;;  %v7897_v5 = vor.u32 %v9882_v4, %v7896_v2 }
 0x15b   : > { %2407 = vmatmul.bf16.gmra.mxu3 %v11042_v11  ;;  %v11136_v28 = vpack.c.bf16 %v3671_v19, %v3663_v18 }
 0x15c   : > { %v2163_v32 = vpop.f32.mrf.mxu2  ;;  %v2116_v61 = vpop.f32.mrf.mxu1  ;;  %2479 = vmatpush.bf16.msra.mxu1 %v7897_v5 }
 0x15d   : > { %12381 = vst [vmem:[#allocation21_spill] sm:$0xff] %v11136_v28  ;;  %v2164_v38 = vadd.f32 %v2163_v32, %v2115_v17 }
 0x15e   : > { %v2212_v39 = vpop.f32.mrf.mxu3 }
 0x15f   : > { %v2067_v56 = vpop.f32.mrf.mxu0  ;;  %v2213_v63 = vadd.f32 %v2212_v39, %v2164_v38  ;;  %v9870_v38 = vld [vmem:[#allocation5 + $0x1cc] sm:$0xf] }
 0x160   : > { %v2068_v60 = vadd.f32 %v2067_v56, %v11091_v55  ;;  %v8381_v56 = vor.u32 %v9998_v35, %v8378_v36  ;;  %v7869_v2 = vor.u32 %v9870_v38, %v7866_v58 }
 0x161   : > { %v3679_v32 = vmax.f32 %v2213_v63, 0.0 }
 0x162   : > { %v2117_v1 = vadd.f32 %v2116_v61, %v2068_v60  ;;  %v8634_v60 = vld [vmem:[#allocation5 + $0x7e8] sm:$0xf0]  ;;  %2717 = vmatpush.bf16.msrb.mxu2 %v8381_v56  ;;  %2619 = vmatpush.bf16.msrb.mxu0 %v7869_v2 }
 0x163   : > { %v8637_v4 = vor.u32 %v10062_v59, %v8634_v60  ;;  %v9990_v60 = vld [vmem:[#allocation5 + $0x58c] sm:$0xf] }
 0x164   : > { %v2165_v6 = vpop.f32.mrf.mxu2  ;;  %v2119_v29 = vpop.f32.mrf.mxu1 }
 0x165   : > { %v2166_v16 = vadd.f32 %v2165_v6, %v2117_v1  ;;  %2766 = vmatpush.bf16.msrb.mxu3 %v8637_v4  ;;  %v7834_v4 = vld [vmem:[#allocation5 + $0x1a8] sm:$0xf0] }
 0x166   : > { %v2214_v18 = vpop.f32.mrf.mxu3 }
 0x167   : > { %v2070_v17 = vpop.f32.mrf.mxu0  ;;  %v2215_v30 = vadd.f32 %v2214_v18, %v2166_v16  ;;  %2314 = vmatmul.bf16.gmra.mxu1 %v11058_v45 }
 0x168   : > { %v2071_v19 = vadd.f32 %v2070_v17, %v11091_v55  ;;  %v9934_v17 = vld [vmem:[#allocation5 + $0x3cc] sm:$0xf] }
 0x169   : > { %v3687_v33 = vmax.f32 %v2215_v30, 0.0  ;;  %2363 = vmatmul.bf16.gmra.mxu2 %v11060_v46 }
 0x16a   : > { %v2120_v31 = vadd.f32 %v2119_v29, %v2071_v19  ;;  %2265 = vmatmul.bf16.gmra.mxu0 %v11056_v44  ;;  %v8122_v19 = vld [vmem:[#allocation5 + $0x3e8] sm:$0xf0] }
 0x16b   : > { %2412 = vmatmul.bf16.gmra.mxu3 %v11062_v47  ;;  %v11144_v34 = vpack.c.bf16 %v3687_v33, %v3679_v32  ;;  %v8125_v29 = vor.u32 %v9934_v17, %v8122_v19 }
 0x16c   : > { %v2168_v39 = vpop.f32.mrf.mxu2  ;;  %v2121_v6 = vpop.f32.mrf.mxu1 }
 0x16d   : > { %12382 = vst [vmem:[#allocation22_spill] sm:$0xff] %v11144_v34  ;;  %v2169_v61 = vadd.f32 %v2168_v39, %v2120_v31  ;;  %2668 = vmatpush.bf16.msrb.mxu1 %v8125_v29 }
 0x16e   : > { %v2217_v1 = vpop.f32.mrf.mxu3 }
 0x16f   : > { %v2072_v63 = vpop.f32.mrf.mxu0  ;;  %v2218_v16 = vadd.f32 %v2217_v1, %v2169_v61  ;;  %v8346_v61 = vld [vmem:[#allocation5 + $0x5a8] sm:$0xf0] }
 0x170   : > { %v2073_v5 = vadd.f32 %v2072_v63, %v11091_v55  ;;  %v9862_v1 = vld [vmem:[#allocation5 + $0x18c] sm:$0xf]  ;;  %v8349_v2 = vor.u32 %v9990_v60, %v8346_v61 }
 0x171   : > { %v3695_v56 = vmax.f32 %v2218_v16, 0.0  ;;  %v7837_v19 = vor.u32 %v9862_v1, %v7834_v4 }
 0x172   : > { %v2122_v18 = vadd.f32 %v2121_v6, %v2073_v5  ;;  %v10054_v5 = vld [vmem:[#allocation5 + $0x78c] sm:$0xf]  ;;  %2718 = vmatpush.bf16.msrb.mxu2 %v8349_v2 }
 0x173   : > { %v8602_v6 = vld [vmem:[#allocation5 + $0x7a8] sm:$0xf0]  ;;  %2620 = vmatpush.bf16.msrb.mxu0 %v7837_v19 }
 0x174   : > { %v2170_v30 = vpop.f32.mrf.mxu2  ;;  %v2124_v36 = vpop.f32.mrf.mxu1  ;;  %v8605_v29 = vor.u32 %v10054_v5, %v8602_v6  ;;  %v9982_v6 = vld [vmem:[#allocation5 + $0x54c] sm:$0xf] }
 0x175   : > { %v2171_v32 = vadd.f32 %v2170_v30, %v2122_v18 }
 0x176   : > { %v2219_v33 = vpop.f32.mrf.mxu3  ;;  %2767 = vmatpush.bf16.msrb.mxu3 %v8605_v29  ;;  %v7802_v29 = vld [vmem:[#allocation5 + $0x168] sm:$0xf0] }
 0x177   : > { %v2075_v31 = vpop.f32.mrf.mxu0  ;;  %v2220_v38 = vadd.f32 %v2219_v33, %v2171_v32  ;;  %2319 = vmatmul.bf16.gmra.mxu1 %v11078_v21 }
 0x178   : > { %v2076_v35 = vadd.f32 %v2075_v31, %v11091_v55 }
 0x179   : > { %v3703_v58 = vmax.f32 %v2220_v38, 0.0  ;;  %2368 = vmatmul.bf16.gmra.mxu2 %v11080_v22  ;;  %v11156_v38 = vperm.slane %v11088_v37, 1 }
 0x17a   : > { %v2125_v39 = vadd.f32 %v2124_v36, %v2076_v35  ;;  %2270 = vmatmul.bf16.gmra.mxu0 %v11076_v20  ;;  %v9926_v35 = vld [vmem:[#allocation5 + $0x38c] sm:$0xf] }
 0x17b   : > { %2417 = vmatmul.bf16.gmra.mxu3 %v11082_v23  ;;  %v11152_v59 = vpack.c.bf16 %v3703_v58, %v3695_v56  ;;  %v8090_v36 = vld [vmem:[#allocation5 + $0x3a8] sm:$0xf0] }
 0x17c   : > { %v2173_v63 = vpop.f32.mrf.mxu2  ;;  %v2126_v32 = vpop.f32.mrf.mxu1  ;;  %v8093_v56 = vor.u32 %v9926_v35, %v8090_v36 }
 0x17d   : > { %12383 = vst [vmem:[#allocation23_spill] sm:$0xff] %v11152_v59  ;;  %v2174_v18 = vadd.f32 %v2173_v63, %v2125_v39 }
 0x17e   : > { %v2222_v17 = vpop.f32.mrf.mxu3  ;;  %2669 = vmatpush.bf16.msrb.mxu1 %v8093_v56 }
 0x17f   : > { %v2077_v16 = vpop.f32.mrf.mxu0  ;;  %v2223_v33 = vadd.f32 %v2222_v17, %v2174_v18  ;;  %v8314_v18 = vld [vmem:[#allocation5 + $0x568] sm:$0xf0] }
 0x180   : > { %v2078_v30 = vadd.f32 %v2077_v16, %v11091_v55  ;;  %v9854_v17 = vld [vmem:[#allocation5 + $0x14c] sm:$0xf]  ;;  %v8317_v19 = vor.u32 %v9982_v6, %v8314_v18 }
 0x181   : > { %v3711_v4 = vmax.f32 %v2223_v33, 0.0  ;;  %v7805_v36 = vor.u32 %v9854_v17, %v7802_v29 }
 0x182   : > { %v2127_v31 = vadd.f32 %v2126_v32, %v2078_v30  ;;  %v10046_v30 = vld [vmem:[#allocation5 + $0x74c] sm:$0xf]  ;;  %2719 = vmatpush.bf16.msrb.mxu2 %v8317_v19 }
 0x183   : > { %v8570_v32 = vld [vmem:[#allocation5 + $0x768] sm:$0xf0]  ;;  %2621 = vmatpush.bf16.msrb.mxu0 %v7805_v36 }
 0x184   : > { %v2175_v58 = vpop.f32.mrf.mxu2  ;;  %v2285_v55 = vpop.f32.mrf.mxu1  ;;  %v8573_v56 = vor.u32 %v10046_v30, %v8570_v32 }
 0x185   : > { %v2176_v39 = vadd.f32 %v2175_v58, %v2127_v31 }
 0x186   : > { %v2224_v60 = vpop.f32.mrf.mxu3  ;;  %2768 = vmatpush.bf16.msrb.mxu3 %v8573_v56 }
 0x187   : > { %v2236_v61 = vpop.f32.mrf.mxu0  ;;  %v2225_v63 = vadd.f32 %v2224_v60, %v2176_v39  ;;  %2480 = vmatmul.bf16.vlgmr.msra.gmra.mxu1 %v10938_v53 }
 0x188   : > { %v2237_v1 = vadd.f32 %v2236_v61, %v11156_v38 }
 0x189   : > { %v3719_v5 = vmax.f32 %v2225_v63, 0.0  ;;  %2529 = vmatmul.bf16.vlgmr.msra.gmra.mxu2 %v10940_v54 }
 0x18a   : > { %v2286_v2 = vadd.f32 %v2285_v55, %v2237_v1  ;;  %2431 = vmatmul.bf16.vlgmr.msra.gmra.mxu0 %v10936_v48  ;;  %v9918_v1 = vld [vmem:[#allocation5 + $0x34c] sm:$0xf] }
 0x18b   : > { %2578 = vmatmul.bf16.vlgmr.msra.gmra.mxu3 %v10942_v57  ;;  %v11163_v37 = vpack.c.bf16 %v3719_v5, %v3711_v4  ;;  %v8058_v55 = vld [vmem:[#allocation5 + $0x368] sm:$0xf0] }
 0x18c   : > { %v2334_v16 = vpop.f32.mrf.mxu2  ;;  %v2287_v39 = vpop.f32.mrf.mxu1  ;;  %v8061_v63 = vor.u32 %v9918_v1, %v8058_v55 }
 0x18d   : > { %12384 = vst [vmem:[#allocation24_spill] sm:$0xff] %v11163_v37  ;;  %v2335_v31 = vadd.f32 %v2334_v16, %v2286_v2 }
 0x18e   : > { %v2383_v35 = vpop.f32.mrf.mxu3  ;;  %2670 = vmatpush.bf16.msrb.mxu1 %v8061_v63 }
 0x18f   : > { %v2238_v33 = vpop.f32.mrf.mxu0  ;;  %v2384_v60 = vadd.f32 %v2383_v35, %v2335_v31  ;;  %v9974_v31 = vld [vmem:[#allocation5 + $0x50c] sm:$0xf] }
 0x190   : > { %v2239_v58 = vadd.f32 %v2238_v33, %v11156_v38  ;;  %v8282_v35 = vld [vmem:[#allocation5 + $0x528] sm:$0xf0] }
 0x191   : > { %v3600_v19 = vmax.f32 %v2384_v60, 0.0  ;;  %v9846_v33 = vld [vmem:[#allocation5 + $0x10c] sm:$0xf]  ;;  %v8285_v56 = vor.u32 %v9974_v31, %v8282_v35 }
 0x192   : > { %v2288_v61 = vadd.f32 %v2287_v39, %v2239_v58  ;;  %v7770_v58 = vld [vmem:[#allocation5 + $0x128] sm:$0xf0] }
 0x193   : > { %v10038_v39 = vld [vmem:[#allocation5 + $0x70c] sm:$0xf]  ;;  %v7773_v63 = vor.u32 %v9846_v33, %v7770_v58  ;;  %2720 = vmatpush.bf16.msrb.mxu2 %v8285_v56 }
 0x194   : > { %v2336_v4 = vpop.f32.mrf.mxu2  ;;  %v2290_v17 = vpop.f32.mrf.mxu1 }
 0x195   : > { %v2337_v5 = vadd.f32 %v2336_v4, %v2288_v61  ;;  %v8538_v61 = vld [vmem:[#allocation5 + $0x728] sm:$0xf0]  ;;  %2622 = vmatpush.bf16.msrb.mxu0 %v7773_v63 }
 0x196   : > { %v2385_v6 = vpop.f32.mrf.mxu3  ;;  %v8541_v4 = vor.u32 %v10038_v39, %v8538_v61  ;;  %v9838_v63 = vld [vmem:[#allocation5 + $0xcc] sm:$0xf] }
 0x197   : > { %v2241_v2 = vpop.f32.mrf.mxu0  ;;  %v2386_v16 = vadd.f32 %v2385_v6, %v2337_v5  ;;  %2485 = vmatmul.bf16.gmra.mxu1 %v10958_v25 }
 0x198   : > { %v2242_v18 = vadd.f32 %v2241_v2, %v11156_v38  ;;  %2769 = vmatpush.bf16.msrb.mxu3 %v8541_v4 }
 0x199   : > { %v3608_v30 = vmax.f32 %v2386_v16, 0.0  ;;  %2534 = vmatmul.bf16.gmra.mxu2 %v10960_v26  ;;  %v8026_v16 = vld [vmem:[#allocation5 + $0x328] sm:$0xf0] }
 0x19a   : > { %v2291_v29 = vadd.f32 %v2290_v17, %v2242_v18  ;;  %2436 = vmatmul.bf16.gmra.mxu0 %v10956_v24  ;;  %v9910_v17 = vld [vmem:[#allocation5 + $0x30c] sm:$0xf] }
 0x19b   : > { %2583 = vmatmul.bf16.gmra.mxu3 %v10962_v27  ;;  %v11171_v32 = vpack.c.bf16 %v3608_v30, %v3600_v19  ;;  %v8029_v19 = vor.u32 %v9910_v17, %v8026_v16  ;;  %v8506_v17 = vld [vmem:[#allocation5 + $0x6e8] sm:$0xf0] }
 0x19c   : > { %v2339_v36 = vpop.f32.mrf.mxu2  ;;  %v2292_v6 = vpop.f32.mrf.mxu1 }
 0x19d   : > { %v2340_v1 = vadd.f32 %v2339_v36, %v2291_v29  ;;  %2671 = vmatpush.bf16.msrb.mxu1 %v8029_v19 }
 0x19e   : > { %v2388_v55 = vpop.f32.mrf.mxu3 }
 0x19f   : > { %v2243_v60 = vpop.f32.mrf.mxu0  ;;  %v2389_v2 = vadd.f32 %v2388_v55, %v2340_v1  ;;  %v9966_v55 = vld [vmem:[#allocation5 + $0x4cc] sm:$0xf] }
 0x1a0   : > { %v2244_v5 = vadd.f32 %v2243_v60, %v11156_v38  ;;  %v8250_v60 = vld [vmem:[#allocation5 + $0x4e8] sm:$0xf0] }
 0x1a1   : > { %v3616_v56 = vmax.f32 %v2389_v2, 0.0 }
 0x1a2   : > { %v2293_v18 = vadd.f32 %v2292_v6, %v2244_v5  ;;  %v8253_v5 = vor.u32 %v9966_v55, %v8250_v60  ;;  %v7738_v6 = vld [vmem:[#allocation5 + $0xe8] sm:$0xf0] }
 0x1a4   : > { %v2341_v30 = vpop.f32.mrf.mxu2  ;;  %v2295_v33 = vpop.f32.mrf.mxu1  ;;  %2721 = vmatpush.bf16.msrb.mxu2 %v8253_v5 }
 0x1a5   : > { %v2342_v31 = vadd.f32 %v2341_v30, %v2293_v18  ;;  %v10030_v18 = vld [vmem:[#allocation5 + $0x6cc] sm:$0xf]  ;;  %v7741_v30 = vor.u32 %v9838_v63, %v7738_v6 }
 0x1a6   : > { %v2390_v35 = vpop.f32.mrf.mxu3 }
 0x1a7   : > { %v2246_v29 = vpop.f32.mrf.mxu0  ;;  %v2391_v58 = vadd.f32 %v2390_v35, %v2342_v31  ;;  %2490 = vmatmul.bf16.gmra.mxu1 %v10978_v50  ;;  %v8509_v31 = vor.u32 %v10030_v18, %v8506_v17  ;;  %2623 = vmatpush.bf16.msrb.mxu0 %v7741_v30  ;;  %v9830_v30 = vld [vmem:[#allocation5 + $0x8c] sm:$0xf] }
 0x1a8   : > { %v2247_v36 = vadd.f32 %v2246_v29, %v11156_v38 }
 0x1a9   : > { %v3624_v61 = vmax.f32 %v2391_v58, 0.0  ;;  %2539 = vmatmul.bf16.gmra.mxu2 %v10980_v51  ;;  %2770 = vmatpush.bf16.msrb.mxu3 %v8509_v31  ;;  %v9902_v58 = vld [vmem:[#allocation5 + $0x2cc] sm:$0xf] }
 0x1aa   : > { %v2296_v39 = vadd.f32 %v2295_v33, %v2247_v36  ;;  %2441 = vmatmul.bf16.gmra.mxu0 %v10976_v49 }
 0x1ab   : > { %2588 = vmatmul.bf16.gmra.mxu3 %v10982_v52  ;;  %v11179_v1 = vpack.c.bf16 %v3624_v61, %v3616_v56  ;;  %v7994_v56 = vld [vmem:[#allocation5 + $0x2e8] sm:$0xf0] }
 0x1ac   : > { %v2344_v4 = vpop.f32.mrf.mxu2  ;;  %v2297_v29 = vpop.f32.mrf.mxu1  ;;  %v7997_v61 = vor.u32 %v9902_v58, %v7994_v56 }
 0x1ad   : > { %v2345_v16 = vadd.f32 %v2344_v4, %v2296_v39 }
 0x1ae   : > { %v2393_v19 = vpop.f32.mrf.mxu3  ;;  %2672 = vmatpush.bf16.msrb.mxu1 %v7997_v61 }
 0x1af   : > { %v2248_v2 = vpop.f32.mrf.mxu0  ;;  %v2394_v36 = vadd.f32 %v2393_v19, %v2345_v16  ;;  %v9958_v19 = vld [vmem:[#allocation5 + $0x48c] sm:$0xf] }
 0x1b0   : > { %v2249_v35 = vadd.f32 %v2248_v2, %v11156_v38  ;;  %v8218_v2 = vld [vmem:[#allocation5 + $0x4a8] sm:$0xf0] }
 0x1b1   : > { %v3632_v5 = vmax.f32 %v2394_v36, 0.0 }
 0x1b2   : > { %v2298_v33 = vadd.f32 %v2297_v29, %v2249_v35  ;;  %v8221_v35 = vor.u32 %v9958_v19, %v8218_v2  ;;  %v7706_v29 = vld [vmem:[#allocation5 + $0xa8] sm:$0xf0] }
 0x1b3   : > { %v7709_v61 = vor.u32 %v9830_v30, %v7706_v29 }
 0x1b4   : > { %v2346_v55 = vpop.f32.mrf.mxu2  ;;  %v2300_v63 = vpop.f32.mrf.mxu1  ;;  %2722 = vmatpush.bf16.msrb.mxu2 %v8221_v35 }
 0x1b5   : > { %v2347_v60 = vadd.f32 %v2346_v55, %v2298_v33  ;;  %v8474_v33 = vld [vmem:[#allocation5 + $0x6a8] sm:$0xf0]  ;;  %2624 = vmatpush.bf16.msrb.mxu0 %v7709_v61 }
 0x1b6   : > { %v2395_v37 = vpop.f32.mrf.mxu3  ;;  %v9822_v61 = vld [vmem:[#allocation5 + $0x4c] sm:$0xf] }
 0x1b7   : > { %v2251_v39 = vpop.f32.mrf.mxu0  ;;  %v2396_v6 = vadd.f32 %v2395_v37, %v2347_v60  ;;  %2495 = vmatmul.bf16.gmra.mxu1 %v10998_v13  ;;  %v10022_v37 = vld [vmem:[#allocation5 + $0x68c] sm:$0xf] }
 0x1b8   : > { %v2252_v4 = vadd.f32 %v2251_v39, %v11156_v38  ;;  %v8477_v55 = vor.u32 %v10022_v37, %v8474_v33 }
 0x1b9   : > { %v3640_v17 = vmax.f32 %v2396_v6, 0.0  ;;  %2544 = vmatmul.bf16.gmra.mxu2 %v11000_v14  ;;  %v9894_v6 = vld [vmem:[#allocation5 + $0x28c] sm:$0xf] }
 0x1ba   : > { %v2301_v18 = vadd.f32 %v2300_v63, %v2252_v4  ;;  %2446 = vmatmul.bf16.gmra.mxu0 %v10996_v12  ;;  %2771 = vmatpush.bf16.msrb.mxu3 %v8477_v55 }
 0x1bb   : > { %2593 = vmatmul.bf16.gmra.mxu3 %v11002_v15  ;;  %v11187_v16 = vpack.c.bf16 %v3640_v17, %v3632_v5  ;;  %v7962_v5 = vld [vmem:[#allocation5 + $0x2a8] sm:$0xf0] }
 0x1bc   : > { %v2349_v31 = vpop.f32.mrf.mxu2  ;;  %v2302_v39 = vpop.f32.mrf.mxu1  ;;  %v7965_v17 = vor.u32 %v9894_v6, %v7962_v5 }
 0x1bd   : > { %12385 = vst [vmem:[#allocation25_spill] sm:$0xff] %v11187_v16  ;;  %v2350_v58 = vadd.f32 %v2349_v31, %v2301_v18 }
 0x1be   : > { %v2398_v56 = vpop.f32.mrf.mxu3  ;;  %2673 = vmatpush.bf16.msrb.mxu1 %v7965_v17 }
 0x1bf   : > { %v2253_v36 = vpop.f32.mrf.mxu0  ;;  %v2399_v4 = vadd.f32 %v2398_v56, %v2350_v58  ;;  %v9950_v56 = vld [vmem:[#allocation5 + $0x44c] sm:$0xf] }
 0x1c0   : > { %v2254_v60 = vadd.f32 %v2253_v36, %v11156_v38  ;;  %v8186_v36 = vld [vmem:[#allocation5 + $0x468] sm:$0xf0] }
 0x1c1   : > { %v3648_v35 = vmax.f32 %v2399_v4, 0.0 }
 0x1c2   : > { %v2303_v63 = vadd.f32 %v2302_v39, %v2254_v60  ;;  %v8189_v60 = vor.u32 %v9950_v56, %v8186_v36  ;;  %v7674_v39 = vld [vmem:[#allocation5 + $0x68] sm:$0xf0] }
 0x1c3   : > { %v7677_v17 = vor.u32 %v9822_v61, %v7674_v39 }
 0x1c4   : > { %v2351_v19 = vpop.f32.mrf.mxu2  ;;  %v2305_v30 = vpop.f32.mrf.mxu1  ;;  %2723 = vmatpush.bf16.msrb.mxu2 %v8189_v60 }
 0x1c5   : > { %v2352_v2 = vadd.f32 %v2351_v19, %v2303_v63  ;;  %v8442_v63 = vld [vmem:[#allocation5 + $0x668] sm:$0xf0]  ;;  %2625 = vmatpush.bf16.msrb.mxu0 %v7677_v17 }
 0x1c6   : > { %v2400_v59 = vpop.f32.mrf.mxu3  ;;  %v9814_v17 = vld [vmem:[#allocation5 + $0xc] sm:$0xf] }
 0x1c7   : > { %v2256_v18 = vpop.f32.mrf.mxu0  ;;  %v2401_v29 = vadd.f32 %v2400_v59, %v2352_v2  ;;  %2500 = vmatmul.bf16.gmra.mxu1 %v11018_v41  ;;  %v10014_v59 = vld [vmem:[#allocation5 + $0x64c] sm:$0xf] }
 0x1c8   : > { %v2257_v31 = vadd.f32 %v2256_v18, %v11156_v38  ;;  %v8445_v19 = vor.u32 %v10014_v59, %v8442_v63 }
 0x1c9   : > { %v3656_v33 = vmax.f32 %v2401_v29, 0.0  ;;  %2549 = vmatmul.bf16.gmra.mxu2 %v11020_v42  ;;  %v9886_v29 = vld [vmem:[#allocation5 + $0x24c] sm:$0xf] }
 0x1ca   : > { %v2306_v37 = vadd.f32 %v2305_v30, %v2257_v31  ;;  %2451 = vmatmul.bf16.gmra.mxu0 %v11016_v40  ;;  %2772 = vmatpush.bf16.msrb.mxu3 %v8445_v19 }
 0x1cb   : > { %2598 = vmatmul.bf16.gmra.mxu3 %v11022_v43  ;;  %v11195_v58 = vpack.c.bf16 %v3656_v33, %v3648_v35  ;;  %v7930_v35 = vld [vmem:[#allocation5 + $0x268] sm:$0xf0] }
 0x1cc   : > { %v2354_v55 = vpop.f32.mrf.mxu2  ;;  %v2307_v18 = vpop.f32.mrf.mxu1  ;;  %v7933_v33 = vor.u32 %v9886_v29, %v7930_v35 }
 0x1cd   : > { %12386 = vst [vmem:[#allocation26_spill] sm:$0xff] %v11195_v58  ;;  %v2355_v6 = vadd.f32 %v2354_v55, %v2306_v37 }
 0x1ce   : > { %v2403_v5 = vpop.f32.mrf.mxu3  ;;  %2674 = vmatpush.bf16.msrb.mxu1 %v7933_v33 }
 0x1cf   : > { %v2258_v4 = vpop.f32.mrf.mxu0  ;;  %v2404_v31 = vadd.f32 %v2403_v5, %v2355_v6  ;;  %v9942_v5 = vld [vmem:[#allocation5 + $0x40c] sm:$0xf] }
 0x1d0   : > { %v2259_v2 = vadd.f32 %v2258_v4, %v11156_v38  ;;  %v8154_v4 = vld [vmem:[#allocation5 + $0x428] sm:$0xf0] }
 0x1d1   : > { %v3664_v60 = vmax.f32 %v2404_v31, 0.0 }
 0x1d2   : > { %v2308_v30 = vadd.f32 %v2307_v18, %v2259_v2  ;;  %v8157_v2 = vor.u32 %v9942_v5, %v8154_v4  ;;  %v7642_v18 = vld [vmem:[#allocation5 + $0x28] sm:$0xf0] }
 0x1d3   : > { %v7645_v33 = vor.u32 %v9814_v17, %v7642_v18 }
 0x1d4   : > { %v2356_v56 = vpop.f32.mrf.mxu2  ;;  %v2310_v61 = vpop.f32.mrf.mxu1  ;;  %2724 = vmatpush.bf16.msrb.mxu2 %v8157_v2 }
 0x1d5   : > { %v2357_v36 = vadd.f32 %v2356_v56, %v2308_v30  ;;  %v8410_v30 = vld [vmem:[#allocation5 + $0x628] sm:$0xf0]  ;;  %2626 = vmatpush.bf16.msrb.mxu0 %v7645_v33  ;;  %v7872_v33 = vld [vmem:[#allocation5 + $0x1d0] sm:$0xf] }
 0x1d6   : > { %v2405_v34 = vpop.f32.mrf.mxu3 }
 0x1d7   : > { %v2261_v37 = vpop.f32.mrf.mxu0  ;;  %v2406_v39 = vadd.f32 %v2405_v34, %v2357_v36  ;;  %2505 = vmatmul.bf16.gmra.mxu1 %v11038_v9  ;;  %v10006_v34 = vld [vmem:[#allocation5 + $0x60c] sm:$0xf] }
 0x1d8   : > { %v2262_v55 = vadd.f32 %v2261_v37, %v11156_v38  ;;  %v8413_v56 = vor.u32 %v10006_v34, %v8410_v30 }
 0x1d9   : > { %v3672_v63 = vmax.f32 %v2406_v39, 0.0  ;;  %2554 = vmatmul.bf16.gmra.mxu2 %v11040_v10  ;;  %v9878_v39 = vld [vmem:[#allocation5 + $0x20c] sm:$0xf] }
 0x1da   : > { %v2311_v59 = vadd.f32 %v2310_v61, %v2262_v55  ;;  %2456 = vmatmul.bf16.gmra.mxu0 %v11036_v8  ;;  %2773 = vmatpush.bf16.msrb.mxu3 %v8413_v56 }
 0x1db   : > { %2603 = vmatmul.bf16.gmra.mxu3 %v11042_v11  ;;  %v11203_v6 = vpack.c.bf16 %v3672_v63, %v3664_v60  ;;  %v7898_v60 = vld [vmem:[#allocation5 + $0x228] sm:$0xf0] }
 0x1dc   : > { %v2359_v19 = vpop.f32.mrf.mxu2  ;;  %v2312_v37 = vpop.f32.mrf.mxu1  ;;  %v7901_v63 = vor.u32 %v9878_v39, %v7898_v60 }
 0x1dd   : > { %12387 = vst [vmem:[#allocation27_spill] sm:$0xff] %v11203_v6  ;;  %v2360_v29 = vadd.f32 %v2359_v19, %v2311_v59 }
 0x1de   : > { %v2408_v35 = vpop.f32.mrf.mxu3  ;;  %2675 = vmatpush.bf16.msrb.mxu1 %v7901_v63 }
 0x1df   : > { %v2263_v31 = vpop.f32.mrf.mxu0  ;;  %v2409_v55 = vadd.f32 %v2408_v35, %v2360_v29  ;;  %v8384_v35 = vld [vmem:[#allocation5 + $0x5d0] sm:$0xf] }
 0x1e0   : > { %v2264_v36 = vadd.f32 %v2263_v31, %v11156_v38  ;;  %v10003_v31 = vld [vmem:[#allocation5 + $0x5ec] sm:$0xf0] }
 0x1e1   : > { %v3680_v2 = vmax.f32 %v2409_v55, 0.0 }
 0x1e2   : > { %v2313_v61 = vadd.f32 %v2312_v37, %v2264_v36  ;;  %v8385_v36 = vor.u32 %v10003_v31, %v8384_v35  ;;  %v9875_v37 = vld [vmem:[#allocation5 + $0x1ec] sm:$0xf0] }
 0x1e3   : > { %v7873_v63 = vor.u32 %v9875_v37, %v7872_v33 }
 0x1e4   : > { %v2361_v5 = vpop.f32.mrf.mxu2  ;;  %v2315_v17 = vpop.f32.mrf.mxu1  ;;  %2913 = vmatpush.bf16.msra.mxu2 %v8385_v36 }
 0x1e5   : > { %v2362_v4 = vadd.f32 %v2361_v5, %v2313_v61  ;;  %v10067_v61 = vld [vmem:[#allocation5 + $0x7ec] sm:$0xf0]  ;;  %2815 = vmatpush.bf16.msra.mxu0 %v7873_v63 }
 0x1e6   : > { %v2410_v6 = vpop.f32.mrf.mxu3  ;;  %v7840_v63 = vld [vmem:[#allocation5 + $0x190] sm:$0xf] }
 0x1e7   : > { %v2266_v59 = vpop.f32.mrf.mxu0  ;;  %v2411_v18 = vadd.f32 %v2410_v6, %v2362_v4  ;;  %2510 = vmatmul.bf16.gmra.mxu1 %v11058_v45  ;;  %v8640_v6 = vld [vmem:[#allocation5 + $0x7d0] sm:$0xf] }
 0x1e8   : > { %v2267_v19 = vadd.f32 %v2266_v59, %v11156_v38  ;;  %v8641_v5 = vor.u32 %v10067_v61, %v8640_v6 }
 0x1e9   : > { %v3688_v30 = vmax.f32 %v2411_v18, 0.0  ;;  %2559 = vmatmul.bf16.gmra.mxu2 %v11060_v46  ;;  %v8128_v18 = vld [vmem:[#allocation5 + $0x3d0] sm:$0xf] }
 0x1ea   : > { %v2316_v34 = vadd.f32 %v2315_v17, %v2267_v19  ;;  %2461 = vmatmul.bf16.gmra.mxu0 %v11056_v44  ;;  %2962 = vmatpush.bf16.msra.mxu3 %v8641_v5 }
 0x1eb   : > { %2608 = vmatmul.bf16.gmra.mxu3 %v11062_v47  ;;  %v11211_v29 = vpack.c.bf16 %v3688_v30, %v3680_v2  ;;  %v9939_v2 = vld [vmem:[#allocation5 + $0x3ec] sm:$0xf0] }
 0x1ec   : > { %v2364_v56 = vpop.f32.mrf.mxu2  ;;  %v2317_v59 = vpop.f32.mrf.mxu1  ;;  %v8129_v30 = vor.u32 %v9939_v2, %v8128_v18 }
 0x1ed   : > { %12388 = vst [vmem:[#allocation28_spill] sm:$0xff] %v11211_v29  ;;  %v2365_v39 = vadd.f32 %v2364_v56, %v2316_v34 }
 0x1ee   : > { %v2413_v60 = vpop.f32.mrf.mxu3  ;;  %2864 = vmatpush.bf16.msra.mxu1 %v8129_v30 }
 0x1ef   : > { %v2268_v55 = vpop.f32.mrf.mxu0  ;;  %v2414_v19 = vadd.f32 %v2413_v60, %v2365_v39  ;;  %v8352_v60 = vld [vmem:[#allocation5 + $0x590] sm:$0xf] }
 0x1f0   : > { %v2269_v4 = vadd.f32 %v2268_v55, %v11156_v38  ;;  %v9995_v55 = vld [vmem:[#allocation5 + $0x5ac] sm:$0xf0] }
 0x1f1   : > { %v3696_v36 = vmax.f32 %v2414_v19, 0.0 }
 0x1f2   : > { %v2318_v17 = vadd.f32 %v2317_v59, %v2269_v4  ;;  %v8353_v4 = vor.u32 %v9995_v55, %v8352_v60  ;;  %v9867_v59 = vld [vmem:[#allocation5 + $0x1ac] sm:$0xf0] }
 0x1f3   : > { %v7841_v30 = vor.u32 %v9867_v59, %v7840_v63 }
 0x1f4   : > { %v2366_v35 = vpop.f32.mrf.mxu2  ;;  %v2320_v33 = vpop.f32.mrf.mxu1  ;;  %2914 = vmatpush.bf16.msra.mxu2 %v8353_v4 }
 0x1f5   : > { %v2367_v31 = vadd.f32 %v2366_v35, %v2318_v17  ;;  %v10059_v17 = vld [vmem:[#allocation5 + $0x7ac] sm:$0xf0]  ;;  %2816 = vmatpush.bf16.msra.mxu0 %v7841_v30 }
 0x1f6   : > { %v2415_v29 = vpop.f32.mrf.mxu3  ;;  %v8320_v30 = vld [vmem:[#allocation5 + $0x550] sm:$0xf] }
 0x1f7   : > { %v2271_v34 = vpop.f32.mrf.mxu0  ;;  %v2416_v37 = vadd.f32 %v2415_v29, %v2367_v31  ;;  %2515 = vmatmul.bf16.gmra.mxu1 %v11078_v21  ;;  %v8608_v29 = vld [vmem:[#allocation5 + $0x790] sm:$0xf] }
 0x1f8   : > { %v2272_v56 = vadd.f32 %v2271_v34, %v11156_v38  ;;  %v8609_v35 = vor.u32 %v10059_v17, %v8608_v29 }
 0x1f9   : > { %v3704_v61 = vmax.f32 %v2416_v37, 0.0  ;;  %2564 = vmatmul.bf16.gmra.mxu2 %v11080_v22  ;;  %v8096_v37 = vld [vmem:[#allocation5 + $0x390] sm:$0xf] }
 0x1fa   : > { %v2321_v6 = vadd.f32 %v2320_v33, %v2272_v56  ;;  %2466 = vmatmul.bf16.gmra.mxu0 %v11076_v20  ;;  %2963 = vmatpush.bf16.msra.mxu3 %v8609_v35  ;;  %v9987_v35 = vld [vmem:[#allocation5 + $0x56c] sm:$0xf0] }
 0x1fb   : > { %2613 = vmatmul.bf16.gmra.mxu3 %v11082_v23  ;;  %v11219_v39 = vpack.c.bf16 %v3704_v61, %v3696_v36  ;;  %v9931_v36 = vld [vmem:[#allocation5 + $0x3ac] sm:$0xf0]  ;;  %v11222_v61 = vld [vmem:[#allocation7] sm:$0xff] }
 0x1fc   : > { %v2369_v5 = vpop.f32.mrf.mxu2  ;;  %v2322_v34 = vpop.f32.mrf.mxu1  ;;  %v11225_v60 = vperm.slane %v11222_v61, 2 }
 0x1fd   : > { %12389 = vst [vmem:[#allocation29_spill] sm:$0xff] %v11219_v39  ;;  %v2370_v18 = vadd.f32 %v2369_v5, %v2321_v6  ;;  %v8097_v6 = vor.u32 %v9931_v36, %v8096_v37  ;;  %v9859_v37 = vld [vmem:[#allocation5 + $0x16c] sm:$0xf0] }
 0x1fe   : > { %v2418_v2 = vpop.f32.mrf.mxu3  ;;  %v8576_v36 = vld [vmem:[#allocation5 + $0x750] sm:$0xf] }
 0x1ff   : > { %v2273_v19 = vpop.f32.mrf.mxu0  ;;  %v2419_v56 = vadd.f32 %v2418_v2, %v2370_v18  ;;  %2865 = vmatpush.bf16.msra.mxu1 %v8097_v6  ;;  %v10051_v6 = vld [vmem:[#allocation5 + $0x76c] sm:$0xf0] }
 0x200   : > { %v2274_v31 = vadd.f32 %v2273_v19, %v11156_v38 }
 0x201   : > { %v3712_v18 = vmax.f32 %v2419_v56, 0.0 }
 0x202   : > { %v2323_v33 = vadd.f32 %v2322_v34, %v2274_v31  ;;  %v7808_v31 = vld [vmem:[#allocation5 + $0x150] sm:$0xf] }
 0x204   : > { %v2371_v55 = vpop.f32.mrf.mxu2  ;;  %v2481_v4 = vpop.f32.mrf.mxu1 }
 0x205   : > { %v2372_v63 = vadd.f32 %v2371_v55, %v2323_v33  ;;  %v8321_v33 = vor.u32 %v9987_v35, %v8320_v30 }
 0x206   : > { %v2420_v5 = vpop.f32.mrf.mxu3 }
 0x207   : > { %v2432_v59 = vpop.f32.mrf.mxu0  ;;  %v2421_v29 = vadd.f32 %v2420_v5, %v2372_v63  ;;  %2676 = vmatmul.bf16.vlgmr.msrb.gmra.mxu1 %v10938_v53  ;;  %v7809_v5 = vor.u32 %v9859_v37, %v7808_v31  ;;  %2915 = vmatpush.bf16.msra.mxu2 %v8321_v33 }
 0x208   : > { %v2433_v38 = vadd.f32 %v2432_v59, %v11225_v60  ;;  %v8577_v59 = vor.u32 %v10051_v6, %v8576_v36 }
 0x209   : > { %v3720_v2 = vmax.f32 %v2421_v29, 0.0  ;;  %2725 = vmatmul.bf16.vlgmr.msrb.gmra.mxu2 %v10940_v54  ;;  %2817 = vmatpush.bf16.msra.mxu0 %v7809_v5 }
 0x20a   : > { %v2482_v17 = vadd.f32 %v2481_v4, %v2433_v38  ;;  %2627 = vmatmul.bf16.vlgmr.msrb.gmra.mxu0 %v10936_v48  ;;  %2964 = vmatpush.bf16.msra.mxu3 %v8577_v59  ;;  %v9851_v59 = vld [vmem:[#allocation5 + $0x12c] sm:$0xf0] }
 0x20b   : > { %2774 = vmatmul.bf16.vlgmr.msrb.gmra.mxu3 %v10942_v57  ;;  %v11232_v19 = vpack.c.bf16 %v3720_v2, %v3712_v18  ;;  %v8064_v2 = vld [vmem:[#allocation5 + $0x350] sm:$0xf] }
 0x20c   : > { %v2530_v34 = vpop.f32.mrf.mxu2  ;;  %v2483_v4 = vpop.f32.mrf.mxu1 }
 0x20d   : > { %12390 = vst [vmem:[#allocation30_spill] sm:$0xff] %v11232_v19  ;;  %v2531_v55 = vadd.f32 %v2530_v34, %v2482_v17  ;;  %v9923_v19 = vld [vmem:[#allocation5 + $0x36c] sm:$0xf0] }
 0x20e   : > { %v2579_v63 = vpop.f32.mrf.mxu3  ;;  %v8065_v39 = vor.u32 %v9923_v19, %v8064_v2 }
 0x20f   : > { %v2434_v56 = vpop.f32.mrf.mxu0  ;;  %v2580_v29 = vadd.f32 %v2579_v63, %v2531_v55  ;;  %v9979_v55 = vld [vmem:[#allocation5 + $0x52c] sm:$0xf0] }
 0x210   : > { %v2435_v38 = vadd.f32 %v2434_v56, %v11225_v60  ;;  %2866 = vmatpush.bf16.msra.mxu1 %v8065_v39  ;;  %v8288_v39 = vld [vmem:[#allocation5 + $0x510] sm:$0xf] }
 0x211   : > { %v3601_v33 = vmax.f32 %v2580_v29, 0.0  ;;  %v7776_v63 = vld [vmem:[#allocation5 + $0x110] sm:$0xf]  ;;  %v8289_v5 = vor.u32 %v9979_v55, %v8288_v39 }
 0x212   : > { %v2484_v18 = vadd.f32 %v2483_v4, %v2435_v38  ;;  %v10043_v38 = vld [vmem:[#allocation5 + $0x72c] sm:$0xf0]  ;;  %v7777_v2 = vor.u32 %v9851_v59, %v7776_v63 }
 0x213   : > { %2916 = vmatpush.bf16.msra.mxu2 %v8289_v5 }
 0x214   : > { %v2532_v30 = vpop.f32.mrf.mxu2  ;;  %v2486_v31 = vpop.f32.mrf.mxu1  ;;  %2818 = vmatpush.bf16.msra.mxu0 %v7777_v2  ;;  %v7744_v2 = vld [vmem:[#allocation5 + $0xd0] sm:$0xf] }
 0x215   : > { %v2533_v35 = vadd.f32 %v2532_v30, %v2484_v18 }
 0x216   : > { %v2581_v28 = vpop.f32.mrf.mxu3 }
 0x217   : > { %v2437_v17 = vpop.f32.mrf.mxu0  ;;  %v2582_v37 = vadd.f32 %v2581_v28, %v2533_v35  ;;  %2681 = vmatmul.bf16.gmra.mxu1 %v10958_v25  ;;  %v8544_v28 = vld [vmem:[#allocation5 + $0x710] sm:$0xf] }
 0x218   : > { %v2438_v34 = vadd.f32 %v2437_v17, %v11225_v60  ;;  %v8545_v30 = vor.u32 %v10043_v38, %v8544_v28 }
 0x219   : > { %v3609_v6 = vmax.f32 %v2582_v37, 0.0  ;;  %2730 = vmatmul.bf16.gmra.mxu2 %v10960_v26  ;;  %v8032_v37 = vld [vmem:[#allocation5 + $0x310] sm:$0xf] }
 0x21a   : > { %v2487_v36 = vadd.f32 %v2486_v31, %v2438_v34  ;;  %2632 = vmatmul.bf16.gmra.mxu0 %v10956_v24  ;;  %2965 = vmatpush.bf16.msra.mxu3 %v8545_v30 }
 0x21b   : > { %2779 = vmatmul.bf16.gmra.mxu3 %v10962_v27  ;;  %v11240_v19 = vpack.c.bf16 %v3609_v6, %v3601_v33  ;;  %v9915_v33 = vld [vmem:[#allocation5 + $0x32c] sm:$0xf0] }
 0x21c   : > { %v2535_v56 = vpop.f32.mrf.mxu2  ;;  %v2488_v17 = vpop.f32.mrf.mxu1  ;;  %v8033_v6 = vor.u32 %v9915_v33, %v8032_v37 }
 0x21d   : > { %12391 = vst [vmem:[#allocation31_spill] sm:$0xff] %v11240_v19  ;;  %v2536_v4 = vadd.f32 %v2535_v56, %v2487_v36 }
 0x21e   : > { %v2584_v18 = vpop.f32.mrf.mxu3  ;;  %2867 = vmatpush.bf16.msra.mxu1 %v8033_v6 }
 0x21f   : > { %v2439_v29 = vpop.f32.mrf.mxu0  ;;  %v2585_v34 = vadd.f32 %v2584_v18, %v2536_v4  ;;  %v8256_v18 = vld [vmem:[#allocation5 + $0x4d0] sm:$0xf] }
 0x220   : > { %v2440_v35 = vadd.f32 %v2439_v29, %v11225_v60  ;;  %v9971_v29 = vld [vmem:[#allocation5 + $0x4ec] sm:$0xf0] }
 0x221   : > { %v3617_v5 = vmax.f32 %v2585_v34, 0.0 }
 0x222   : > { %v2489_v31 = vadd.f32 %v2488_v17, %v2440_v35  ;;  %v8257_v35 = vor.u32 %v9971_v29, %v8256_v18  ;;  %v9843_v17 = vld [vmem:[#allocation5 + $0xec] sm:$0xf0] }
 0x223   : > { %v7745_v6 = vor.u32 %v9843_v17, %v7744_v2 }
 0x224   : > { %v2537_v39 = vpop.f32.mrf.mxu2  ;;  %v2491_v63 = vpop.f32.mrf.mxu1  ;;  %2917 = vmatpush.bf16.msra.mxu2 %v8257_v35 }
 0x225   : > { %v2538_v55 = vadd.f32 %v2537_v39, %v2489_v31  ;;  %v10035_v31 = vld [vmem:[#allocation5 + $0x6ec] sm:$0xf0]  ;;  %2819 = vmatpush.bf16.msra.mxu0 %v7745_v6 }
 0x226   : > { %v2586_v58 = vpop.f32.mrf.mxu3  ;;  %v7712_v6 = vld [vmem:[#allocation5 + $0x90] sm:$0xf] }
 0x227   : > { %v2442_v36 = vpop.f32.mrf.mxu0  ;;  %v2587_v59 = vadd.f32 %v2586_v58, %v2538_v55  ;;  %2686 = vmatmul.bf16.gmra.mxu1 %v10978_v50  ;;  %v8512_v58 = vld [vmem:[#allocation5 + $0x6d0] sm:$0xf] }
 0x228   : > { %v2443_v56 = vadd.f32 %v2442_v36, %v11225_v60  ;;  %v8513_v39 = vor.u32 %v10035_v31, %v8512_v58 }
 0x229   : > { %v3625_v38 = vmax.f32 %v2587_v59, 0.0  ;;  %2735 = vmatmul.bf16.gmra.mxu2 %v10980_v51  ;;  %v8000_v59 = vld [vmem:[#allocation5 + $0x2d0] sm:$0xf] }
 0x22a   : > { %v2492_v28 = vadd.f32 %v2491_v63, %v2443_v56  ;;  %2637 = vmatmul.bf16.gmra.mxu0 %v10976_v49  ;;  %2966 = vmatpush.bf16.msra.mxu3 %v8513_v39 }
 0x22b   : > { %2784 = vmatmul.bf16.gmra.mxu3 %v10982_v52  ;;  %v11248_v4 = vpack.c.bf16 %v3625_v38, %v3617_v5  ;;  %v9907_v5 = vld [vmem:[#allocation5 + $0x2ec] sm:$0xf0] }
 0x22c   : > { %v2540_v30 = vpop.f32.mrf.mxu2  ;;  %v2493_v36 = vpop.f32.mrf.mxu1  ;;  %v8001_v38 = vor.u32 %v9907_v5, %v8000_v59 }
 0x22d   : > { %v2541_v37 = vadd.f32 %v2540_v30, %v2492_v28 }
 0x22e   : > { %v2589_v33 = vpop.f32.mrf.mxu3  ;;  %2868 = vmatpush.bf16.msra.mxu1 %v8001_v38 }
 0x22f   : > { %v2444_v34 = vpop.f32.mrf.mxu0  ;;  %v2590_v56 = vadd.f32 %v2589_v33, %v2541_v37  ;;  %v8224_v33 = vld [vmem:[#allocation5 + $0x490] sm:$0xf] }
 0x230   : > { %v2445_v55 = vadd.f32 %v2444_v34, %v11225_v60  ;;  %v9963_v34 = vld [vmem:[#allocation5 + $0x4ac] sm:$0xf0] }
 0x231   : > { %v3633_v35 = vmax.f32 %v2590_v56, 0.0 }
 0x232   : > { %v2494_v63 = vadd.f32 %v2493_v36, %v2445_v55  ;;  %v8225_v55 = vor.u32 %v9963_v34, %v8224_v33  ;;  %v9835_v36 = vld [vmem:[#allocation5 + $0xac] sm:$0xf0] }
 0x233   : > { %v7713_v38 = vor.u32 %v9835_v36, %v7712_v6 }
 0x234   : > { %v2542_v18 = vpop.f32.mrf.mxu2  ;;  %v2496_v2 = vpop.f32.mrf.mxu1  ;;  %2918 = vmatpush.bf16.msra.mxu2 %v8225_v55 }
 0x235   : > { %v2543_v29 = vadd.f32 %v2542_v18, %v2494_v63  ;;  %v10027_v63 = vld [vmem:[#allocation5 + $0x6ac] sm:$0xf0]  ;;  %2820 = vmatpush.bf16.msra.mxu0 %v7713_v38 }
 0x236   : > { %v2591_v7 = vpop.f32.mrf.mxu3  ;;  %v7680_v38 = vld [vmem:[#allocation5 + $0x50] sm:$0xf] }
 0x237   : > { %v2447_v28 = vpop.f32.mrf.mxu0  ;;  %v2592_v17 = vadd.f32 %v2591_v7, %v2543_v29  ;;  %2691 = vmatmul.bf16.gmra.mxu1 %v10998_v13  ;;  %v8480_v7 = vld [vmem:[#allocation5 + $0x690] sm:$0xf] }
 0x238   : > { %v2448_v30 = vadd.f32 %v2447_v28, %v11225_v60  ;;  %v8481_v18 = vor.u32 %v10027_v63, %v8480_v7 }
 0x239   : > { %v3641_v31 = vmax.f32 %v2592_v17, 0.0  ;;  %2740 = vmatmul.bf16.gmra.mxu2 %v11000_v14  ;;  %v7968_v17 = vld [vmem:[#allocation5 + $0x290] sm:$0xf] }
 0x23a   : > { %v2497_v58 = vadd.f32 %v2496_v2, %v2448_v30  ;;  %2642 = vmatmul.bf16.gmra.mxu0 %v10996_v12  ;;  %2967 = vmatpush.bf16.msra.mxu3 %v8481_v18 }
 0x23b   : > { %2789 = vmatmul.bf16.gmra.mxu3 %v11002_v15  ;;  %v11256_v37 = vpack.c.bf16 %v3641_v31, %v3633_v35  ;;  %v9899_v35 = vld [vmem:[#allocation5 + $0x2ac] sm:$0xf0] }
 0x23c   : > { %v2545_v39 = vpop.f32.mrf.mxu2  ;;  %v2498_v28 = vpop.f32.mrf.mxu1  ;;  %v7969_v31 = vor.u32 %v9899_v35, %v7968_v17 }
 0x23d   : > { %12392 = vst [vmem:[#allocation32_spill] sm:$0xff] %v11256_v37  ;;  %v2546_v59 = vadd.f32 %v2545_v39, %v2497_v58 }
 0x23e   : > { %v2594_v5 = vpop.f32.mrf.mxu3  ;;  %2869 = vmatpush.bf16.msra.mxu1 %v7969_v31 }
 0x23f   : > { %v2449_v56 = vpop.f32.mrf.mxu0  ;;  %v2595_v30 = vadd.f32 %v2594_v5, %v2546_v59  ;;  %v8192_v5 = vld [vmem:[#allocation5 + $0x450] sm:$0xf] }
 0x240   : > { %v2450_v29 = vadd.f32 %v2449_v56, %v11225_v60  ;;  %v9955_v56 = vld [vmem:[#allocation5 + $0x46c] sm:$0xf0] }
 0x241   : > { %v3649_v55 = vmax.f32 %v2595_v30, 0.0 }
 0x242   : > { %v2499_v2 = vadd.f32 %v2498_v28, %v2450_v29  ;;  %v8193_v29 = vor.u32 %v9955_v56, %v8192_v5  ;;  %v9827_v28 = vld [vmem:[#allocation5 + $0x6c] sm:$0xf0] }
 0x243   : > { %v7681_v31 = vor.u32 %v9827_v28, %v7680_v38 }
 0x244   : > { %v2547_v33 = vpop.f32.mrf.mxu2  ;;  %v2501_v6 = vpop.f32.mrf.mxu1  ;;  %2919 = vmatpush.bf16.msra.mxu2 %v8193_v29 }
 0x245   : > { %v2548_v34 = vadd.f32 %v2547_v33, %v2499_v2  ;;  %v10019_v2 = vld [vmem:[#allocation5 + $0x66c] sm:$0xf0]  ;;  %2821 = vmatpush.bf16.msra.mxu0 %v7681_v31 }
 0x246   : > { %v2596_v37 = vpop.f32.mrf.mxu3  ;;  %v7648_v31 = vld [vmem:[#allocation5 + $0x10] sm:$0xf] }
 0x247   : > { %v2452_v58 = vpop.f32.mrf.mxu0  ;;  %v2597_v36 = vadd.f32 %v2596_v37, %v2548_v34  ;;  %2696 = vmatmul.bf16.gmra.mxu1 %v11018_v41  ;;  %v8448_v37 = vld [vmem:[#allocation5 + $0x650] sm:$0xf] }
 0x248   : > { %v2453_v39 = vadd.f32 %v2452_v58, %v11225_v60  ;;  %v8449_v33 = vor.u32 %v10019_v2, %v8448_v37 }
 0x249   : > { %v3657_v63 = vmax.f32 %v2597_v36, 0.0  ;;  %2745 = vmatmul.bf16.gmra.mxu2 %v11020_v42  ;;  %v7936_v36 = vld [vmem:[#allocation5 + $0x250] sm:$0xf] }
 0x24a   : > { %v2502_v7 = vadd.f32 %v2501_v6, %v2453_v39  ;;  %2647 = vmatmul.bf16.gmra.mxu0 %v11016_v40  ;;  %2968 = vmatpush.bf16.msra.mxu3 %v8449_v33 }
 0x24b   : > { %2794 = vmatmul.bf16.gmra.mxu3 %v11022_v43  ;;  %v11264_v59 = vpack.c.bf16 %v3657_v63, %v3649_v55  ;;  %v9891_v55 = vld [vmem:[#allocation5 + $0x26c] sm:$0xf0] }
 0x24c   : > { %v2550_v18 = vpop.f32.mrf.mxu2  ;;  %v2503_v58 = vpop.f32.mrf.mxu1  ;;  %v7937_v63 = vor.u32 %v9891_v55, %v7936_v36 }
 0x24d   : > { %12393 = vst [vmem:[#allocation33_spill] sm:$0xff] %v11264_v59  ;;  %v2551_v17 = vadd.f32 %v2550_v18, %v2502_v7 }
 0x24e   : > { %v2599_v35 = vpop.f32.mrf.mxu3  ;;  %2870 = vmatpush.bf16.msra.mxu1 %v7937_v63 }
 0x24f   : > { %v2454_v30 = vpop.f32.mrf.mxu0  ;;  %v2600_v39 = vadd.f32 %v2599_v35, %v2551_v17  ;;  %v8160_v35 = vld [vmem:[#allocation5 + $0x410] sm:$0xf] }
 0x250   : > { %v2455_v34 = vadd.f32 %v2454_v30, %v11225_v60  ;;  %v9947_v30 = vld [vmem:[#allocation5 + $0x42c] sm:$0xf0] }
 0x251   : > { %v3665_v29 = vmax.f32 %v2600_v39, 0.0 }
 0x252   : > { %v2504_v6 = vadd.f32 %v2503_v58, %v2455_v34  ;;  %v8161_v34 = vor.u32 %v9947_v30, %v8160_v35  ;;  %v9819_v58 = vld [vmem:[#allocation5 + $0x2c] sm:$0xf0] }
 0x253   : > { %v7649_v63 = vor.u32 %v9819_v58, %v7648_v31 }
 0x254   : > { %v2552_v5 = vpop.f32.mrf.mxu2  ;;  %v2506_v38 = vpop.f32.mrf.mxu1  ;;  %2920 = vmatpush.bf16.msra.mxu2 %v8161_v34 }
 0x255   : > { %v2553_v56 = vadd.f32 %v2552_v5, %v2504_v6  ;;  %v10011_v6 = vld [vmem:[#allocation5 + $0x62c] sm:$0xf0]  ;;  %2822 = vmatpush.bf16.msra.mxu0 %v7649_v63  ;;  %v9871_v63 = vld [vmem:[#allocation5 + $0x1d4] sm:$0xf] }
 0x256   : > { %v2601_v59 = vpop.f32.mrf.mxu3 }
 0x257   : > { %v2457_v7 = vpop.f32.mrf.mxu0  ;;  %v2602_v28 = vadd.f32 %v2601_v59, %v2553_v56  ;;  %2701 = vmatmul.bf16.gmra.mxu1 %v11038_v9  ;;  %v8416_v59 = vld [vmem:[#allocation5 + $0x610] sm:$0xf] }
 0x258   : > { %v2458_v18 = vadd.f32 %v2457_v7, %v11225_v60  ;;  %v8417_v5 = vor.u32 %v10011_v6, %v8416_v59 }
 0x259   : > { %v3673_v2 = vmax.f32 %v2602_v28, 0.0  ;;  %2750 = vmatmul.bf16.gmra.mxu2 %v11040_v10  ;;  %v7904_v28 = vld [vmem:[#allocation5 + $0x210] sm:$0xf] }
 0x25a   : > { %v2507_v37 = vadd.f32 %v2506_v38, %v2458_v18  ;;  %2652 = vmatmul.bf16.gmra.mxu0 %v11036_v8  ;;  %2969 = vmatpush.bf16.msra.mxu3 %v8417_v5 }
 0x25b   : > { %2799 = vmatmul.bf16.gmra.mxu3 %v11042_v11  ;;  %v11272_v17 = vpack.c.bf16 %v3673_v2, %v3665_v29  ;;  %v9883_v29 = vld [vmem:[#allocation5 + $0x22c] sm:$0xf0] }
 0x25c   : > { %v2555_v33 = vpop.f32.mrf.mxu2  ;;  %v2508_v7 = vpop.f32.mrf.mxu1  ;;  %v7905_v2 = vor.u32 %v9883_v29, %v7904_v28 }
 0x25d   : > { %12394 = vst [vmem:[#allocation34_spill] sm:$0xff] %v11272_v17  ;;  %v2556_v36 = vadd.f32 %v2555_v33, %v2507_v37 }
 0x25e   : > { %v2604_v55 = vpop.f32.mrf.mxu3  ;;  %2871 = vmatpush.bf16.msra.mxu1 %v7905_v2 }
 0x25f   : > { %v2459_v39 = vpop.f32.mrf.mxu0  ;;  %v2605_v18 = vadd.f32 %v2604_v55, %v2556_v36  ;;  %v9999_v55 = vld [vmem:[#allocation5 + $0x5d4] sm:$0xf] }
 0x260   : > { %v2460_v56 = vadd.f32 %v2459_v39, %v11225_v60  ;;  %v8386_v39 = vld [vmem:[#allocation5 + $0x5f0] sm:$0xf0] }
 0x261   : > { %v3681_v34 = vmax.f32 %v2605_v18, 0.0 }
 0x262   : > { %v2509_v38 = vadd.f32 %v2508_v7, %v2460_v56  ;;  %v8389_v56 = vor.u32 %v9999_v55, %v8386_v39  ;;  %v7874_v7 = vld [vmem:[#allocation5 + $0x1f0] sm:$0xf0] }
 0x263   : > { %v7877_v2 = vor.u32 %v9871_v63, %v7874_v7 }
 0x264   : > { %v2557_v35 = vpop.f32.mrf.mxu2  ;;  %v2511_v31 = vpop.f32.mrf.mxu1  ;;  %3109 = vmatpush.bf16.msrb.mxu2 %v8389_v56 }
 0x265   : > { %v2558_v30 = vadd.f32 %v2557_v35, %v2509_v38  ;;  %v8642_v38 = vld [vmem:[#allocation5 + $0x7f0] sm:$0xf0]  ;;  %3011 = vmatpush.bf16.msrb.mxu0 %v7877_v2 }
 0x266   : > { %v2606_v17 = vpop.f32.mrf.mxu3  ;;  %v9863_v2 = vld [vmem:[#allocation5 + $0x194] sm:$0xf] }
 0x267   : > { %v2462_v37 = vpop.f32.mrf.mxu0  ;;  %v2607_v58 = vadd.f32 %v2606_v17, %v2558_v30  ;;  %2706 = vmatmul.bf16.gmra.mxu1 %v11058_v45  ;;  %v10063_v17 = vld [vmem:[#allocation5 + $0x7d4] sm:$0xf] }
 0x268   : > { %v2463_v33 = vadd.f32 %v2462_v37, %v11225_v60  ;;  %v8645_v35 = vor.u32 %v10063_v17, %v8642_v38 }
 0x269   : > { %v3689_v6 = vmax.f32 %v2607_v58, 0.0  ;;  %2755 = vmatmul.bf16.gmra.mxu2 %v11060_v46  ;;  %v9935_v58 = vld [vmem:[#allocation5 + $0x3d4] sm:$0xf] }
 0x26a   : > { %v2512_v59 = vadd.f32 %v2511_v31, %v2463_v33  ;;  %2657 = vmatmul.bf16.gmra.mxu0 %v11056_v44  ;;  %3158 = vmatpush.bf16.msrb.mxu3 %v8645_v35 }
 0x26b   : > { %2804 = vmatmul.bf16.gmra.mxu3 %v11062_v47  ;;  %v11280_v36 = vpack.c.bf16 %v3689_v6, %v3681_v34  ;;  %v8130_v34 = vld [vmem:[#allocation5 + $0x3f0] sm:$0xf0] }
 0x26c   : > { %v2560_v5 = vpop.f32.mrf.mxu2  ;;  %v2513_v37 = vpop.f32.mrf.mxu1  ;;  %v8133_v6 = vor.u32 %v9935_v58, %v8130_v34 }
 0x26d   : > { %12395 = vst [vmem:[#allocation35_spill] sm:$0xff] %v11280_v36  ;;  %v2561_v28 = vadd.f32 %v2560_v5, %v2512_v59 }
 0x26e   : > { %v2609_v29 = vpop.f32.mrf.mxu3  ;;  %3060 = vmatpush.bf16.msrb.mxu1 %v8133_v6 }
 0x26f   : > { %v2464_v18 = vpop.f32.mrf.mxu0  ;;  %v2610_v33 = vadd.f32 %v2609_v29, %v2561_v28  ;;  %v9991_v29 = vld [vmem:[#allocation5 + $0x594] sm:$0xf] }
 0x270   : > { %v2465_v30 = vadd.f32 %v2464_v18, %v11225_v60  ;;  %v8354_v18 = vld [vmem:[#allocation5 + $0x5b0] sm:$0xf0] }
 0x271   : > { %v3697_v56 = vmax.f32 %v2610_v33, 0.0 }
 0x272   : > { %v2514_v31 = vadd.f32 %v2513_v37, %v2465_v30  ;;  %v8357_v30 = vor.u32 %v9991_v29, %v8354_v18  ;;  %v7842_v37 = vld [vmem:[#allocation5 + $0x1b0] sm:$0xf0] }
 0x273   : > { %v7845_v6 = vor.u32 %v9863_v2, %v7842_v37 }
 0x274   : > { %v2562_v55 = vpop.f32.mrf.mxu2  ;;  %v2516_v63 = vpop.f32.mrf.mxu1  ;;  %3110 = vmatpush.bf16.msrb.mxu2 %v8357_v30 }
 0x275   : > { %v2563_v39 = vadd.f32 %v2562_v55, %v2514_v31  ;;  %v8610_v31 = vld [vmem:[#allocation5 + $0x7b0] sm:$0xf0]  ;;  %3012 = vmatpush.bf16.msrb.mxu0 %v7845_v6 }
 0x276   : > { %v2611_v36 = vpop.f32.mrf.mxu3  ;;  %v9855_v6 = vld [vmem:[#allocation5 + $0x154] sm:$0xf] }
 0x277   : > { %v2467_v59 = vpop.f32.mrf.mxu0  ;;  %v2612_v7 = vadd.f32 %v2611_v36, %v2563_v39  ;;  %2711 = vmatmul.bf16.gmra.mxu1 %v11078_v21  ;;  %v10055_v36 = vld [vmem:[#allocation5 + $0x794] sm:$0xf] }
 0x278   : > { %v2468_v5 = vadd.f32 %v2467_v59, %v11225_v60  ;;  %v8613_v55 = vor.u32 %v10055_v36, %v8610_v31 }
 0x279   : > { %v3705_v38 = vmax.f32 %v2612_v7, 0.0  ;;  %2760 = vmatmul.bf16.gmra.mxu2 %v11080_v22  ;;  %v9927_v7 = vld [vmem:[#allocation5 + $0x394] sm:$0xf] }
 0x27a   : > { %v2517_v17 = vadd.f32 %v2516_v63, %v2468_v5  ;;  %2662 = vmatmul.bf16.gmra.mxu0 %v11076_v20  ;;  %3159 = vmatpush.bf16.msrb.mxu3 %v8613_v55 }
 0x27b   : > { %2809 = vmatmul.bf16.gmra.mxu3 %v11082_v23  ;;  %v11288_v28 = vpack.c.bf16 %v3705_v38, %v3697_v56  ;;  %v8098_v56 = vld [vmem:[#allocation5 + $0x3b0] sm:$0xf0]  ;;  %v11292_v38 = vperm.slane %v11222_v61, 3 }
 0x27c   : > { %v2565_v35 = vpop.f32.mrf.mxu2  ;;  %v2518_v59 = vpop.f32.mrf.mxu1  ;;  %v8101_v29 = vor.u32 %v9927_v7, %v8098_v56  ;;  %v8578_v7 = vld [vmem:[#allocation5 + $0x770] sm:$0xf0] }
 0x27d   : > { %12396 = vst [vmem:[#allocation36_spill] sm:$0xff] %v11288_v28  ;;  %v2566_v58 = vadd.f32 %v2565_v35, %v2517_v17 }
 0x27e   : > { %v2614_v34 = vpop.f32.mrf.mxu3  ;;  %3061 = vmatpush.bf16.msrb.mxu1 %v8101_v29 }
 0x27f   : > { %v2469_v33 = vpop.f32.mrf.mxu0  ;;  %v2615_v5 = vadd.f32 %v2614_v34, %v2566_v58  ;;  %v9983_v34 = vld [vmem:[#allocation5 + $0x554] sm:$0xf] }
 0x280   : > { %v2470_v39 = vadd.f32 %v2469_v33, %v11225_v60  ;;  %v8322_v33 = vld [vmem:[#allocation5 + $0x570] sm:$0xf0] }
 0x281   : > { %v3713_v31 = vmax.f32 %v2615_v5, 0.0 }
 0x282   : > { %v2519_v63 = vadd.f32 %v2518_v59, %v2470_v39  ;;  %v8325_v39 = vor.u32 %v9983_v34, %v8322_v33  ;;  %v7810_v59 = vld [vmem:[#allocation5 + $0x170] sm:$0xf0] }
 0x284   : > { %v2567_v18 = vpop.f32.mrf.mxu2  ;;  %v2677_v60 = vpop.f32.mrf.mxu1  ;;  %3111 = vmatpush.bf16.msrb.mxu2 %v8325_v39 }
 0x285   : > { %v2568_v17 = vadd.f32 %v2567_v18, %v2519_v63  ;;  %v10047_v63 = vld [vmem:[#allocation5 + $0x754] sm:$0xf]  ;;  %v7813_v18 = vor.u32 %v9855_v6, %v7810_v59 }
 0x286   : > { %v2616_v35 = vpop.f32.mrf.mxu3 }
 0x287   : > { %v2628_v2 = vpop.f32.mrf.mxu0  ;;  %v2617_v36 = vadd.f32 %v2616_v35, %v2568_v17  ;;  %2872 = vmatmul.bf16.vlgmr.msra.gmra.mxu1 %v10938_v53  ;;  %v8581_v17 = vor.u32 %v10047_v63, %v8578_v7  ;;  %3013 = vmatpush.bf16.msrb.mxu0 %v7813_v18  ;;  %v9847_v18 = vld [vmem:[#allocation5 + $0x114] sm:$0xf] }
 0x288   : > { %v2629_v37 = vadd.f32 %v2628_v2, %v11292_v38 }
 0x289   : > { %v3721_v58 = vmax.f32 %v2617_v36, 0.0  ;;  %2921 = vmatmul.bf16.vlgmr.msra.gmra.mxu2 %v10940_v54  ;;  %3160 = vmatpush.bf16.msrb.mxu3 %v8581_v17  ;;  %v9919_v36 = vld [vmem:[#allocation5 + $0x354] sm:$0xf] }
 0x28a   : > { %v2678_v30 = vadd.f32 %v2677_v60, %v2629_v37  ;;  %2823 = vmatmul.bf16.vlgmr.msra.gmra.mxu0 %v10936_v48 }
 0x28b   : > { %2970 = vmatmul.bf16.vlgmr.msra.gmra.mxu3 %v10942_v57  ;;  %v11299_v61 = vpack.c.bf16 %v3721_v58, %v3713_v31  ;;  %v8066_v31 = vld [vmem:[#allocation5 + $0x370] sm:$0xf0] }
 0x28c   : > { %v2726_v55 = vpop.f32.mrf.mxu2  ;;  %v2679_v2 = vpop.f32.mrf.mxu1  ;;  %v8069_v58 = vor.u32 %v9919_v36, %v8066_v31 }
 0x28d   : > { %12397 = vst [vmem:[#allocation37_spill] sm:$0xff] %v11299_v61  ;;  %v2727_v56 = vadd.f32 %v2726_v55, %v2678_v30 }
 0x28e   : > { %v2775_v29 = vpop.f32.mrf.mxu3  ;;  %3062 = vmatpush.bf16.msrb.mxu1 %v8069_v58 }
 0x28f   : > { %v2630_v5 = vpop.f32.mrf.mxu0  ;;  %v2776_v37 = vadd.f32 %v2775_v29, %v2727_v56  ;;  %v9975_v29 = vld [vmem:[#allocation5 + $0x514] sm:$0xf] }
 0x290   : > { %v2631_v35 = vadd.f32 %v2630_v5, %v11292_v38  ;;  %v8290_v5 = vld [vmem:[#allocation5 + $0x530] sm:$0xf0] }
 0x291   : > { %v3602_v39 = vmax.f32 %v2776_v37, 0.0 }
 0x292   : > { %v2680_v60 = vadd.f32 %v2679_v2, %v2631_v35  ;;  %v8293_v35 = vor.u32 %v9975_v29, %v8290_v5  ;;  %v7778_v2 = vld [vmem:[#allocation5 + $0x130] sm:$0xf0] }
 0x293   : > { %v7781_v58 = vor.u32 %v9847_v18, %v7778_v2 }
 0x294   : > { %v2728_v34 = vpop.f32.mrf.mxu2  ;;  %v2682_v6 = vpop.f32.mrf.mxu1  ;;  %3112 = vmatpush.bf16.msrb.mxu2 %v8293_v35 }
 0x295   : > { %v2729_v33 = vadd.f32 %v2728_v34, %v2680_v60  ;;  %v8546_v60 = vld [vmem:[#allocation5 + $0x730] sm:$0xf0]  ;;  %3014 = vmatpush.bf16.msrb.mxu0 %v7781_v58 }
 0x296   : > { %v2777_v61 = vpop.f32.mrf.mxu3  ;;  %v9839_v58 = vld [vmem:[#allocation5 + $0xd4] sm:$0xf] }
 0x297   : > { %v2633_v30 = vpop.f32.mrf.mxu0  ;;  %v2778_v59 = vadd.f32 %v2777_v61, %v2729_v33  ;;  %2877 = vmatmul.bf16.gmra.mxu1 %v10958_v25  ;;  %v10039_v61 = vld [vmem:[#allocation5 + $0x714] sm:$0xf] }
 0x298   : > { %v2634_v55 = vadd.f32 %v2633_v30, %v11292_v38  ;;  %v8549_v34 = vor.u32 %v10039_v61, %v8546_v60 }
 0x299   : > { %v3610_v7 = vmax.f32 %v2778_v59, 0.0  ;;  %2926 = vmatmul.bf16.gmra.mxu2 %v10960_v26  ;;  %v9911_v59 = vld [vmem:[#allocation5 + $0x314] sm:$0xf] }
 0x29a   : > { %v2683_v63 = vadd.f32 %v2682_v6, %v2634_v55  ;;  %2828 = vmatmul.bf16.gmra.mxu0 %v10956_v24  ;;  %3161 = vmatpush.bf16.msrb.mxu3 %v8549_v34 }
 0x29b   : > { %2975 = vmatmul.bf16.gmra.mxu3 %v10962_v27  ;;  %v11307_v56 = vpack.c.bf16 %v3610_v7, %v3602_v39  ;;  %v8034_v39 = vld [vmem:[#allocation5 + $0x330] sm:$0xf0] }
 0x29c   : > { %v2731_v17 = vpop.f32.mrf.mxu2  ;;  %v2684_v30 = vpop.f32.mrf.mxu1  ;;  %v8037_v7 = vor.u32 %v9911_v59, %v8034_v39 }
 0x29d   : > { %12398 = vst [vmem:[#allocation38_spill] sm:$0xff] %v11307_v56  ;;  %v2732_v36 = vadd.f32 %v2731_v17, %v2683_v63 }
 0x29e   : > { %v2780_v31 = vpop.f32.mrf.mxu3  ;;  %3063 = vmatpush.bf16.msrb.mxu1 %v8037_v7 }
 0x29f   : > { %v2635_v37 = vpop.f32.mrf.mxu0  ;;  %v2781_v55 = vadd.f32 %v2780_v31, %v2732_v36  ;;  %v9967_v31 = vld [vmem:[#allocation5 + $0x4d4] sm:$0xf] }
 0x2a0   : > { %v2636_v33 = vadd.f32 %v2635_v37, %v11292_v38  ;;  %v8258_v37 = vld [vmem:[#allocation5 + $0x4f0] sm:$0xf0] }
 0x2a1   : > { %v3618_v35 = vmax.f32 %v2781_v55, 0.0 }
 0x2a2   : > { %v2685_v6 = vadd.f32 %v2684_v30, %v2636_v33  ;;  %v8261_v33 = vor.u32 %v9967_v31, %v8258_v37  ;;  %v7746_v30 = vld [vmem:[#allocation5 + $0xf0] sm:$0xf0] }
 0x2a3   : > { %v7749_v7 = vor.u32 %v9839_v58, %v7746_v30 }
 0x2a4   : > { %v2733_v29 = vpop.f32.mrf.mxu2  ;;  %v2687_v18 = vpop.f32.mrf.mxu1  ;;  %3113 = vmatpush.bf16.msrb.mxu2 %v8261_v33 }
 0x2a5   : > { %v2734_v5 = vadd.f32 %v2733_v29, %v2685_v6  ;;  %v8514_v6 = vld [vmem:[#allocation5 + $0x6f0] sm:$0xf0]  ;;  %3015 = vmatpush.bf16.msrb.mxu0 %v7749_v7 }
 0x2a6   : > { %v2782_v28 = vpop.f32.mrf.mxu3  ;;  %v9831_v7 = vld [vmem:[#allocation5 + $0x94] sm:$0xf] }
 0x2a7   : > { %v2638_v63 = vpop.f32.mrf.mxu0  ;;  %v2783_v2 = vadd.f32 %v2782_v28, %v2734_v5  ;;  %2882 = vmatmul.bf16.gmra.mxu1 %v10978_v50  ;;  %v10031_v28 = vld [vmem:[#allocation5 + $0x6d4] sm:$0xf] }
 0x2a8   : > { %v2639_v17 = vadd.f32 %v2638_v63, %v11292_v38  ;;  %v8517_v29 = vor.u32 %v10031_v28, %v8514_v6 }
 0x2a9   : > { %v3626_v60 = vmax.f32 %v2783_v2, 0.0  ;;  %2931 = vmatmul.bf16.gmra.mxu2 %v10980_v51  ;;  %v9903_v2 = vld [vmem:[#allocation5 + $0x2d4] sm:$0xf] }
 0x2aa   : > { %v2688_v61 = vadd.f32 %v2687_v18, %v2639_v17  ;;  %2833 = vmatmul.bf16.gmra.mxu0 %v10976_v49  ;;  %3162 = vmatpush.bf16.msrb.mxu3 %v8517_v29 }
 0x2ab   : > { %2980 = vmatmul.bf16.gmra.mxu3 %v10982_v52  ;;  %v11315_v36 = vpack.c.bf16 %v3626_v60, %v3618_v35  ;;  %v8002_v35 = vld [vmem:[#allocation5 + $0x2f0] sm:$0xf0] }
 0x2ac   : > { %v2736_v34 = vpop.f32.mrf.mxu2  ;;  %v2689_v63 = vpop.f32.mrf.mxu1  ;;  %v8005_v60 = vor.u32 %v9903_v2, %v8002_v35 }
 0x2ad   : > { %v2737_v59 = vadd.f32 %v2736_v34, %v2688_v61 }
 0x2ae   : > { %v2785_v39 = vpop.f32.mrf.mxu3  ;;  %3064 = vmatpush.bf16.msrb.mxu1 %v8005_v60 }
 0x2af   : > { %v2640_v55 = vpop.f32.mrf.mxu0  ;;  %v2786_v17 = vadd.f32 %v2785_v39, %v2737_v59  ;;  %v9959_v39 = vld [vmem:[#allocation5 + $0x494] sm:$0xf] }
 0x2b0   : > { %v2641_v5 = vadd.f32 %v2640_v55, %v11292_v38  ;;  %v8226_v55 = vld [vmem:[#allocation5 + $0x4b0] sm:$0xf0] }
 0x2b1   : > { %v3634_v33 = vmax.f32 %v2786_v17, 0.0 }
 0x2b2   : > { %v2690_v18 = vadd.f32 %v2689_v63, %v2641_v5  ;;  %v8229_v5 = vor.u32 %v9959_v39, %v8226_v55  ;;  %v7714_v63 = vld [vmem:[#allocation5 + $0xb0] sm:$0xf0] }
 0x2b3   : > { %v7717_v60 = vor.u32 %v9831_v7, %v7714_v63 }
 0x2b4   : > { %v2738_v31 = vpop.f32.mrf.mxu2  ;;  %v2692_v58 = vpop.f32.mrf.mxu1  ;;  %3114 = vmatpush.bf16.msrb.mxu2 %v8229_v5 }
 0x2b5   : > { %v2739_v37 = vadd.f32 %v2738_v31, %v2690_v18  ;;  %v8482_v18 = vld [vmem:[#allocation5 + $0x6b0] sm:$0xf0]  ;;  %3016 = vmatpush.bf16.msrb.mxu0 %v7717_v60 }
 0x2b6   : > { %v2787_v16 = vpop.f32.mrf.mxu3  ;;  %v9823_v60 = vld [vmem:[#allocation5 + $0x54] sm:$0xf] }
 0x2b7   : > { %v2643_v61 = vpop.f32.mrf.mxu0  ;;  %v2788_v30 = vadd.f32 %v2787_v16, %v2739_v37  ;;  %2887 = vmatmul.bf16.gmra.mxu1 %v10998_v13  ;;  %v10023_v16 = vld [vmem:[#allocation5 + $0x694] sm:$0xf] }
 0x2b8   : > { %v2644_v34 = vadd.f32 %v2643_v61, %v11292_v38  ;;  %v8485_v31 = vor.u32 %v10023_v16, %v8482_v18 }
 0x2b9   : > { %v3642_v6 = vmax.f32 %v2788_v30, 0.0  ;;  %2936 = vmatmul.bf16.gmra.mxu2 %v11000_v14  ;;  %v9895_v30 = vld [vmem:[#allocation5 + $0x294] sm:$0xf] }
 0x2ba   : > { %v2693_v28 = vadd.f32 %v2692_v58, %v2644_v34  ;;  %2838 = vmatmul.bf16.gmra.mxu0 %v10996_v12  ;;  %3163 = vmatpush.bf16.msrb.mxu3 %v8485_v31 }
 0x2bb   : > { %2985 = vmatmul.bf16.gmra.mxu3 %v11002_v15  ;;  %v11323_v59 = vpack.c.bf16 %v3642_v6, %v3634_v33  ;;  %v7970_v33 = vld [vmem:[#allocation5 + $0x2b0] sm:$0xf0] }
 0x2bc   : > { %v2741_v29 = vpop.f32.mrf.mxu2  ;;  %v2694_v61 = vpop.f32.mrf.mxu1  ;;  %v7973_v6 = vor.u32 %v9895_v30, %v7970_v33 }
 0x2bd   : > { %12399 = vst [vmem:[#allocation39_spill] sm:$0xff] %v11323_v59  ;;  %v2742_v2 = vadd.f32 %v2741_v29, %v2693_v28 }
 0x2be   : > { %v2790_v35 = vpop.f32.mrf.mxu3  ;;  %3065 = vmatpush.bf16.msrb.mxu1 %v7973_v6 }
 0x2bf   : > { %v2645_v17 = vpop.f32.mrf.mxu0  ;;  %v2791_v34 = vadd.f32 %v2790_v35, %v2742_v2  ;;  %v9951_v35 = vld [vmem:[#allocation5 + $0x454] sm:$0xf] }
 0x2c0   : > { %v2646_v37 = vadd.f32 %v2645_v17, %v11292_v38  ;;  %v8194_v17 = vld [vmem:[#allocation5 + $0x470] sm:$0xf0] }
 0x2c1   : > { %v3650_v5 = vmax.f32 %v2791_v34, 0.0 }
 0x2c2   : > { %v2695_v58 = vadd.f32 %v2694_v61, %v2646_v37  ;;  %v8197_v37 = vor.u32 %v9951_v35, %v8194_v17  ;;  %v7682_v61 = vld [vmem:[#allocation5 + $0x70] sm:$0xf0] }
 0x2c3   : > { %v7685_v6 = vor.u32 %v9823_v60, %v7682_v61 }
 0x2c4   : > { %v2743_v39 = vpop.f32.mrf.mxu2  ;;  %v2697_v7 = vpop.f32.mrf.mxu1  ;;  %3115 = vmatpush.bf16.msrb.mxu2 %v8197_v37 }
 0x2c5   : > { %v2744_v55 = vadd.f32 %v2743_v39, %v2695_v58  ;;  %v8450_v58 = vld [vmem:[#allocation5 + $0x670] sm:$0xf0]  ;;  %3017 = vmatpush.bf16.msrb.mxu0 %v7685_v6 }
 0x2c6   : > { %v2792_v59 = vpop.f32.mrf.mxu3  ;;  %v9815_v6 = vld [vmem:[#allocation5 + $0x14] sm:$0xf] }
 0x2c7   : > { %v2648_v28 = vpop.f32.mrf.mxu0  ;;  %v2793_v63 = vadd.f32 %v2792_v59, %v2744_v55  ;;  %2892 = vmatmul.bf16.gmra.mxu1 %v11018_v41  ;;  %v10015_v59 = vld [vmem:[#allocation5 + $0x654] sm:$0xf] }
 0x2c8   : > { %v2649_v29 = vadd.f32 %v2648_v28, %v11292_v38  ;;  %v8453_v39 = vor.u32 %v10015_v59, %v8450_v58 }
 0x2c9   : > { %v3658_v18 = vmax.f32 %v2793_v63, 0.0  ;;  %2941 = vmatmul.bf16.gmra.mxu2 %v11020_v42  ;;  %v9887_v63 = vld [vmem:[#allocation5 + $0x254] sm:$0xf] }
 0x2ca   : > { %v2698_v16 = vadd.f32 %v2697_v7, %v2649_v29  ;;  %2843 = vmatmul.bf16.gmra.mxu0 %v11016_v40  ;;  %3164 = vmatpush.bf16.msrb.mxu3 %v8453_v39 }
 0x2cb   : > { %2990 = vmatmul.bf16.gmra.mxu3 %v11022_v43  ;;  %v11331_v2 = vpack.c.bf16 %v3658_v18, %v3650_v5  ;;  %v7938_v5 = vld [vmem:[#allocation5 + $0x270] sm:$0xf0] }
 0x2cc   : > { %v2746_v31 = vpop.f32.mrf.mxu2  ;;  %v2699_v28 = vpop.f32.mrf.mxu1  ;;  %v7941_v18 = vor.u32 %v9887_v63, %v7938_v5 }
 0x2cd   : > { %12400 = vst [vmem:[#allocation40_spill] sm:$0xff] %v11331_v2  ;;  %v2747_v30 = vadd.f32 %v2746_v31, %v2698_v16 }
 0x2ce   : > { %v2795_v33 = vpop.f32.mrf.mxu3  ;;  %3066 = vmatpush.bf16.msrb.mxu1 %v7941_v18 }
 0x2cf   : > { %v2650_v34 = vpop.f32.mrf.mxu0  ;;  %v2796_v29 = vadd.f32 %v2795_v33, %v2747_v30  ;;  %v9943_v33 = vld [vmem:[#allocation5 + $0x414] sm:$0xf] }
 0x2d0   : > { %v2651_v55 = vadd.f32 %v2650_v34, %v11292_v38  ;;  %v8162_v34 = vld [vmem:[#allocation5 + $0x430] sm:$0xf0] }
 0x2d1   : > { %v3666_v37 = vmax.f32 %v2796_v29, 0.0 }
 0x2d2   : > { %v2700_v7 = vadd.f32 %v2699_v28, %v2651_v55  ;;  %v8165_v55 = vor.u32 %v9943_v33, %v8162_v34  ;;  %v7650_v28 = vld [vmem:[#allocation5 + $0x30] sm:$0xf0] }
 0x2d3   : > { %v7653_v18 = vor.u32 %v9815_v6, %v7650_v28 }
 0x2d4   : > { %v2748_v35 = vpop.f32.mrf.mxu2  ;;  %v2702_v60 = vpop.f32.mrf.mxu1  ;;  %3116 = vmatpush.bf16.msrb.mxu2 %v8165_v55 }
 0x2d5   : > { %v2749_v17 = vadd.f32 %v2748_v35, %v2700_v7  ;;  %v8418_v7 = vld [vmem:[#allocation5 + $0x630] sm:$0xf0]  ;;  %3018 = vmatpush.bf16.msrb.mxu0 %v7653_v18  ;;  %v7880_v18 = vld [vmem:[#allocation5 + $0x1d8] sm:$0xf] }
 0x2d6   : > { %v2797_v2 = vpop.f32.mrf.mxu3 }
 0x2d7   : > { %v2653_v16 = vpop.f32.mrf.mxu0  ;;  %v2798_v61 = vadd.f32 %v2797_v2, %v2749_v17  ;;  %2897 = vmatmul.bf16.gmra.mxu1 %v11038_v9  ;;  %v10007_v2 = vld [vmem:[#allocation5 + $0x614] sm:$0xf] }
 0x2d8   : > { %v2654_v31 = vadd.f32 %v2653_v16, %v11292_v38  ;;  %v8421_v35 = vor.u32 %v10007_v2, %v8418_v7 }
 0x2d9   : > { %v3674_v58 = vmax.f32 %v2798_v61, 0.0  ;;  %2946 = vmatmul.bf16.gmra.mxu2 %v11040_v10  ;;  %v9879_v61 = vld [vmem:[#allocation5 + $0x214] sm:$0xf] }
 0x2da   : > { %v2703_v59 = vadd.f32 %v2702_v60, %v2654_v31  ;;  %2848 = vmatmul.bf16.gmra.mxu0 %v11036_v8  ;;  %3165 = vmatpush.bf16.msrb.mxu3 %v8421_v35 }
 0x2db   : > { %2995 = vmatmul.bf16.gmra.mxu3 %v11042_v11  ;;  %v11339_v30 = vpack.c.bf16 %v3674_v58, %v3666_v37  ;;  %v7906_v37 = vld [vmem:[#allocation5 + $0x230] sm:$0xf0] }
 0x2dc   : > { %v2751_v39 = vpop.f32.mrf.mxu2  ;;  %v2704_v16 = vpop.f32.mrf.mxu1  ;;  %v7909_v58 = vor.u32 %v9879_v61, %v7906_v37 }
 0x2dd   : > { %12401 = vst [vmem:[#allocation41_spill] sm:$0xff] %v11339_v30  ;;  %v2752_v63 = vadd.f32 %v2751_v39, %v2703_v59 }
 0x2de   : > { %v2800_v5 = vpop.f32.mrf.mxu3  ;;  %3067 = vmatpush.bf16.msrb.mxu1 %v7909_v58 }
 0x2df   : > { %v2655_v29 = vpop.f32.mrf.mxu0  ;;  %v2801_v31 = vadd.f32 %v2800_v5, %v2752_v63  ;;  %v8392_v5 = vld [vmem:[#allocation5 + $0x5d8] sm:$0xf] }
 0x2e0   : > { %v2656_v17 = vadd.f32 %v2655_v29, %v11292_v38  ;;  %v10004_v29 = vld [vmem:[#allocation5 + $0x5f4] sm:$0xf0] }
 0x2e1   : > { %v3682_v55 = vmax.f32 %v2801_v31, 0.0 }
 0x2e2   : > { %v2705_v60 = vadd.f32 %v2704_v16, %v2656_v17  ;;  %v8393_v17 = vor.u32 %v10004_v29, %v8392_v5  ;;  %v9876_v16 = vld [vmem:[#allocation5 + $0x1f4] sm:$0xf0] }
 0x2e3   : > { %v7881_v58 = vor.u32 %v9876_v16, %v7880_v18 }
 0x2e4   : > { %v2753_v33 = vpop.f32.mrf.mxu2  ;;  %v2707_v6 = vpop.f32.mrf.mxu1  ;;  %3305 = vmatpush.bf16.msra.mxu2 %v8393_v17 }
 0x2e5   : > { %v2754_v34 = vadd.f32 %v2753_v33, %v2705_v60  ;;  %v10068_v60 = vld [vmem:[#allocation5 + $0x7f4] sm:$0xf0]  ;;  %3207 = vmatpush.bf16.msra.mxu0 %v7881_v58 }
 0x2e6   : > { %v2802_v30 = vpop.f32.mrf.mxu3  ;;  %v7848_v58 = vld [vmem:[#allocation5 + $0x198] sm:$0xf] }
 0x2e7   : > { %v2658_v59 = vpop.f32.mrf.mxu0  ;;  %v2803_v28 = vadd.f32 %v2802_v30, %v2754_v34  ;;  %2902 = vmatmul.bf16.gmra.mxu1 %v11058_v45  ;;  %v8648_v30 = vld [vmem:[#allocation5 + $0x7d8] sm:$0xf] }
 0x2e8   : > { %v2659_v39 = vadd.f32 %v2658_v59, %v11292_v38  ;;  %v8649_v33 = vor.u32 %v10068_v60, %v8648_v30 }
 0x2e9   : > { %v3690_v7 = vmax.f32 %v2803_v28, 0.0  ;;  %2951 = vmatmul.bf16.gmra.mxu2 %v11060_v46  ;;  %v8136_v28 = vld [vmem:[#allocation5 + $0x3d8] sm:$0xf] }
 0x2ea   : > { %v2708_v2 = vadd.f32 %v2707_v6, %v2659_v39  ;;  %2853 = vmatmul.bf16.gmra.mxu0 %v11056_v44  ;;  %3354 = vmatpush.bf16.msra.mxu3 %v8649_v33 }
 0x2eb   : > { %3000 = vmatmul.bf16.gmra.mxu3 %v11062_v47  ;;  %v11347_v63 = vpack.c.bf16 %v3690_v7, %v3682_v55  ;;  %v9940_v55 = vld [vmem:[#allocation5 + $0x3f4] sm:$0xf0] }
 0x2ec   : > { %v2756_v35 = vpop.f32.mrf.mxu2  ;;  %v2709_v59 = vpop.f32.mrf.mxu1  ;;  %v8137_v7 = vor.u32 %v9940_v55, %v8136_v28 }
 0x2ed   : > { %12402 = vst [vmem:[#allocation42_spill] sm:$0xff] %v11347_v63  ;;  %v2757_v61 = vadd.f32 %v2756_v35, %v2708_v2 }
 0x2ee   : > { %v2805_v37 = vpop.f32.mrf.mxu3  ;;  %3256 = vmatpush.bf16.msra.mxu1 %v8137_v7 }
 0x2ef   : > { %v2660_v31 = vpop.f32.mrf.mxu0  ;;  %v2806_v39 = vadd.f32 %v2805_v37, %v2757_v61  ;;  %v8360_v37 = vld [vmem:[#allocation5 + $0x598] sm:$0xf] }
 0x2f0   : > { %v2661_v34 = vadd.f32 %v2660_v31, %v11292_v38  ;;  %v9996_v31 = vld [vmem:[#allocation5 + $0x5b4] sm:$0xf0] }
 0x2f1   : > { %v3698_v17 = vmax.f32 %v2806_v39, 0.0 }
 0x2f2   : > { %v2710_v6 = vadd.f32 %v2709_v59, %v2661_v34  ;;  %v8361_v34 = vor.u32 %v9996_v31, %v8360_v37  ;;  %v9868_v59 = vld [vmem:[#allocation5 + $0x1b4] sm:$0xf0] }
 0x2f3   : > { %v7849_v7 = vor.u32 %v9868_v59, %v7848_v58 }
 0x2f4   : > { %v2758_v5 = vpop.f32.mrf.mxu2  ;;  %v2712_v18 = vpop.f32.mrf.mxu1  ;;  %3306 = vmatpush.bf16.msra.mxu2 %v8361_v34 }
 0x2f5   : > { %v2759_v29 = vadd.f32 %v2758_v5, %v2710_v6  ;;  %v10060_v6 = vld [vmem:[#allocation5 + $0x7b4] sm:$0xf0]  ;;  %3208 = vmatpush.bf16.msra.mxu0 %v7849_v7 }
 0x2f6   : > { %v2807_v63 = vpop.f32.mrf.mxu3  ;;  %v8328_v7 = vld [vmem:[#allocation5 + $0x558] sm:$0xf] }
 0x2f7   : > { %v2663_v2 = vpop.f32.mrf.mxu0  ;;  %v2808_v16 = vadd.f32 %v2807_v63, %v2759_v29  ;;  %2907 = vmatmul.bf16.gmra.mxu1 %v11078_v21  ;;  %v8616_v63 = vld [vmem:[#allocation5 + $0x798] sm:$0xf] }
 0x2f8   : > { %v2664_v35 = vadd.f32 %v2663_v2, %v11292_v38  ;;  %v8617_v5 = vor.u32 %v10060_v6, %v8616_v63 }
 0x2f9   : > { %v3706_v60 = vmax.f32 %v2808_v16, 0.0  ;;  %2956 = vmatmul.bf16.gmra.mxu2 %v11080_v22  ;;  %v8104_v16 = vld [vmem:[#allocation5 + $0x398] sm:$0xf] }
 0x2fa   : > { %v2713_v30 = vadd.f32 %v2712_v18, %v2664_v35  ;;  %2858 = vmatmul.bf16.gmra.mxu0 %v11076_v20  ;;  %3355 = vmatpush.bf16.msra.mxu3 %v8617_v5  ;;  %v9988_v5 = vld [vmem:[#allocation5 + $0x574] sm:$0xf0] }
 0x2fb   : > { %3005 = vmatmul.bf16.gmra.mxu3 %v11082_v23  ;;  %v11355_v61 = vpack.c.bf16 %v3706_v60, %v3698_v17  ;;  %v9932_v17 = vld [vmem:[#allocation5 + $0x3b4] sm:$0xf0]  ;;  %v11358_v60 = vld [vmem:[#allocation7] sm:$0xff] }
 0x2fc   : > { %v2761_v33 = vpop.f32.mrf.mxu2  ;;  %v2714_v2 = vpop.f32.mrf.mxu1  ;;  %v11361_v37 = vperm.slane %v11358_v60, 4 }
 0x2fd   : > { %12403 = vst [vmem:[#allocation43_spill] sm:$0xff] %v11355_v61  ;;  %v2762_v28 = vadd.f32 %v2761_v33, %v2713_v30  ;;  %v8105_v30 = vor.u32 %v9932_v17, %v8104_v16  ;;  %v9860_v16 = vld [vmem:[#allocation5 + $0x174] sm:$0xf0] }
 0x2fe   : > { %v2810_v55 = vpop.f32.mrf.mxu3  ;;  %v8584_v17 = vld [vmem:[#allocation5 + $0x758] sm:$0xf] }
 0x2ff   : > { %v2665_v39 = vpop.f32.mrf.mxu0  ;;  %v2811_v35 = vadd.f32 %v2810_v55, %v2762_v28  ;;  %3257 = vmatpush.bf16.msra.mxu1 %v8105_v30  ;;  %v10052_v30 = vld [vmem:[#allocation5 + $0x774] sm:$0xf0] }
 0x300   : > { %v2666_v29 = vadd.f32 %v2665_v39, %v11292_v38 }
 0x301   : > { %v3714_v28 = vmax.f32 %v2811_v35, 0.0 }
 0x302   : > { %v2715_v18 = vadd.f32 %v2714_v2, %v2666_v29  ;;  %v7816_v29 = vld [vmem:[#allocation5 + $0x158] sm:$0xf] }
 0x304   : > { %v2763_v31 = vpop.f32.mrf.mxu2  ;;  %v2873_v34 = vpop.f32.mrf.mxu1 }
 0x305   : > { %v2764_v58 = vadd.f32 %v2763_v31, %v2715_v18  ;;  %v8329_v18 = vor.u32 %v9988_v5, %v8328_v7 }
 0x306   : > { %v2812_v33 = vpop.f32.mrf.mxu3 }
 0x307   : > { %v2824_v59 = vpop.f32.mrf.mxu0  ;;  %v2813_v63 = vadd.f32 %v2812_v33, %v2764_v58  ;;  %3068 = vmatmul.bf16.vlgmr.msrb.gmra.mxu1 %v10938_v53  ;;  %v7817_v33 = vor.u32 %v9860_v16, %v7816_v29  ;;  %3307 = vmatpush.bf16.msra.mxu2 %v8329_v18 }
 0x308   : > { %v2825_v38 = vadd.f32 %v2824_v59, %v11361_v37  ;;  %v8585_v59 = vor.u32 %v10052_v30, %v8584_v17 }
 0x309   : > { %v3722_v55 = vmax.f32 %v2813_v63, 0.0  ;;  %3117 = vmatmul.bf16.vlgmr.msrb.gmra.mxu2 %v10940_v54  ;;  %3209 = vmatpush.bf16.msra.mxu0 %v7817_v33 }
 0x30a   : > { %v2874_v6 = vadd.f32 %v2873_v34, %v2825_v38  ;;  %3019 = vmatmul.bf16.vlgmr.msrb.gmra.mxu0 %v10936_v48  ;;  %3356 = vmatpush.bf16.msra.mxu3 %v8585_v59  ;;  %v9852_v59 = vld [vmem:[#allocation5 + $0x134] sm:$0xf0] }
 0x30b   : > { %3166 = vmatmul.bf16.vlgmr.msrb.gmra.mxu3 %v10942_v57  ;;  %v11368_v39 = vpack.c.bf16 %v3722_v55, %v3714_v28  ;;  %v8072_v55 = vld [vmem:[#allocation5 + $0x358] sm:$0xf] }
 0x30c   : > { %v2922_v2 = vpop.f32.mrf.mxu2  ;;  %v2875_v34 = vpop.f32.mrf.mxu1 }
 0x30d   : > { %12404 = vst [vmem:[#allocation44_spill] sm:$0xff] %v11368_v39  ;;  %v2923_v31 = vadd.f32 %v2922_v2, %v2874_v6  ;;  %v9924_v39 = vld [vmem:[#allocation5 + $0x374] sm:$0xf0] }
 0x30e   : > { %v2971_v58 = vpop.f32.mrf.mxu3  ;;  %v8073_v61 = vor.u32 %v9924_v39, %v8072_v55 }
 0x30f   : > { %v2826_v35 = vpop.f32.mrf.mxu0  ;;  %v2972_v63 = vadd.f32 %v2971_v58, %v2923_v31  ;;  %v9980_v31 = vld [vmem:[#allocation5 + $0x534] sm:$0xf0] }
 0x310   : > { %v2827_v38 = vadd.f32 %v2826_v35, %v11361_v37  ;;  %3258 = vmatpush.bf16.msra.mxu1 %v8073_v61  ;;  %v8296_v61 = vld [vmem:[#allocation5 + $0x518] sm:$0xf] }
 0x311   : > { %v3603_v18 = vmax.f32 %v2972_v63, 0.0  ;;  %v7784_v58 = vld [vmem:[#allocation5 + $0x118] sm:$0xf]  ;;  %v8297_v33 = vor.u32 %v9980_v31, %v8296_v61 }
 0x312   : > { %v2876_v28 = vadd.f32 %v2875_v34, %v2827_v38  ;;  %v10044_v38 = vld [vmem:[#allocation5 + $0x734] sm:$0xf0]  ;;  %v7785_v55 = vor.u32 %v9852_v59, %v7784_v58 }
 0x313   : > { %3308 = vmatpush.bf16.msra.mxu2 %v8297_v33 }
 0x314   : > { %v2924_v7 = vpop.f32.mrf.mxu2  ;;  %v2878_v29 = vpop.f32.mrf.mxu1  ;;  %3210 = vmatpush.bf16.msra.mxu0 %v7785_v55  ;;  %v7752_v55 = vld [vmem:[#allocation5 + $0xd8] sm:$0xf] }
 0x315   : > { %v2925_v5 = vadd.f32 %v2924_v7, %v2876_v28 }
 0x316   : > { %v2973_v3 = vpop.f32.mrf.mxu3 }
 0x317   : > { %v2829_v6 = vpop.f32.mrf.mxu0  ;;  %v2974_v16 = vadd.f32 %v2973_v3, %v2925_v5  ;;  %3073 = vmatmul.bf16.gmra.mxu1 %v10958_v25  ;;  %v8552_v3 = vld [vmem:[#allocation5 + $0x718] sm:$0xf] }
 0x318   : > { %v2830_v2 = vadd.f32 %v2829_v6, %v11361_v37  ;;  %v8553_v7 = vor.u32 %v10044_v38, %v8552_v3 }
 0x319   : > { %v3611_v30 = vmax.f32 %v2974_v16, 0.0  ;;  %3122 = vmatmul.bf16.gmra.mxu2 %v10960_v26  ;;  %v8040_v16 = vld [vmem:[#allocation5 + $0x318] sm:$0xf] }
 0x31a   : > { %v2879_v17 = vadd.f32 %v2878_v29, %v2830_v2  ;;  %3024 = vmatmul.bf16.gmra.mxu0 %v10956_v24  ;;  %3357 = vmatpush.bf16.msra.mxu3 %v8553_v7 }
 0x31b   : > { %3171 = vmatmul.bf16.gmra.mxu3 %v10962_v27  ;;  %v11376_v39 = vpack.c.bf16 %v3611_v30, %v3603_v18  ;;  %v9916_v18 = vld [vmem:[#allocation5 + $0x334] sm:$0xf0] }
 0x31c   : > { %v2927_v35 = vpop.f32.mrf.mxu2  ;;  %v2880_v6 = vpop.f32.mrf.mxu1  ;;  %v8041_v30 = vor.u32 %v9916_v18, %v8040_v16 }
 0x31d   : > { %12405 = vst [vmem:[#allocation45_spill] sm:$0xff] %v11376_v39  ;;  %v2928_v34 = vadd.f32 %v2927_v35, %v2879_v17 }
 0x31e   : > { %v2976_v28 = vpop.f32.mrf.mxu3  ;;  %3259 = vmatpush.bf16.msra.mxu1 %v8041_v30 }
 0x31f   : > { %v2831_v63 = vpop.f32.mrf.mxu0  ;;  %v2977_v2 = vadd.f32 %v2976_v28, %v2928_v34  ;;  %v8264_v28 = vld [vmem:[#allocation5 + $0x4d8] sm:$0xf] }
 0x320   : > { %v2832_v5 = vadd.f32 %v2831_v63, %v11361_v37  ;;  %v9972_v63 = vld [vmem:[#allocation5 + $0x4f4] sm:$0xf0] }
 0x321   : > { %v3619_v33 = vmax.f32 %v2977_v2, 0.0 }
 0x322   : > { %v2881_v29 = vadd.f32 %v2880_v6, %v2832_v5  ;;  %v8265_v5 = vor.u32 %v9972_v63, %v8264_v28  ;;  %v9844_v6 = vld [vmem:[#allocation5 + $0xf4] sm:$0xf0] }
 0x323   : > { %v7753_v30 = vor.u32 %v9844_v6, %v7752_v55 }
 0x324   : > { %v2929_v61 = vpop.f32.mrf.mxu2  ;;  %v2883_v58 = vpop.f32.mrf.mxu1  ;;  %3309 = vmatpush.bf16.msra.mxu2 %v8265_v5 }
 0x325   : > { %v2930_v31 = vadd.f32 %v2929_v61, %v2881_v29  ;;  %v10036_v29 = vld [vmem:[#allocation5 + $0x6f4] sm:$0xf0]  ;;  %3211 = vmatpush.bf16.msra.mxu0 %v7753_v30 }
 0x326   : > { %v2978_v39 = vpop.f32.mrf.mxu3  ;;  %v7720_v30 = vld [vmem:[#allocation5 + $0x98] sm:$0xf] }
 0x327   : > { %v2834_v17 = vpop.f32.mrf.mxu0  ;;  %v2979_v59 = vadd.f32 %v2978_v39, %v2930_v31  ;;  %3078 = vmatmul.bf16.gmra.mxu1 %v10978_v50  ;;  %v8520_v39 = vld [vmem:[#allocation5 + $0x6d8] sm:$0xf] }
 0x328   : > { %v2835_v35 = vadd.f32 %v2834_v17, %v11361_v37  ;;  %v8521_v61 = vor.u32 %v10036_v29, %v8520_v39 }
 0x329   : > { %v3627_v38 = vmax.f32 %v2979_v59, 0.0  ;;  %3127 = vmatmul.bf16.gmra.mxu2 %v10980_v51  ;;  %v8008_v59 = vld [vmem:[#allocation5 + $0x2d8] sm:$0xf] }
 0x32a   : > { %v2884_v3 = vadd.f32 %v2883_v58, %v2835_v35  ;;  %3029 = vmatmul.bf16.gmra.mxu0 %v10976_v49  ;;  %3358 = vmatpush.bf16.msra.mxu3 %v8521_v61 }
 0x32b   : > { %3176 = vmatmul.bf16.gmra.mxu3 %v10982_v52  ;;  %v11384_v34 = vpack.c.bf16 %v3627_v38, %v3619_v33  ;;  %v9908_v33 = vld [vmem:[#allocation5 + $0x2f4] sm:$0xf0] }
 0x32c   : > { %v2932_v7 = vpop.f32.mrf.mxu2  ;;  %v2885_v17 = vpop.f32.mrf.mxu1  ;;  %v8009_v38 = vor.u32 %v9908_v33, %v8008_v59 }
 0x32d   : > { %12406 = vst [vmem:[#allocation46_spill] sm:$0xff] %v11384_v34  ;;  %v2933_v16 = vadd.f32 %v2932_v7, %v2884_v3 }
 0x32e   : > { %v2981_v18 = vpop.f32.mrf.mxu3  ;;  %3260 = vmatpush.bf16.msra.mxu1 %v8009_v38 }
 0x32f   : > { %v2836_v2 = vpop.f32.mrf.mxu0  ;;  %v2982_v35 = vadd.f32 %v2981_v18, %v2933_v16  ;;  %v8232_v18 = vld [vmem:[#allocation5 + $0x498] sm:$0xf] }
 0x330   : > { %v2837_v31 = vadd.f32 %v2836_v2, %v11361_v37  ;;  %v9964_v2 = vld [vmem:[#allocation5 + $0x4b4] sm:$0xf0] }
 0x331   : > { %v3635_v5 = vmax.f32 %v2982_v35, 0.0 }
 0x332   : > { %v2886_v58 = vadd.f32 %v2885_v17, %v2837_v31  ;;  %v8233_v31 = vor.u32 %v9964_v2, %v8232_v18  ;;  %v9836_v17 = vld [vmem:[#allocation5 + $0xb4] sm:$0xf0] }
 0x333   : > { %v7721_v38 = vor.u32 %v9836_v17, %v7720_v30 }
 0x334   : > { %v2934_v28 = vpop.f32.mrf.mxu2  ;;  %v2888_v55 = vpop.f32.mrf.mxu1  ;;  %3310 = vmatpush.bf16.msra.mxu2 %v8233_v31 }
 0x335   : > { %v2935_v63 = vadd.f32 %v2934_v28, %v2886_v58  ;;  %v10028_v58 = vld [vmem:[#allocation5 + $0x6b4] sm:$0xf0]  ;;  %3212 = vmatpush.bf16.msra.mxu0 %v7721_v38 }
 0x336   : > { %v2983_v34 = vpop.f32.mrf.mxu3  ;;  %v7688_v38 = vld [vmem:[#allocation5 + $0x58] sm:$0xf] }
 0x337   : > { %v2839_v3 = vpop.f32.mrf.mxu0  ;;  %v2984_v6 = vadd.f32 %v2983_v34, %v2935_v63  ;;  %3083 = vmatmul.bf16.gmra.mxu1 %v10998_v13  ;;  %v8488_v34 = vld [vmem:[#allocation5 + $0x698] sm:$0xf] }
 0x338   : > { %v2840_v7 = vadd.f32 %v2839_v3, %v11361_v37  ;;  %v8489_v28 = vor.u32 %v10028_v58, %v8488_v34 }
 0x339   : > { %v3643_v29 = vmax.f32 %v2984_v6, 0.0  ;;  %3132 = vmatmul.bf16.gmra.mxu2 %v11000_v14  ;;  %v7976_v6 = vld [vmem:[#allocation5 + $0x298] sm:$0xf] }
 0x33a   : > { %v2889_v39 = vadd.f32 %v2888_v55, %v2840_v7  ;;  %3034 = vmatmul.bf16.gmra.mxu0 %v10996_v12  ;;  %3359 = vmatpush.bf16.msra.mxu3 %v8489_v28 }
 0x33b   : > { %3181 = vmatmul.bf16.gmra.mxu3 %v11002_v15  ;;  %v11392_v16 = vpack.c.bf16 %v3643_v29, %v3635_v5  ;;  %v9900_v5 = vld [vmem:[#allocation5 + $0x2b4] sm:$0xf0] }
 0x33c   : > { %v2937_v61 = vpop.f32.mrf.mxu2  ;;  %v2890_v3 = vpop.f32.mrf.mxu1  ;;  %v7977_v29 = vor.u32 %v9900_v5, %v7976_v6 }
 0x33d   : > { %12407 = vst [vmem:[#allocation47_spill] sm:$0xff] %v11392_v16  ;;  %v2938_v59 = vadd.f32 %v2937_v61, %v2889_v39 }
 0x33e   : > { %v2986_v33 = vpop.f32.mrf.mxu3  ;;  %3261 = vmatpush.bf16.msra.mxu1 %v7977_v29 }
 0x33f   : > { %v2841_v35 = vpop.f32.mrf.mxu0  ;;  %v2987_v7 = vadd.f32 %v2986_v33, %v2938_v59  ;;  %v8200_v33 = vld [vmem:[#allocation5 + $0x458] sm:$0xf] }
 0x340   : > { %v2842_v63 = vadd.f32 %v2841_v35, %v11361_v37  ;;  %v9956_v35 = vld [vmem:[#allocation5 + $0x474] sm:$0xf0] }
 0x341   : > { %v3651_v31 = vmax.f32 %v2987_v7, 0.0 }
 0x342   : > { %v2891_v55 = vadd.f32 %v2890_v3, %v2842_v63  ;;  %v8201_v63 = vor.u32 %v9956_v35, %v8200_v33  ;;  %v9828_v3 = vld [vmem:[#allocation5 + $0x74] sm:$0xf0] }
 0x343   : > { %v7689_v29 = vor.u32 %v9828_v3, %v7688_v38 }
 0x344   : > { %v2939_v18 = vpop.f32.mrf.mxu2  ;;  %v2893_v30 = vpop.f32.mrf.mxu1  ;;  %3311 = vmatpush.bf16.msra.mxu2 %v8201_v63 }
 0x345   : > { %v2940_v2 = vadd.f32 %v2939_v18, %v2891_v55  ;;  %v10020_v55 = vld [vmem:[#allocation5 + $0x674] sm:$0xf0]  ;;  %3213 = vmatpush.bf16.msra.mxu0 %v7689_v29 }
 0x346   : > { %v2988_v16 = vpop.f32.mrf.mxu3  ;;  %v7656_v29 = vld [vmem:[#allocation5 + $0x18] sm:$0xf] }
 0x347   : > { %v2844_v39 = vpop.f32.mrf.mxu0  ;;  %v2989_v17 = vadd.f32 %v2988_v16, %v2940_v2  ;;  %3088 = vmatmul.bf16.gmra.mxu1 %v11018_v41  ;;  %v8456_v16 = vld [vmem:[#allocation5 + $0x658] sm:$0xf] }
 0x348   : > { %v2845_v61 = vadd.f32 %v2844_v39, %v11361_v37  ;;  %v8457_v18 = vor.u32 %v10020_v55, %v8456_v16 }
 0x349   : > { %v3659_v58 = vmax.f32 %v2989_v17, 0.0  ;;  %3137 = vmatmul.bf16.gmra.mxu2 %v11020_v42  ;;  %v7944_v17 = vld [vmem:[#allocation5 + $0x258] sm:$0xf] }
 0x34a   : > { %v2894_v34 = vadd.f32 %v2893_v30, %v2845_v61  ;;  %3039 = vmatmul.bf16.gmra.mxu0 %v11016_v40  ;;  %3360 = vmatpush.bf16.msra.mxu3 %v8457_v18 }
 0x34b   : > { %3186 = vmatmul.bf16.gmra.mxu3 %v11022_v43  ;;  %v11400_v59 = vpack.c.bf16 %v3659_v58, %v3651_v31  ;;  %v9892_v31 = vld [vmem:[#allocation5 + $0x274] sm:$0xf0] }
 0x34c   : > { %v2942_v28 = vpop.f32.mrf.mxu2  ;;  %v2895_v39 = vpop.f32.mrf.mxu1  ;;  %v7945_v58 = vor.u32 %v9892_v31, %v7944_v17 }
 0x34d   : > { %12408 = vst [vmem:[#allocation48_spill] sm:$0xff] %v11400_v59  ;;  %v2943_v6 = vadd.f32 %v2942_v28, %v2894_v34 }
 0x34e   : > { %v2991_v5 = vpop.f32.mrf.mxu3  ;;  %3262 = vmatpush.bf16.msra.mxu1 %v7945_v58 }
 0x34f   : > { %v2846_v7 = vpop.f32.mrf.mxu0  ;;  %v2992_v61 = vadd.f32 %v2991_v5, %v2943_v6  ;;  %v8168_v5 = vld [vmem:[#allocation5 + $0x418] sm:$0xf] }
 0x350   : > { %v2847_v2 = vadd.f32 %v2846_v7, %v11361_v37  ;;  %v9948_v7 = vld [vmem:[#allocation5 + $0x434] sm:$0xf0] }
 0x351   : > { %v3667_v63 = vmax.f32 %v2992_v61, 0.0 }
 0x352   : > { %v2896_v30 = vadd.f32 %v2895_v39, %v2847_v2  ;;  %v8169_v2 = vor.u32 %v9948_v7, %v8168_v5  ;;  %v9820_v39 = vld [vmem:[#allocation5 + $0x34] sm:$0xf0] }
 0x353   : > { %v7657_v58 = vor.u32 %v9820_v39, %v7656_v29 }
 0x354   : > { %v2944_v33 = vpop.f32.mrf.mxu2  ;;  %v2898_v38 = vpop.f32.mrf.mxu1  ;;  %3312 = vmatpush.bf16.msra.mxu2 %v8169_v2 }
 0x355   : > { %v2945_v35 = vadd.f32 %v2944_v33, %v2896_v30  ;;  %v10012_v30 = vld [vmem:[#allocation5 + $0x634] sm:$0xf0]  ;;  %3214 = vmatpush.bf16.msra.mxu0 %v7657_v58  ;;  %v9872_v58 = vld [vmem:[#allocation5 + $0x1dc] sm:$0xf] }
 0x356   : > { %v2993_v59 = vpop.f32.mrf.mxu3 }
 0x357   : > { %v2849_v34 = vpop.f32.mrf.mxu0  ;;  %v2994_v3 = vadd.f32 %v2993_v59, %v2945_v35  ;;  %3093 = vmatmul.bf16.gmra.mxu1 %v11038_v9  ;;  %v8424_v59 = vld [vmem:[#allocation5 + $0x618] sm:$0xf] }
 0x358   : > { %v2850_v28 = vadd.f32 %v2849_v34, %v11361_v37  ;;  %v8425_v33 = vor.u32 %v10012_v30, %v8424_v59 }
 0x359   : > { %v3675_v55 = vmax.f32 %v2994_v3, 0.0  ;;  %3142 = vmatmul.bf16.gmra.mxu2 %v11040_v10  ;;  %v7912_v3 = vld [vmem:[#allocation5 + $0x218] sm:$0xf] }
 0x35a   : > { %v2899_v16 = vadd.f32 %v2898_v38, %v2850_v28  ;;  %3044 = vmatmul.bf16.gmra.mxu0 %v11036_v8  ;;  %3361 = vmatpush.bf16.msra.mxu3 %v8425_v33 }
 0x35b   : > { %3191 = vmatmul.bf16.gmra.mxu3 %v11042_v11  ;;  %v11408_v6 = vpack.c.bf16 %v3675_v55, %v3667_v63  ;;  %v9884_v63 = vld [vmem:[#allocation5 + $0x234] sm:$0xf0] }
 0x35c   : > { %v2947_v18 = vpop.f32.mrf.mxu2  ;;  %v2900_v34 = vpop.f32.mrf.mxu1  ;;  %v7913_v55 = vor.u32 %v9884_v63, %v7912_v3 }
 0x35d   : > { %12409 = vst [vmem:[#allocation49_spill] sm:$0xff] %v11408_v6  ;;  %v2948_v17 = vadd.f32 %v2947_v18, %v2899_v16 }
 0x35e   : > { %v2996_v31 = vpop.f32.mrf.mxu3  ;;  %3263 = vmatpush.bf16.msra.mxu1 %v7913_v55 }
 0x35f   : > { %v2851_v61 = vpop.f32.mrf.mxu0  ;;  %v2997_v28 = vadd.f32 %v2996_v31, %v2948_v17  ;;  %v10000_v31 = vld [vmem:[#allocation5 + $0x5dc] sm:$0xf] }
 0x360   : > { %v2852_v35 = vadd.f32 %v2851_v61, %v11361_v37  ;;  %v8394_v61 = vld [vmem:[#allocation5 + $0x5f8] sm:$0xf0] }
 0x361   : > { %v3683_v2 = vmax.f32 %v2997_v28, 0.0 }
 0x362   : > { %v2901_v38 = vadd.f32 %v2900_v34, %v2852_v35  ;;  %v8397_v35 = vor.u32 %v10000_v31, %v8394_v61  ;;  %v7882_v34 = vld [vmem:[#allocation5 + $0x1f8] sm:$0xf0] }
 0x363   : > { %v7885_v55 = vor.u32 %v9872_v58, %v7882_v34 }
 0x364   : > { %v2949_v5 = vpop.f32.mrf.mxu2  ;;  %v2903_v29 = vpop.f32.mrf.mxu1  ;;  %3501 = vmatpush.bf16.msrb.mxu2 %v8397_v35 }
 0x365   : > { %v2950_v7 = vadd.f32 %v2949_v5, %v2901_v38  ;;  %v8650_v38 = vld [vmem:[#allocation5 + $0x7f8] sm:$0xf0]  ;;  %3403 = vmatpush.bf16.msrb.mxu0 %v7885_v55 }
 0x366   : > { %v2998_v6 = vpop.f32.mrf.mxu3  ;;  %v9864_v55 = vld [vmem:[#allocation5 + $0x19c] sm:$0xf] }
 0x367   : > { %v2854_v16 = vpop.f32.mrf.mxu0  ;;  %v2999_v39 = vadd.f32 %v2998_v6, %v2950_v7  ;;  %3098 = vmatmul.bf16.gmra.mxu1 %v11058_v45  ;;  %v10064_v6 = vld [vmem:[#allocation5 + $0x7dc] sm:$0xf] }
 0x368   : > { %v2855_v18 = vadd.f32 %v2854_v16, %v11361_v37  ;;  %v8653_v5 = vor.u32 %v10064_v6, %v8650_v38 }
 0x369   : > { %v3691_v30 = vmax.f32 %v2999_v39, 0.0  ;;  %3147 = vmatmul.bf16.gmra.mxu2 %v11060_v46  ;;  %v9936_v39 = vld [vmem:[#allocation5 + $0x3dc] sm:$0xf] }
 0x36a   : > { %v2904_v59 = vadd.f32 %v2903_v29, %v2855_v18  ;;  %3049 = vmatmul.bf16.gmra.mxu0 %v11056_v44  ;;  %3550 = vmatpush.bf16.msrb.mxu3 %v8653_v5 }
 0x36b   : > { %3196 = vmatmul.bf16.gmra.mxu3 %v11062_v47  ;;  %v11416_v17 = vpack.c.bf16 %v3691_v30, %v3683_v2  ;;  %v8138_v2 = vld [vmem:[#allocation5 + $0x3f8] sm:$0xf0] }
 0x36c   : > { %v2952_v33 = vpop.f32.mrf.mxu2  ;;  %v2905_v16 = vpop.f32.mrf.mxu1  ;;  %v8141_v30 = vor.u32 %v9936_v39, %v8138_v2 }
 0x36d   : > { %12410 = vst [vmem:[#allocation50_spill] sm:$0xff] %v11416_v17  ;;  %v2953_v3 = vadd.f32 %v2952_v33, %v2904_v59 }
 0x36e   : > { %v3001_v63 = vpop.f32.mrf.mxu3  ;;  %3452 = vmatpush.bf16.msrb.mxu1 %v8141_v30 }
 0x36f   : > { %v2856_v28 = vpop.f32.mrf.mxu0  ;;  %v3002_v18 = vadd.f32 %v3001_v63, %v2953_v3  ;;  %v9992_v63 = vld [vmem:[#allocation5 + $0x59c] sm:$0xf] }
 0x370   : > { %v2857_v7 = vadd.f32 %v2856_v28, %v11361_v37  ;;  %v8362_v28 = vld [vmem:[#allocation5 + $0x5b8] sm:$0xf0] }
 0x371   : > { %v3699_v35 = vmax.f32 %v3002_v18, 0.0 }
 0x372   : > { %v2906_v29 = vadd.f32 %v2905_v16, %v2857_v7  ;;  %v8365_v7 = vor.u32 %v9992_v63, %v8362_v28  ;;  %v7850_v16 = vld [vmem:[#allocation5 + $0x1b8] sm:$0xf0] }
 0x373   : > { %v7853_v30 = vor.u32 %v9864_v55, %v7850_v16 }
 0x374   : > { %v2954_v31 = vpop.f32.mrf.mxu2  ;;  %v2908_v58 = vpop.f32.mrf.mxu1  ;;  %3502 = vmatpush.bf16.msrb.mxu2 %v8365_v7 }
 0x375   : > { %v2955_v61 = vadd.f32 %v2954_v31, %v2906_v29  ;;  %v8618_v29 = vld [vmem:[#allocation5 + $0x7b8] sm:$0xf0]  ;;  %3404 = vmatpush.bf16.msrb.mxu0 %v7853_v30 }
 0x376   : > { %v3003_v17 = vpop.f32.mrf.mxu3  ;;  %v9856_v30 = vld [vmem:[#allocation5 + $0x15c] sm:$0xf] }
 0x377   : > { %v2859_v59 = vpop.f32.mrf.mxu0  ;;  %v3004_v34 = vadd.f32 %v3003_v17, %v2955_v61  ;;  %3103 = vmatmul.bf16.gmra.mxu1 %v11078_v21  ;;  %v10056_v17 = vld [vmem:[#allocation5 + $0x79c] sm:$0xf] }
 0x378   : > { %v2860_v33 = vadd.f32 %v2859_v59, %v11361_v37  ;;  %v8621_v31 = vor.u32 %v10056_v17, %v8618_v29 }
 0x379   : > { %v3707_v38 = vmax.f32 %v3004_v34, 0.0  ;;  %3152 = vmatmul.bf16.gmra.mxu2 %v11080_v22  ;;  %v9928_v34 = vld [vmem:[#allocation5 + $0x39c] sm:$0xf] }
 0x37a   : > { %v2909_v6 = vadd.f32 %v2908_v58, %v2860_v33  ;;  %3054 = vmatmul.bf16.gmra.mxu0 %v11076_v20  ;;  %3551 = vmatpush.bf16.msrb.mxu3 %v8621_v31 }
 0x37b   : > { %3201 = vmatmul.bf16.gmra.mxu3 %v11082_v23  ;;  %v11424_v3 = vpack.c.bf16 %v3707_v38, %v3699_v35  ;;  %v8106_v35 = vld [vmem:[#allocation5 + $0x3b8] sm:$0xf0]  ;;  %v11428_v38 = vperm.slane %v11358_v60, 5 }
 0x37c   : > { %v2957_v5 = vpop.f32.mrf.mxu2  ;;  %v2910_v59 = vpop.f32.mrf.mxu1  ;;  %v8109_v63 = vor.u32 %v9928_v34, %v8106_v35  ;;  %v8586_v34 = vld [vmem:[#allocation5 + $0x778] sm:$0xf0] }
 0x37d   : > { %12411 = vst [vmem:[#allocation51_spill] sm:$0xff] %v11424_v3  ;;  %v2958_v39 = vadd.f32 %v2957_v5, %v2909_v6 }
 0x37e   : > { %v3006_v2 = vpop.f32.mrf.mxu3  ;;  %3453 = vmatpush.bf16.msrb.mxu1 %v8109_v63 }
 0x37f   : > { %v2861_v18 = vpop.f32.mrf.mxu0  ;;  %v3007_v33 = vadd.f32 %v3006_v2, %v2958_v39  ;;  %v9984_v2 = vld [vmem:[#allocation5 + $0x55c] sm:$0xf] }
 0x380   : > { %v2862_v61 = vadd.f32 %v2861_v18, %v11361_v37  ;;  %v8330_v18 = vld [vmem:[#allocation5 + $0x578] sm:$0xf0] }
 0x381   : > { %v3715_v29 = vmax.f32 %v3007_v33, 0.0 }
 0x382   : > { %v2911_v58 = vadd.f32 %v2910_v59, %v2862_v61  ;;  %v8333_v61 = vor.u32 %v9984_v2, %v8330_v18  ;;  %v7818_v59 = vld [vmem:[#allocation5 + $0x178] sm:$0xf0] }
 0x384   : > { %v2959_v28 = vpop.f32.mrf.mxu2  ;;  %v3069_v37 = vpop.f32.mrf.mxu1  ;;  %3503 = vmatpush.bf16.msrb.mxu2 %v8333_v61 }
 0x385   : > { %v2960_v6 = vadd.f32 %v2959_v28, %v2911_v58  ;;  %v10048_v58 = vld [vmem:[#allocation5 + $0x75c] sm:$0xf]  ;;  %v7821_v28 = vor.u32 %v9856_v30, %v7818_v59 }
 0x386   : > { %v3008_v5 = vpop.f32.mrf.mxu3 }
 0x387   : > { %v3020_v55 = vpop.f32.mrf.mxu0  ;;  %v3009_v17 = vadd.f32 %v3008_v5, %v2960_v6  ;;  %3264 = vmatmul.bf16.vlgmr.msra.gmra.mxu1 %v10938_v53  ;;  %v8589_v6 = vor.u32 %v10048_v58, %v8586_v34  ;;  %3405 = vmatpush.bf16.msrb.mxu0 %v7821_v28  ;;  %v9848_v28 = vld [vmem:[#allocation5 + $0x11c] sm:$0xf] }
 0x388   : > { %v3021_v16 = vadd.f32 %v3020_v55, %v11428_v38 }
 0x389   : > { %v3723_v39 = vmax.f32 %v3009_v17, 0.0  ;;  %3313 = vmatmul.bf16.vlgmr.msra.gmra.mxu2 %v10940_v54  ;;  %3552 = vmatpush.bf16.msrb.mxu3 %v8589_v6  ;;  %v9920_v17 = vld [vmem:[#allocation5 + $0x35c] sm:$0xf] }
 0x38a   : > { %v3070_v7 = vadd.f32 %v3069_v37, %v3021_v16  ;;  %3215 = vmatmul.bf16.vlgmr.msra.gmra.mxu0 %v10936_v48 }
 0x38b   : > { %3362 = vmatmul.bf16.vlgmr.msra.gmra.mxu3 %v10942_v57  ;;  %v11435_v60 = vpack.c.bf16 %v3723_v39, %v3715_v29  ;;  %v8074_v29 = vld [vmem:[#allocation5 + $0x378] sm:$0xf0] }
 0x38c   : > { %v3118_v31 = vpop.f32.mrf.mxu2  ;;  %v3071_v55 = vpop.f32.mrf.mxu1  ;;  %v8077_v39 = vor.u32 %v9920_v17, %v8074_v29 }
 0x38d   : > { %12412 = vst [vmem:[#allocation52_spill] sm:$0xff] %v11435_v60  ;;  %v3119_v35 = vadd.f32 %v3118_v31, %v3070_v7 }
 0x38e   : > { %v3167_v63 = vpop.f32.mrf.mxu3  ;;  %3454 = vmatpush.bf16.msrb.mxu1 %v8077_v39 }
 0x38f   : > { %v3022_v33 = vpop.f32.mrf.mxu0  ;;  %v3168_v16 = vadd.f32 %v3167_v63, %v3119_v35  ;;  %v9976_v63 = vld [vmem:[#allocation5 + $0x51c] sm:$0xf] }
 0x390   : > { %v3023_v5 = vadd.f32 %v3022_v33, %v11428_v38  ;;  %v8298_v33 = vld [vmem:[#allocation5 + $0x538] sm:$0xf0] }
 0x391   : > { %v3604_v61 = vmax.f32 %v3168_v16, 0.0 }
 0x392   : > { %v3072_v37 = vadd.f32 %v3071_v55, %v3023_v5  ;;  %v8301_v5 = vor.u32 %v9976_v63, %v8298_v33  ;;  %v7786_v55 = vld [vmem:[#allocation5 + $0x138] sm:$0xf0] }
 0x393   : > { %v7789_v39 = vor.u32 %v9848_v28, %v7786_v55 }
 0x394   : > { %v3120_v2 = vpop.f32.mrf.mxu2  ;;  %v3074_v30 = vpop.f32.mrf.mxu1  ;;  %3504 = vmatpush.bf16.msrb.mxu2 %v8301_v5 }
 0x395   : > { %v3121_v18 = vadd.f32 %v3120_v2, %v3072_v37  ;;  %v8554_v37 = vld [vmem:[#allocation5 + $0x738] sm:$0xf0]  ;;  %3406 = vmatpush.bf16.msrb.mxu0 %v7789_v39 }
 0x396   : > { %v3169_v60 = vpop.f32.mrf.mxu3  ;;  %v9840_v39 = vld [vmem:[#allocation5 + $0xdc] sm:$0xf] }
 0x397   : > { %v3025_v7 = vpop.f32.mrf.mxu0  ;;  %v3170_v59 = vadd.f32 %v3169_v60, %v3121_v18  ;;  %3269 = vmatmul.bf16.gmra.mxu1 %v10958_v25  ;;  %v10040_v60 = vld [vmem:[#allocation5 + $0x71c] sm:$0xf] }
 0x398   : > { %v3026_v31 = vadd.f32 %v3025_v7, %v11428_v38  ;;  %v8557_v2 = vor.u32 %v10040_v60, %v8554_v37 }
 0x399   : > { %v3612_v34 = vmax.f32 %v3170_v59, 0.0  ;;  %3318 = vmatmul.bf16.gmra.mxu2 %v10960_v26  ;;  %v9912_v59 = vld [vmem:[#allocation5 + $0x31c] sm:$0xf] }
 0x39a   : > { %v3075_v58 = vadd.f32 %v3074_v30, %v3026_v31  ;;  %3220 = vmatmul.bf16.gmra.mxu0 %v10956_v24  ;;  %3553 = vmatpush.bf16.msrb.mxu3 %v8557_v2 }
 0x39b   : > { %3367 = vmatmul.bf16.gmra.mxu3 %v10962_v27  ;;  %v11443_v35 = vpack.c.bf16 %v3612_v34, %v3604_v61  ;;  %v8042_v61 = vld [vmem:[#allocation5 + $0x338] sm:$0xf0] }
 0x39c   : > { %v3123_v6 = vpop.f32.mrf.mxu2  ;;  %v3076_v7 = vpop.f32.mrf.mxu1  ;;  %v8045_v34 = vor.u32 %v9912_v59, %v8042_v61 }
 0x39d   : > { %12413 = vst [vmem:[#allocation53_spill] sm:$0xff] %v11443_v35  ;;  %v3124_v17 = vadd.f32 %v3123_v6, %v3075_v58 }
 0x39e   : > { %v3172_v29 = vpop.f32.mrf.mxu3  ;;  %3455 = vmatpush.bf16.msrb.mxu1 %v8045_v34 }
 0x39f   : > { %v3027_v16 = vpop.f32.mrf.mxu0  ;;  %v3173_v31 = vadd.f32 %v3172_v29, %v3124_v17  ;;  %v9968_v29 = vld [vmem:[#allocation5 + $0x4dc] sm:$0xf] }
 0x3a0   : > { %v3028_v18 = vadd.f32 %v3027_v16, %v11428_v38  ;;  %v8266_v16 = vld [vmem:[#allocation5 + $0x4f8] sm:$0xf0] }
 0x3a1   : > { %v3620_v5 = vmax.f32 %v3173_v31, 0.0 }
 0x3a2   : > { %v3077_v30 = vadd.f32 %v3076_v7, %v3028_v18  ;;  %v8269_v18 = vor.u32 %v9968_v29, %v8266_v16  ;;  %v7754_v7 = vld [vmem:[#allocation5 + $0xf8] sm:$0xf0] }
 0x3a3   : > { %v7757_v34 = vor.u32 %v9840_v39, %v7754_v7 }
 0x3a4   : > { %v3125_v63 = vpop.f32.mrf.mxu2  ;;  %v3079_v28 = vpop.f32.mrf.mxu1  ;;  %3505 = vmatpush.bf16.msrb.mxu2 %v8269_v18 }
 0x3a5   : > { %v3126_v33 = vadd.f32 %v3125_v63, %v3077_v30  ;;  %v8522_v30 = vld [vmem:[#allocation5 + $0x6f8] sm:$0xf0]  ;;  %3407 = vmatpush.bf16.msrb.mxu0 %v7757_v34 }
 0x3a6   : > { %v3174_v3 = vpop.f32.mrf.mxu3  ;;  %v9832_v34 = vld [vmem:[#allocation5 + $0x9c] sm:$0xf] }
 0x3a7   : > { %v3030_v58 = vpop.f32.mrf.mxu0  ;;  %v3175_v55 = vadd.f32 %v3174_v3, %v3126_v33  ;;  %3274 = vmatmul.bf16.gmra.mxu1 %v10978_v50  ;;  %v10032_v3 = vld [vmem:[#allocation5 + $0x6dc] sm:$0xf] }
 0x3a8   : > { %v3031_v6 = vadd.f32 %v3030_v58, %v11428_v38  ;;  %v8525_v63 = vor.u32 %v10032_v3, %v8522_v30 }
 0x3a9   : > { %v3628_v37 = vmax.f32 %v3175_v55, 0.0  ;;  %3323 = vmatmul.bf16.gmra.mxu2 %v10980_v51  ;;  %v9904_v55 = vld [vmem:[#allocation5 + $0x2dc] sm:$0xf] }
 0x3aa   : > { %v3080_v60 = vadd.f32 %v3079_v28, %v3031_v6  ;;  %3225 = vmatmul.bf16.gmra.mxu0 %v10976_v49  ;;  %3554 = vmatpush.bf16.msrb.mxu3 %v8525_v63 }
 0x3ab   : > { %3372 = vmatmul.bf16.gmra.mxu3 %v10982_v52  ;;  %v11451_v17 = vpack.c.bf16 %v3628_v37, %v3620_v5  ;;  %v8010_v5 = vld [vmem:[#allocation5 + $0x2f8] sm:$0xf0] }
 0x3ac   : > { %v3128_v2 = vpop.f32.mrf.mxu2  ;;  %v3081_v58 = vpop.f32.mrf.mxu1  ;;  %v8013_v37 = vor.u32 %v9904_v55, %v8010_v5 }
 0x3ad   : > { %12414 = vst [vmem:[#allocation54_spill] sm:$0xff] %v11451_v17  ;;  %v3129_v59 = vadd.f32 %v3128_v2, %v3080_v60 }
 0x3ae   : > { %v3177_v61 = vpop.f32.mrf.mxu3  ;;  %3456 = vmatpush.bf16.msrb.mxu1 %v8013_v37 }
 0x3af   : > { %v3032_v31 = vpop.f32.mrf.mxu0  ;;  %v3178_v6 = vadd.f32 %v3177_v61, %v3129_v59  ;;  %v9960_v61 = vld [vmem:[#allocation5 + $0x49c] sm:$0xf] }
 0x3b0   : > { %v3033_v33 = vadd.f32 %v3032_v31, %v11428_v38  ;;  %v8234_v31 = vld [vmem:[#allocation5 + $0x4b8] sm:$0xf0] }
 0x3b1   : > { %v3636_v18 = vmax.f32 %v3178_v6, 0.0 }
 0x3b2   : > { %v3082_v28 = vadd.f32 %v3081_v58, %v3033_v33  ;;  %v8237_v33 = vor.u32 %v9960_v61, %v8234_v31  ;;  %v7722_v58 = vld [vmem:[#allocation5 + $0xb8] sm:$0xf0] }
 0x3b3   : > { %v7725_v37 = vor.u32 %v9832_v34, %v7722_v58 }
 0x3b4   : > { %v3130_v29 = vpop.f32.mrf.mxu2  ;;  %v3084_v39 = vpop.f32.mrf.mxu1  ;;  %3506 = vmatpush.bf16.msrb.mxu2 %v8237_v33 }
 0x3b5   : > { %v3131_v16 = vadd.f32 %v3130_v29, %v3082_v28  ;;  %v8490_v28 = vld [vmem:[#allocation5 + $0x6b8] sm:$0xf0]  ;;  %3408 = vmatpush.bf16.msrb.mxu0 %v7725_v37 }
 0x3b6   : > { %v3179_v17 = vpop.f32.mrf.mxu3  ;;  %v9824_v37 = vld [vmem:[#allocation5 + $0x5c] sm:$0xf] }
 0x3b7   : > { %v3035_v60 = vpop.f32.mrf.mxu0  ;;  %v3180_v7 = vadd.f32 %v3179_v17, %v3131_v16  ;;  %3279 = vmatmul.bf16.gmra.mxu1 %v10998_v13  ;;  %v10024_v17 = vld [vmem:[#allocation5 + $0x69c] sm:$0xf] }
 0x3b8   : > { %v3036_v2 = vadd.f32 %v3035_v60, %v11428_v38  ;;  %v8493_v29 = vor.u32 %v10024_v17, %v8490_v28 }
 0x3b9   : > { %v3644_v30 = vmax.f32 %v3180_v7, 0.0  ;;  %3328 = vmatmul.bf16.gmra.mxu2 %v11000_v14  ;;  %v9896_v7 = vld [vmem:[#allocation5 + $0x29c] sm:$0xf] }
 0x3ba   : > { %v3085_v3 = vadd.f32 %v3084_v39, %v3036_v2  ;;  %3230 = vmatmul.bf16.gmra.mxu0 %v10996_v12  ;;  %3555 = vmatpush.bf16.msrb.mxu3 %v8493_v29 }
 0x3bb   : > { %3377 = vmatmul.bf16.gmra.mxu3 %v11002_v15  ;;  %v11459_v59 = vpack.c.bf16 %v3644_v30, %v3636_v18  ;;  %v7978_v18 = vld [vmem:[#allocation5 + $0x2b8] sm:$0xf0] }
 0x3bc   : > { %v3133_v63 = vpop.f32.mrf.mxu2  ;;  %v3086_v60 = vpop.f32.mrf.mxu1  ;;  %v7981_v30 = vor.u32 %v9896_v7, %v7978_v18 }
 0x3bd   : > { %12415 = vst [vmem:[#allocation55_spill] sm:$0xff] %v11459_v59  ;;  %v3134_v55 = vadd.f32 %v3133_v63, %v3085_v3 }
 0x3be   : > { %v3182_v5 = vpop.f32.mrf.mxu3  ;;  %3457 = vmatpush.bf16.msrb.mxu1 %v7981_v30 }
 0x3bf   : > { %v3037_v6 = vpop.f32.mrf.mxu0  ;;  %v3183_v2 = vadd.f32 %v3182_v5, %v3134_v55  ;;  %v9952_v5 = vld [vmem:[#allocation5 + $0x45c] sm:$0xf] }
 0x3c0   : > { %v3038_v16 = vadd.f32 %v3037_v6, %v11428_v38  ;;  %v8202_v6 = vld [vmem:[#allocation5 + $0x478] sm:$0xf0] }
 0x3c1   : > { %v3652_v33 = vmax.f32 %v3183_v2, 0.0 }
 0x3c2   : > { %v3087_v39 = vadd.f32 %v3086_v60, %v3038_v16  ;;  %v8205_v16 = vor.u32 %v9952_v5, %v8202_v6  ;;  %v7690_v60 = vld [vmem:[#allocation5 + $0x78] sm:$0xf0] }
 0x3c3   : > { %v7693_v30 = vor.u32 %v9824_v37, %v7690_v60 }
 0x3c4   : > { %v3135_v61 = vpop.f32.mrf.mxu2  ;;  %v3089_v34 = vpop.f32.mrf.mxu1  ;;  %3507 = vmatpush.bf16.msrb.mxu2 %v8205_v16 }
 0x3c5   : > { %v3136_v31 = vadd.f32 %v3135_v61, %v3087_v39  ;;  %v8458_v39 = vld [vmem:[#allocation5 + $0x678] sm:$0xf0]  ;;  %3409 = vmatpush.bf16.msrb.mxu0 %v7693_v30 }
 0x3c6   : > { %v3184_v59 = vpop.f32.mrf.mxu3  ;;  %v9816_v30 = vld [vmem:[#allocation5 + $0x1c] sm:$0xf] }
 0x3c7   : > { %v3040_v3 = vpop.f32.mrf.mxu0  ;;  %v3185_v58 = vadd.f32 %v3184_v59, %v3136_v31  ;;  %3284 = vmatmul.bf16.gmra.mxu1 %v11018_v41  ;;  %v10016_v59 = vld [vmem:[#allocation5 + $0x65c] sm:$0xf] }
 0x3c8   : > { %v3041_v63 = vadd.f32 %v3040_v3, %v11428_v38  ;;  %v8461_v61 = vor.u32 %v10016_v59, %v8458_v39 }
 0x3c9   : > { %v3660_v28 = vmax.f32 %v3185_v58, 0.0  ;;  %3333 = vmatmul.bf16.gmra.mxu2 %v11020_v42  ;;  %v9888_v58 = vld [vmem:[#allocation5 + $0x25c] sm:$0xf] }
 0x3ca   : > { %v3090_v17 = vadd.f32 %v3089_v34, %v3041_v63  ;;  %3235 = vmatmul.bf16.gmra.mxu0 %v11016_v40  ;;  %3556 = vmatpush.bf16.msrb.mxu3 %v8461_v61 }
 0x3cb   : > { %3382 = vmatmul.bf16.gmra.mxu3 %v11022_v43  ;;  %v11467_v55 = vpack.c.bf16 %v3660_v28, %v3652_v33  ;;  %v7946_v33 = vld [vmem:[#allocation5 + $0x278] sm:$0xf0] }
 0x3cc   : > { %v3138_v29 = vpop.f32.mrf.mxu2  ;;  %v3091_v3 = vpop.f32.mrf.mxu1  ;;  %v7949_v28 = vor.u32 %v9888_v58, %v7946_v33 }
 0x3cd   : > { %12416 = vst [vmem:[#allocation56_spill] sm:$0xff] %v11467_v55  ;;  %v3139_v7 = vadd.f32 %v3138_v29, %v3090_v17 }
 0x3ce   : > { %v3187_v18 = vpop.f32.mrf.mxu3  ;;  %3458 = vmatpush.bf16.msrb.mxu1 %v7949_v28 }
 0x3cf   : > { %v3042_v2 = vpop.f32.mrf.mxu0  ;;  %v3188_v63 = vadd.f32 %v3187_v18, %v3139_v7  ;;  %v9944_v18 = vld [vmem:[#allocation5 + $0x41c] sm:$0xf] }
 0x3d0   : > { %v3043_v31 = vadd.f32 %v3042_v2, %v11428_v38  ;;  %v8170_v2 = vld [vmem:[#allocation5 + $0x438] sm:$0xf0] }
 0x3d1   : > { %v3668_v16 = vmax.f32 %v3188_v63, 0.0 }
 0x3d2   : > { %v3092_v34 = vadd.f32 %v3091_v3, %v3043_v31  ;;  %v8173_v31 = vor.u32 %v9944_v18, %v8170_v2  ;;  %v7658_v3 = vld [vmem:[#allocation5 + $0x38] sm:$0xf0] }
 0x3d3   : > { %v7661_v28 = vor.u32 %v9816_v30, %v7658_v3 }
 0x3d4   : > { %v3140_v5 = vpop.f32.mrf.mxu2  ;;  %v3094_v37 = vpop.f32.mrf.mxu1  ;;  %3508 = vmatpush.bf16.msrb.mxu2 %v8173_v31 }
 0x3d5   : > { %v3141_v6 = vadd.f32 %v3140_v5, %v3092_v34  ;;  %v8426_v34 = vld [vmem:[#allocation5 + $0x638] sm:$0xf0]  ;;  %3410 = vmatpush.bf16.msrb.mxu0 %v7661_v28  ;;  %v8768_v28 = vld [vmem:[#allocation8 + $0xe0] sm:$0xf] }
 0x3d6   : > { %v3189_v55 = vpop.f32.mrf.mxu3 }
 0x3d7   : > { %v3045_v17 = vpop.f32.mrf.mxu0  ;;  %v3190_v60 = vadd.f32 %v3189_v55, %v3141_v6  ;;  %3289 = vmatmul.bf16.gmra.mxu1 %v11038_v9  ;;  %v10008_v55 = vld [vmem:[#allocation5 + $0x61c] sm:$0xf] }
 0x3d8   : > { %v3046_v29 = vadd.f32 %v3045_v17, %v11428_v38  ;;  %v8429_v5 = vor.u32 %v10008_v55, %v8426_v34 }
 0x3d9   : > { %v3676_v39 = vmax.f32 %v3190_v60, 0.0  ;;  %3338 = vmatmul.bf16.gmra.mxu2 %v11040_v10  ;;  %v9880_v60 = vld [vmem:[#allocation5 + $0x21c] sm:$0xf] }
 0x3da   : > { %v3095_v59 = vadd.f32 %v3094_v37, %v3046_v29  ;;  %3240 = vmatmul.bf16.gmra.mxu0 %v11036_v8  ;;  %3557 = vmatpush.bf16.msrb.mxu3 %v8429_v5 }
 0x3db   : > { %3387 = vmatmul.bf16.gmra.mxu3 %v11042_v11  ;;  %v11475_v7 = vpack.c.bf16 %v3676_v39, %v3668_v16  ;;  %v7914_v16 = vld [vmem:[#allocation5 + $0x238] sm:$0xf0] }
 0x3dc   : > { %v3143_v61 = vpop.f32.mrf.mxu2  ;;  %v3096_v17 = vpop.f32.mrf.mxu1  ;;  %v7917_v39 = vor.u32 %v9880_v60, %v7914_v16 }
 0x3dd   : > { %12417 = vst [vmem:[#allocation57_spill] sm:$0xff] %v11475_v7  ;;  %v3144_v58 = vadd.f32 %v3143_v61, %v3095_v59 }
 0x3de   : > { %v3192_v33 = vpop.f32.mrf.mxu3  ;;  %3459 = vmatpush.bf16.msrb.mxu1 %v7917_v39 }
 0x3df   : > { %v3047_v63 = vpop.f32.mrf.mxu0  ;;  %v3193_v29 = vadd.f32 %v3192_v33, %v3144_v58  ;;  %v9024_v33 = vld [vmem:[#allocation8 + $0x2e0] sm:$0xf] }
 0x3e0   : > { %v3048_v6 = vadd.f32 %v3047_v63, %v11428_v38  ;;  %v10163_v63 = vld [vmem:[#allocation8 + $0x2ec] sm:$0xf0] }
 0x3e1   : > { %v3684_v31 = vmax.f32 %v3193_v29, 0.0 }
 0x3e2   : > { %v3097_v37 = vadd.f32 %v3096_v17, %v3048_v6  ;;  %v9025_v6 = vor.u32 %v10163_v63, %v9024_v33  ;;  %v10099_v17 = vld [vmem:[#allocation8 + $0xec] sm:$0xf0] }
 0x3e3   : > { %v8769_v39 = vor.u32 %v10099_v17, %v8768_v28 }
 0x3e4   : > { %v3145_v18 = vpop.f32.mrf.mxu2  ;;  %v3099_v30 = vpop.f32.mrf.mxu1  ;;  %5435 = vmatpush.bf16.msra.mxu2 %v9025_v6 }
 0x3e5   : > { %v3146_v2 = vadd.f32 %v3145_v18, %v3097_v37  ;;  %v10195_v37 = vld [vmem:[#allocation8 + $0x3ec] sm:$0xf0]  ;;  %5337 = vmatpush.bf16.msra.mxu0 %v8769_v39  ;;  %v8752_v39 = vld [vmem:[#allocation8 + $0xc0] sm:$0xf] }
 0x3e6   : > { %v3194_v7 = vpop.f32.mrf.mxu3 }
 0x3e7   : > { %v3050_v59 = vpop.f32.mrf.mxu0  ;;  %v3195_v3 = vadd.f32 %v3194_v7, %v3146_v2  ;;  %3294 = vmatmul.bf16.gmra.mxu1 %v11058_v45  ;;  %v9152_v7 = vld [vmem:[#allocation8 + $0x3e0] sm:$0xf] }
 0x3e8   : > { %v3051_v61 = vadd.f32 %v3050_v59, %v11428_v38  ;;  %v9153_v18 = vor.u32 %v10195_v37, %v9152_v7 }
 0x3e9   : > { %v3692_v34 = vmax.f32 %v3195_v3, 0.0  ;;  %3343 = vmatmul.bf16.gmra.mxu2 %v11060_v46  ;;  %v8896_v3 = vld [vmem:[#allocation8 + $0x1e0] sm:$0xf] }
 0x3ea   : > { %v3100_v55 = vadd.f32 %v3099_v30, %v3051_v61  ;;  %3245 = vmatmul.bf16.gmra.mxu0 %v11056_v44  ;;  %5484 = vmatpush.bf16.msra.mxu3 %v9153_v18 }
 0x3eb   : > { %3392 = vmatmul.bf16.gmra.mxu3 %v11062_v47  ;;  %v11483_v58 = vpack.c.bf16 %v3692_v34, %v3684_v31  ;;  %v10131_v31 = vld [vmem:[#allocation8 + $0x1ec] sm:$0xf0] }
 0x3ec   : > { %v3148_v5 = vpop.f32.mrf.mxu2  ;;  %v3101_v59 = vpop.f32.mrf.mxu1  ;;  %v8897_v34 = vor.u32 %v10131_v31, %v8896_v3 }
 0x3ed   : > { %12418 = vst [vmem:[#allocation58_spill] sm:$0xff] %v11483_v58  ;;  %v3149_v60 = vadd.f32 %v3148_v5, %v3100_v55 }
 0x3ee   : > { %v3197_v16 = vpop.f32.mrf.mxu3  ;;  %5386 = vmatpush.bf16.msra.mxu1 %v8897_v34 }
 0x3ef   : > { %v3052_v29 = vpop.f32.mrf.mxu0  ;;  %v3198_v61 = vadd.f32 %v3197_v16, %v3149_v60  ;;  %v9008_v16 = vld [vmem:[#allocation8 + $0x2c0] sm:$0xf] }
 0x3f0   : > { %v3053_v2 = vadd.f32 %v3052_v29, %v11428_v38  ;;  %v10159_v29 = vld [vmem:[#allocation8 + $0x2cc] sm:$0xf0] }
 0x3f1   : > { %v3700_v6 = vmax.f32 %v3198_v61, 0.0 }
 0x3f2   : > { %v3102_v30 = vadd.f32 %v3101_v59, %v3053_v2  ;;  %v9009_v2 = vor.u32 %v10159_v29, %v9008_v16  ;;  %v10095_v59 = vld [vmem:[#allocation8 + $0xcc] sm:$0xf0] }
 0x3f3   : > { %v8753_v34 = vor.u32 %v10095_v59, %v8752_v39 }
 0x3f4   : > { %v3150_v33 = vpop.f32.mrf.mxu2  ;;  %v3104_v28 = vpop.f32.mrf.mxu1  ;;  %5436 = vmatpush.bf16.msra.mxu2 %v9009_v2 }
 0x3f5   : > { %v3151_v63 = vadd.f32 %v3150_v33, %v3102_v30  ;;  %v10191_v30 = vld [vmem:[#allocation8 + $0x3cc] sm:$0xf0]  ;;  %5338 = vmatpush.bf16.msra.mxu0 %v8753_v34  ;;  %v8992_v34 = vld [vmem:[#allocation8 + $0x2a0] sm:$0xf] }
 0x3f6   : > { %v3199_v58 = vpop.f32.mrf.mxu3 }
 0x3f7   : > { %v3055_v55 = vpop.f32.mrf.mxu0  ;;  %v3200_v17 = vadd.f32 %v3199_v58, %v3151_v63  ;;  %3299 = vmatmul.bf16.gmra.mxu1 %v11078_v21  ;;  %v9136_v58 = vld [vmem:[#allocation8 + $0x3c0] sm:$0xf] }
 0x3f8   : > { %v3056_v5 = vadd.f32 %v3055_v55, %v11428_v38  ;;  %v9137_v33 = vor.u32 %v10191_v30, %v9136_v58 }
 0x3f9   : > { %v3708_v37 = vmax.f32 %v3200_v17, 0.0  ;;  %3348 = vmatmul.bf16.gmra.mxu2 %v11080_v22  ;;  %v8880_v17 = vld [vmem:[#allocation8 + $0x1c0] sm:$0xf] }
 0x3fa   : > { %v3105_v7 = vadd.f32 %v3104_v28, %v3056_v5  ;;  %3250 = vmatmul.bf16.gmra.mxu0 %v11076_v20  ;;  %5485 = vmatpush.bf16.msra.mxu3 %v9137_v33  ;;  %v10155_v33 = vld [vmem:[#allocation8 + $0x2ac] sm:$0xf0] }
 0x3fb   : > { %3397 = vmatmul.bf16.gmra.mxu3 %v11082_v23  ;;  %v11491_v60 = vpack.c.bf16 %v3708_v37, %v3700_v6  ;;  %v10127_v6 = vld [vmem:[#allocation8 + $0x1cc] sm:$0xf0]  ;;  %v11494_v37 = vld [vmem:[#allocation7] sm:$0xff] }
 0x3fc   : > { %v3153_v18 = vpop.f32.mrf.mxu2  ;;  %v3106_v55 = vpop.f32.mrf.mxu1  ;;  %v11497_v16 = vperm.slane %v11494_v37, 6 }
 0x3fd   : > { %12419 = vst [vmem:[#allocation59_spill] sm:$0xff] %v11491_v60  ;;  %v3154_v3 = vadd.f32 %v3153_v18, %v3105_v7  ;;  %v8881_v7 = vor.u32 %v10127_v6, %v8880_v17  ;;  %v10091_v17 = vld [vmem:[#allocation8 + $0xac] sm:$0xf0]  ;;  %v9120_v6 = vld [vmem:[#allocation8 + $0x3a0] sm:$0xf] }
 0x3fe   : > { %v3202_v31 = vpop.f32.mrf.mxu3 }
 0x3ff   : > { %v3057_v61 = vpop.f32.mrf.mxu0  ;;  %v3203_v5 = vadd.f32 %v3202_v31, %v3154_v3  ;;  %5387 = vmatpush.bf16.msra.mxu1 %v8881_v7  ;;  %v10187_v7 = vld [vmem:[#allocation8 + $0x3ac] sm:$0xf0] }
 0x400   : > { %v3058_v63 = vadd.f32 %v3057_v61, %v11428_v38 }
 0x401   : > { %v3716_v3 = vmax.f32 %v3203_v5, 0.0 }
 0x402   : > { %v3107_v28 = vadd.f32 %v3106_v55, %v3058_v63  ;;  %v8736_v63 = vld [vmem:[#allocation8 + $0xa0] sm:$0xf] }
 0x404   : > { %v3155_v29 = vpop.f32.mrf.mxu2  ;;  %v3265_v2 = vpop.f32.mrf.mxu1 }
 0x405   : > { %v3156_v39 = vadd.f32 %v3155_v29, %v3107_v28  ;;  %v8993_v28 = vor.u32 %v10155_v33, %v8992_v34 }
 0x406   : > { %v3204_v18 = vpop.f32.mrf.mxu3 }
 0x407   : > { %v3216_v59 = vpop.f32.mrf.mxu0  ;;  %v3205_v58 = vadd.f32 %v3204_v18, %v3156_v39  ;;  %3460 = vmatmul.bf16.vlgmr.msrb.gmra.mxu1 %v10938_v53  ;;  %v8737_v39 = vor.u32 %v10091_v17, %v8736_v63  ;;  %v9121_v18 = vor.u32 %v10187_v7, %v9120_v6  ;;  %5437 = vmatpush.bf16.msra.mxu2 %v8993_v28 }
 0x408   : > { %v3217_v38 = vadd.f32 %v3216_v59, %v11497_v16 }
 0x409   : > { %v3724_v31 = vmax.f32 %v3205_v58, 0.0  ;;  %3509 = vmatmul.bf16.vlgmr.msrb.gmra.mxu2 %v10940_v54  ;;  %5339 = vmatpush.bf16.msra.mxu0 %v8737_v39 }
 0x40a   : > { %v3266_v30 = vadd.f32 %v3265_v2, %v3217_v38  ;;  %3411 = vmatmul.bf16.vlgmr.msrb.gmra.mxu0 %v10936_v48  ;;  %5486 = vmatpush.bf16.msra.mxu3 %v9121_v18  ;;  %v8864_v38 = vld [vmem:[#allocation8 + $0x1a0] sm:$0xf]  ;;  %v10123_v2 = vld [vmem:[#allocation8 + $0x1ac] sm:$0xf0] }
 0x40b   : > { %3558 = vmatmul.bf16.vlgmr.msrb.gmra.mxu3 %v10942_v57  ;;  %v11504_v61 = vpack.c.bf16 %v3724_v31, %v3716_v3  ;;  %v8865_v58 = vor.u32 %v10123_v2, %v8864_v38 }
 0x40c   : > { %v3314_v55 = vpop.f32.mrf.mxu2  ;;  %v3267_v54 = vpop.f32.mrf.mxu1 }
 0x40d   : > { %12420 = vst [vmem:[#allocation60_spill] sm:$0xff] %v11504_v61  ;;  %v3315_v29 = vadd.f32 %v3314_v55, %v3266_v30  ;;  %5388 = vmatpush.bf16.msra.mxu1 %v8865_v58 }
 0x40e   : > { %v3363_v48 = vpop.f32.mrf.mxu3 }
 0x40f   : > { %v3218_v5 = vpop.f32.mrf.mxu0  ;;  %v3364_v57 = vadd.f32 %v3363_v48, %v3315_v29  ;;  %v8976_v29 = vld [vmem:[#allocation8 + $0x280] sm:$0xf]  ;;  %v10151_v48 = vld [vmem:[#allocation8 + $0x28c] sm:$0xf0] }
 0x410   : > { %v3219_v53 = vadd.f32 %v3218_v5, %v11497_v16  ;;  %v8720_v5 = vld [vmem:[#allocation8 + $0x80] sm:$0xf]  ;;  %v8977_v18 = vor.u32 %v10151_v48, %v8976_v29 }
 0x411   : > { %v3605_v28 = vmax.f32 %v3364_v57, 0.0 }
 0x412   : > { %v3268_v59 = vadd.f32 %v3267_v54, %v3219_v53  ;;  %v10087_v53 = vld [vmem:[#allocation8 + $0x8c] sm:$0xf0]  ;;  %v9104_v54 = vld [vmem:[#allocation8 + $0x380] sm:$0xf]  ;;  %5438 = vmatpush.bf16.msra.mxu2 %v8977_v18 }
 0x413   : > { %v8721_v2 = vor.u32 %v10087_v53, %v8720_v5  ;;  %v8960_v53 = vld [vmem:[#allocation8 + $0x260] sm:$0xf] }
 0x414   : > { %v3316_v3 = vpop.f32.mrf.mxu2  ;;  %v3270_v63 = vpop.f32.mrf.mxu1 }
 0x415   : > { %v3317_v31 = vadd.f32 %v3316_v3, %v3268_v59  ;;  %v10183_v59 = vld [vmem:[#allocation8 + $0x38c] sm:$0xf0]  ;;  %5340 = vmatpush.bf16.msra.mxu0 %v8721_v2  ;;  %v9088_v2 = vld [vmem:[#allocation8 + $0x360] sm:$0xf] }
 0x416   : > { %v3365_v34 = vpop.f32.mrf.mxu3  ;;  %v9105_v58 = vor.u32 %v10183_v59, %v9104_v54  ;;  %v10147_v54 = vld [vmem:[#allocation8 + $0x26c] sm:$0xf0]  ;;  %v8704_v59 = vld [vmem:[#allocation8 + $0x60] sm:$0xf] }
 0x417   : > { %v3221_v30 = vpop.f32.mrf.mxu0  ;;  %v3366_v55 = vadd.f32 %v3365_v34, %v3317_v31  ;;  %3465 = vmatmul.bf16.gmra.mxu1 %v10958_v25  ;;  %v8848_v31 = vld [vmem:[#allocation8 + $0x180] sm:$0xf]  ;;  %v10119_v34 = vld [vmem:[#allocation8 + $0x18c] sm:$0xf0] }
 0x418   : > { %v3222_v33 = vadd.f32 %v3221_v30, %v11497_v16  ;;  %5487 = vmatpush.bf16.msra.mxu3 %v9105_v58  ;;  %v8849_v30 = vor.u32 %v10119_v34, %v8848_v31  ;;  %v10179_v58 = vld [vmem:[#allocation8 + $0x36c] sm:$0xf0]  ;;  %v8832_v34 = vld [vmem:[#allocation8 + $0x160] sm:$0xf] }
 0x419   : > { %v3613_v6 = vmax.f32 %v3366_v55, 0.0  ;;  %3514 = vmatmul.bf16.gmra.mxu2 %v10960_v26 }
 0x41a   : > { %v3271_v17 = vadd.f32 %v3270_v63, %v3222_v33  ;;  %3416 = vmatmul.bf16.gmra.mxu0 %v10956_v24  ;;  %5389 = vmatpush.bf16.msra.mxu1 %v8849_v30  ;;  %v10115_v30 = vld [vmem:[#allocation8 + $0x16c] sm:$0xf0] }
 0x41b   : > { %3563 = vmatmul.bf16.gmra.mxu3 %v10962_v27  ;;  %v11512_v7 = vpack.c.bf16 %v3613_v6, %v3605_v28 }
 0x41c   : > { %v3319_v39 = vpop.f32.mrf.mxu2  ;;  %v3272_v26 = vpop.f32.mrf.mxu1 }
 0x41d   : > { %12421 = vst [vmem:[#allocation61_spill] sm:$0xff] %v11512_v7  ;;  %v3320_v38 = vadd.f32 %v3319_v39, %v3271_v17 }
 0x41e   : > { %v3368_v24 = vpop.f32.mrf.mxu3 }
 0x41f   : > { %v3223_v57 = vpop.f32.mrf.mxu0  ;;  %v3369_v27 = vadd.f32 %v3368_v24, %v3320_v38  ;;  %v8961_v24 = vor.u32 %v10147_v54, %v8960_v53 }
 0x420   : > { %v3224_v25 = vadd.f32 %v3223_v57, %v11497_v16  ;;  %v10083_v57 = vld [vmem:[#allocation8 + $0x6c] sm:$0xf0] }
 0x421   : > { %v3621_v5 = vmax.f32 %v3369_v27, 0.0  ;;  %v8705_v27 = vor.u32 %v10083_v57, %v8704_v59  ;;  %5439 = vmatpush.bf16.msra.mxu2 %v8961_v24  ;;  %v8944_v59 = vld [vmem:[#allocation8 + $0x240] sm:$0xf] }
 0x422   : > { %v3273_v3 = vadd.f32 %v3272_v26, %v3224_v25  ;;  %v8688_v24 = vld [vmem:[#allocation8 + $0x40] sm:$0xf] }
 0x423   : > { %5341 = vmatpush.bf16.msra.mxu0 %v8705_v27 }
 0x424   : > { %v3321_v33 = vpop.f32.mrf.mxu2  ;;  %v3275_v6 = vpop.f32.mrf.mxu1 }
 0x425   : > { %v3322_v63 = vadd.f32 %v3321_v33, %v3273_v3  ;;  %v9089_v3 = vor.u32 %v10179_v58, %v9088_v2  ;;  %v8833_v33 = vor.u32 %v10115_v30, %v8832_v34  ;;  %v10079_v58 = vld [vmem:[#allocation8 + $0x4c] sm:$0xf0] }
 0x426   : > { %v3370_v55 = vpop.f32.mrf.mxu3 }
 0x427   : > { %v3226_v17 = vpop.f32.mrf.mxu0  ;;  %v3371_v29 = vadd.f32 %v3370_v55, %v3322_v63  ;;  %3470 = vmatmul.bf16.gmra.mxu1 %v10978_v50  ;;  %5488 = vmatpush.bf16.msra.mxu3 %v9089_v3  ;;  %v8689_v3 = vor.u32 %v10079_v58, %v8688_v24  ;;  %v9056_v58 = vld [vmem:[#allocation8 + $0x320] sm:$0xf] }
 0x428   : > { %v3227_v28 = vadd.f32 %v3226_v17, %v11497_v16  ;;  %5390 = vmatpush.bf16.msra.mxu1 %v8833_v33 }
 0x429   : > { %v3629_v39 = vmax.f32 %v3371_v29, 0.0  ;;  %3519 = vmatmul.bf16.gmra.mxu2 %v10980_v51  ;;  %5342 = vmatpush.bf16.msra.mxu0 %v8689_v3 }
 0x42a   : > { %v3276_v48 = vadd.f32 %v3275_v6, %v3227_v28  ;;  %3421 = vmatmul.bf16.gmra.mxu0 %v10976_v49 }
 0x42b   : > { %3568 = vmatmul.bf16.gmra.mxu3 %v10982_v52  ;;  %v11520_v18 = vpack.c.bf16 %v3629_v39, %v3621_v5 }
 0x42c   : > { %v3324_v38 = vpop.f32.mrf.mxu2  ;;  %v3277_v51 = vpop.f32.mrf.mxu1 }
 0x42d   : > { %12422 = vst [vmem:[#allocation62_spill] sm:$0xff] %v11520_v18  ;;  %v3325_v25 = vadd.f32 %v3324_v38, %v3276_v48  ;;  %v10143_v38 = vld [vmem:[#allocation8 + $0x24c] sm:$0xf0] }
 0x42e   : > { %v3373_v49 = vpop.f32.mrf.mxu3  ;;  %v8945_v2 = vor.u32 %v10143_v38, %v8944_v59  ;;  %v10139_v59 = vld [vmem:[#allocation8 + $0x22c] sm:$0xf0]  ;;  %v8672_v38 = vld [vmem:[#allocation8 + $0x20] sm:$0xf] }
 0x42f   : > { %v3228_v26 = vpop.f32.mrf.mxu0  ;;  %v3374_v52 = vadd.f32 %v3373_v49, %v3325_v25  ;;  %v9072_v25 = vld [vmem:[#allocation8 + $0x340] sm:$0xf]  ;;  %v10175_v49 = vld [vmem:[#allocation8 + $0x34c] sm:$0xf0] }
 0x430   : > { %v3229_v50 = vadd.f32 %v3228_v26, %v11497_v16  ;;  %5440 = vmatpush.bf16.msra.mxu2 %v8945_v2  ;;  %v10075_v2 = vld [vmem:[#allocation8 + $0x2c] sm:$0xf0] }
 0x431   : > { %v3637_v39 = vmax.f32 %v3374_v52, 0.0  ;;  %v8816_v52 = vld [vmem:[#allocation8 + $0x140] sm:$0xf] }
 0x432   : > { %v3278_v31 = vadd.f32 %v3277_v51, %v3229_v50  ;;  %v9073_v50 = vor.u32 %v10175_v49, %v9072_v25  ;;  %v10171_v25 = vld [vmem:[#allocation8 + $0x32c] sm:$0xf0] }
 0x434   : > { %v3326_v63 = vpop.f32.mrf.mxu2  ;;  %v3280_v29 = vpop.f32.mrf.mxu1  ;;  %5489 = vmatpush.bf16.msra.mxu3 %v9073_v50  ;;  %v8800_v50 = vld [vmem:[#allocation8 + $0x120] sm:$0xf] }
 0x435   : > { %v3327_v55 = vadd.f32 %v3326_v63, %v3278_v31  ;;  %v10111_v31 = vld [vmem:[#allocation8 + $0x14c] sm:$0xf0] }
 0x436   : > { %v3375_v17 = vpop.f32.mrf.mxu3  ;;  %v8817_v34 = vor.u32 %v10111_v31, %v8816_v52 }
 0x437   : > { %v3231_v28 = vpop.f32.mrf.mxu0  ;;  %v3376_v48 = vadd.f32 %v3375_v17, %v3327_v55  ;;  %3475 = vmatmul.bf16.gmra.mxu1 %v10998_v13 }
 0x438   : > { %v3232_v6 = vadd.f32 %v3231_v28, %v11497_v16  ;;  %5391 = vmatpush.bf16.msra.mxu1 %v8817_v34 }
 0x439   : > { %v3645_v53 = vmax.f32 %v3376_v48, 0.0  ;;  %3524 = vmatmul.bf16.gmra.mxu2 %v11000_v14 }
 0x43a   : > { %v3281_v5 = vadd.f32 %v3280_v29, %v3232_v6  ;;  %3426 = vmatmul.bf16.gmra.mxu0 %v10996_v12 }
 0x43b   : > { %3573 = vmatmul.bf16.gmra.mxu3 %v11002_v15  ;;  %v11528_v54 = vpack.c.bf16 %v3645_v53, %v3637_v39  ;;  %v8928_v53 = vld [vmem:[#allocation8 + $0x220] sm:$0xf] }
 0x43c   : > { %v3329_v57 = vpop.f32.mrf.mxu2  ;;  %v3282_v14 = vpop.f32.mrf.mxu1 }
 0x43d   : > { %12423 = vst [vmem:[#allocation63_spill] sm:$0xff] %v11528_v54  ;;  %v3330_v26 = vadd.f32 %v3329_v57, %v3281_v5  ;;  %v8929_v57 = vor.u32 %v10139_v59, %v8928_v53  ;;  %v10071_v59 = vld [vmem:[#allocation8 + $0xc] sm:$0xf0] }
 0x43e   : > { %v3378_v12 = vpop.f32.mrf.mxu3 }
 0x43f   : > { %v3233_v27 = vpop.f32.mrf.mxu0  ;;  %v3379_v15 = vadd.f32 %v3378_v12, %v3330_v26  ;;  %v8673_v12 = vor.u32 %v10075_v2, %v8672_v38  ;;  %5441 = vmatpush.bf16.msra.mxu2 %v8929_v57  ;;  %v9040_v38 = vld [vmem:[#allocation8 + $0x300] sm:$0xf] }
 0x440   : > { %v3234_v13 = vadd.f32 %v3233_v27, %v11497_v16  ;;  %v9057_v27 = vor.u32 %v10171_v25, %v9056_v58 }
 0x441   : > { %v3653_v48 = vmax.f32 %v3379_v15, 0.0  ;;  %5343 = vmatpush.bf16.msra.mxu0 %v8673_v12 }
 0x442   : > { %v3283_v51 = vadd.f32 %v3282_v14, %v3234_v13  ;;  %5490 = vmatpush.bf16.msra.mxu3 %v9057_v27  ;;  %v10107_v13 = vld [vmem:[#allocation8 + $0x12c] sm:$0xf0] }
 0x443   : > { %v8801_v14 = vor.u32 %v10107_v13, %v8800_v50 }
 0x444   : > { %v3331_v30 = vpop.f32.mrf.mxu2  ;;  %v3285_v28 = vpop.f32.mrf.mxu1 }
 0x445   : > { %v3332_v33 = vadd.f32 %v3331_v30, %v3283_v51  ;;  %5392 = vmatpush.bf16.msra.mxu1 %v8801_v14 }
 0x446   : > { %v3380_v63 = vpop.f32.mrf.mxu3 }
 0x447   : > { %v3236_v55 = vpop.f32.mrf.mxu0  ;;  %v3381_v6 = vadd.f32 %v3380_v63, %v3332_v33  ;;  %3480 = vmatmul.bf16.gmra.mxu1 %v11018_v41 }
 0x448   : > { %v3237_v17 = vadd.f32 %v3236_v55, %v11497_v16 }
 0x449   : > { %v3661_v5 = vmax.f32 %v3381_v6, 0.0  ;;  %3529 = vmatmul.bf16.gmra.mxu2 %v11020_v42  ;;  %v8912_v6 = vld [vmem:[#allocation8 + $0x200] sm:$0xf] }
 0x44a   : > { %v3286_v29 = vadd.f32 %v3285_v28, %v3237_v17  ;;  %3431 = vmatmul.bf16.gmra.mxu0 %v11016_v40 }
 0x44b   : > { %3578 = vmatmul.bf16.gmra.mxu3 %v11022_v43  ;;  %v11536_v39 = vpack.c.bf16 %v3661_v5, %v3653_v48  ;;  %v8656_v48 = vld [vmem:[#allocation8] sm:$0xf] }
 0x44c   : > { %v3334_v24 = vpop.f32.mrf.mxu2  ;;  %v3287_v42 = vpop.f32.mrf.mxu1  ;;  %v8657_v58 = vor.u32 %v10071_v59, %v8656_v48 }
 0x44d   : > { %12424 = vst [vmem:[#allocation64_spill] sm:$0xff] %v11536_v39  ;;  %v3335_v49 = vadd.f32 %v3334_v24, %v3286_v29  ;;  %v10135_v29 = vld [vmem:[#allocation8 + $0x20c] sm:$0xf0] }
 0x44e   : > { %v3383_v40 = vpop.f32.mrf.mxu3  ;;  %v8913_v53 = vor.u32 %v10135_v29, %v8912_v6  ;;  %v10167_v24 = vld [vmem:[#allocation8 + $0x30c] sm:$0xf0]  ;;  %5344 = vmatpush.bf16.msra.mxu0 %v8657_v58 }
 0x44f   : > { %v3238_v26 = vpop.f32.mrf.mxu0  ;;  %v3384_v43 = vadd.f32 %v3383_v40, %v3335_v49  ;;  %v9041_v25 = vor.u32 %v10167_v24, %v9040_v38  ;;  %v8784_v40 = vld [vmem:[#allocation8 + $0x100] sm:$0xf]  ;;  %v10323_v6 = vld [vmem:[#allocation8 + $0x7ec] sm:$0xf0] }
 0x450   : > { %v3239_v41 = vadd.f32 %v3238_v26, %v11497_v16  ;;  %5442 = vmatpush.bf16.msra.mxu2 %v8913_v53  ;;  %v10103_v26 = vld [vmem:[#allocation8 + $0x10c] sm:$0xf0]  ;;  %v9408_v38 = vld [vmem:[#allocation8 + $0x5e0] sm:$0xf] }
 0x451   : > { %v3669_v55 = vmax.f32 %v3384_v43, 0.0  ;;  %5491 = vmatpush.bf16.msra.mxu3 %v9041_v25  ;;  %v8785_v12 = vor.u32 %v10103_v26, %v8784_v40  ;;  %v10259_v24 = vld [vmem:[#allocation8 + $0x5ec] sm:$0xf0] }
 0x452   : > { %v3288_v3 = vadd.f32 %v3287_v42, %v3239_v41 }
 0x453   : > { %5393 = vmatpush.bf16.msra.mxu1 %v8785_v12 }
 0x454   : > { %v3336_v15 = vpop.f32.mrf.mxu2  ;;  %v3290_v30 = vpop.f32.mrf.mxu1 }
 0x455   : > { %v3337_v51 = vadd.f32 %v3336_v15, %v3288_v3 }
 0x456   : > { %v3385_v52 = vpop.f32.mrf.mxu3 }
 0x457   : > { %v3241_v31 = vpop.f32.mrf.mxu0  ;;  %v3386_v33 = vadd.f32 %v3385_v52, %v3337_v51  ;;  %3485 = vmatmul.bf16.gmra.mxu1 %v11038_v9 }
 0x458   : > { %v3242_v34 = vadd.f32 %v3241_v31, %v11497_v16  ;;  %v9536_v31 = vld [vmem:[#allocation8 + $0x6e0] sm:$0xf] }
 0x459   : > { %v3677_v17 = vmax.f32 %v3386_v33, 0.0  ;;  %3534 = vmatmul.bf16.gmra.mxu2 %v11040_v10 }
 0x45a   : > { %v3291_v63 = vadd.f32 %v3290_v30, %v3242_v34  ;;  %3436 = vmatmul.bf16.gmra.mxu0 %v11036_v8  ;;  %v10291_v34 = vld [vmem:[#allocation8 + $0x6ec] sm:$0xf0]  ;;  %v9280_v30 = vld [vmem:[#allocation8 + $0x4e0] sm:$0xf] }
 0x45b   : > { %3583 = vmatmul.bf16.gmra.mxu3 %v11042_v11  ;;  %v11544_v28 = vpack.c.bf16 %v3677_v17, %v3669_v55  ;;  %v10227_v55 = vld [vmem:[#allocation8 + $0x4ec] sm:$0xf0]  ;;  %v9664_v17 = vld [vmem:[#allocation8 + $0x7e0] sm:$0xf] }
 0x45c   : > { %v3339_v5 = vpop.f32.mrf.mxu2  ;;  %v3292_v10 = vpop.f32.mrf.mxu1  ;;  %v9665_v53 = vor.u32 %v10323_v6, %v9664_v17 }
 0x45d   : > { %12425 = vst [vmem:[#allocation65_spill] sm:$0xff] %v11544_v28  ;;  %v3340_v57 = vadd.f32 %v3339_v5, %v3291_v63  ;;  %v9537_v63 = vor.u32 %v10291_v34, %v9536_v31  ;;  %v9281_v5 = vor.u32 %v10227_v55, %v9280_v30  ;;  %v11564_v55 = vperm.slane %v11494_v37, 7 }
 0x45e   : > { %v3388_v8 = vpop.f32.mrf.mxu3  ;;  %5680 = vmatpush.bf16.msrb.mxu3 %v9665_v53 }
 0x45f   : > { %v3243_v2 = vpop.f32.mrf.mxu0  ;;  %v3389_v11 = vadd.f32 %v3388_v8, %v3340_v57  ;;  %5631 = vmatpush.bf16.msrb.mxu2 %v9537_v63  ;;  %5533 = vmatpush.bf16.msrb.mxu0 %v9281_v5  ;;  %v9409_v57 = vor.u32 %v10259_v24, %v9408_v38  ;;  %v10255_v63 = vld [vmem:[#allocation8 + $0x5cc] sm:$0xf0]  ;;  %v9248_v24 = vld [vmem:[#allocation8 + $0x4a0] sm:$0xf] }
 0x460   : > { %v3244_v9 = vadd.f32 %v3243_v2, %v11497_v16  ;;  %v10283_v38 = vld [vmem:[#allocation8 + $0x6ac] sm:$0xf0] }
 0x461   : > { %v3685_v15 = vmax.f32 %v3389_v11, 0.0  ;;  %5582 = vmatpush.bf16.msrb.mxu1 %v9409_v57 }
 0x462   : > { %v3293_v49 = vadd.f32 %v3292_v10, %v3244_v9 }
 0x464   : > { %v3341_v27 = vpop.f32.mrf.mxu2  ;;  %v3295_v50 = vpop.f32.mrf.mxu1 }
 0x465   : > { %v3342_v41 = vadd.f32 %v3341_v27, %v3293_v49  ;;  %v9520_v27 = vld [vmem:[#allocation8 + $0x6c0] sm:$0xf] }
 0x466   : > { %v3390_v42 = vpop.f32.mrf.mxu3 }
 0x467   : > { %v3246_v43 = vpop.f32.mrf.mxu0  ;;  %v3391_v13 = vadd.f32 %v3390_v42, %v3342_v41  ;;  %3490 = vmatmul.bf16.gmra.mxu1 %v11058_v45  ;;  %v10287_v41 = vld [vmem:[#allocation8 + $0x6cc] sm:$0xf0]  ;;  %v9264_v42 = vld [vmem:[#allocation8 + $0x4c0] sm:$0xf] }
 0x468   : > { %v3247_v3 = vadd.f32 %v3246_v43, %v11497_v16 }
 0x469   : > { %v3693_v51 = vmax.f32 %v3391_v13, 0.0  ;;  %3539 = vmatmul.bf16.gmra.mxu2 %v11060_v46  ;;  %v9648_v13 = vld [vmem:[#allocation8 + $0x7c0] sm:$0xf] }
 0x46a   : > { %v3296_v14 = vadd.f32 %v3295_v50, %v3247_v3  ;;  %3441 = vmatmul.bf16.gmra.mxu0 %v11056_v44  ;;  %v9521_v3 = vor.u32 %v10287_v41, %v9520_v27  ;;  %v10223_v50 = vld [vmem:[#allocation8 + $0x4cc] sm:$0xf0] }
 0x46b   : > { %3588 = vmatmul.bf16.gmra.mxu3 %v11062_v47  ;;  %v11552_v52 = vpack.c.bf16 %v3693_v51, %v3685_v15  ;;  %v9265_v31 = vor.u32 %v10223_v50, %v9264_v42 }
 0x46c   : > { %v3344_v33 = vpop.f32.mrf.mxu2  ;;  %v3297_v46 = vpop.f32.mrf.mxu1  ;;  %5632 = vmatpush.bf16.msrb.mxu2 %v9521_v3  ;;  %v10251_v3 = vld [vmem:[#allocation8 + $0x5ac] sm:$0xf0] }
 0x46d   : > { %12426 = vst [vmem:[#allocation66_spill] sm:$0xff] %v11552_v52  ;;  %v3345_v29 = vadd.f32 %v3344_v33, %v3296_v14  ;;  %v10319_v14 = vld [vmem:[#allocation8 + $0x7cc] sm:$0xf0]  ;;  %5534 = vmatpush.bf16.msrb.mxu0 %v9265_v31  ;;  %v9392_v33 = vld [vmem:[#allocation8 + $0x5c0] sm:$0xf] }
 0x46e   : > { %v3393_v44 = vpop.f32.mrf.mxu3  ;;  %v9649_v34 = vor.u32 %v10319_v14, %v9648_v13  ;;  %v9393_v17 = vor.u32 %v10255_v63, %v9392_v33  ;;  %v9488_v33 = vld [vmem:[#allocation8 + $0x680] sm:$0xf]  ;;  %v10279_v63 = vld [vmem:[#allocation8 + $0x68c] sm:$0xf0] }
 0x46f   : > { %v3248_v48 = vpop.f32.mrf.mxu0  ;;  %v3394_v47 = vadd.f32 %v3393_v44, %v3345_v29 }
 0x470   : > { %v3249_v45 = vadd.f32 %v3248_v48, %v11497_v16  ;;  %5681 = vmatpush.bf16.msrb.mxu3 %v9649_v34  ;;  %5583 = vmatpush.bf16.msrb.mxu1 %v9393_v17  ;;  %v9232_v17 = vld [vmem:[#allocation8 + $0x480] sm:$0xf] }
 0x471   : > { %v3701_v40 = vmax.f32 %v3394_v47, 0.0 }
 0x472   : > { %v3298_v59 = vadd.f32 %v3297_v46, %v3249_v45 }
 0x474   : > { %v3346_v8 = vpop.f32.mrf.mxu2  ;;  %v3300_v10 = vpop.f32.mrf.mxu1 }
 0x475   : > { %v3347_v2 = vadd.f32 %v3346_v8, %v3298_v59  ;;  %v9504_v59 = vld [vmem:[#allocation8 + $0x6a0] sm:$0xf] }
 0x476   : > { %v3395_v58 = vpop.f32.mrf.mxu3  ;;  %v9505_v8 = vor.u32 %v10283_v38, %v9504_v59 }
 0x477   : > { %v3251_v25 = vpop.f32.mrf.mxu0  ;;  %v3396_v11 = vadd.f32 %v3395_v58, %v3347_v2  ;;  %3495 = vmatmul.bf16.gmra.mxu1 %v11078_v21  ;;  %v10219_v2 = vld [vmem:[#allocation8 + $0x4ac] sm:$0xf0]  ;;  %v9632_v58 = vld [vmem:[#allocation8 + $0x7a0] sm:$0xf] }
 0x478   : > { %v3252_v9 = vadd.f32 %v3251_v25, %v11497_v16  ;;  %v10315_v25 = vld [vmem:[#allocation8 + $0x7ac] sm:$0xf0]  ;;  %5633 = vmatpush.bf16.msrb.mxu2 %v9505_v8  ;;  %v9360_v8 = vld [vmem:[#allocation8 + $0x580] sm:$0xf] }
 0x479   : > { %v3709_v26 = vmax.f32 %v3396_v11, 0.0  ;;  %3544 = vmatmul.bf16.gmra.mxu2 %v11080_v22 }
 0x47a   : > { %v3301_v49 = vadd.f32 %v3300_v10, %v3252_v9  ;;  %3446 = vmatmul.bf16.gmra.mxu0 %v11076_v20 }
 0x47b   : > { %3593 = vmatmul.bf16.gmra.mxu3 %v11082_v23  ;;  %v11560_v12 = vpack.c.bf16 %v3709_v26, %v3701_v40  ;;  %v9633_v40 = vor.u32 %v10315_v25, %v9632_v58 }
 0x47c   : > { %v3349_v43 = vpop.f32.mrf.mxu2  ;;  %v3302_v22 = vpop.f32.mrf.mxu1 }
 0x47d   : > { %12427 = vst [vmem:[#allocation67_spill] sm:$0xff] %v11560_v12  ;;  %v3350_v15 = vadd.f32 %v3349_v43, %v3301_v49  ;;  %v9249_v49 = vor.u32 %v10219_v2, %v9248_v24  ;;  %5682 = vmatpush.bf16.msrb.mxu3 %v9633_v40  ;;  %v9376_v43 = vld [vmem:[#allocation8 + $0x5a0] sm:$0xf]  ;;  %v10247_v2 = vld [vmem:[#allocation8 + $0x58c] sm:$0xf0] }
 0x47e   : > { %v3398_v20 = vpop.f32.mrf.mxu3  ;;  %v9377_v50 = vor.u32 %v10251_v3, %v9376_v43  ;;  %v9361_v58 = vor.u32 %v10247_v2, %v9360_v8  ;;  %v12431_v3 = vld [vmem:[#allocation25_spill] sm:$0xff] }
 0x47f   : > { %v3253_v51 = vpop.f32.mrf.mxu0  ;;  %v3399_v23 = vadd.f32 %v3398_v20, %v3350_v15  ;;  %5535 = vmatpush.bf16.msrb.mxu0 %v9249_v49 }
 0x480   : > { %v3254_v21 = vadd.f32 %v3253_v51, %v11497_v16  ;;  %5584 = vmatpush.bf16.msrb.mxu1 %v9377_v50  ;;  %v12432_v50 = vld [vmem:[#allocation32_spill] sm:$0xff] }
 0x481   : > { %v3717_v46 = vmax.f32 %v3399_v23, 0.0 }
 0x482   : > { %v3303_v30 = vadd.f32 %v3302_v22, %v3254_v21 }
 0x484   : > { %v3351_v6 = vpop.f32.mrf.mxu2  ;;  %v3461_v16 = vpop.f32.mrf.mxu1  ;;  %5585 = vmatpush.bf16.msrb.mxu1 %v9361_v58 }
 0x485   : > { %v3352_v29 = vadd.f32 %v3351_v6, %v3303_v30 }
 0x486   : > { %v3400_v44 = vpop.f32.mrf.mxu3 }
 0x487   : > { %v3412_v48 = vpop.f32.mrf.mxu0  ;;  %v3401_v53 = vadd.f32 %v3400_v44, %v3352_v29  ;;  %5394 = vmatmul.bf16.vlgmr.msra.gmra.mxu1 %v11171_v32  ;;  %v9489_v29 = vor.u32 %v10279_v63, %v9488_v33  ;;  %v10215_v44 = vld [vmem:[#allocation8 + $0x48c] sm:$0xf0] }
 0x488   : > { %v3413_v5 = vadd.f32 %v3412_v48, %v11564_v55  ;;  %v9616_v48 = vld [vmem:[#allocation8 + $0x780] sm:$0xf] }
 0x489   : > { %v3725_v47 = vmax.f32 %v3401_v53, 0.0  ;;  %5443 = vmatmul.bf16.vlgmr.msra.gmra.mxu2 %v11240_v19 }
 0x48a   : > { %v3462_v45 = vadd.f32 %v3461_v16, %v3413_v5  ;;  %5345 = vmatmul.bf16.vlgmr.msra.gmra.mxu0 %v11104_v62  ;;  %v10311_v5 = vld [vmem:[#allocation8 + $0x78c] sm:$0xf0]  ;;  %5634 = vmatpush.bf16.msrb.mxu2 %v9489_v29 }
 0x48b   : > { %5492 = vmatmul.bf16.vlgmr.msra.gmra.mxu3 %v11307_v56  ;;  %v11571_v37 = vpack.c.bf16 %v3725_v47, %v3717_v46  ;;  %v9233_v46 = vor.u32 %v10215_v44, %v9232_v17  ;;  %v9617_v47 = vor.u32 %v10311_v5, %v9616_v48 }
 0x48c   : > { %v3510_v57 = vpop.f32.mrf.mxu2  ;;  %v3463_v27 = vpop.f32.mrf.mxu1 }
 0x48d   : > { %12428 = vst [vmem:[#allocation68_spill] sm:$0xff] %v11571_v37  ;;  %v3511_v9 = vadd.f32 %v3510_v57, %v3462_v45  ;;  %5536 = vmatpush.bf16.msrb.mxu0 %v9233_v46  ;;  %5683 = vmatpush.bf16.msrb.mxu3 %v9617_v47 }
 0x48e   : > { %v3559_v10 = vpop.f32.mrf.mxu3 }
 0x48f   : > { %v3414_v11 = vpop.f32.mrf.mxu0  ;;  %v3560_v41 = vadd.f32 %v3559_v10, %v3511_v9 }
 0x490   : > { %v3415_v26 = vadd.f32 %v3414_v11, %v11564_v55 }
 0x491   : > { %v3606_v22 = vmax.f32 %v3560_v41, 0.0  ;;  %v12430_v41 = vld [vmem:[#allocation19_spill] sm:$0xff] }
 0x492   : > { %v3464_v42 = vadd.f32 %v3463_v27, %v3415_v26 }
 0x494   : > { %v3512_v13 = vpop.f32.mrf.mxu2  ;;  %v3466_v31 = vpop.f32.mrf.mxu1 }
 0x495   : > { %v3513_v14 = vadd.f32 %v3512_v13, %v3464_v42  ;;  %v12433_v13 = vld [vmem:[#allocation39_spill] sm:$0xff] }
 0x496   : > { %v3561_v15 = vpop.f32.mrf.mxu3 }
 0x497   : > { %v3417_v20 = vpop.f32.mrf.mxu0  ;;  %v3562_v34 = vadd.f32 %v3561_v15, %v3513_v14  ;;  %5399 = vmatmul.bf16.gmra.mxu1 %v11179_v1  ;;  %v9472_v15 = vld [vmem:[#allocation8 + $0x660] sm:$0xf] }
 0x498   : > { %v3418_v51 = vadd.f32 %v3417_v20, %v11564_v55  ;;  %v10275_v20 = vld [vmem:[#allocation8 + $0x66c] sm:$0xf0] }
 0x499   : > { %v3614_v23 = vmax.f32 %v3562_v34, 0.0  ;;  %5448 = vmatmul.bf16.gmra.mxu2 %v11248_v4  ;;  %v9473_v34 = vor.u32 %v10275_v20, %v9472_v15 }
 0x49a   : > { %v3467_v21 = vadd.f32 %v3466_v31, %v3418_v51  ;;  %5350 = vmatmul.bf16.gmra.mxu0 %v11112_v0  ;;  %v9216_v51 = vld [vmem:[#allocation8 + $0x460] sm:$0xf] }
 0x49b   : > { %5497 = vmatmul.bf16.gmra.mxu3 %v11315_v36  ;;  %v11579_v30 = vpack.c.bf16 %v3614_v23, %v3606_v22  ;;  %v9600_v22 = vld [vmem:[#allocation8 + $0x760] sm:$0xf]  ;;  %v10307_v23 = vld [vmem:[#allocation8 + $0x76c] sm:$0xf0]  ;;  %5635 = vmatpush.bf16.msrb.mxu2 %v9473_v34 }
 0x49c   : > { %v3515_v6 = vpop.f32.mrf.mxu2  ;;  %v3468_v38 = vpop.f32.mrf.mxu1  ;;  %v9601_v29 = vor.u32 %v10307_v23, %v9600_v22  ;;  %v10303_v34 = vld [vmem:[#allocation8 + $0x74c] sm:$0xf0] }
 0x49d   : > { %12429 = vst [vmem:[#allocation69_spill] sm:$0xff] %v11579_v30  ;;  %v3516_v16 = vadd.f32 %v3515_v6, %v3467_v21  ;;  %v10211_v21 = vld [vmem:[#allocation8 + $0x46c] sm:$0xf0] }
 0x49e   : > { %v3564_v53 = vpop.f32.mrf.mxu3  ;;  %v9217_v6 = vor.u32 %v10211_v21, %v9216_v51  ;;  %5684 = vmatpush.bf16.msrb.mxu3 %v9601_v29  ;;  %v10207_v51 = vld [vmem:[#allocation8 + $0x44c] sm:$0xf0] }
 0x49f   : > { %v3419_v45 = vpop.f32.mrf.mxu0  ;;  %v3565_v24 = vadd.f32 %v3564_v53, %v3516_v16  ;;  %v9344_v53 = vld [vmem:[#allocation8 + $0x560] sm:$0xf] }
 0x4a0   : > { %v3420_v59 = vadd.f32 %v3419_v45, %v11564_v55  ;;  %5537 = vmatpush.bf16.msrb.mxu0 %v9217_v6  ;;  %v10243_v45 = vld [vmem:[#allocation8 + $0x56c] sm:$0xf0] }
 0x4a1   : > { %v3622_v42 = vmax.f32 %v3565_v24, 0.0  ;;  %v9345_v46 = vor.u32 %v10243_v45, %v9344_v53 }
 0x4a2   : > { %v3469_v57 = vadd.f32 %v3468_v38, %v3420_v59 }
 0x4a3   : > { %5586 = vmatpush.bf16.msrb.mxu1 %v9345_v46 }
 0x4a4   : > { %v3517_v25 = vpop.f32.mrf.mxu2  ;;  %v3471_v40 = vpop.f32.mrf.mxu1 }
 0x4a5   : > { %v3518_v9 = vadd.f32 %v3517_v25, %v3469_v57  ;;  %v12435_v25 = vld [vmem:[#allocation20_spill] sm:$0xff] }
 0x4a6   : > { %v3566_v10 = vpop.f32.mrf.mxu3 }
 0x4a7   : > { %v3422_v11 = vpop.f32.mrf.mxu0  ;;  %v3567_v26 = vadd.f32 %v3566_v10, %v3518_v9  ;;  %5404 = vmatmul.bf16.gmra.mxu1 %v12431_v3 }
 0x4a8   : > { %v3423_v49 = vadd.f32 %v3422_v11, %v11564_v55  ;;  %v12436_v11 = vld [vmem:[#allocation26_spill] sm:$0xff] }
 0x4a9   : > { %v3630_v43 = vmax.f32 %v3567_v26, 0.0  ;;  %5453 = vmatmul.bf16.gmra.mxu2 %v12432_v50 }
 0x4aa   : > { %v3472_v27 = vadd.f32 %v3471_v40, %v3423_v49  ;;  %5355 = vmatmul.bf16.gmra.mxu0 %v12430_v41  ;;  %v12437_v49 = vld [vmem:[#allocation33_spill] sm:$0xff]  ;;  %v12438_v40 = vld [vmem:[#allocation40_spill] sm:$0xff] }
 0x4ab   : > { %5502 = vmatmul.bf16.gmra.mxu3 %v12433_v13  ;;  %v11587_v14 = vpack.c.bf16 %v3630_v43, %v3622_v42  ;;  %v10271_v42 = vld [vmem:[#allocation8 + $0x64c] sm:$0xf0]  ;;  %v9200_v43 = vld [vmem:[#allocation8 + $0x440] sm:$0xf] }
 0x4ac   : > { %v3520_v31 = vpop.f32.mrf.mxu2  ;;  %v3473_v48 = vpop.f32.mrf.mxu1 }
 0x4ad   : > { %12434 = vst [vmem:[#allocation19_spill] sm:$0xff] %v11587_v14  ;;  %v3521_v33 = vadd.f32 %v3520_v31, %v3472_v27  ;;  %v9456_v27 = vld [vmem:[#allocation8 + $0x640] sm:$0xf] }
 0x4ae   : > { %v3569_v63 = vpop.f32.mrf.mxu3  ;;  %v9457_v20 = vor.u32 %v10271_v42, %v9456_v27  ;;  %v9584_v31 = vld [vmem:[#allocation8 + $0x740] sm:$0xf]  ;;  %v12443_v27 = vld [vmem:[#allocation41_spill] sm:$0xff] }
 0x4af   : > { %v3424_v17 = vpop.f32.mrf.mxu0  ;;  %v3570_v5 = vadd.f32 %v3569_v63, %v3521_v33  ;;  %v9201_v33 = vor.u32 %v10207_v51, %v9200_v43  ;;  %v9585_v63 = vor.u32 %v10303_v34, %v9584_v31  ;;  %v9440_v43 = vld [vmem:[#allocation8 + $0x620] sm:$0xf]  ;;  %v10203_v34 = vld [vmem:[#allocation8 + $0x42c] sm:$0xf0] }
 0x4b0   : > { %v3425_v44 = vadd.f32 %v3424_v17, %v11564_v55  ;;  %5636 = vmatpush.bf16.msrb.mxu2 %v9457_v20  ;;  %v9184_v20 = vld [vmem:[#allocation8 + $0x420] sm:$0xf] }
 0x4b1   : > { %v3638_v9 = vmax.f32 %v3570_v5, 0.0  ;;  %5538 = vmatpush.bf16.msrb.mxu0 %v9201_v33  ;;  %5685 = vmatpush.bf16.msrb.mxu3 %v9585_v63  ;;  %v10239_v5 = vld [vmem:[#allocation8 + $0x54c] sm:$0xf0] }
 0x4b2   : > { %v3474_v16 = vadd.f32 %v3473_v48, %v3425_v44  ;;  %v9328_v48 = vld [vmem:[#allocation8 + $0x540] sm:$0xf] }
 0x4b4   : > { %v3522_v47 = vpop.f32.mrf.mxu2  ;;  %v3476_v8 = vpop.f32.mrf.mxu1 }
 0x4b5   : > { %v3523_v59 = vadd.f32 %v3522_v47, %v3474_v16  ;;  %v9329_v16 = vor.u32 %v10239_v5, %v9328_v48 }
 0x4b6   : > { %v3571_v38 = vpop.f32.mrf.mxu3 }
 0x4b7   : > { %v3427_v24 = vpop.f32.mrf.mxu0  ;;  %v3572_v2 = vadd.f32 %v3571_v38, %v3523_v59  ;;  %5409 = vmatmul.bf16.gmra.mxu1 %v12436_v11 }
 0x4b8   : > { %v3428_v57 = vadd.f32 %v3427_v24, %v11564_v55  ;;  %5587 = vmatpush.bf16.msrb.mxu1 %v9329_v16  ;;  %v9312_v16 = vld [vmem:[#allocation8 + $0x520] sm:$0xf] }
 0x4b9   : > { %v3646_v10 = vmax.f32 %v3572_v2, 0.0  ;;  %5458 = vmatmul.bf16.gmra.mxu2 %v12437_v49 }
 0x4ba   : > { %v3477_v58 = vadd.f32 %v3476_v8, %v3428_v57  ;;  %5360 = vmatmul.bf16.gmra.mxu0 %v12435_v25  ;;  %v12440_v8 = vld [vmem:[#allocation21_spill] sm:$0xff] }
 0x4bb   : > { %5507 = vmatmul.bf16.gmra.mxu3 %v12438_v40  ;;  %v11595_v26 = vpack.c.bf16 %v3646_v10, %v3638_v9  ;;  %v12441_v9 = vld [vmem:[#allocation27_spill] sm:$0xff]  ;;  %v12442_v10 = vld [vmem:[#allocation34_spill] sm:$0xff] }
 0x4bc   : > { %v3525_v15 = vpop.f32.mrf.mxu2  ;;  %v3478_v6 = vpop.f32.mrf.mxu1 }
 0x4bd   : > { %12439 = vst [vmem:[#allocation25_spill] sm:$0xff] %v11595_v26  ;;  %v3526_v21 = vadd.f32 %v3525_v15, %v3477_v58  ;;  %v10267_v15 = vld [vmem:[#allocation8 + $0x62c] sm:$0xf0] }
 0x4be   : > { %v3574_v22 = vpop.f32.mrf.mxu3  ;;  %v9441_v31 = vor.u32 %v10267_v15, %v9440_v43  ;;  %v12445_v43 = vld [vmem:[#allocation22_spill] sm:$0xff] }
 0x4bf   : > { %v3429_v23 = vpop.f32.mrf.mxu0  ;;  %v3575_v29 = vadd.f32 %v3574_v22, %v3526_v21  ;;  %v9568_v21 = vld [vmem:[#allocation8 + $0x720] sm:$0xf]  ;;  %v10299_v22 = vld [vmem:[#allocation8 + $0x72c] sm:$0xf0] }
 0x4c0   : > { %v3430_v17 = vadd.f32 %v3429_v23, %v11564_v55  ;;  %5637 = vmatpush.bf16.msrb.mxu2 %v9441_v31  ;;  %v12447_v31 = vld [vmem:[#allocation35_spill] sm:$0xff] }
 0x4c1   : > { %v3654_v2 = vmax.f32 %v3575_v29, 0.0 }
 0x4c2   : > { %v3479_v44 = vadd.f32 %v3478_v6, %v3430_v17  ;;  %v9185_v17 = vor.u32 %v10203_v34, %v9184_v20  ;;  %v9569_v6 = vor.u32 %v10299_v22, %v9568_v21  ;;  %v12448_v34 = vld [vmem:[#allocation42_spill] sm:$0xff] }
 0x4c3   : > { %v9424_v22 = vld [vmem:[#allocation8 + $0x600] sm:$0xf] }
 0x4c4   : > { %v3527_v53 = vpop.f32.mrf.mxu2  ;;  %v3481_v38 = vpop.f32.mrf.mxu1  ;;  %5539 = vmatpush.bf16.msrb.mxu0 %v9185_v17  ;;  %5686 = vmatpush.bf16.msrb.mxu3 %v9569_v6  ;;  %v10199_v6 = vld [vmem:[#allocation8 + $0x40c] sm:$0xf0] }
 0x4c5   : > { %v3528_v45 = vadd.f32 %v3527_v53, %v3479_v44  ;;  %v10235_v53 = vld [vmem:[#allocation8 + $0x52c] sm:$0xf0] }
 0x4c6   : > { %v3576_v46 = vpop.f32.mrf.mxu3 }
 0x4c7   : > { %v3432_v47 = vpop.f32.mrf.mxu0  ;;  %v3577_v24 = vadd.f32 %v3576_v46, %v3528_v45  ;;  %5414 = vmatmul.bf16.gmra.mxu1 %v12441_v9  ;;  %v9313_v45 = vor.u32 %v10235_v53, %v9312_v16 }
 0x4c8   : > { %v3433_v59 = vadd.f32 %v3432_v47, %v11564_v55 }
 0x4c9   : > { %v3662_v58 = vmax.f32 %v3577_v24, 0.0  ;;  %5463 = vmatmul.bf16.gmra.mxu2 %v12442_v10  ;;  %5588 = vmatpush.bf16.msrb.mxu1 %v9313_v45 }
 0x4ca   : > { %v3482_v57 = vadd.f32 %v3481_v38, %v3433_v59  ;;  %5365 = vmatmul.bf16.gmra.mxu0 %v12440_v8 }
 0x4cb   : > { %5512 = vmatmul.bf16.gmra.mxu3 %v12443_v27  ;;  %v11603_v42 = vpack.c.bf16 %v3662_v58, %v3654_v2 }
 0x4cc   : > { %v3530_v51 = vpop.f32.mrf.mxu2  ;;  %v3483_v44 = vpop.f32.mrf.mxu1 }
 0x4cd   : > { %12444 = vst [vmem:[#allocation32_spill] sm:$0xff] %v11603_v42  ;;  %v3531_v23 = vadd.f32 %v3530_v51, %v3482_v57  ;;  %v12446_v51 = vld [vmem:[#allocation28_spill] sm:$0xff] }
 0x4ce   : > { %v3579_v33 = vpop.f32.mrf.mxu3 }
 0x4cf   : > { %v3434_v63 = vpop.f32.mrf.mxu0  ;;  %v3580_v48 = vadd.f32 %v3579_v33, %v3531_v23  ;;  %v10263_v23 = vld [vmem:[#allocation8 + $0x60c] sm:$0xf0]  ;;  %v9168_v33 = vld [vmem:[#allocation8 + $0x400] sm:$0xf] }
 0x4d0   : > { %v3435_v29 = vadd.f32 %v3434_v63, %v11564_v55  ;;  %v9425_v17 = vor.u32 %v10263_v23, %v9424_v22  ;;  %v9169_v53 = vor.u32 %v10199_v6, %v9168_v33 }
 0x4d1   : > { %v3670_v15 = vmax.f32 %v3580_v48, 0.0 }
 0x4d2   : > { %v3484_v5 = vadd.f32 %v3483_v44, %v3435_v29  ;;  %v9552_v29 = vld [vmem:[#allocation8 + $0x700] sm:$0xf]  ;;  %v10295_v44 = vld [vmem:[#allocation8 + $0x70c] sm:$0xf0]  ;;  %5638 = vmatpush.bf16.msrb.mxu2 %v9425_v17  ;;  %5540 = vmatpush.bf16.msrb.mxu0 %v9169_v53 }
 0x4d3   : > { %v9553_v45 = vor.u32 %v10295_v44, %v9552_v29  ;;  %v12450_v29 = vld [vmem:[#allocation23_spill] sm:$0xff] }
 0x4d4   : > { %v3532_v46 = vpop.f32.mrf.mxu2  ;;  %v3486_v57 = vpop.f32.mrf.mxu1 }
 0x4d5   : > { %v3533_v47 = vadd.f32 %v3532_v46, %v3484_v5  ;;  %5687 = vmatpush.bf16.msrb.mxu3 %v9553_v45  ;;  %v10161_v45 = vld [vmem:[#allocation8 + $0x2e4] sm:$0xf] }
 0x4d6   : > { %v3581_v59 = vpop.f32.mrf.mxu3 }
 0x4d7   : > { %v3437_v38 = vpop.f32.mrf.mxu0  ;;  %v3582_v2 = vadd.f32 %v3581_v59, %v3533_v47  ;;  %5419 = vmatmul.bf16.gmra.mxu1 %v12446_v51 }
 0x4d8   : > { %v3438_v24 = vadd.f32 %v3437_v38, %v11564_v55 }
 0x4d9   : > { %v3678_v20 = vmax.f32 %v3582_v2, 0.0  ;;  %5468 = vmatmul.bf16.gmra.mxu2 %v12447_v31 }
 0x4da   : > { %v3487_v58 = vadd.f32 %v3486_v57, %v3438_v24  ;;  %5370 = vmatmul.bf16.gmra.mxu0 %v12445_v43  ;;  %v9296_v24 = vld [vmem:[#allocation8 + $0x500] sm:$0xf]  ;;  %v10231_v57 = vld [vmem:[#allocation8 + $0x50c] sm:$0xf0] }
 0x4db   : > { %5517 = vmatmul.bf16.gmra.mxu3 %v12448_v34  ;;  %v11611_v21 = vpack.c.bf16 %v3678_v20, %v3670_v15  ;;  %v9297_v2 = vor.u32 %v10231_v57, %v9296_v24  ;;  %v8770_v57 = vld [vmem:[#allocation8 + $0xf0] sm:$0xf0] }
 0x4dc   : > { %v3535_v63 = vpop.f32.mrf.mxu2  ;;  %v3488_v47 = vpop.f32.mrf.mxu1 }
 0x4dd   : > { %12449 = vst [vmem:[#allocation39_spill] sm:$0xff] %v11611_v21  ;;  %v3536_v5 = vadd.f32 %v3535_v63, %v3487_v58  ;;  %5589 = vmatpush.bf16.msrb.mxu1 %v9297_v2  ;;  %v10193_v2 = vld [vmem:[#allocation8 + $0x3e4] sm:$0xf] }
 0x4de   : > { %v3584_v16 = vpop.f32.mrf.mxu3 }
 0x4df   : > { %v3439_v48 = vpop.f32.mrf.mxu0  ;;  %v3585_v59 = vadd.f32 %v3584_v16, %v3536_v5  ;;  %v12451_v5 = vld [vmem:[#allocation29_spill] sm:$0xff]  ;;  %v12452_v16 = vld [vmem:[#allocation36_spill] sm:$0xff] }
 0x4e0   : > { %v3440_v46 = vadd.f32 %v3439_v48, %v11564_v55  ;;  %v12453_v48 = vld [vmem:[#allocation43_spill] sm:$0xff] }
 0x4e1   : > { %v3686_v17 = vmax.f32 %v3585_v59, 0.0 }
 0x4e2   : > { %v3489_v38 = vadd.f32 %v3488_v47, %v3440_v46  ;;  %v9026_v46 = vld [vmem:[#allocation8 + $0x2f0] sm:$0xf0]  ;;  %v10097_v47 = vld [vmem:[#allocation8 + $0xe4] sm:$0xf] }
 0x4e3   : > { %v9029_v24 = vor.u32 %v10161_v45, %v9026_v46 }
 0x4e4   : > { %v3537_v15 = vpop.f32.mrf.mxu2  ;;  %v3491_v33 = vpop.f32.mrf.mxu1 }
 0x4e5   : > { %v3538_v20 = vadd.f32 %v3537_v15, %v3489_v38  ;;  %v9154_v15 = vld [vmem:[#allocation8 + $0x3f0] sm:$0xf0]  ;;  %5827 = vmatpush.bf16.msra.mxu2 %v9029_v24 }
 0x4e6   : > { %v3586_v22 = vpop.f32.mrf.mxu3 }
 0x4e7   : > { %v3442_v58 = vpop.f32.mrf.mxu0  ;;  %v3587_v63 = vadd.f32 %v3586_v22, %v3538_v20  ;;  %5424 = vmatmul.bf16.gmra.mxu1 %v12451_v5 }
 0x4e8   : > { %v3443_v23 = vadd.f32 %v3442_v58, %v11564_v55  ;;  %v8773_v58 = vor.u32 %v10097_v47, %v8770_v57 }
 0x4e9   : > { %v3694_v44 = vmax.f32 %v3587_v63, 0.0  ;;  %5473 = vmatmul.bf16.gmra.mxu2 %v12452_v16 }
 0x4ea   : > { %v3492_v6 = vadd.f32 %v3491_v33, %v3443_v23  ;;  %5375 = vmatmul.bf16.gmra.mxu0 %v12450_v29  ;;  %v9157_v23 = vor.u32 %v10193_v2, %v9154_v15  ;;  %v12455_v15 = vld [vmem:[#allocation24_spill] sm:$0xff] }
 0x4eb   : > { %5522 = vmatmul.bf16.gmra.mxu3 %v12453_v48  ;;  %v11619_v53 = vpack.c.bf16 %v3694_v44, %v3686_v17  ;;  %5729 = vmatpush.bf16.msra.mxu0 %v8773_v58  ;;  %v10129_v17 = vld [vmem:[#allocation8 + $0x1e4] sm:$0xf]  ;;  %v8898_v44 = vld [vmem:[#allocation8 + $0x1f0] sm:$0xf0]  ;;  %v12458_v58 = vld [vmem:[#allocation44_spill] sm:$0xff] }
 0x4ec   : > { %v3540_v38 = vpop.f32.mrf.mxu2  ;;  %v3493_v63 = vpop.f32.mrf.mxu1  ;;  %5876 = vmatpush.bf16.msra.mxu3 %v9157_v23  ;;  %v8901_v5 = vor.u32 %v10129_v17, %v8898_v44  ;;  %v9010_v23 = vld [vmem:[#allocation8 + $0x2d0] sm:$0xf0]  ;;  %v10189_v44 = vld [vmem:[#allocation8 + $0x3c4] sm:$0xf] }
 0x4ed   : > { %12454 = vst [vmem:[#allocation20_spill] sm:$0xff] %v11619_v53  ;;  %v3541_v20 = vadd.f32 %v3540_v38, %v3492_v6  ;;  %v8754_v17 = vld [vmem:[#allocation8 + $0xd0] sm:$0xf0] }
 0x4ee   : > { %v3589_v22 = vpop.f32.mrf.mxu3  ;;  %5778 = vmatpush.bf16.msra.mxu1 %v8901_v5  ;;  %v10157_v5 = vld [vmem:[#allocation8 + $0x2c4] sm:$0xf] }
 0x4ef   : > { %v3444_v59 = vpop.f32.mrf.mxu0  ;;  %v3590_v48 = vadd.f32 %v3589_v22, %v3541_v20  ;;  %v12456_v22 = vld [vmem:[#allocation30_spill] sm:$0xff] }
 0x4f0   : > { %v3445_v33 = vadd.f32 %v3444_v59, %v11564_v55  ;;  %v12457_v59 = vld [vmem:[#allocation37_spill] sm:$0xff] }
 0x4f1   : > { %v3702_v24 = vmax.f32 %v3590_v48, 0.0 }
 0x4f2   : > { %v3494_v16 = vadd.f32 %v3493_v63, %v3445_v33  ;;  %v9013_v63 = vor.u32 %v10157_v5, %v9010_v23 }
 0x4f4   : > { %v3542_v45 = vpop.f32.mrf.mxu2  ;;  %v3496_v47 = vpop.f32.mrf.mxu1  ;;  %5828 = vmatpush.bf16.msra.mxu2 %v9013_v63 }
 0x4f5   : > { %v3543_v46 = vadd.f32 %v3542_v45, %v3494_v16  ;;  %v10093_v16 = vld [vmem:[#allocation8 + $0xc4] sm:$0xf] }
 0x4f6   : > { %v3591_v29 = vpop.f32.mrf.mxu3 }
 0x4f7   : > { %v3447_v6 = vpop.f32.mrf.mxu0  ;;  %v3592_v57 = vadd.f32 %v3591_v29, %v3543_v46  ;;  %5429 = vmatmul.bf16.gmra.mxu1 %v12456_v22  ;;  %v9138_v29 = vld [vmem:[#allocation8 + $0x3d0] sm:$0xf0]  ;;  %v8757_v46 = vor.u32 %v10093_v16, %v8754_v17  ;;  %v4047_v22 = vld [vmem:[#allocation10] sm:$0xf] }
 0x4f8   : > { %v3448_v38 = vadd.f32 %v3447_v6, %v11564_v55  ;;  %v9141_v6 = vor.u32 %v10189_v44, %v9138_v29 }
 0x4f9   : > { %v3710_v20 = vmax.f32 %v3592_v57, 0.0  ;;  %5478 = vmatmul.bf16.gmra.mxu2 %v12457_v59  ;;  %5730 = vmatpush.bf16.msra.mxu0 %v8757_v46  ;;  %v12460_v46 = vld [vmem:[#allocation45_spill] sm:$0xff] }
 0x4fa   : > { %v3497_v2 = vadd.f32 %v3496_v47, %v3448_v38  ;;  %5380 = vmatmul.bf16.gmra.mxu0 %v12455_v15  ;;  %5877 = vmatpush.bf16.msra.mxu3 %v9141_v6  ;;  %v11630_v15 = vperm.slane %v4047_v22, 0  ;;  %v10153_v22 = vld [vmem:[#allocation8 + $0x2a4] sm:$0xf] }
 0x4fb   : > { %5527 = vmatmul.bf16.gmra.mxu3 %v12458_v58  ;;  %v11627_v33 = vpack.c.bf16 %v3710_v20, %v3702_v24  ;;  %v10125_v24 = vld [vmem:[#allocation8 + $0x1c4] sm:$0xf]  ;;  %v8882_v20 = vld [vmem:[#allocation8 + $0x1d0] sm:$0xf0] }
 0x4fc   : > { %v3545_v45 = vpop.f32.mrf.mxu2  ;;  %v3498_v59 = vpop.f32.mrf.mxu1  ;;  %v8885_v23 = vor.u32 %v10125_v24, %v8882_v20  ;;  %v8738_v24 = vld [vmem:[#allocation8 + $0xb0] sm:$0xf0]  ;;  %v10185_v20 = vld [vmem:[#allocation8 + $0x3a4] sm:$0xf] }
 0x4fd   : > { %12459 = vst [vmem:[#allocation26_spill] sm:$0xff] %v11627_v33  ;;  %v3546_v48 = vadd.f32 %v3545_v45, %v3497_v2 }
 0x4fe   : > { %v3594_v38 = vpop.f32.mrf.mxu3  ;;  %5779 = vmatpush.bf16.msra.mxu1 %v8885_v23 }
 0x4ff   : > { %v3449_v47 = vpop.f32.mrf.mxu0  ;;  %v3595_v58 = vadd.f32 %v3594_v38, %v3546_v48  ;;  %v10089_v38 = vld [vmem:[#allocation8 + $0xa4] sm:$0xf] }
 0x500   : > { %v3450_v57 = vadd.f32 %v3449_v47, %v11564_v55 }
 0x501   : > { %v3718_v6 = vmax.f32 %v3595_v58, 0.0 }
 0x502   : > { %v3499_v5 = vadd.f32 %v3498_v59, %v3450_v57  ;;  %v8994_v59 = vld [vmem:[#allocation8 + $0x2b0] sm:$0xf0] }
 0x503   : > { %v8997_v57 = vor.u32 %v10153_v22, %v8994_v59 }
 0x504   : > { %v3547_v16 = vpop.f32.mrf.mxu2  ;;  %v5395_v29 = vpop.f32.mrf.mxu1 }
 0x505   : > { %v3548_v17 = vadd.f32 %v3547_v16, %v3499_v5  ;;  %v9122_v5 = vld [vmem:[#allocation8 + $0x3b0] sm:$0xf0]  ;;  %v8741_v16 = vor.u32 %v10089_v38, %v8738_v24  ;;  %5829 = vmatpush.bf16.msra.mxu2 %v8997_v57 }
 0x506   : > { %v3596_v2 = vpop.f32.mrf.mxu3 }
 0x507   : > { %v5346_v44 = vpop.f32.mrf.mxu0  ;;  %v3597_v55 = vadd.f32 %v3596_v2, %v3548_v17  ;;  %5590 = vmatmul.bf16.vlgmr.msrb.gmra.mxu1 %v11443_v35  ;;  %v9125_v17 = vor.u32 %v10185_v20, %v9122_v5  ;;  %5731 = vmatpush.bf16.msra.mxu0 %v8741_v16  ;;  %v12463_v16 = vld [vmem:[#allocation54_spill] sm:$0xff] }
 0x508   : > { %v5347_v63 = vadd.f32 %v5346_v44, %v11630_v15 }
 0x509   : > { %v3726_v48 = vmax.f32 %v3597_v55, 0.0  ;;  %5639 = vmatmul.bf16.vlgmr.msrb.gmra.mxu2 %v11512_v7  ;;  %5878 = vmatpush.bf16.msra.mxu3 %v9125_v17  ;;  %v10149_v17 = vld [vmem:[#allocation8 + $0x284] sm:$0xf] }
 0x50a   : > { %v5396_v45 = vadd.f32 %v5395_v29, %v5347_v63  ;;  %5541 = vmatmul.bf16.vlgmr.msrb.gmra.mxu0 %v12460_v46 }
 0x50b   : > { %5688 = vmatmul.bf16.vlgmr.msrb.gmra.mxu3 %v11579_v30  ;;  %v11637_v47 = vpack.c.bf16 %v3726_v48, %v3718_v6  ;;  %v10121_v6 = vld [vmem:[#allocation8 + $0x1a4] sm:$0xf]  ;;  %v8866_v48 = vld [vmem:[#allocation8 + $0x1b0] sm:$0xf0] }
 0x50c   : > { %v5444_v23 = vpop.f32.mrf.mxu2  ;;  %v5397_v29 = vpop.f32.mrf.mxu1  ;;  %v8869_v59 = vor.u32 %v10121_v6, %v8866_v48 }
 0x50d   : > { %12461 = vst [vmem:[#allocation33_spill] sm:$0xff] %v11637_v47  ;;  %v5445_v58 = vadd.f32 %v5444_v23, %v5396_v45  ;;  %v12462_v23 = vld [vmem:[#allocation46_spill] sm:$0xff] }
 0x50e   : > { %v5493_v2 = vpop.f32.mrf.mxu3  ;;  %5780 = vmatpush.bf16.msra.mxu1 %v8869_v59 }
 0x50f   : > { %v5348_v44 = vpop.f32.mrf.mxu0  ;;  %v11640_v55 = vadd.f32 %v5493_v2, %v5445_v58  ;;  %v8978_v58 = vld [vmem:[#allocation8 + $0x290] sm:$0xf0]  ;;  %v10085_v2 = vld [vmem:[#allocation8 + $0x84] sm:$0xf] }
 0x510   : > { %v5349_v63 = vadd.f32 %v5348_v44, %v11630_v15  ;;  %v8722_v44 = vld [vmem:[#allocation8 + $0x90] sm:$0xf0] }
 0x511   : > { %v8725_v48 = vor.u32 %v10085_v2, %v8722_v44 }
 0x512   : > { %v5398_v22 = vadd.f32 %v5397_v29, %v5349_v63  ;;  %v10181_v63 = vld [vmem:[#allocation8 + $0x384] sm:$0xf]  ;;  %v9106_v29 = vld [vmem:[#allocation8 + $0x390] sm:$0xf0] }
 0x513   : > { %5732 = vmatpush.bf16.msra.mxu0 %v8725_v48  ;;  %v12465_v48 = vld [vmem:[#allocation55_spill] sm:$0xff] }
 0x514   : > { %v5446_v30 = vpop.f32.mrf.mxu2  ;;  %v5400_v20 = vpop.f32.mrf.mxu1 }
 0x515   : > { %v5447_v7 = vadd.f32 %v5446_v30, %v5398_v22  ;;  %v8981_v30 = vor.u32 %v10149_v17, %v8978_v58 }
 0x516   : > { %v5495_v38 = vpop.f32.mrf.mxu3 }
 0x517   : > { %v5351_v24 = vpop.f32.mrf.mxu0  ;;  %v11643_v57 = vadd.f32 %v5495_v38, %v5447_v7  ;;  %5595 = vmatmul.bf16.gmra.mxu1 %v12463_v16  ;;  %v9109_v7 = vor.u32 %v10181_v63, %v9106_v29  ;;  %5830 = vmatpush.bf16.msra.mxu2 %v8981_v30 }
 0x518   : > { %v5352_v45 = vadd.f32 %v5351_v24, %v11630_v15 }
 0x519   : > { %5644 = vmatmul.bf16.gmra.mxu2 %v11520_v18  ;;  %5879 = vmatpush.bf16.msra.mxu3 %v9109_v7  ;;  %v8850_v18 = vld [vmem:[#allocation8 + $0x190] sm:$0xf0]  ;;  %v10081_v7 = vld [vmem:[#allocation8 + $0x64] sm:$0xf] }
 0x51a   : > { %v5401_v5 = vadd.f32 %v5400_v20, %v5352_v45  ;;  %5546 = vmatmul.bf16.gmra.mxu0 %v12462_v23 }
 0x51b   : > { %5693 = vmatmul.bf16.gmra.mxu3 %v11587_v14  ;;  %v10117_v14 = vld [vmem:[#allocation8 + $0x184] sm:$0xf] }
 0x51c   : > { %v5449_v6 = vpop.f32.mrf.mxu2  ;;  %v5402_v45 = vpop.f32.mrf.mxu1  ;;  %v8853_v58 = vor.u32 %v10117_v14, %v8850_v18  ;;  %v10145_v18 = vld [vmem:[#allocation8 + $0x264] sm:$0xf]  ;;  %v8962_v14 = vld [vmem:[#allocation8 + $0x270] sm:$0xf0] }
 0x51d   : > { %v5450_v22 = vadd.f32 %v5449_v6, %v5401_v5  ;;  %v12464_v6 = vld [vmem:[#allocation47_spill] sm:$0xff] }
 0x51e   : > { %v5498_v59 = vpop.f32.mrf.mxu3  ;;  %5781 = vmatpush.bf16.msra.mxu1 %v8853_v58 }
 0x51f   : > { %v5353_v38 = vpop.f32.mrf.mxu0  ;;  %v11650_v20 = vadd.f32 %v5498_v59, %v5450_v22  ;;  %v8706_v22 = vld [vmem:[#allocation8 + $0x70] sm:$0xf0]  ;;  %v10177_v59 = vld [vmem:[#allocation8 + $0x364] sm:$0xf] }
 0x520   : > { %v5354_v24 = vadd.f32 %v5353_v38, %v11630_v15  ;;  %v9090_v38 = vld [vmem:[#allocation8 + $0x370] sm:$0xf0] }
 0x522   : > { %v5403_v17 = vadd.f32 %v5402_v45, %v5354_v24  ;;  %v8709_v45 = vor.u32 %v10081_v7, %v8706_v22 }
 0x524   : > { %v5451_v16 = vpop.f32.mrf.mxu2  ;;  %v5405_v63 = vpop.f32.mrf.mxu1  ;;  %5733 = vmatpush.bf16.msra.mxu0 %v8709_v45  ;;  %v12467_v45 = vld [vmem:[#allocation56_spill] sm:$0xff] }
 0x525   : > { %v5452_v23 = vadd.f32 %v5451_v16, %v5403_v17  ;;  %v8965_v16 = vor.u32 %v10145_v18, %v8962_v14 }
 0x526   : > { %v5500_v2 = vpop.f32.mrf.mxu3 }
 0x527   : > { %v5356_v44 = vpop.f32.mrf.mxu0  ;;  %v11653_v30 = vadd.f32 %v5500_v2, %v5452_v23  ;;  %5600 = vmatmul.bf16.gmra.mxu1 %v12465_v48  ;;  %v9093_v23 = vor.u32 %v10177_v59, %v9090_v38  ;;  %5831 = vmatpush.bf16.msra.mxu2 %v8965_v16 }
 0x528   : > { %v5357_v5 = vadd.f32 %v5356_v44, %v11630_v15 }
 0x529   : > { %5649 = vmatmul.bf16.gmra.mxu2 %v11528_v54  ;;  %5880 = vmatpush.bf16.msra.mxu3 %v9093_v23  ;;  %v8834_v54 = vld [vmem:[#allocation8 + $0x170] sm:$0xf0]  ;;  %v10077_v23 = vld [vmem:[#allocation8 + $0x44] sm:$0xf] }
 0x52a   : > { %v5406_v29 = vadd.f32 %v5405_v63, %v5357_v5  ;;  %5551 = vmatmul.bf16.gmra.mxu0 %v12464_v6 }
 0x52b   : > { %5698 = vmatmul.bf16.gmra.mxu3 %v11595_v26  ;;  %v10113_v26 = vld [vmem:[#allocation8 + $0x164] sm:$0xf] }
 0x52c   : > { %v5454_v24 = vpop.f32.mrf.mxu2  ;;  %v5407_v5 = vpop.f32.mrf.mxu1  ;;  %v8837_v14 = vor.u32 %v10113_v26, %v8834_v54  ;;  %v10141_v54 = vld [vmem:[#allocation8 + $0x244] sm:$0xf]  ;;  %v8946_v26 = vld [vmem:[#allocation8 + $0x250] sm:$0xf0] }
 0x52d   : > { %v5455_v17 = vadd.f32 %v5454_v24, %v5406_v29  ;;  %v12466_v24 = vld [vmem:[#allocation48_spill] sm:$0xff] }
 0x52e   : > { %v5503_v58 = vpop.f32.mrf.mxu3  ;;  %5782 = vmatpush.bf16.msra.mxu1 %v8837_v14 }
 0x52f   : > { %v5358_v2 = vpop.f32.mrf.mxu0  ;;  %v11660_v63 = vadd.f32 %v5503_v58, %v5455_v17  ;;  %v8690_v17 = vld [vmem:[#allocation8 + $0x50] sm:$0xf0]  ;;  %v10173_v58 = vld [vmem:[#allocation8 + $0x344] sm:$0xf] }
 0x530   : > { %v5359_v44 = vadd.f32 %v5358_v2, %v11630_v15  ;;  %v9074_v2 = vld [vmem:[#allocation8 + $0x350] sm:$0xf0] }
 0x532   : > { %v5408_v18 = vadd.f32 %v5407_v5, %v5359_v44  ;;  %v8693_v5 = vor.u32 %v10077_v23, %v8690_v17 }
 0x534   : > { %v5456_v48 = vpop.f32.mrf.mxu2  ;;  %v5410_v59 = vpop.f32.mrf.mxu1  ;;  %5734 = vmatpush.bf16.msra.mxu0 %v8693_v5  ;;  %v12469_v5 = vld [vmem:[#allocation57_spill] sm:$0xff] }
 0x535   : > { %v5457_v6 = vadd.f32 %v5456_v48, %v5408_v18  ;;  %v8949_v48 = vor.u32 %v10141_v54, %v8946_v26 }
 0x536   : > { %v5505_v7 = vpop.f32.mrf.mxu3 }
 0x537   : > { %v5361_v22 = vpop.f32.mrf.mxu0  ;;  %v11663_v16 = vadd.f32 %v5505_v7, %v5457_v6  ;;  %5605 = vmatmul.bf16.gmra.mxu1 %v12467_v45  ;;  %v9077_v6 = vor.u32 %v10173_v58, %v9074_v2  ;;  %5832 = vmatpush.bf16.msra.mxu2 %v8949_v48 }
 0x538   : > { %v5362_v29 = vadd.f32 %v5361_v22, %v11630_v15 }
 0x539   : > { %5654 = vmatmul.bf16.gmra.mxu2 %v11536_v39  ;;  %5881 = vmatpush.bf16.msra.mxu3 %v9077_v6  ;;  %v8818_v39 = vld [vmem:[#allocation8 + $0x150] sm:$0xf0]  ;;  %v10073_v6 = vld [vmem:[#allocation8 + $0x24] sm:$0xf] }
 0x53a   : > { %v5411_v38 = vadd.f32 %v5410_v59, %v5362_v29  ;;  %5556 = vmatmul.bf16.gmra.mxu0 %v12466_v24 }
 0x53b   : > { %5703 = vmatmul.bf16.gmra.mxu3 %v11603_v42  ;;  %v10109_v42 = vld [vmem:[#allocation8 + $0x144] sm:$0xf] }
 0x53c   : > { %v5459_v44 = vpop.f32.mrf.mxu2  ;;  %v5412_v29 = vpop.f32.mrf.mxu1  ;;  %v8821_v26 = vor.u32 %v10109_v42, %v8818_v39  ;;  %v10137_v39 = vld [vmem:[#allocation8 + $0x224] sm:$0xf]  ;;  %v8930_v42 = vld [vmem:[#allocation8 + $0x230] sm:$0xf0] }
 0x53d   : > { %v5460_v18 = vadd.f32 %v5459_v44, %v5411_v38  ;;  %v12468_v44 = vld [vmem:[#allocation49_spill] sm:$0xff] }
 0x53e   : > { %v5508_v14 = vpop.f32.mrf.mxu3  ;;  %5783 = vmatpush.bf16.msra.mxu1 %v8821_v26 }
 0x53f   : > { %v5363_v7 = vpop.f32.mrf.mxu0  ;;  %v11670_v59 = vadd.f32 %v5508_v14, %v5460_v18  ;;  %v8674_v18 = vld [vmem:[#allocation8 + $0x30] sm:$0xf0]  ;;  %v10169_v14 = vld [vmem:[#allocation8 + $0x324] sm:$0xf] }
 0x540   : > { %v5364_v22 = vadd.f32 %v5363_v7, %v11630_v15  ;;  %v9058_v7 = vld [vmem:[#allocation8 + $0x330] sm:$0xf0] }
 0x542   : > { %v5413_v54 = vadd.f32 %v5412_v29, %v5364_v22  ;;  %v8677_v29 = vor.u32 %v10073_v6, %v8674_v18 }
 0x544   : > { %v5461_v45 = vpop.f32.mrf.mxu2  ;;  %v5415_v58 = vpop.f32.mrf.mxu1  ;;  %5735 = vmatpush.bf16.msra.mxu0 %v8677_v29  ;;  %v12471_v29 = vld [vmem:[#allocation58_spill] sm:$0xff] }
 0x545   : > { %v5462_v24 = vadd.f32 %v5461_v45, %v5413_v54  ;;  %v8933_v45 = vor.u32 %v10137_v39, %v8930_v42 }
 0x546   : > { %v5510_v23 = vpop.f32.mrf.mxu3 }
 0x547   : > { %v5366_v17 = vpop.f32.mrf.mxu0  ;;  %v11673_v48 = vadd.f32 %v5510_v23, %v5462_v24  ;;  %5610 = vmatmul.bf16.gmra.mxu1 %v12469_v5  ;;  %v9061_v24 = vor.u32 %v10169_v14, %v9058_v7  ;;  %5833 = vmatpush.bf16.msra.mxu2 %v8933_v45 }
 0x548   : > { %v5367_v38 = vadd.f32 %v5366_v17, %v11630_v15 }
 0x549   : > { %5659 = vmatmul.bf16.gmra.mxu2 %v11544_v28  ;;  %5882 = vmatpush.bf16.msra.mxu3 %v9061_v24  ;;  %v8802_v28 = vld [vmem:[#allocation8 + $0x130] sm:$0xf0]  ;;  %v10069_v24 = vld [vmem:[#allocation8 + $0x4] sm:$0xf] }
 0x54a   : > { %v5416_v2 = vadd.f32 %v5415_v58, %v5367_v38  ;;  %5561 = vmatmul.bf16.gmra.mxu0 %v12468_v44 }
 0x54b   : > { %5708 = vmatmul.bf16.gmra.mxu3 %v11611_v21  ;;  %v10105_v21 = vld [vmem:[#allocation8 + $0x124] sm:$0xf] }
 0x54c   : > { %v5464_v22 = vpop.f32.mrf.mxu2  ;;  %v5417_v38 = vpop.f32.mrf.mxu1  ;;  %v8805_v42 = vor.u32 %v10105_v21, %v8802_v28  ;;  %v10133_v28 = vld [vmem:[#allocation8 + $0x204] sm:$0xf]  ;;  %v8914_v21 = vld [vmem:[#allocation8 + $0x210] sm:$0xf0] }
 0x54d   : > { %v5465_v54 = vadd.f32 %v5464_v22, %v5416_v2  ;;  %v12470_v22 = vld [vmem:[#allocation50_spill] sm:$0xff] }
 0x54e   : > { %v5513_v26 = vpop.f32.mrf.mxu3  ;;  %5784 = vmatpush.bf16.msra.mxu1 %v8805_v42 }
 0x54f   : > { %v5368_v23 = vpop.f32.mrf.mxu0  ;;  %v11680_v58 = vadd.f32 %v5513_v26, %v5465_v54  ;;  %v8658_v54 = vld [vmem:[#allocation8 + $0x10] sm:$0xf0]  ;;  %v10165_v26 = vld [vmem:[#allocation8 + $0x304] sm:$0xf] }
 0x550   : > { %v5369_v17 = vadd.f32 %v5368_v23, %v11630_v15  ;;  %v9042_v23 = vld [vmem:[#allocation8 + $0x310] sm:$0xf0] }
 0x552   : > { %v5418_v39 = vadd.f32 %v5417_v38, %v5369_v17  ;;  %v8661_v38 = vor.u32 %v10069_v24, %v8658_v54 }
 0x554   : > { %v5466_v5 = vpop.f32.mrf.mxu2  ;;  %v5420_v14 = vpop.f32.mrf.mxu1  ;;  %5736 = vmatpush.bf16.msra.mxu0 %v8661_v38  ;;  %v10225_v38 = vld [vmem:[#allocation8 + $0x4e4] sm:$0xf] }
 0x555   : > { %v5467_v44 = vadd.f32 %v5466_v5, %v5418_v39  ;;  %v8917_v5 = vor.u32 %v10133_v28, %v8914_v21 }
 0x556   : > { %v5515_v6 = vpop.f32.mrf.mxu3 }
 0x557   : > { %v5371_v18 = vpop.f32.mrf.mxu0  ;;  %v11683_v45 = vadd.f32 %v5515_v6, %v5467_v44  ;;  %5615 = vmatmul.bf16.gmra.mxu1 %v12471_v29  ;;  %v9045_v44 = vor.u32 %v10165_v26, %v9042_v23  ;;  %5834 = vmatpush.bf16.msra.mxu2 %v8917_v5 }
 0x558   : > { %v5372_v2 = vadd.f32 %v5371_v18, %v11630_v15 }
 0x559   : > { %5664 = vmatmul.bf16.gmra.mxu2 %v11552_v52  ;;  %5883 = vmatpush.bf16.msra.mxu3 %v9045_v44  ;;  %v8786_v52 = vld [vmem:[#allocation8 + $0x110] sm:$0xf0] }
 0x55a   : > { %v5421_v7 = vadd.f32 %v5420_v14, %v5372_v2  ;;  %5566 = vmatmul.bf16.gmra.mxu0 %v12470_v22  ;;  %v9282_v44 = vld [vmem:[#allocation8 + $0x4f0] sm:$0xf0] }
 0x55b   : > { %5713 = vmatmul.bf16.gmra.mxu3 %v11619_v53  ;;  %v10101_v53 = vld [vmem:[#allocation8 + $0x104] sm:$0xf] }
 0x55c   : > { %v5469_v17 = vpop.f32.mrf.mxu2  ;;  %v5422_v2 = vpop.f32.mrf.mxu1  ;;  %v8789_v21 = vor.u32 %v10101_v53, %v8786_v52  ;;  %v10289_v52 = vld [vmem:[#allocation8 + $0x6e4] sm:$0xf]  ;;  %v9538_v53 = vld [vmem:[#allocation8 + $0x6f0] sm:$0xf0] }
 0x55d   : > { %v5470_v39 = vadd.f32 %v5469_v17, %v5421_v7  ;;  %v12472_v17 = vld [vmem:[#allocation51_spill] sm:$0xff] }
 0x55e   : > { %v5518_v42 = vpop.f32.mrf.mxu3  ;;  %5785 = vmatpush.bf16.msra.mxu1 %v8789_v21 }
 0x55f   : > { %v5373_v6 = vpop.f32.mrf.mxu0  ;;  %v11690_v14 = vadd.f32 %v5518_v42, %v5470_v39  ;;  %v10321_v39 = vld [vmem:[#allocation8 + $0x7e4] sm:$0xf]  ;;  %v9666_v42 = vld [vmem:[#allocation8 + $0x7f0] sm:$0xf0] }
 0x560   : > { %v5374_v18 = vadd.f32 %v5373_v6, %v11630_v15 }
 0x562   : > { %v5423_v28 = vadd.f32 %v5422_v2, %v5374_v18  ;;  %v9285_v18 = vor.u32 %v10225_v38, %v9282_v44 }
 0x564   : > { %v5471_v29 = vpop.f32.mrf.mxu2  ;;  %v5425_v26 = vpop.f32.mrf.mxu1  ;;  %5925 = vmatpush.bf16.msrb.mxu0 %v9285_v18  ;;  %v9522_v18 = vld [vmem:[#allocation8 + $0x6d0] sm:$0xf0] }
 0x565   : > { %v5472_v22 = vadd.f32 %v5471_v29, %v5423_v28  ;;  %v9541_v29 = vor.u32 %v10289_v52, %v9538_v53  ;;  %v9410_v52 = vld [vmem:[#allocation8 + $0x5f0] sm:$0xf0] }
 0x566   : > { %v5520_v24 = vpop.f32.mrf.mxu3 }
 0x567   : > { %v5376_v54 = vpop.f32.mrf.mxu0  ;;  %v11693_v5 = vadd.f32 %v5520_v24, %v5472_v22  ;;  %5620 = vmatmul.bf16.gmra.mxu1 %v11491_v60  ;;  %v9669_v22 = vor.u32 %v10321_v39, %v9666_v42  ;;  %6023 = vmatpush.bf16.msrb.mxu2 %v9541_v29 }
 0x568   : > { %v5377_v7 = vadd.f32 %v5376_v54, %v11630_v15 }
 0x569   : > { %5669 = vmatmul.bf16.gmra.mxu2 %v11560_v12  ;;  %6072 = vmatpush.bf16.msrb.mxu3 %v9669_v22  ;;  %v10221_v22 = vld [vmem:[#allocation8 + $0x4c4] sm:$0xf] }
 0x56a   : > { %v5426_v23 = vadd.f32 %v5425_v26, %v5377_v7  ;;  %5571 = vmatmul.bf16.gmra.mxu0 %v12472_v17 }
 0x56b   : > { %5718 = vmatmul.bf16.gmra.mxu3 %v11627_v33  ;;  %v10257_v33 = vld [vmem:[#allocation8 + $0x5e4] sm:$0xf] }
 0x56c   : > { %v5474_v6 = vpop.f32.mrf.mxu2  ;;  %v5427_v54 = vpop.f32.mrf.mxu1  ;;  %v9413_v53 = vor.u32 %v10257_v33, %v9410_v52  ;;  %v10285_v33 = vld [vmem:[#allocation8 + $0x6c4] sm:$0xf] }
 0x56d   : > { %v5475_v2 = vadd.f32 %v5474_v6, %v5426_v23  ;;  %v12473_v6 = vld [vmem:[#allocation52_spill] sm:$0xff] }
 0x56e   : > { %v5523_v28 = vpop.f32.mrf.mxu3  ;;  %5974 = vmatpush.bf16.msrb.mxu1 %v9413_v53 }
 0x56f   : > { %v5378_v21 = vpop.f32.mrf.mxu0  ;;  %v11700_v7 = vadd.f32 %v5523_v28, %v5475_v2  ;;  %v9525_v2 = vor.u32 %v10285_v33, %v9522_v18  ;;  %v9266_v28 = vld [vmem:[#allocation8 + $0x4d0] sm:$0xf0] }
 0x570   : > { %v5379_v24 = vadd.f32 %v5378_v21, %v11630_v15  ;;  %v10317_v21 = vld [vmem:[#allocation8 + $0x7c4] sm:$0xf]  ;;  %v9269_v52 = vor.u32 %v10221_v22, %v9266_v28 }
 0x571   : > { %6024 = vmatpush.bf16.msrb.mxu2 %v9525_v2  ;;  %v10217_v2 = vld [vmem:[#allocation8 + $0x4a4] sm:$0xf] }
 0x572   : > { %v5428_v26 = vadd.f32 %v5427_v54, %v5379_v24  ;;  %v9650_v24 = vld [vmem:[#allocation8 + $0x7d0] sm:$0xf0]  ;;  %5926 = vmatpush.bf16.msrb.mxu0 %v9269_v52 }
 0x573   : > { %v9653_v53 = vor.u32 %v10317_v21, %v9650_v24 }
 0x574   : > { %v5476_v12 = vpop.f32.mrf.mxu2  ;;  %v5430_v39 = vpop.f32.mrf.mxu1 }
 0x575   : > { %v5477_v60 = vadd.f32 %v5476_v12, %v5428_v26  ;;  %6073 = vmatpush.bf16.msrb.mxu3 %v9653_v53 }
 0x576   : > { %v5525_v38 = vpop.f32.mrf.mxu3 }
 0x577   : > { %v5381_v44 = vpop.f32.mrf.mxu0  ;;  %v11703_v29 = vadd.f32 %v5525_v38, %v5477_v60  ;;  %5625 = vmatmul.bf16.gmra.mxu1 %v11504_v61 }
 0x578   : > { %v5382_v23 = vadd.f32 %v5381_v44, %v11630_v15 }
 0x579   : > { %5674 = vmatmul.bf16.gmra.mxu2 %v11571_v37  ;;  %v9394_v37 = vld [vmem:[#allocation8 + $0x5d0] sm:$0xf0] }
 0x57a   : > { %v5431_v42 = vadd.f32 %v5430_v39, %v5382_v23  ;;  %5576 = vmatmul.bf16.gmra.mxu0 %v12473_v6 }
 0x57b   : > { %5723 = vmatmul.bf16.gmra.mxu3 %v11637_v47  ;;  %v10253_v47 = vld [vmem:[#allocation8 + $0x5c4] sm:$0xf] }
 0x57c   : > { %v5479_v12 = vpop.f32.mrf.mxu2  ;;  %v5432_v44 = vpop.f32.mrf.mxu1  ;;  %v9397_v33 = vor.u32 %v10253_v47, %v9394_v37  ;;  %v10281_v37 = vld [vmem:[#allocation8 + $0x6a4] sm:$0xf]  ;;  %v9506_v47 = vld [vmem:[#allocation8 + $0x6b0] sm:$0xf0] }
 0x57d   : > { %v5480_v54 = vadd.f32 %v5479_v12, %v5431_v42  ;;  %v9509_v24 = vor.u32 %v10281_v37, %v9506_v47 }
 0x57e   : > { %v5528_v60 = vpop.f32.mrf.mxu3  ;;  %5975 = vmatpush.bf16.msrb.mxu1 %v9397_v33 }
 0x57f   : > { %v5383_v26 = vpop.f32.mrf.mxu0  ;;  %v11710_v23 = vadd.f32 %v5528_v60, %v5480_v54  ;;  %v9250_v54 = vld [vmem:[#allocation8 + $0x4b0] sm:$0xf0]  ;;  %v10313_v60 = vld [vmem:[#allocation8 + $0x7a4] sm:$0xf]  ;;  %6025 = vmatpush.bf16.msrb.mxu2 %v9509_v24 }
 0x580   : > { %v5384_v38 = vadd.f32 %v5383_v26, %v11630_v15  ;;  %v9634_v26 = vld [vmem:[#allocation8 + $0x7b0] sm:$0xf0]  ;;  %v9253_v52 = vor.u32 %v10217_v2, %v9250_v54 }
 0x582   : > { %v5433_v39 = vadd.f32 %v5432_v44, %v5384_v38  ;;  %5927 = vmatpush.bf16.msrb.mxu0 %v9253_v52  ;;  %v9490_v52 = vld [vmem:[#allocation8 + $0x690] sm:$0xf0] }
 0x584   : > { %v5481_v18 = vpop.f32.mrf.mxu2  ;;  %v5591_v28 = vpop.f32.mrf.mxu1 }
 0x585   : > { %v5482_v61 = vadd.f32 %v5481_v18, %v5433_v39 }
 0x586   : > { %v5530_v42 = vpop.f32.mrf.mxu3 }
 0x587   : > { %v5542_v12 = vpop.f32.mrf.mxu0  ;;  %v11713_v21 = vadd.f32 %v5530_v42, %v5482_v61  ;;  %5786 = vmatmul.bf16.vlgmr.msra.gmra.mxu1 %v11171_v32  ;;  %v9637_v61 = vor.u32 %v10313_v60, %v9634_v26 }
 0x588   : > { %v5543_v22 = vadd.f32 %v5542_v12, %v11640_v55  ;;  %v10249_v12 = vld [vmem:[#allocation8 + $0x5a4] sm:$0xf] }
 0x589   : > { %5835 = vmatmul.bf16.vlgmr.msra.gmra.mxu2 %v11240_v19  ;;  %6074 = vmatpush.bf16.msrb.mxu3 %v9637_v61  ;;  %v10213_v61 = vld [vmem:[#allocation8 + $0x484] sm:$0xf] }
 0x58a   : > { %v5592_v15 = vadd.f32 %v5591_v28, %v5543_v22  ;;  %5737 = vmatmul.bf16.vlgmr.msra.gmra.mxu0 %v11104_v62  ;;  %v9378_v22 = vld [vmem:[#allocation8 + $0x5b0] sm:$0xf0] }
 0x58b   : > { %5884 = vmatmul.bf16.vlgmr.msra.gmra.mxu3 %v11307_v56  ;;  %v9381_v28 = vor.u32 %v10249_v12, %v9378_v22 }
 0x58c   : > { %v5640_v55 = vpop.f32.mrf.mxu2  ;;  %v5593_v33 = vpop.f32.mrf.mxu1 }
 0x58d   : > { %v5641_v53 = vadd.f32 %v5640_v55, %v5592_v15  ;;  %5976 = vmatpush.bf16.msrb.mxu1 %v9381_v28  ;;  %v10277_v55 = vld [vmem:[#allocation8 + $0x684] sm:$0xf] }
 0x58e   : > { %v5689_v38 = vpop.f32.mrf.mxu3 }
 0x58f   : > { %v5544_v44 = vpop.f32.mrf.mxu0  ;;  %v5690_v18 = vadd.f32 %v5689_v38, %v5641_v53  ;;  %v9493_v38 = vor.u32 %v10277_v55, %v9490_v52 }
 0x590   : > { %v5545_v39 = vadd.f32 %v5544_v44, %v11643_v57  ;;  %v10309_v44 = vld [vmem:[#allocation8 + $0x784] sm:$0xf] }
 0x591   : > { %v6905_v57 = vmax.f32 %v5690_v18, 0.0  ;;  %6026 = vmatpush.bf16.msrb.mxu2 %v9493_v38 }
 0x592   : > { %v5594_v42 = vadd.f32 %v5593_v33, %v5545_v39 }
 0x594   : > { %v5642_v37 = vpop.f32.mrf.mxu2  ;;  %v5596_v54 = vpop.f32.mrf.mxu1 }
 0x595   : > { %v5643_v47 = vadd.f32 %v5642_v37, %v5594_v42 }
 0x596   : > { %v5691_v56 = vpop.f32.mrf.mxu3 }
 0x597   : > { %v5547_v2 = vpop.f32.mrf.mxu0  ;;  %v5692_v60 = vadd.f32 %v5691_v56, %v5643_v47  ;;  %5791 = vmatmul.bf16.gmra.mxu1 %v11179_v1  ;;  %v9618_v56 = vld [vmem:[#allocation8 + $0x790] sm:$0xf0] }
 0x598   : > { %v5548_v15 = vadd.f32 %v5547_v2, %v11650_v20  ;;  %v9234_v20 = vld [vmem:[#allocation8 + $0x490] sm:$0xf0]  ;;  %v9621_v42 = vor.u32 %v10309_v44, %v9618_v56  ;;  %v10273_v56 = vld [vmem:[#allocation8 + $0x664] sm:$0xf] }
 0x599   : > { %v6909_v26 = vmax.f32 %v5692_v60, 0.0  ;;  %5840 = vmatmul.bf16.gmra.mxu2 %v11248_v4  ;;  %v9237_v33 = vor.u32 %v10213_v61, %v9234_v20 }
 0x59a   : > { %v5597_v24 = vadd.f32 %v5596_v54, %v5548_v15  ;;  %5742 = vmatmul.bf16.gmra.mxu0 %v11112_v0  ;;  %6075 = vmatpush.bf16.msrb.mxu3 %v9621_v42  ;;  %v10245_v15 = vld [vmem:[#allocation8 + $0x584] sm:$0xf]  ;;  %v9362_v54 = vld [vmem:[#allocation8 + $0x590] sm:$0xf0] }
 0x59b   : > { %5889 = vmatmul.bf16.gmra.mxu3 %v11315_v36  ;;  %v11725_v53 = vpack.c.bf16 %v6909_v26, %v6905_v57  ;;  %5928 = vmatpush.bf16.msrb.mxu0 %v9237_v33  ;;  %v9365_v60 = vor.u32 %v10245_v15, %v9362_v54  ;;  %v10209_v33 = vld [vmem:[#allocation8 + $0x464] sm:$0xf] }
 0x59c   : > { %v5645_v39 = vpop.f32.mrf.mxu2  ;;  %v5598_v37 = vpop.f32.mrf.mxu1 }
 0x59d   : > { %12474 = vst [vmem:[#allocation40_spill] sm:$0xff] %v11725_v53  ;;  %v5646_v18 = vadd.f32 %v5645_v39, %v5597_v24  ;;  %5977 = vmatpush.bf16.msrb.mxu1 %v9365_v60  ;;  %v9474_v39 = vld [vmem:[#allocation8 + $0x670] sm:$0xf0] }
 0x59e   : > { %v5694_v12 = vpop.f32.mrf.mxu3  ;;  %v9477_v42 = vor.u32 %v10273_v56, %v9474_v39 }
 0x59f   : > { %v5549_v22 = vpop.f32.mrf.mxu0  ;;  %v5695_v47 = vadd.f32 %v5694_v12, %v5646_v18  ;;  %v9218_v18 = vld [vmem:[#allocation8 + $0x470] sm:$0xf0]  ;;  %v10305_v12 = vld [vmem:[#allocation8 + $0x764] sm:$0xf] }
 0x5a0   : > { %v5550_v28 = vadd.f32 %v5549_v22, %v11653_v30  ;;  %6027 = vmatpush.bf16.msrb.mxu2 %v9477_v42 }
 0x5a1   : > { %v6913_v30 = vmax.f32 %v5695_v47, 0.0 }
 0x5a2   : > { %v5599_v2 = vadd.f32 %v5598_v37, %v5550_v28  ;;  %v9221_v37 = vor.u32 %v10209_v33, %v9218_v18 }
 0x5a4   : > { %v5647_v57 = vpop.f32.mrf.mxu2  ;;  %v5601_v61 = vpop.f32.mrf.mxu1  ;;  %5929 = vmatpush.bf16.msrb.mxu0 %v9221_v37 }
 0x5a5   : > { %v5648_v26 = vadd.f32 %v5647_v57, %v5599_v2 }
 0x5a6   : > { %v5696_v55 = vpop.f32.mrf.mxu3 }
 0x5a7   : > { %v5552_v52 = vpop.f32.mrf.mxu0  ;;  %v5697_v20 = vadd.f32 %v5696_v55, %v5648_v26  ;;  %5796 = vmatmul.bf16.gmra.mxu1 %v12431_v3 }
 0x5a8   : > { %v5553_v24 = vadd.f32 %v5552_v52, %v11660_v63  ;;  %v9602_v63 = vld [vmem:[#allocation8 + $0x770] sm:$0xf0]  ;;  %v10241_v52 = vld [vmem:[#allocation8 + $0x564] sm:$0xf] }
 0x5a9   : > { %v6917_v44 = vmax.f32 %v5697_v20, 0.0  ;;  %5845 = vmatmul.bf16.gmra.mxu2 %v12432_v50  ;;  %v9605_v2 = vor.u32 %v10305_v12, %v9602_v63  ;;  %v10269_v12 = vld [vmem:[#allocation8 + $0x644] sm:$0xf]  ;;  %v9458_v63 = vld [vmem:[#allocation8 + $0x650] sm:$0xf0] }
 0x5aa   : > { %v5602_v38 = vadd.f32 %v5601_v61, %v5553_v24  ;;  %5747 = vmatmul.bf16.gmra.mxu0 %v12430_v41  ;;  %v9346_v24 = vld [vmem:[#allocation8 + $0x570] sm:$0xf0]  ;;  %v9461_v37 = vor.u32 %v10269_v12, %v9458_v63 }
 0x5ab   : > { %5894 = vmatmul.bf16.gmra.mxu3 %v12433_v13  ;;  %v11733_v22 = vpack.c.bf16 %v6917_v44, %v6913_v30  ;;  %v9349_v61 = vor.u32 %v10241_v52, %v9346_v24 }
 0x5ac   : > { %v5650_v28 = vpop.f32.mrf.mxu2  ;;  %v5603_v57 = vpop.f32.mrf.mxu1  ;;  %6076 = vmatpush.bf16.msrb.mxu3 %v9605_v2  ;;  %v9202_v2 = vld [vmem:[#allocation8 + $0x450] sm:$0xf0]  ;;  %6028 = vmatpush.bf16.msrb.mxu2 %v9461_v37 }
 0x5ad   : > { %12475 = vst [vmem:[#allocation21_spill] sm:$0xff] %v11733_v22  ;;  %v5651_v47 = vadd.f32 %v5650_v28, %v5602_v38  ;;  %5978 = vmatpush.bf16.msrb.mxu1 %v9349_v61  ;;  %v10205_v28 = vld [vmem:[#allocation8 + $0x444] sm:$0xf]  ;;  %v10120_v22 = vld [vmem:[#allocation8 + $0x194] sm:$0xf0] }
 0x5ae   : > { %v5699_v15 = vpop.f32.mrf.mxu3 }
 0x5af   : > { %v5554_v54 = vpop.f32.mrf.mxu0  ;;  %v5700_v26 = vadd.f32 %v5699_v15, %v5651_v47  ;;  %v10301_v47 = vld [vmem:[#allocation8 + $0x744] sm:$0xf] }
 0x5b0   : > { %v5555_v60 = vadd.f32 %v5554_v54, %v11663_v16 }
 0x5b1   : > { %v6921_v16 = vmax.f32 %v5700_v26, 0.0 }
 0x5b2   : > { %v5604_v55 = vadd.f32 %v5603_v57, %v5555_v60  ;;  %v9205_v60 = vor.u32 %v10205_v28, %v9202_v2  ;;  %v10265_v2 = vld [vmem:[#allocation8 + $0x624] sm:$0xf] }
 0x5b4   : > { %v5652_v20 = vpop.f32.mrf.mxu2  ;;  %v5606_v39 = vpop.f32.mrf.mxu1  ;;  %5930 = vmatpush.bf16.msrb.mxu0 %v9205_v60  ;;  %v9186_v60 = vld [vmem:[#allocation8 + $0x430] sm:$0xf0] }
 0x5b5   : > { %v5653_v30 = vadd.f32 %v5652_v20, %v5604_v55 }
 0x5b6   : > { %v5701_v44 = vpop.f32.mrf.mxu3 }
 0x5b7   : > { %v5557_v56 = vpop.f32.mrf.mxu0  ;;  %v5702_v33 = vadd.f32 %v5701_v44, %v5653_v30  ;;  %5801 = vmatmul.bf16.gmra.mxu1 %v12436_v11  ;;  %v10237_v44 = vld [vmem:[#allocation8 + $0x544] sm:$0xf] }
 0x5b8   : > { %v5558_v38 = vadd.f32 %v5557_v56, %v11670_v59  ;;  %v9586_v59 = vld [vmem:[#allocation8 + $0x750] sm:$0xf0] }
 0x5b9   : > { %v6925_v18 = vmax.f32 %v5702_v33, 0.0  ;;  %5850 = vmatmul.bf16.gmra.mxu2 %v12437_v49  ;;  %v9589_v57 = vor.u32 %v10301_v47, %v9586_v59  ;;  %v9330_v56 = vld [vmem:[#allocation8 + $0x550] sm:$0xf0]  ;;  %v10201_v59 = vld [vmem:[#allocation8 + $0x424] sm:$0xf] }
 0x5ba   : > { %v5607_v42 = vadd.f32 %v5606_v39, %v5558_v38  ;;  %5752 = vmatmul.bf16.gmra.mxu0 %v12435_v25  ;;  %v9333_v38 = vor.u32 %v10237_v44, %v9330_v56  ;;  %v9442_v47 = vld [vmem:[#allocation8 + $0x630] sm:$0xf0] }
 0x5bb   : > { %5899 = vmatmul.bf16.gmra.mxu3 %v12438_v40  ;;  %v11741_v15 = vpack.c.bf16 %v6925_v18, %v6921_v16 }
 0x5bc   : > { %v5655_v54 = vpop.f32.mrf.mxu2  ;;  %v5608_v61 = vpop.f32.mrf.mxu1  ;;  %6077 = vmatpush.bf16.msrb.mxu3 %v9589_v57  ;;  %5979 = vmatpush.bf16.msrb.mxu1 %v9333_v38  ;;  %v10297_v57 = vld [vmem:[#allocation8 + $0x724] sm:$0xf] }
 0x5bd   : > { %12476 = vst [vmem:[#allocation27_spill] sm:$0xff] %v11741_v15  ;;  %v5656_v26 = vadd.f32 %v5655_v54, %v5607_v42  ;;  %v9445_v54 = vor.u32 %v10265_v2, %v9442_v47  ;;  %v8856_v15 = vld [vmem:[#allocation8 + $0x188] sm:$0xf] }
 0x5be   : > { %v5704_v55 = vpop.f32.mrf.mxu3 }
 0x5bf   : > { %v5559_v52 = vpop.f32.mrf.mxu0  ;;  %v5705_v20 = vadd.f32 %v5704_v55, %v5656_v26  ;;  %6029 = vmatpush.bf16.msrb.mxu2 %v9445_v54  ;;  %v10261_v54 = vld [vmem:[#allocation8 + $0x604] sm:$0xf] }
 0x5c0   : > { %v5560_v24 = vadd.f32 %v5559_v52, %v11673_v48  ;;  %v9189_v52 = vor.u32 %v10201_v59, %v9186_v60  ;;  %v9426_v60 = vld [vmem:[#allocation8 + $0x610] sm:$0xf0] }
 0x5c1   : > { %v6929_v48 = vmax.f32 %v5705_v20, 0.0 }
 0x5c2   : > { %v5609_v30 = vadd.f32 %v5608_v61, %v5560_v24  ;;  %5931 = vmatpush.bf16.msrb.mxu0 %v9189_v52  ;;  %v10293_v52 = vld [vmem:[#allocation8 + $0x704] sm:$0xf] }
 0x5c4   : > { %v5657_v39 = vpop.f32.mrf.mxu2  ;;  %v5611_v12 = vpop.f32.mrf.mxu1 }
 0x5c5   : > { %v5658_v33 = vadd.f32 %v5657_v39, %v5609_v30 }
 0x5c6   : > { %v5706_v16 = vpop.f32.mrf.mxu3 }
 0x5c7   : > { %v5562_v18 = vpop.f32.mrf.mxu0  ;;  %v5707_v63 = vadd.f32 %v5706_v16, %v5658_v33  ;;  %5806 = vmatmul.bf16.gmra.mxu1 %v12441_v9  ;;  %v10233_v33 = vld [vmem:[#allocation8 + $0x524] sm:$0xf]  ;;  %v9314_v16 = vld [vmem:[#allocation8 + $0x530] sm:$0xf0] }
 0x5c8   : > { %v5563_v42 = vadd.f32 %v5562_v18, %v11680_v58  ;;  %v9570_v58 = vld [vmem:[#allocation8 + $0x730] sm:$0xf0]  ;;  %v9317_v18 = vor.u32 %v10233_v33, %v9314_v16 }
 0x5c9   : > { %v6933_v37 = vmax.f32 %v5707_v63, 0.0  ;;  %5855 = vmatmul.bf16.gmra.mxu2 %v12442_v10  ;;  %v9573_v24 = vor.u32 %v10297_v57, %v9570_v58  ;;  %v10197_v57 = vld [vmem:[#allocation8 + $0x404] sm:$0xf]  ;;  %v9429_v58 = vor.u32 %v10261_v54, %v9426_v60 }
 0x5ca   : > { %v5612_v28 = vadd.f32 %v5611_v12, %v5563_v42  ;;  %5757 = vmatmul.bf16.gmra.mxu0 %v12440_v8  ;;  %5980 = vmatpush.bf16.msrb.mxu1 %v9317_v18  ;;  %v12479_v60 = vld [vmem:[#allocation23_spill] sm:$0xff] }
 0x5cb   : > { %5904 = vmatmul.bf16.gmra.mxu3 %v12443_v27  ;;  %v11749_v26 = vpack.c.bf16 %v6933_v37, %v6929_v48  ;;  %6030 = vmatpush.bf16.msrb.mxu2 %v9429_v58  ;;  %v12480_v58 = vld [vmem:[#allocation29_spill] sm:$0xff] }
 0x5cc   : > { %v5660_v55 = vpop.f32.mrf.mxu2  ;;  %v5613_v56 = vpop.f32.mrf.mxu1  ;;  %6078 = vmatpush.bf16.msrb.mxu3 %v9573_v24 }
 0x5cd   : > { %12477 = vst [vmem:[#allocation34_spill] sm:$0xff] %v11749_v26  ;;  %v5661_v61 = vadd.f32 %v5660_v55, %v5612_v28  ;;  %v9170_v55 = vld [vmem:[#allocation8 + $0x410] sm:$0xf0] }
 0x5ce   : > { %v5709_v20 = vpop.f32.mrf.mxu3 }
 0x5cf   : > { %v5564_v30 = vpop.f32.mrf.mxu0  ;;  %v5710_v38 = vadd.f32 %v5709_v20, %v5661_v61  ;;  %v9173_v20 = vor.u32 %v10197_v57, %v9170_v55  ;;  %v12481_v55 = vld [vmem:[#allocation36_spill] sm:$0xff] }
 0x5d0   : > { %v5565_v44 = vadd.f32 %v5564_v30, %v11683_v45 }
 0x5d1   : > { %v6937_v45 = vmax.f32 %v5710_v38, 0.0  ;;  %5932 = vmatpush.bf16.msrb.mxu0 %v9173_v20  ;;  %v8776_v20 = vld [vmem:[#allocation8 + $0xe8] sm:$0xf] }
 0x5d2   : > { %v5614_v39 = vadd.f32 %v5613_v56, %v5565_v44 }
 0x5d4   : > { %v5662_v42 = vpop.f32.mrf.mxu2  ;;  %v5616_v37 = vpop.f32.mrf.mxu1 }
 0x5d5   : > { %v5663_v12 = vadd.f32 %v5662_v42, %v5614_v39  ;;  %v10229_v42 = vld [vmem:[#allocation8 + $0x504] sm:$0xf] }
 0x5d6   : > { %v5711_v63 = vpop.f32.mrf.mxu3 }
 0x5d7   : > { %v5567_v48 = vpop.f32.mrf.mxu0  ;;  %v5712_v2 = vadd.f32 %v5711_v63, %v5663_v12  ;;  %5811 = vmatmul.bf16.gmra.mxu1 %v12446_v51  ;;  %v9298_v12 = vld [vmem:[#allocation8 + $0x510] sm:$0xf0] }
 0x5d8   : > { %v5568_v28 = vadd.f32 %v5567_v48, %v11690_v14  ;;  %v9554_v14 = vld [vmem:[#allocation8 + $0x710] sm:$0xf0]  ;;  %v9301_v63 = vor.u32 %v10229_v42, %v9298_v12 }
 0x5d9   : > { %v6941_v59 = vmax.f32 %v5712_v2, 0.0  ;;  %5860 = vmatmul.bf16.gmra.mxu2 %v12447_v31  ;;  %v9557_v30 = vor.u32 %v10293_v52, %v9554_v14  ;;  %v12482_v52 = vld [vmem:[#allocation43_spill] sm:$0xff] }
 0x5da   : > { %v5617_v47 = vadd.f32 %v5616_v37, %v5568_v28  ;;  %5762 = vmatmul.bf16.gmra.mxu0 %v12445_v43  ;;  %5981 = vmatpush.bf16.msrb.mxu1 %v9301_v63  ;;  %v9032_v14 = vld [vmem:[#allocation8 + $0x2e8] sm:$0xf] }
 0x5db   : > { %5909 = vmatmul.bf16.gmra.mxu3 %v12448_v34  ;;  %v11757_v24 = vpack.c.bf16 %v6941_v59, %v6937_v45 }
 0x5dc   : > { %v5665_v61 = vpop.f32.mrf.mxu2  ;;  %v5618_v33 = vpop.f32.mrf.mxu1  ;;  %6079 = vmatpush.bf16.msrb.mxu3 %v9557_v30 }
 0x5dd   : > { %12478 = vst [vmem:[#allocation41_spill] sm:$0xff] %v11757_v24  ;;  %v5666_v44 = vadd.f32 %v5665_v61, %v5617_v47  ;;  %v10164_v61 = vld [vmem:[#allocation8 + $0x2f4] sm:$0xf0] }
 0x5de   : > { %v5714_v56 = vpop.f32.mrf.mxu3  ;;  %v9033_v30 = vor.u32 %v10164_v61, %v9032_v14 }
 0x5df   : > { %v5569_v38 = vpop.f32.mrf.mxu0  ;;  %v5715_v16 = vadd.f32 %v5714_v56, %v5666_v44  ;;  %v10100_v44 = vld [vmem:[#allocation8 + $0xf4] sm:$0xf0]  ;;  %v9160_v56 = vld [vmem:[#allocation8 + $0x3e8] sm:$0xf] }
 0x5e0   : > { %v5570_v39 = vadd.f32 %v5569_v38, %v11693_v5  ;;  %6219 = vmatpush.bf16.msra.mxu2 %v9033_v30 }
 0x5e1   : > { %v6945_v5 = vmax.f32 %v5715_v16, 0.0 }
 0x5e2   : > { %v5619_v18 = vadd.f32 %v5618_v33, %v5570_v39  ;;  %v8777_v33 = vor.u32 %v10100_v44, %v8776_v20  ;;  %v12484_v44 = vld [vmem:[#allocation24_spill] sm:$0xff] }
 0x5e4   : > { %v5667_v48 = vpop.f32.mrf.mxu2  ;;  %v5621_v45 = vpop.f32.mrf.mxu1  ;;  %6121 = vmatpush.bf16.msra.mxu0 %v8777_v33  ;;  %v12487_v33 = vld [vmem:[#allocation44_spill] sm:$0xff] }
 0x5e5   : > { %v5668_v28 = vadd.f32 %v5667_v48, %v5619_v18 }
 0x5e6   : > { %v5716_v37 = vpop.f32.mrf.mxu3 }
 0x5e7   : > { %v5572_v2 = vpop.f32.mrf.mxu0  ;;  %v5717_v59 = vadd.f32 %v5716_v37, %v5668_v28  ;;  %5816 = vmatmul.bf16.gmra.mxu1 %v12480_v58  ;;  %v8904_v37 = vld [vmem:[#allocation8 + $0x1e8] sm:$0xf] }
 0x5e8   : > { %v5573_v47 = vadd.f32 %v5572_v2, %v11700_v7  ;;  %v10196_v7 = vld [vmem:[#allocation8 + $0x3f4] sm:$0xf0] }
 0x5e9   : > { %v6949_v57 = vmax.f32 %v5717_v59, 0.0  ;;  %5865 = vmatmul.bf16.gmra.mxu2 %v12481_v55  ;;  %v9161_v18 = vor.u32 %v10196_v7, %v9160_v56  ;;  %v10132_v2 = vld [vmem:[#allocation8 + $0x1f4] sm:$0xf0]  ;;  %v12485_v7 = vld [vmem:[#allocation30_spill] sm:$0xff] }
 0x5ea   : > { %v5622_v54 = vadd.f32 %v5621_v45, %v5573_v47  ;;  %5767 = vmatmul.bf16.gmra.mxu0 %v12479_v60  ;;  %v8905_v45 = vor.u32 %v10132_v2, %v8904_v37 }
 0x5eb   : > { %5914 = vmatmul.bf16.gmra.mxu3 %v12482_v52  ;;  %v11765_v38 = vpack.c.bf16 %v6949_v57, %v6945_v5 }
 0x5ec   : > { %v5670_v39 = vpop.f32.mrf.mxu2  ;;  %v5623_v48 = vpop.f32.mrf.mxu1  ;;  %6268 = vmatpush.bf16.msra.mxu3 %v9161_v18  ;;  %6170 = vmatpush.bf16.msra.mxu1 %v8905_v45  ;;  %v9016_v18 = vld [vmem:[#allocation8 + $0x2c8] sm:$0xf] }
 0x5ed   : > { %12483 = vst [vmem:[#allocation22_spill] sm:$0xff] %v11765_v38  ;;  %v5671_v16 = vadd.f32 %v5670_v39, %v5622_v54  ;;  %v12486_v39 = vld [vmem:[#allocation37_spill] sm:$0xff]  ;;  %v10467_v38 = vld [vmem:[#allocation10] sm:$0xf] }
 0x5ee   : > { %v5719_v42 = vpop.f32.mrf.mxu3 }
 0x5ef   : > { %v5574_v12 = vpop.f32.mrf.mxu0  ;;  %v5720_v28 = vadd.f32 %v5719_v42, %v5671_v16  ;;  %v10160_v16 = vld [vmem:[#allocation8 + $0x2d4] sm:$0xf0]  ;;  %v8760_v42 = vld [vmem:[#allocation8 + $0xc8] sm:$0xf] }
 0x5f0   : > { %v5575_v63 = vadd.f32 %v5574_v12, %v11703_v29  ;;  %v9017_v12 = vor.u32 %v10160_v16, %v9016_v18 }
 0x5f1   : > { %v6953_v29 = vmax.f32 %v5720_v28, 0.0 }
 0x5f2   : > { %v5624_v47 = vadd.f32 %v5623_v48, %v5575_v63  ;;  %v10096_v63 = vld [vmem:[#allocation8 + $0xd4] sm:$0xf0]  ;;  %v9144_v48 = vld [vmem:[#allocation8 + $0x3c8] sm:$0xf]  ;;  %6220 = vmatpush.bf16.msra.mxu2 %v9017_v12 }
 0x5f4   : > { %v5672_v59 = vpop.f32.mrf.mxu2  ;;  %v5626_v61 = vpop.f32.mrf.mxu1 }
 0x5f5   : > { %v5673_v5 = vadd.f32 %v5672_v59, %v5624_v47  ;;  %v8761_v47 = vor.u32 %v10096_v63, %v8760_v42 }
 0x5f6   : > { %v5721_v57 = vpop.f32.mrf.mxu3 }
 0x5f7   : > { %v5577_v14 = vpop.f32.mrf.mxu0  ;;  %v5722_v20 = vadd.f32 %v5721_v57, %v5673_v5  ;;  %5821 = vmatmul.bf16.gmra.mxu1 %v12485_v7  ;;  %6122 = vmatpush.bf16.msra.mxu0 %v8761_v47 }
 0x5f8   : > { %v5578_v54 = vadd.f32 %v5577_v14, %v11710_v23  ;;  %v10192_v23 = vld [vmem:[#allocation8 + $0x3d4] sm:$0xf0] }
 0x5f9   : > { %v6957_v56 = vmax.f32 %v5722_v20, 0.0  ;;  %5870 = vmatmul.bf16.gmra.mxu2 %v12486_v39  ;;  %v9145_v45 = vor.u32 %v10192_v23, %v9144_v48  ;;  %v10128_v20 = vld [vmem:[#allocation8 + $0x1d4] sm:$0xf0] }
 0x5fa   : > { %v5627_v30 = vadd.f32 %v5626_v61, %v5578_v54  ;;  %5772 = vmatmul.bf16.gmra.mxu0 %v12484_v44  ;;  %v8888_v61 = vld [vmem:[#allocation8 + $0x1c8] sm:$0xf] }
 0x5fb   : > { %5919 = vmatmul.bf16.gmra.mxu3 %v12487_v33  ;;  %v11773_v37 = vpack.c.bf16 %v6957_v56, %v6953_v29  ;;  %v8889_v16 = vor.u32 %v10128_v20, %v8888_v61  ;;  %v11776_v29 = vperm.slane %v10467_v38, 1  ;;  %v12490_v38 = vld [vmem:[#allocation69_spill] sm:$0xff]  ;;  %v9128_v61 = vld [vmem:[#allocation8 + $0x3a8] sm:$0xf] }
 0x5fc   : > { %v5675_v2 = vpop.f32.mrf.mxu2  ;;  %v5628_v14 = vpop.f32.mrf.mxu1  ;;  %6269 = vmatpush.bf16.msra.mxu3 %v9145_v45  ;;  %v12489_v45 = vld [vmem:[#allocation61_spill] sm:$0xff] }
 0x5fd   : > { %12488 = vst [vmem:[#allocation28_spill] sm:$0xff] %v11773_v37  ;;  %v5676_v28 = vadd.f32 %v5675_v2, %v5627_v30  ;;  %6171 = vmatpush.bf16.msra.mxu1 %v8889_v16  ;;  %v10188_v20 = vld [vmem:[#allocation8 + $0x3b4] sm:$0xf0] }
 0x5fe   : > { %v5724_v59 = vpop.f32.mrf.mxu3 }
 0x5ff   : > { %v5579_v5 = vpop.f32.mrf.mxu0  ;;  %v5725_v54 = vadd.f32 %v5724_v59, %v5676_v28  ;;  %v9000_v28 = vld [vmem:[#allocation8 + $0x2a8] sm:$0xf]  ;;  %v10156_v59 = vld [vmem:[#allocation8 + $0x2b4] sm:$0xf0] }
 0x600   : > { %v5580_v57 = vadd.f32 %v5579_v5, %v11713_v21  ;;  %v8744_v5 = vld [vmem:[#allocation8 + $0xa8] sm:$0xf] }
 0x601   : > { %v6961_v2 = vmax.f32 %v5725_v54, 0.0 }
 0x602   : > { %v5629_v18 = vadd.f32 %v5628_v14, %v5580_v57  ;;  %v9001_v57 = vor.u32 %v10156_v59, %v9000_v28  ;;  %v10092_v14 = vld [vmem:[#allocation8 + $0xb4] sm:$0xf0]  ;;  %v8872_v28 = vld [vmem:[#allocation8 + $0x1a8] sm:$0xf] }
 0x603   : > { %v10124_v59 = vld [vmem:[#allocation8 + $0x1b4] sm:$0xf0] }
 0x604   : > { %v5677_v56 = vpop.f32.mrf.mxu2  ;;  %v5787_v48 = vpop.f32.mrf.mxu1  ;;  %6221 = vmatpush.bf16.msra.mxu2 %v9001_v57  ;;  %v8873_v24 = vor.u32 %v10124_v59, %v8872_v28  ;;  %v10184_v28 = vld [vmem:[#allocation8 + $0x394] sm:$0xf0] }
 0x605   : > { %v5678_v42 = vadd.f32 %v5677_v56, %v5629_v18  ;;  %v8745_v56 = vor.u32 %v10092_v14, %v8744_v5 }
 0x606   : > { %v5726_v30 = vpop.f32.mrf.mxu3  ;;  %6172 = vmatpush.bf16.msra.mxu1 %v8873_v24  ;;  %v10152_v24 = vld [vmem:[#allocation8 + $0x294] sm:$0xf0] }
 0x607   : > { %v5738_v63 = vpop.f32.mrf.mxu0  ;;  %v5727_v21 = vadd.f32 %v5726_v30, %v5678_v42  ;;  %5982 = vmatmul.bf16.vlgmr.msrb.gmra.mxu1 %v11443_v35  ;;  %v9129_v42 = vor.u32 %v10188_v20, %v9128_v61  ;;  %6123 = vmatpush.bf16.msra.mxu0 %v8745_v56  ;;  %v12493_v56 = vld [vmem:[#allocation54_spill] sm:$0xff] }
 0x608   : > { %v5739_v12 = vadd.f32 %v5738_v63, %v11776_v29 }
 0x609   : > { %v6965_v47 = vmax.f32 %v5727_v21, 0.0  ;;  %6031 = vmatmul.bf16.vlgmr.msrb.gmra.mxu2 %v12489_v45  ;;  %6270 = vmatpush.bf16.msra.mxu3 %v9129_v42  ;;  %v12494_v42 = vld [vmem:[#allocation62_spill] sm:$0xff] }
 0x60a   : > { %v5788_v23 = vadd.f32 %v5787_v48, %v5739_v12  ;;  %5933 = vmatmul.bf16.vlgmr.msrb.gmra.mxu0 %v12460_v46 }
 0x60b   : > { %6080 = vmatmul.bf16.vlgmr.msrb.gmra.mxu3 %v12490_v38  ;;  %v11783_v18 = vpack.c.bf16 %v6965_v47, %v6961_v2 }
 0x60c   : > { %v5836_v16 = vpop.f32.mrf.mxu2  ;;  %v5789_v48 = vpop.f32.mrf.mxu1 }
 0x60d   : > { %12491 = vst [vmem:[#allocation35_spill] sm:$0xff] %v11783_v18  ;;  %v5837_v54 = vadd.f32 %v5836_v16, %v5788_v23  ;;  %v12492_v16 = vld [vmem:[#allocation46_spill] sm:$0xff] }
 0x60e   : > { %v5885_v30 = vpop.f32.mrf.mxu3 }
 0x60f   : > { %v5740_v63 = vpop.f32.mrf.mxu0  ;;  %v11786_v21 = vadd.f32 %v5885_v30, %v5837_v54  ;;  %v12495_v54 = vld [vmem:[#allocation19_spill] sm:$0xff] }
 0x610   : > { %v5741_v12 = vadd.f32 %v5740_v63, %v11776_v29  ;;  %v8984_v30 = vld [vmem:[#allocation8 + $0x288] sm:$0xf] }
 0x611   : > { %v8728_v63 = vld [vmem:[#allocation8 + $0x88] sm:$0xf] }
 0x612   : > { %v5790_v37 = vadd.f32 %v5789_v48, %v5741_v12  ;;  %v10088_v12 = vld [vmem:[#allocation8 + $0x94] sm:$0xf0]  ;;  %v9112_v48 = vld [vmem:[#allocation8 + $0x388] sm:$0xf] }
 0x614   : > { %v5838_v2 = vpop.f32.mrf.mxu2  ;;  %v5792_v61 = vpop.f32.mrf.mxu1 }
 0x615   : > { %v5839_v47 = vadd.f32 %v5838_v2, %v5790_v37  ;;  %v8985_v37 = vor.u32 %v10152_v24, %v8984_v30  ;;  %v8729_v2 = vor.u32 %v10088_v12, %v8728_v63  ;;  %v8857_v24 = vor.u32 %v10120_v22, %v8856_v15  ;;  %v8968_v22 = vld [vmem:[#allocation8 + $0x268] sm:$0xf]  ;;  %v10148_v15 = vld [vmem:[#allocation8 + $0x274] sm:$0xf0] }
 0x616   : > { %v5887_v5 = vpop.f32.mrf.mxu3 }
 0x617   : > { %v5743_v14 = vpop.f32.mrf.mxu0  ;;  %v11789_v57 = vadd.f32 %v5887_v5, %v5839_v47  ;;  %5987 = vmatmul.bf16.gmra.mxu1 %v12493_v56  ;;  %v9113_v47 = vor.u32 %v10184_v28, %v9112_v48  ;;  %6222 = vmatpush.bf16.msra.mxu2 %v8985_v37 }
 0x618   : > { %v5744_v23 = vadd.f32 %v5743_v14, %v11776_v29  ;;  %6124 = vmatpush.bf16.msra.mxu0 %v8729_v2  ;;  %6173 = vmatpush.bf16.msra.mxu1 %v8857_v24  ;;  %v12497_v2 = vld [vmem:[#allocation55_spill] sm:$0xff] }
 0x619   : > { %6036 = vmatmul.bf16.gmra.mxu2 %v12494_v42  ;;  %6271 = vmatpush.bf16.msra.mxu3 %v9113_v47  ;;  %v12498_v47 = vld [vmem:[#allocation63_spill] sm:$0xff] }
 0x61a   : > { %v5793_v20 = vadd.f32 %v5792_v61, %v5744_v23  ;;  %5938 = vmatmul.bf16.gmra.mxu0 %v12492_v16 }
 0x61b   : > { %6085 = vmatmul.bf16.gmra.mxu3 %v12495_v54 }
 0x61c   : > { %v5841_v59 = vpop.f32.mrf.mxu2  ;;  %v5794_v18 = vpop.f32.mrf.mxu1 }
 0x61d   : > { %v5842_v5 = vadd.f32 %v5841_v59, %v5793_v20  ;;  %v12496_v59 = vld [vmem:[#allocation47_spill] sm:$0xff] }
 0x61e   : > { %v5890_v14 = vpop.f32.mrf.mxu3 }
 0x61f   : > { %v5745_v23 = vpop.f32.mrf.mxu0  ;;  %v11796_v26 = vadd.f32 %v5890_v14, %v5842_v5  ;;  %v12499_v5 = vld [vmem:[#allocation25_spill] sm:$0xff] }
 0x620   : > { %v5746_v61 = vadd.f32 %v5745_v23, %v11776_v29  ;;  %v10084_v14 = vld [vmem:[#allocation8 + $0x74] sm:$0xf0]  ;;  %v9096_v23 = vld [vmem:[#allocation8 + $0x368] sm:$0xf] }
 0x622   : > { %v5795_v30 = vadd.f32 %v5794_v18, %v5746_v61  ;;  %v8712_v18 = vld [vmem:[#allocation8 + $0x68] sm:$0xf]  ;;  %v10180_v61 = vld [vmem:[#allocation8 + $0x374] sm:$0xf0] }
 0x623   : > { %v8713_v24 = vor.u32 %v10084_v14, %v8712_v18 }
 0x624   : > { %v5843_v53 = vpop.f32.mrf.mxu2  ;;  %v5797_v48 = vpop.f32.mrf.mxu1 }
 0x625   : > { %v5844_v54 = vadd.f32 %v5843_v53, %v5795_v30  ;;  %v8969_v53 = vor.u32 %v10148_v15, %v8968_v22  ;;  %6125 = vmatpush.bf16.msra.mxu0 %v8713_v24  ;;  %v12501_v24 = vld [vmem:[#allocation56_spill] sm:$0xff] }
 0x626   : > { %v5892_v63 = vpop.f32.mrf.mxu3 }
 0x627   : > { %v5748_v12 = vpop.f32.mrf.mxu0  ;;  %v11799_v37 = vadd.f32 %v5892_v63, %v5844_v54  ;;  %5992 = vmatmul.bf16.gmra.mxu1 %v12497_v2  ;;  %v9097_v54 = vor.u32 %v10180_v61, %v9096_v23  ;;  %6223 = vmatpush.bf16.msra.mxu2 %v8969_v53 }
 0x628   : > { %v5749_v20 = vadd.f32 %v5748_v12, %v11776_v29 }
 0x629   : > { %6041 = vmatmul.bf16.gmra.mxu2 %v12498_v47  ;;  %6272 = vmatpush.bf16.msra.mxu3 %v9097_v54  ;;  %v8840_v47 = vld [vmem:[#allocation8 + $0x168] sm:$0xf]  ;;  %v12502_v54 = vld [vmem:[#allocation64_spill] sm:$0xff] }
 0x62a   : > { %v5798_v28 = vadd.f32 %v5797_v48, %v5749_v20  ;;  %5943 = vmatmul.bf16.gmra.mxu0 %v12496_v59  ;;  %v10116_v59 = vld [vmem:[#allocation8 + $0x174] sm:$0xf0] }
 0x62b   : > { %6090 = vmatmul.bf16.gmra.mxu3 %v12499_v5  ;;  %v8841_v15 = vor.u32 %v10116_v59, %v8840_v47  ;;  %v8952_v59 = vld [vmem:[#allocation8 + $0x248] sm:$0xf] }
 0x62c   : > { %v5846_v30 = vpop.f32.mrf.mxu2  ;;  %v5799_v2 = vpop.f32.mrf.mxu1  ;;  %v8696_v47 = vld [vmem:[#allocation8 + $0x48] sm:$0xf] }
 0x62d   : > { %v5847_v63 = vadd.f32 %v5846_v30, %v5798_v28  ;;  %6174 = vmatpush.bf16.msra.mxu1 %v8841_v15  ;;  %v12500_v30 = vld [vmem:[#allocation48_spill] sm:$0xff] }
 0x62e   : > { %v5895_v12 = vpop.f32.mrf.mxu3 }
 0x62f   : > { %v5750_v20 = vpop.f32.mrf.mxu0  ;;  %v11806_v5 = vadd.f32 %v5895_v12, %v5847_v63  ;;  %v12503_v63 = vld [vmem:[#allocation32_spill] sm:$0xff]  ;;  %v10080_v12 = vld [vmem:[#allocation8 + $0x54] sm:$0xf0] }
 0x630   : > { %v5751_v48 = vadd.f32 %v5750_v20, %v11776_v29  ;;  %v9080_v20 = vld [vmem:[#allocation8 + $0x348] sm:$0xf]  ;;  %v8697_v15 = vor.u32 %v10080_v12, %v8696_v47 }
 0x632   : > { %v5800_v22 = vadd.f32 %v5799_v2, %v5751_v48  ;;  %v10144_v2 = vld [vmem:[#allocation8 + $0x254] sm:$0xf0]  ;;  %6126 = vmatpush.bf16.msra.mxu0 %v8697_v15 }
 0x633   : > { %v10176_v48 = vld [vmem:[#allocation8 + $0x354] sm:$0xf0] }
 0x634   : > { %v5848_v42 = vpop.f32.mrf.mxu2  ;;  %v5802_v23 = vpop.f32.mrf.mxu1  ;;  %v12505_v15 = vld [vmem:[#allocation57_spill] sm:$0xff] }
 0x635   : > { %v5849_v56 = vadd.f32 %v5848_v42, %v5800_v22  ;;  %v8953_v42 = vor.u32 %v10144_v2, %v8952_v59 }
 0x636   : > { %v5897_v18 = vpop.f32.mrf.mxu3 }
 0x637   : > { %v5753_v14 = vpop.f32.mrf.mxu0  ;;  %v11809_v53 = vadd.f32 %v5897_v18, %v5849_v56  ;;  %5997 = vmatmul.bf16.gmra.mxu1 %v12501_v24  ;;  %v9081_v56 = vor.u32 %v10176_v48, %v9080_v20  ;;  %6224 = vmatpush.bf16.msra.mxu2 %v8953_v42 }
 0x638   : > { %v5754_v28 = vadd.f32 %v5753_v14, %v11776_v29 }
 0x639   : > { %6046 = vmatmul.bf16.gmra.mxu2 %v12502_v54  ;;  %6273 = vmatpush.bf16.msra.mxu3 %v9081_v56  ;;  %v8824_v54 = vld [vmem:[#allocation8 + $0x148] sm:$0xf]  ;;  %v12506_v56 = vld [vmem:[#allocation65_spill] sm:$0xff] }
 0x63a   : > { %v5803_v61 = vadd.f32 %v5802_v23, %v5754_v28  ;;  %5948 = vmatmul.bf16.gmra.mxu0 %v12500_v30  ;;  %v10112_v30 = vld [vmem:[#allocation8 + $0x154] sm:$0xf0] }
 0x63b   : > { %6095 = vmatmul.bf16.gmra.mxu3 %v12503_v63  ;;  %v8825_v2 = vor.u32 %v10112_v30, %v8824_v54  ;;  %v8936_v30 = vld [vmem:[#allocation8 + $0x228] sm:$0xf] }
 0x63c   : > { %v5851_v22 = vpop.f32.mrf.mxu2  ;;  %v5804_v24 = vpop.f32.mrf.mxu1  ;;  %v8680_v54 = vld [vmem:[#allocation8 + $0x28] sm:$0xf] }
 0x63d   : > { %v5852_v18 = vadd.f32 %v5851_v22, %v5803_v61  ;;  %6175 = vmatpush.bf16.msra.mxu1 %v8825_v2  ;;  %v12504_v22 = vld [vmem:[#allocation49_spill] sm:$0xff] }
 0x63e   : > { %v5900_v14 = vpop.f32.mrf.mxu3 }
 0x63f   : > { %v5755_v28 = vpop.f32.mrf.mxu0  ;;  %v11816_v63 = vadd.f32 %v5900_v14, %v5852_v18  ;;  %v12507_v18 = vld [vmem:[#allocation39_spill] sm:$0xff]  ;;  %v10076_v14 = vld [vmem:[#allocation8 + $0x34] sm:$0xf0] }
 0x640   : > { %v5756_v23 = vadd.f32 %v5755_v28, %v11776_v29  ;;  %v9064_v28 = vld [vmem:[#allocation8 + $0x328] sm:$0xf]  ;;  %v8681_v2 = vor.u32 %v10076_v14, %v8680_v54 }
 0x642   : > { %v5805_v59 = vadd.f32 %v5804_v24, %v5756_v23  ;;  %v10140_v24 = vld [vmem:[#allocation8 + $0x234] sm:$0xf0]  ;;  %6127 = vmatpush.bf16.msra.mxu0 %v8681_v2  ;;  %v12509_v2 = vld [vmem:[#allocation58_spill] sm:$0xff] }
 0x643   : > { %v10172_v23 = vld [vmem:[#allocation8 + $0x334] sm:$0xf0] }
 0x644   : > { %v5853_v16 = vpop.f32.mrf.mxu2  ;;  %v5807_v20 = vpop.f32.mrf.mxu1 }
 0x645   : > { %v5854_v38 = vadd.f32 %v5853_v16, %v5805_v59  ;;  %v8937_v16 = vor.u32 %v10140_v24, %v8936_v30 }
 0x646   : > { %v5902_v47 = vpop.f32.mrf.mxu3 }
 0x647   : > { %v5758_v12 = vpop.f32.mrf.mxu0  ;;  %v11819_v42 = vadd.f32 %v5902_v47, %v5854_v38  ;;  %6002 = vmatmul.bf16.gmra.mxu1 %v12505_v15  ;;  %v9065_v38 = vor.u32 %v10172_v23, %v9064_v28  ;;  %6225 = vmatpush.bf16.msra.mxu2 %v8937_v16 }
 0x648   : > { %v5759_v61 = vadd.f32 %v5758_v12, %v11776_v29 }
 0x649   : > { %6051 = vmatmul.bf16.gmra.mxu2 %v12506_v56  ;;  %6274 = vmatpush.bf16.msra.mxu3 %v9065_v38  ;;  %v8808_v56 = vld [vmem:[#allocation8 + $0x128] sm:$0xf]  ;;  %v12510_v38 = vld [vmem:[#allocation66_spill] sm:$0xff] }
 0x64a   : > { %v5808_v48 = vadd.f32 %v5807_v20, %v5759_v61  ;;  %5953 = vmatmul.bf16.gmra.mxu0 %v12504_v22  ;;  %v10108_v22 = vld [vmem:[#allocation8 + $0x134] sm:$0xf0] }
 0x64b   : > { %6100 = vmatmul.bf16.gmra.mxu3 %v12507_v18  ;;  %v8809_v24 = vor.u32 %v10108_v22, %v8808_v56  ;;  %v8920_v22 = vld [vmem:[#allocation8 + $0x208] sm:$0xf] }
 0x64c   : > { %v5856_v59 = vpop.f32.mrf.mxu2  ;;  %v5809_v15 = vpop.f32.mrf.mxu1  ;;  %v8664_v56 = vld [vmem:[#allocation8 + $0x8] sm:$0xf] }
 0x64d   : > { %v5857_v47 = vadd.f32 %v5856_v59, %v5808_v48  ;;  %6176 = vmatpush.bf16.msra.mxu1 %v8809_v24  ;;  %v12508_v59 = vld [vmem:[#allocation50_spill] sm:$0xff] }
 0x64e   : > { %v5905_v12 = vpop.f32.mrf.mxu3 }
 0x64f   : > { %v5760_v61 = vpop.f32.mrf.mxu0  ;;  %v11826_v18 = vadd.f32 %v5905_v12, %v5857_v47  ;;  %v12511_v47 = vld [vmem:[#allocation20_spill] sm:$0xff]  ;;  %v10072_v12 = vld [vmem:[#allocation8 + $0x14] sm:$0xf0] }
 0x650   : > { %v5761_v20 = vadd.f32 %v5760_v61, %v11776_v29  ;;  %v9048_v61 = vld [vmem:[#allocation8 + $0x308] sm:$0xf]  ;;  %v8665_v24 = vor.u32 %v10072_v12, %v8664_v56 }
 0x652   : > { %v5810_v30 = vadd.f32 %v5809_v15, %v5761_v20  ;;  %v10136_v15 = vld [vmem:[#allocation8 + $0x214] sm:$0xf0]  ;;  %6128 = vmatpush.bf16.msra.mxu0 %v8665_v24  ;;  %v12513_v24 = vld [vmem:[#allocation67_spill] sm:$0xff] }
 0x653   : > { %v10168_v20 = vld [vmem:[#allocation8 + $0x314] sm:$0xf0] }
 0x654   : > { %v5858_v45 = vpop.f32.mrf.mxu2  ;;  %v5812_v28 = vpop.f32.mrf.mxu1 }
 0x655   : > { %v5859_v35 = vadd.f32 %v5858_v45, %v5810_v30  ;;  %v8921_v45 = vor.u32 %v10136_v15, %v8920_v22 }
 0x656   : > { %v5907_v54 = vpop.f32.mrf.mxu3 }
 0x657   : > { %v5763_v14 = vpop.f32.mrf.mxu0  ;;  %v11829_v16 = vadd.f32 %v5907_v54, %v5859_v35  ;;  %6007 = vmatmul.bf16.gmra.mxu1 %v12509_v2  ;;  %v9049_v35 = vor.u32 %v10168_v20, %v9048_v61  ;;  %6226 = vmatpush.bf16.msra.mxu2 %v8921_v45 }
 0x658   : > { %v5764_v48 = vadd.f32 %v5763_v14, %v11776_v29 }
 0x659   : > { %6056 = vmatmul.bf16.gmra.mxu2 %v12510_v38  ;;  %6275 = vmatpush.bf16.msra.mxu3 %v9049_v35  ;;  %v8792_v38 = vld [vmem:[#allocation8 + $0x108] sm:$0xf]  ;;  %v12514_v35 = vld [vmem:[#allocation26_spill] sm:$0xff] }
 0x65a   : > { %v5813_v23 = vadd.f32 %v5812_v28, %v5764_v48  ;;  %5958 = vmatmul.bf16.gmra.mxu0 %v12508_v59  ;;  %v10104_v59 = vld [vmem:[#allocation8 + $0x114] sm:$0xf0] }
 0x65b   : > { %6105 = vmatmul.bf16.gmra.mxu3 %v12511_v47  ;;  %v8793_v15 = vor.u32 %v10104_v59, %v8792_v38  ;;  %v9544_v59 = vld [vmem:[#allocation8 + $0x6e8] sm:$0xf] }
 0x65c   : > { %v5861_v30 = vpop.f32.mrf.mxu2  ;;  %v5814_v2 = vpop.f32.mrf.mxu1  ;;  %v9288_v38 = vld [vmem:[#allocation8 + $0x4e8] sm:$0xf] }
 0x65d   : > { %v5862_v54 = vadd.f32 %v5861_v30, %v5813_v23  ;;  %6177 = vmatpush.bf16.msra.mxu1 %v8793_v15  ;;  %v12512_v30 = vld [vmem:[#allocation59_spill] sm:$0xff] }
 0x65e   : > { %v5910_v14 = vpop.f32.mrf.mxu3 }
 0x65f   : > { %v5765_v48 = vpop.f32.mrf.mxu0  ;;  %v11836_v47 = vadd.f32 %v5910_v14, %v5862_v54  ;;  %v10228_v54 = vld [vmem:[#allocation8 + $0x4f4] sm:$0xf0]  ;;  %v9672_v14 = vld [vmem:[#allocation8 + $0x7e8] sm:$0xf] }
 0x660   : > { %v5766_v28 = vadd.f32 %v5765_v48, %v11776_v29  ;;  %v10324_v48 = vld [vmem:[#allocation8 + $0x7f4] sm:$0xf0] }
 0x662   : > { %v5815_v22 = vadd.f32 %v5814_v2, %v5766_v28  ;;  %v10292_v2 = vld [vmem:[#allocation8 + $0x6f4] sm:$0xf0] }
 0x664   : > { %v5863_v46 = vpop.f32.mrf.mxu2  ;;  %v5817_v61 = vpop.f32.mrf.mxu1 }
 0x665   : > { %v5864_v33 = vadd.f32 %v5863_v46, %v5815_v22  ;;  %v9545_v46 = vor.u32 %v10292_v2, %v9544_v59  ;;  %v9289_v22 = vor.u32 %v10228_v54, %v9288_v38  ;;  %v10260_v59 = vld [vmem:[#allocation8 + $0x5f4] sm:$0xf0] }
 0x666   : > { %v5912_v56 = vpop.f32.mrf.mxu3 }
 0x667   : > { %v5768_v12 = vpop.f32.mrf.mxu0  ;;  %v11839_v45 = vadd.f32 %v5912_v56, %v5864_v33  ;;  %6012 = vmatmul.bf16.gmra.mxu1 %v12512_v30  ;;  %v9673_v33 = vor.u32 %v10324_v48, %v9672_v14  ;;  %6415 = vmatpush.bf16.msrb.mxu2 %v9545_v46  ;;  %v9416_v30 = vld [vmem:[#allocation8 + $0x5e8] sm:$0xf] }
 0x668   : > { %v5769_v23 = vadd.f32 %v5768_v12, %v11776_v29  ;;  %6317 = vmatpush.bf16.msrb.mxu0 %v9289_v22  ;;  %v9417_v2 = vor.u32 %v10260_v59, %v9416_v30  ;;  %v12516_v22 = vld [vmem:[#allocation68_spill] sm:$0xff]  ;;  %v9528_v30 = vld [vmem:[#allocation8 + $0x6c8] sm:$0xf] }
 0x669   : > { %6061 = vmatmul.bf16.gmra.mxu2 %v12513_v24  ;;  %6464 = vmatpush.bf16.msrb.mxu3 %v9673_v33  ;;  %v12517_v33 = vld [vmem:[#allocation33_spill] sm:$0xff] }
 0x66a   : > { %v5818_v20 = vadd.f32 %v5817_v61, %v5769_v23  ;;  %5963 = vmatmul.bf16.gmra.mxu0 %v12472_v17  ;;  %6366 = vmatpush.bf16.msrb.mxu1 %v9417_v2 }
 0x66b   : > { %6110 = vmatmul.bf16.gmra.mxu3 %v12514_v35 }
 0x66c   : > { %v5866_v28 = vpop.f32.mrf.mxu2  ;;  %v5819_v61 = vpop.f32.mrf.mxu1 }
 0x66d   : > { %v5867_v15 = vadd.f32 %v5866_v28, %v5818_v20  ;;  %v12515_v28 = vld [vmem:[#allocation60_spill] sm:$0xff] }
 0x66e   : > { %v5915_v56 = vpop.f32.mrf.mxu3 }
 0x66f   : > { %v5770_v12 = vpop.f32.mrf.mxu0  ;;  %v11846_v35 = vadd.f32 %v5915_v56, %v5867_v15  ;;  %v10288_v15 = vld [vmem:[#allocation8 + $0x6d4] sm:$0xf0]  ;;  %v9272_v56 = vld [vmem:[#allocation8 + $0x4c8] sm:$0xf] }
 0x670   : > { %v5771_v23 = vadd.f32 %v5770_v12, %v11776_v29  ;;  %v10224_v12 = vld [vmem:[#allocation8 + $0x4d4] sm:$0xf0] }
 0x672   : > { %v5820_v24 = vadd.f32 %v5819_v61, %v5771_v23  ;;  %v9656_v23 = vld [vmem:[#allocation8 + $0x7c8] sm:$0xf]  ;;  %v10320_v61 = vld [vmem:[#allocation8 + $0x7d4] sm:$0xf0] }
 0x674   : > { %v5868_v17 = vpop.f32.mrf.mxu2  ;;  %v5822_v14 = vpop.f32.mrf.mxu1 }
 0x675   : > { %v5869_v39 = vadd.f32 %v5868_v17, %v5820_v24  ;;  %v9529_v24 = vor.u32 %v10288_v15, %v9528_v30 }
 0x676   : > { %v5917_v38 = vpop.f32.mrf.mxu3 }
 0x677   : > { %v5773_v54 = vpop.f32.mrf.mxu0  ;;  %v11849_v46 = vadd.f32 %v5917_v38, %v5869_v39  ;;  %6017 = vmatmul.bf16.gmra.mxu1 %v12515_v28  ;;  %v9273_v38 = vor.u32 %v10224_v12, %v9272_v56  ;;  %6416 = vmatpush.bf16.msrb.mxu2 %v9529_v24  ;;  %v9400_v28 = vld [vmem:[#allocation8 + $0x5c8] sm:$0xf]  ;;  %v12518_v24 = vld [vmem:[#allocation38_spill] sm:$0xff] }
 0x678   : > { %v5774_v20 = vadd.f32 %v5773_v54, %v11776_v29  ;;  %v9657_v54 = vor.u32 %v10320_v61, %v9656_v23  ;;  %v9256_v61 = vld [vmem:[#allocation8 + $0x4a8] sm:$0xf] }
 0x679   : > { %6066 = vmatmul.bf16.gmra.mxu2 %v12516_v22  ;;  %6318 = vmatpush.bf16.msrb.mxu0 %v9273_v38 }
 0x67a   : > { %v5823_v48 = vadd.f32 %v5822_v14, %v5774_v20  ;;  %5968 = vmatmul.bf16.gmra.mxu0 %v12473_v6  ;;  %6465 = vmatpush.bf16.msrb.mxu3 %v9657_v54  ;;  %v10256_v6 = vld [vmem:[#allocation8 + $0x5d4] sm:$0xf0] }
 0x67b   : > { %6115 = vmatmul.bf16.gmra.mxu3 %v12517_v33  ;;  %v9401_v30 = vor.u32 %v10256_v6, %v9400_v28  ;;  %v9512_v6 = vld [vmem:[#allocation8 + $0x6a8] sm:$0xf]  ;;  %v10284_v28 = vld [vmem:[#allocation8 + $0x6b4] sm:$0xf0] }
 0x67c   : > { %v5871_v17 = vpop.f32.mrf.mxu2  ;;  %v5824_v14 = vpop.f32.mrf.mxu1 }
 0x67d   : > { %v5872_v59 = vadd.f32 %v5871_v17, %v5823_v48  ;;  %6367 = vmatpush.bf16.msrb.mxu1 %v9401_v30 }
 0x67e   : > { %v5920_v39 = vpop.f32.mrf.mxu3 }
 0x67f   : > { %v5775_v2 = vpop.f32.mrf.mxu0  ;;  %v11856_v22 = vadd.f32 %v5920_v39, %v5872_v59  ;;  %v10220_v59 = vld [vmem:[#allocation8 + $0x4b4] sm:$0xf0]  ;;  %v9640_v39 = vld [vmem:[#allocation8 + $0x7a8] sm:$0xf] }
 0x680   : > { %v5776_v20 = vadd.f32 %v5775_v2, %v11776_v29  ;;  %v10316_v2 = vld [vmem:[#allocation8 + $0x7b4] sm:$0xf0]  ;;  %v9257_v38 = vor.u32 %v10220_v59, %v9256_v61 }
 0x682   : > { %v5825_v33 = vadd.f32 %v5824_v14, %v5776_v20  ;;  %6319 = vmatpush.bf16.msrb.mxu0 %v9257_v38  ;;  %v10280_v38 = vld [vmem:[#allocation8 + $0x694] sm:$0xf0] }
 0x684   : > { %v5873_v15 = vpop.f32.mrf.mxu2  ;;  %v5983_v12 = vpop.f32.mrf.mxu1 }
 0x685   : > { %v5874_v7 = vadd.f32 %v5873_v15, %v5825_v33  ;;  %v9513_v33 = vor.u32 %v10284_v28, %v9512_v6 }
 0x686   : > { %v5922_v48 = vpop.f32.mrf.mxu3 }
 0x687   : > { %v5934_v17 = vpop.f32.mrf.mxu0  ;;  %v11859_v23 = vadd.f32 %v5922_v48, %v5874_v7  ;;  %6178 = vmatmul.bf16.vlgmr.msra.gmra.mxu1 %v11171_v32  ;;  %v9641_v7 = vor.u32 %v10316_v2, %v9640_v39  ;;  %6417 = vmatpush.bf16.msrb.mxu2 %v9513_v33 }
 0x688   : > { %v5935_v56 = vadd.f32 %v5934_v17, %v11786_v21 }
 0x689   : > { %6227 = vmatmul.bf16.vlgmr.msra.gmra.mxu2 %v11240_v19  ;;  %6466 = vmatpush.bf16.msrb.mxu3 %v9641_v7  ;;  %v9240_v7 = vld [vmem:[#allocation8 + $0x488] sm:$0xf] }
 0x68a   : > { %v5984_v29 = vadd.f32 %v5983_v12, %v5935_v56  ;;  %6129 = vmatmul.bf16.vlgmr.msra.gmra.mxu0 %v11104_v62  ;;  %v9384_v56 = vld [vmem:[#allocation8 + $0x5a8] sm:$0xf]  ;;  %v10252_v12 = vld [vmem:[#allocation8 + $0x5b4] sm:$0xf0] }
 0x68b   : > { %6276 = vmatmul.bf16.vlgmr.msra.gmra.mxu3 %v12518_v24  ;;  %v9385_v6 = vor.u32 %v10252_v12, %v9384_v56 }
 0x68c   : > { %v6032_v21 = vpop.f32.mrf.mxu2  ;;  %v5985_v15 = vpop.f32.mrf.mxu1 }
 0x68d   : > { %v6033_v54 = vadd.f32 %v6032_v21, %v5984_v29  ;;  %6368 = vmatpush.bf16.msrb.mxu1 %v9385_v6  ;;  %v9496_v21 = vld [vmem:[#allocation8 + $0x688] sm:$0xf] }
 0x68e   : > { %v6081_v20 = vpop.f32.mrf.mxu3 }
 0x68f   : > { %v5936_v14 = vpop.f32.mrf.mxu0  ;;  %v6082_v48 = vadd.f32 %v6081_v20, %v6033_v54  ;;  %v9497_v20 = vor.u32 %v10280_v38, %v9496_v21 }
 0x690   : > { %v5937_v30 = vadd.f32 %v5936_v14, %v11789_v57  ;;  %v9624_v14 = vld [vmem:[#allocation8 + $0x788] sm:$0xf] }
 0x691   : > { %v6906_v57 = vmax.f32 %v6082_v48, 0.0  ;;  %6418 = vmatpush.bf16.msrb.mxu2 %v9497_v20 }
 0x692   : > { %v5986_v17 = vadd.f32 %v5985_v15, %v5937_v30 }
 0x694   : > { %v6034_v28 = vpop.f32.mrf.mxu2  ;;  %v5988_v59 = vpop.f32.mrf.mxu1 }
 0x695   : > { %v6035_v24 = vadd.f32 %v6034_v28, %v5986_v17 }
 0x696   : > { %v6083_v19 = vpop.f32.mrf.mxu3 }
 0x697   : > { %v5939_v61 = vpop.f32.mrf.mxu0  ;;  %v6084_v39 = vadd.f32 %v6083_v19, %v6035_v24  ;;  %6183 = vmatmul.bf16.gmra.mxu1 %v11179_v1  ;;  %v10312_v19 = vld [vmem:[#allocation8 + $0x794] sm:$0xf0] }
 0x698   : > { %v5940_v29 = vadd.f32 %v5939_v61, %v11796_v26  ;;  %v10216_v26 = vld [vmem:[#allocation8 + $0x494] sm:$0xf0]  ;;  %v9625_v15 = vor.u32 %v10312_v19, %v9624_v14  ;;  %v9480_v19 = vld [vmem:[#allocation8 + $0x668] sm:$0xf] }
 0x699   : > { %v6910_v2 = vmax.f32 %v6084_v39, 0.0  ;;  %6232 = vmatmul.bf16.gmra.mxu2 %v11248_v4  ;;  %v9241_v30 = vor.u32 %v10216_v26, %v9240_v7 }
 0x69a   : > { %v5989_v33 = vadd.f32 %v5988_v59, %v5940_v29  ;;  %6134 = vmatmul.bf16.gmra.mxu0 %v11112_v0  ;;  %6467 = vmatpush.bf16.msrb.mxu3 %v9625_v15  ;;  %v9368_v29 = vld [vmem:[#allocation8 + $0x588] sm:$0xf]  ;;  %v10248_v59 = vld [vmem:[#allocation8 + $0x594] sm:$0xf0] }
 0x69b   : > { %6281 = vmatmul.bf16.gmra.mxu3 %v11315_v36  ;;  %v11871_v54 = vpack.c.bf16 %v6910_v2, %v6906_v57  ;;  %6320 = vmatpush.bf16.msrb.mxu0 %v9241_v30  ;;  %v9369_v39 = vor.u32 %v10248_v59, %v9368_v29  ;;  %v9224_v30 = vld [vmem:[#allocation8 + $0x468] sm:$0xf] }
 0x69c   : > { %v6037_v24 = vpop.f32.mrf.mxu2  ;;  %v5990_v6 = vpop.f32.mrf.mxu1 }
 0x69d   : > { %12519 = vst [vmem:[#allocation42_spill] sm:$0xff] %v11871_v54  ;;  %v6038_v48 = vadd.f32 %v6037_v24, %v5989_v33  ;;  %6369 = vmatpush.bf16.msrb.mxu1 %v9369_v39  ;;  %v10276_v24 = vld [vmem:[#allocation8 + $0x674] sm:$0xf0] }
 0x69e   : > { %v6086_v17 = vpop.f32.mrf.mxu3  ;;  %v9481_v15 = vor.u32 %v10276_v24, %v9480_v19 }
 0x69f   : > { %v5941_v56 = vpop.f32.mrf.mxu0  ;;  %v6087_v28 = vadd.f32 %v6086_v17, %v6038_v48  ;;  %v10212_v48 = vld [vmem:[#allocation8 + $0x474] sm:$0xf0]  ;;  %v9608_v17 = vld [vmem:[#allocation8 + $0x768] sm:$0xf] }
 0x6a0   : > { %v5942_v12 = vadd.f32 %v5941_v56, %v11799_v37  ;;  %6419 = vmatpush.bf16.msrb.mxu2 %v9481_v15 }
 0x6a1   : > { %v6914_v37 = vmax.f32 %v6087_v28, 0.0 }
 0x6a2   : > { %v5991_v61 = vadd.f32 %v5990_v6, %v5942_v12  ;;  %v9225_v6 = vor.u32 %v10212_v48, %v9224_v30 }
 0x6a4   : > { %v6039_v57 = vpop.f32.mrf.mxu2  ;;  %v5993_v7 = vpop.f32.mrf.mxu1  ;;  %6321 = vmatpush.bf16.msrb.mxu0 %v9225_v6 }
 0x6a5   : > { %v6040_v2 = vadd.f32 %v6039_v57, %v5991_v61 }
 0x6a6   : > { %v6088_v21 = vpop.f32.mrf.mxu3 }
 0x6a7   : > { %v5944_v38 = vpop.f32.mrf.mxu0  ;;  %v6089_v26 = vadd.f32 %v6088_v21, %v6040_v2  ;;  %6188 = vmatmul.bf16.gmra.mxu1 %v12431_v3 }
 0x6a8   : > { %v5945_v33 = vadd.f32 %v5944_v38, %v11806_v5  ;;  %v10308_v5 = vld [vmem:[#allocation8 + $0x774] sm:$0xf0]  ;;  %v9352_v38 = vld [vmem:[#allocation8 + $0x568] sm:$0xf] }
 0x6a9   : > { %v6918_v14 = vmax.f32 %v6089_v26, 0.0  ;;  %6237 = vmatmul.bf16.gmra.mxu2 %v12432_v50  ;;  %v9609_v61 = vor.u32 %v10308_v5, %v9608_v17  ;;  %v9464_v17 = vld [vmem:[#allocation8 + $0x648] sm:$0xf]  ;;  %v10272_v5 = vld [vmem:[#allocation8 + $0x654] sm:$0xf0] }
 0x6aa   : > { %v5994_v20 = vadd.f32 %v5993_v7, %v5945_v33  ;;  %6139 = vmatmul.bf16.gmra.mxu0 %v12430_v41  ;;  %v10244_v33 = vld [vmem:[#allocation8 + $0x574] sm:$0xf0]  ;;  %v9465_v6 = vor.u32 %v10272_v5, %v9464_v17 }
 0x6ab   : > { %6286 = vmatmul.bf16.gmra.mxu3 %v12433_v13  ;;  %v11879_v56 = vpack.c.bf16 %v6918_v14, %v6914_v37  ;;  %v9353_v7 = vor.u32 %v10244_v33, %v9352_v38 }
 0x6ac   : > { %v6042_v12 = vpop.f32.mrf.mxu2  ;;  %v5995_v57 = vpop.f32.mrf.mxu1  ;;  %6468 = vmatpush.bf16.msrb.mxu3 %v9609_v61  ;;  %v10208_v61 = vld [vmem:[#allocation8 + $0x454] sm:$0xf0]  ;;  %6420 = vmatpush.bf16.msrb.mxu2 %v9465_v6 }
 0x6ad   : > { %12520 = vst [vmem:[#allocation23_spill] sm:$0xff] %v11879_v56  ;;  %v6043_v28 = vadd.f32 %v6042_v12, %v5994_v20  ;;  %6370 = vmatpush.bf16.msrb.mxu1 %v9353_v7  ;;  %v9208_v12 = vld [vmem:[#allocation8 + $0x448] sm:$0xf] }
 0x6ae   : > { %v6091_v29 = vpop.f32.mrf.mxu3 }
 0x6af   : > { %v5946_v59 = vpop.f32.mrf.mxu0  ;;  %v6092_v2 = vadd.f32 %v6091_v29, %v6043_v28  ;;  %v9592_v28 = vld [vmem:[#allocation8 + $0x748] sm:$0xf] }
 0x6b0   : > { %v5947_v39 = vadd.f32 %v5946_v59, %v11809_v53 }
 0x6b1   : > { %v6922_v53 = vmax.f32 %v6092_v2, 0.0 }
 0x6b2   : > { %v5996_v21 = vadd.f32 %v5995_v57, %v5947_v39  ;;  %v9209_v39 = vor.u32 %v10208_v61, %v9208_v12  ;;  %v9448_v61 = vld [vmem:[#allocation8 + $0x628] sm:$0xf] }
 0x6b4   : > { %v6044_v26 = vpop.f32.mrf.mxu2  ;;  %v5998_v24 = vpop.f32.mrf.mxu1  ;;  %6322 = vmatpush.bf16.msrb.mxu0 %v9209_v39  ;;  %v10204_v39 = vld [vmem:[#allocation8 + $0x434] sm:$0xf0] }
 0x6b5   : > { %v6045_v37 = vadd.f32 %v6044_v26, %v5996_v21 }
 0x6b6   : > { %v6093_v14 = vpop.f32.mrf.mxu3 }
 0x6b7   : > { %v5949_v19 = vpop.f32.mrf.mxu0  ;;  %v6094_v30 = vadd.f32 %v6093_v14, %v6045_v37  ;;  %6193 = vmatmul.bf16.gmra.mxu1 %v12436_v11  ;;  %v9336_v14 = vld [vmem:[#allocation8 + $0x548] sm:$0xf] }
 0x6b8   : > { %v5950_v20 = vadd.f32 %v5949_v19, %v11816_v63  ;;  %v10304_v63 = vld [vmem:[#allocation8 + $0x754] sm:$0xf0] }
 0x6b9   : > { %v6926_v48 = vmax.f32 %v6094_v30, 0.0  ;;  %6242 = vmatmul.bf16.gmra.mxu2 %v12437_v49  ;;  %v9593_v57 = vor.u32 %v10304_v63, %v9592_v28  ;;  %v10240_v19 = vld [vmem:[#allocation8 + $0x554] sm:$0xf0]  ;;  %v9192_v63 = vld [vmem:[#allocation8 + $0x428] sm:$0xf] }
 0x6ba   : > { %v5999_v15 = vadd.f32 %v5998_v24, %v5950_v20  ;;  %6144 = vmatmul.bf16.gmra.mxu0 %v12435_v25  ;;  %v9337_v20 = vor.u32 %v10240_v19, %v9336_v14  ;;  %v10268_v28 = vld [vmem:[#allocation8 + $0x634] sm:$0xf0] }
 0x6bb   : > { %6291 = vmatmul.bf16.gmra.mxu3 %v12438_v40  ;;  %v11887_v29 = vpack.c.bf16 %v6926_v48, %v6922_v53 }
 0x6bc   : > { %v6047_v59 = vpop.f32.mrf.mxu2  ;;  %v6000_v7 = vpop.f32.mrf.mxu1  ;;  %6469 = vmatpush.bf16.msrb.mxu3 %v9593_v57  ;;  %6371 = vmatpush.bf16.msrb.mxu1 %v9337_v20  ;;  %v9576_v57 = vld [vmem:[#allocation8 + $0x728] sm:$0xf] }
 0x6bd   : > { %12521 = vst [vmem:[#allocation29_spill] sm:$0xff] %v11887_v29  ;;  %v6048_v2 = vadd.f32 %v6047_v59, %v5999_v15  ;;  %v9449_v59 = vor.u32 %v10268_v28, %v9448_v61 }
 0x6be   : > { %v6096_v21 = vpop.f32.mrf.mxu3 }
 0x6bf   : > { %v5951_v38 = vpop.f32.mrf.mxu0  ;;  %v6097_v26 = vadd.f32 %v6096_v21, %v6048_v2  ;;  %6421 = vmatpush.bf16.msrb.mxu2 %v9449_v59  ;;  %v9432_v59 = vld [vmem:[#allocation8 + $0x608] sm:$0xf] }
 0x6c0   : > { %v5952_v33 = vadd.f32 %v5951_v38, %v11819_v42  ;;  %v9193_v38 = vor.u32 %v10204_v39, %v9192_v63  ;;  %v10264_v39 = vld [vmem:[#allocation8 + $0x614] sm:$0xf0] }
 0x6c1   : > { %v6930_v42 = vmax.f32 %v6097_v26, 0.0 }
 0x6c2   : > { %v6001_v37 = vadd.f32 %v6000_v7, %v5952_v33  ;;  %6323 = vmatpush.bf16.msrb.mxu0 %v9193_v38  ;;  %v9560_v38 = vld [vmem:[#allocation8 + $0x708] sm:$0xf] }
 0x6c4   : > { %v6049_v24 = vpop.f32.mrf.mxu2  ;;  %v6003_v17 = vpop.f32.mrf.mxu1 }
 0x6c5   : > { %v6050_v30 = vadd.f32 %v6049_v24, %v6001_v37 }
 0x6c6   : > { %v6098_v53 = vpop.f32.mrf.mxu3 }
 0x6c7   : > { %v5954_v48 = vpop.f32.mrf.mxu0  ;;  %v6099_v5 = vadd.f32 %v6098_v53, %v6050_v30  ;;  %6198 = vmatmul.bf16.gmra.mxu1 %v12441_v9  ;;  %v9320_v30 = vld [vmem:[#allocation8 + $0x528] sm:$0xf]  ;;  %v10236_v53 = vld [vmem:[#allocation8 + $0x534] sm:$0xf0] }
 0x6c8   : > { %v5955_v15 = vadd.f32 %v5954_v48, %v11826_v18  ;;  %v10300_v18 = vld [vmem:[#allocation8 + $0x734] sm:$0xf0]  ;;  %v9321_v48 = vor.u32 %v10236_v53, %v9320_v30 }
 0x6c9   : > { %v6934_v6 = vmax.f32 %v6099_v5, 0.0  ;;  %6247 = vmatmul.bf16.gmra.mxu2 %v12442_v10  ;;  %v9577_v33 = vor.u32 %v10300_v18, %v9576_v57  ;;  %v9176_v57 = vld [vmem:[#allocation8 + $0x408] sm:$0xf]  ;;  %v9433_v18 = vor.u32 %v10264_v39, %v9432_v59 }
 0x6ca   : > { %v6004_v12 = vadd.f32 %v6003_v17, %v5955_v15  ;;  %6149 = vmatmul.bf16.gmra.mxu0 %v12440_v8  ;;  %6372 = vmatpush.bf16.msrb.mxu1 %v9321_v48 }
 0x6cb   : > { %6296 = vmatmul.bf16.gmra.mxu3 %v12443_v27  ;;  %v11895_v2 = vpack.c.bf16 %v6934_v6, %v6930_v42  ;;  %6422 = vmatpush.bf16.msrb.mxu2 %v9433_v18  ;;  %v9034_v18 = vld [vmem:[#allocation8 + $0x2f8] sm:$0xf0] }
 0x6cc   : > { %v6052_v21 = vpop.f32.mrf.mxu2  ;;  %v6005_v19 = vpop.f32.mrf.mxu1  ;;  %6470 = vmatpush.bf16.msrb.mxu3 %v9577_v33 }
 0x6cd   : > { %12522 = vst [vmem:[#allocation36_spill] sm:$0xff] %v11895_v2  ;;  %v6053_v7 = vadd.f32 %v6052_v21, %v6004_v12  ;;  %v10200_v21 = vld [vmem:[#allocation8 + $0x414] sm:$0xf0] }
 0x6ce   : > { %v6101_v26 = vpop.f32.mrf.mxu3 }
 0x6cf   : > { %v5956_v37 = vpop.f32.mrf.mxu0  ;;  %v6102_v20 = vadd.f32 %v6101_v26, %v6053_v7  ;;  %v9177_v26 = vor.u32 %v10200_v21, %v9176_v57  ;;  %v10162_v57 = vld [vmem:[#allocation8 + $0x2ec] sm:$0xf] }
 0x6d0   : > { %v5957_v14 = vadd.f32 %v5956_v37, %v11829_v16  ;;  %v10098_v21 = vld [vmem:[#allocation8 + $0xec] sm:$0xf] }
 0x6d1   : > { %v6938_v16 = vmax.f32 %v6102_v20, 0.0  ;;  %6324 = vmatpush.bf16.msrb.mxu0 %v9177_v26 }
 0x6d2   : > { %v6006_v24 = vadd.f32 %v6005_v19, %v5957_v14 }
 0x6d4   : > { %v6054_v15 = vpop.f32.mrf.mxu2  ;;  %v6008_v6 = vpop.f32.mrf.mxu1 }
 0x6d5   : > { %v6055_v17 = vadd.f32 %v6054_v15, %v6006_v24  ;;  %v9304_v15 = vld [vmem:[#allocation8 + $0x508] sm:$0xf] }
 0x6d6   : > { %v6103_v5 = vpop.f32.mrf.mxu3 }
 0x6d7   : > { %v5959_v42 = vpop.f32.mrf.mxu0  ;;  %v6104_v61 = vadd.f32 %v6103_v5, %v6055_v17  ;;  %6203 = vmatmul.bf16.gmra.mxu1 %v12446_v51  ;;  %v10232_v17 = vld [vmem:[#allocation8 + $0x514] sm:$0xf0] }
 0x6d8   : > { %v5960_v12 = vadd.f32 %v5959_v42, %v11836_v47  ;;  %v10296_v47 = vld [vmem:[#allocation8 + $0x714] sm:$0xf0]  ;;  %v9305_v5 = vor.u32 %v10232_v17, %v9304_v15  ;;  %v10130_v17 = vld [vmem:[#allocation8 + $0x1ec] sm:$0xf] }
 0x6d9   : > { %v6942_v63 = vmax.f32 %v6104_v61, 0.0  ;;  %6252 = vmatmul.bf16.gmra.mxu2 %v12447_v31  ;;  %v9561_v37 = vor.u32 %v10296_v47, %v9560_v38  ;;  %v9037_v38 = vor.u32 %v10162_v57, %v9034_v18  ;;  %v8778_v47 = vld [vmem:[#allocation8 + $0xf8] sm:$0xf0] }
 0x6da   : > { %v6009_v28 = vadd.f32 %v6008_v6, %v5960_v12  ;;  %6154 = vmatmul.bf16.gmra.mxu0 %v12445_v43  ;;  %6373 = vmatpush.bf16.msrb.mxu1 %v9305_v5  ;;  %v8906_v5 = vld [vmem:[#allocation8 + $0x1f8] sm:$0xf0] }
 0x6db   : > { %6301 = vmatmul.bf16.gmra.mxu3 %v12448_v34  ;;  %v11903_v33 = vpack.c.bf16 %v6942_v63, %v6938_v16  ;;  %6611 = vmatpush.bf16.msra.mxu2 %v9037_v38  ;;  %v12525_v18 = vld [vmem:[#allocation30_spill] sm:$0xff]  ;;  %v12527_v38 = vld [vmem:[#allocation44_spill] sm:$0xff] }
 0x6dc   : > { %v6057_v7 = vpop.f32.mrf.mxu2  ;;  %v6010_v30 = vpop.f32.mrf.mxu1  ;;  %6471 = vmatpush.bf16.msrb.mxu3 %v9561_v37 }
 0x6dd   : > { %12523 = vst [vmem:[#allocation43_spill] sm:$0xff] %v11903_v33  ;;  %v6058_v14 = vadd.f32 %v6057_v7, %v6009_v28  ;;  %v10194_v7 = vld [vmem:[#allocation8 + $0x3ec] sm:$0xf]  ;;  %v8858_v33 = vld [vmem:[#allocation8 + $0x198] sm:$0xf0] }
 0x6de   : > { %v6106_v19 = vpop.f32.mrf.mxu3 }
 0x6df   : > { %v5961_v20 = vpop.f32.mrf.mxu0  ;;  %v6107_v53 = vadd.f32 %v6106_v19, %v6058_v14  ;;  %v8781_v14 = vor.u32 %v10098_v21, %v8778_v47  ;;  %v12526_v21 = vld [vmem:[#allocation37_spill] sm:$0xff]  ;;  %v10158_v47 = vld [vmem:[#allocation8 + $0x2cc] sm:$0xf] }
 0x6e0   : > { %v5962_v24 = vadd.f32 %v5961_v20, %v11839_v45 }
 0x6e1   : > { %v6946_v45 = vmax.f32 %v6107_v53, 0.0  ;;  %6513 = vmatpush.bf16.msra.mxu0 %v8781_v14  ;;  %v8762_v14 = vld [vmem:[#allocation8 + $0xd8] sm:$0xf0] }
 0x6e2   : > { %v6011_v48 = vadd.f32 %v6010_v30, %v5962_v24 }
 0x6e4   : > { %v6059_v42 = vpop.f32.mrf.mxu2  ;;  %v6013_v16 = vpop.f32.mrf.mxu1 }
 0x6e5   : > { %v6060_v12 = vadd.f32 %v6059_v42, %v6011_v48 }
 0x6e6   : > { %v6108_v6 = vpop.f32.mrf.mxu3 }
 0x6e7   : > { %v5964_v61 = vpop.f32.mrf.mxu0  ;;  %v6109_v63 = vadd.f32 %v6108_v6, %v6060_v12  ;;  %6208 = vmatmul.bf16.gmra.mxu1 %v12480_v58  ;;  %v8909_v12 = vor.u32 %v10130_v17, %v8906_v5 }
 0x6e8   : > { %v5965_v28 = vadd.f32 %v5964_v61, %v11846_v35  ;;  %v9162_v35 = vld [vmem:[#allocation8 + $0x3f8] sm:$0xf0] }
 0x6e9   : > { %v6950_v39 = vmax.f32 %v6109_v63, 0.0  ;;  %6257 = vmatmul.bf16.gmra.mxu2 %v12481_v55  ;;  %v9165_v19 = vor.u32 %v10194_v7, %v9162_v35  ;;  %6562 = vmatpush.bf16.msra.mxu1 %v8909_v12  ;;  %v9018_v7 = vld [vmem:[#allocation8 + $0x2d8] sm:$0xf0]  ;;  %v10094_v35 = vld [vmem:[#allocation8 + $0xcc] sm:$0xf] }
 0x6ea   : > { %v6014_v59 = vadd.f32 %v6013_v16, %v5965_v28  ;;  %6159 = vmatmul.bf16.gmra.mxu0 %v12479_v60 }
 0x6eb   : > { %6306 = vmatmul.bf16.gmra.mxu3 %v12482_v52  ;;  %v11911_v26 = vpack.c.bf16 %v6950_v39, %v6946_v45 }
 0x6ec   : > { %v6062_v37 = vpop.f32.mrf.mxu2  ;;  %v6015_v48 = vpop.f32.mrf.mxu1  ;;  %6660 = vmatpush.bf16.msra.mxu3 %v9165_v19  ;;  %v10190_v19 = vld [vmem:[#allocation8 + $0x3cc] sm:$0xf] }
 0x6ed   : > { %12524 = vst [vmem:[#allocation24_spill] sm:$0xff] %v11911_v26  ;;  %v6063_v20 = vadd.f32 %v6062_v37, %v6014_v59  ;;  %v9021_v37 = vor.u32 %v10158_v47, %v9018_v7  ;;  %v10118_v26 = vld [vmem:[#allocation8 + $0x18c] sm:$0xf] }
 0x6ee   : > { %v6111_v24 = vpop.f32.mrf.mxu3 }
 0x6ef   : > { %v5966_v30 = vpop.f32.mrf.mxu0  ;;  %v6112_v15 = vadd.f32 %v6111_v24, %v6063_v20  ;;  %6612 = vmatpush.bf16.msra.mxu2 %v9021_v37  ;;  %v12529_v37 = vld [vmem:[#allocation45_spill] sm:$0xff] }
 0x6f0   : > { %v5967_v53 = vadd.f32 %v5966_v30, %v11849_v46  ;;  %v8765_v30 = vor.u32 %v10094_v35, %v8762_v14 }
 0x6f1   : > { %v6954_v46 = vmax.f32 %v6112_v15, 0.0 }
 0x6f2   : > { %v6016_v42 = vadd.f32 %v6015_v48, %v5967_v53  ;;  %6514 = vmatpush.bf16.msra.mxu0 %v8765_v30  ;;  %v12532_v30 = vld [vmem:[#allocation69_spill] sm:$0xff] }
 0x6f4   : > { %v6064_v6 = vpop.f32.mrf.mxu2  ;;  %v6018_v59 = vpop.f32.mrf.mxu1 }
 0x6f5   : > { %v6065_v61 = vadd.f32 %v6064_v6, %v6016_v42  ;;  %v10126_v6 = vld [vmem:[#allocation8 + $0x1cc] sm:$0xf] }
 0x6f6   : > { %v6113_v28 = vpop.f32.mrf.mxu3 }
 0x6f7   : > { %v5969_v16 = vpop.f32.mrf.mxu0  ;;  %v6114_v45 = vadd.f32 %v6113_v28, %v6065_v61  ;;  %6213 = vmatmul.bf16.gmra.mxu1 %v12525_v18  ;;  %v8890_v61 = vld [vmem:[#allocation8 + $0x1d8] sm:$0xf0] }
 0x6f8   : > { %v5970_v63 = vadd.f32 %v5969_v16, %v11856_v22  ;;  %v9146_v22 = vld [vmem:[#allocation8 + $0x3d8] sm:$0xf0]  ;;  %v8893_v16 = vor.u32 %v10126_v6, %v8890_v61 }
 0x6f9   : > { %v6958_v57 = vmax.f32 %v6114_v45, 0.0  ;;  %6262 = vmatmul.bf16.gmra.mxu2 %v12526_v21  ;;  %v9149_v53 = vor.u32 %v10190_v19, %v9146_v22  ;;  %v12530_v22 = vld [vmem:[#allocation53_spill] sm:$0xff]  ;;  %v9130_v6 = vld [vmem:[#allocation8 + $0x3b8] sm:$0xf0] }
 0x6fa   : > { %v6019_v39 = vadd.f32 %v6018_v59, %v5970_v63  ;;  %6164 = vmatmul.bf16.gmra.mxu0 %v12484_v44  ;;  %v10468_v63 = vld [vmem:[#allocation10] sm:$0xf]  ;;  %6563 = vmatpush.bf16.msra.mxu1 %v8893_v16 }
 0x6fb   : > { %6311 = vmatmul.bf16.gmra.mxu3 %v12527_v38  ;;  %v11919_v20 = vpack.c.bf16 %v6958_v57, %v6954_v46  ;;  %v11922_v59 = vperm.slane %v10468_v63, 2  ;;  %v9402_v38 = vld [vmem:[#allocation8 + $0x5d8] sm:$0xf0] }
 0x6fc   : > { %v6067_v24 = vpop.f32.mrf.mxu2  ;;  %v6020_v42 = vpop.f32.mrf.mxu1  ;;  %6661 = vmatpush.bf16.msra.mxu3 %v9149_v53  ;;  %v10154_v53 = vld [vmem:[#allocation8 + $0x2ac] sm:$0xf] }
 0x6fd   : > { %12528 = vst [vmem:[#allocation30_spill] sm:$0xff] %v11919_v20  ;;  %v6068_v48 = vadd.f32 %v6067_v24, %v6019_v39  ;;  %v12531_v24 = vld [vmem:[#allocation61_spill] sm:$0xff] }
 0x6fe   : > { %v6116_v15 = vpop.f32.mrf.mxu3 }
 0x6ff   : > { %v5971_v17 = vpop.f32.mrf.mxu0  ;;  %v6117_v12 = vadd.f32 %v6116_v15, %v6068_v48  ;;  %v9002_v48 = vld [vmem:[#allocation8 + $0x2b8] sm:$0xf0]  ;;  %v10090_v15 = vld [vmem:[#allocation8 + $0xac] sm:$0xf] }
 0x700   : > { %v5972_v5 = vadd.f32 %v5971_v17, %v11859_v23  ;;  %v9005_v17 = vor.u32 %v10154_v53, %v9002_v48 }
 0x701   : > { %v6962_v14 = vmax.f32 %v6117_v12, 0.0 }
 0x702   : > { %v6021_v28 = vadd.f32 %v6020_v42, %v5972_v5  ;;  %v8746_v5 = vld [vmem:[#allocation8 + $0xb8] sm:$0xf0]  ;;  %v10186_v42 = vld [vmem:[#allocation8 + $0x3ac] sm:$0xf]  ;;  %6613 = vmatpush.bf16.msra.mxu2 %v9005_v17 }
 0x703   : > { %v8749_v16 = vor.u32 %v10090_v15, %v8746_v5  ;;  %v9133_v63 = vor.u32 %v10186_v42, %v9130_v6 }
 0x704   : > { %v6069_v45 = vpop.f32.mrf.mxu2  ;;  %v6179_v7 = vpop.f32.mrf.mxu1 }
 0x705   : > { %v6070_v46 = vadd.f32 %v6069_v45, %v6021_v28  ;;  %6515 = vmatpush.bf16.msra.mxu0 %v8749_v16  ;;  %6662 = vmatpush.bf16.msra.mxu3 %v9133_v63  ;;  %v12535_v16 = vld [vmem:[#allocation54_spill] sm:$0xff] }
 0x706   : > { %v6118_v39 = vpop.f32.mrf.mxu3  ;;  %v12536_v63 = vld [vmem:[#allocation62_spill] sm:$0xff] }
 0x707   : > { %v6130_v57 = vpop.f32.mrf.mxu0  ;;  %v6119_v23 = vadd.f32 %v6118_v39, %v6070_v46  ;;  %6374 = vmatmul.bf16.vlgmr.msrb.gmra.mxu1 %v12530_v22 }
 0x708   : > { %v6131_v47 = vadd.f32 %v6130_v57, %v11922_v59 }
 0x709   : > { %v6966_v19 = vmax.f32 %v6119_v23, 0.0  ;;  %6423 = vmatmul.bf16.vlgmr.msrb.gmra.mxu2 %v12531_v24  ;;  %v8874_v23 = vld [vmem:[#allocation8 + $0x1b8] sm:$0xf0] }
 0x70a   : > { %v6180_v35 = vadd.f32 %v6179_v7, %v6131_v47  ;;  %6325 = vmatmul.bf16.vlgmr.msrb.gmra.mxu0 %v12529_v37  ;;  %v10122_v7 = vld [vmem:[#allocation8 + $0x1ac] sm:$0xf] }
 0x70b   : > { %6472 = vmatmul.bf16.vlgmr.msrb.gmra.mxu3 %v12532_v30  ;;  %v11929_v61 = vpack.c.bf16 %v6966_v19, %v6962_v14  ;;  %v8877_v48 = vor.u32 %v10122_v7, %v8874_v23  ;;  %v8730_v7 = vld [vmem:[#allocation8 + $0x98] sm:$0xf0]  ;;  %v10182_v23 = vld [vmem:[#allocation8 + $0x38c] sm:$0xf] }
 0x70c   : > { %v6228_v28 = vpop.f32.mrf.mxu2  ;;  %v6181_v57 = vpop.f32.mrf.mxu1 }
 0x70d   : > { %12533 = vst [vmem:[#allocation70_spill] sm:$0xff] %v11929_v61  ;;  %v6229_v12 = vadd.f32 %v6228_v28, %v6180_v35  ;;  %6564 = vmatpush.bf16.msra.mxu1 %v8877_v48  ;;  %v12534_v28 = vld [vmem:[#allocation46_spill] sm:$0xff] }
 0x70e   : > { %v6277_v45 = vpop.f32.mrf.mxu3 }
 0x70f   : > { %v6132_v46 = vpop.f32.mrf.mxu0  ;;  %v11932_v47 = vadd.f32 %v6277_v45, %v6229_v12  ;;  %v12537_v12 = vld [vmem:[#allocation19_spill] sm:$0xff]  ;;  %v10150_v45 = vld [vmem:[#allocation8 + $0x28c] sm:$0xf] }
 0x710   : > { %v6133_v39 = vadd.f32 %v6132_v46, %v11922_v59  ;;  %v8986_v46 = vld [vmem:[#allocation8 + $0x298] sm:$0xf0] }
 0x712   : > { %v6182_v53 = vadd.f32 %v6181_v57, %v6133_v39  ;;  %v10086_v39 = vld [vmem:[#allocation8 + $0x8c] sm:$0xf]  ;;  %v8989_v57 = vor.u32 %v10150_v45, %v8986_v46  ;;  %v8861_v46 = vor.u32 %v10118_v26, %v8858_v33  ;;  %v8970_v26 = vld [vmem:[#allocation8 + $0x278] sm:$0xf0] }
 0x713   : > { %v10146_v33 = vld [vmem:[#allocation8 + $0x26c] sm:$0xf] }
 0x714   : > { %v6230_v14 = vpop.f32.mrf.mxu2  ;;  %v6184_v42 = vpop.f32.mrf.mxu1  ;;  %6614 = vmatpush.bf16.msra.mxu2 %v8989_v57  ;;  %6565 = vmatpush.bf16.msra.mxu1 %v8861_v46 }
 0x715   : > { %v6231_v19 = vadd.f32 %v6230_v14, %v6182_v53  ;;  %v9114_v53 = vld [vmem:[#allocation8 + $0x398] sm:$0xf0]  ;;  %v8733_v14 = vor.u32 %v10086_v39, %v8730_v7 }
 0x716   : > { %v6279_v15 = vpop.f32.mrf.mxu3 }
 0x717   : > { %v6135_v5 = vpop.f32.mrf.mxu0  ;;  %v11935_v17 = vadd.f32 %v6279_v15, %v6231_v19  ;;  %6379 = vmatmul.bf16.gmra.mxu1 %v12535_v16  ;;  %v9117_v19 = vor.u32 %v10182_v23, %v9114_v53  ;;  %6516 = vmatpush.bf16.msra.mxu0 %v8733_v14  ;;  %v12539_v14 = vld [vmem:[#allocation55_spill] sm:$0xff] }
 0x718   : > { %v6136_v35 = vadd.f32 %v6135_v5, %v11922_v59 }
 0x719   : > { %6428 = vmatmul.bf16.gmra.mxu2 %v12536_v63  ;;  %6663 = vmatpush.bf16.msra.mxu3 %v9117_v19  ;;  %v12540_v19 = vld [vmem:[#allocation63_spill] sm:$0xff] }
 0x71a   : > { %v6185_v6 = vadd.f32 %v6184_v42, %v6136_v35  ;;  %6330 = vmatmul.bf16.gmra.mxu0 %v12534_v28 }
 0x71b   : > { %6477 = vmatmul.bf16.gmra.mxu3 %v12537_v12 }
 0x71c   : > { %v6233_v48 = vpop.f32.mrf.mxu2  ;;  %v6186_v61 = vpop.f32.mrf.mxu1 }
 0x71d   : > { %v6234_v15 = vadd.f32 %v6233_v48, %v6185_v6  ;;  %v12538_v48 = vld [vmem:[#allocation47_spill] sm:$0xff] }
 0x71e   : > { %v6282_v5 = vpop.f32.mrf.mxu3 }
 0x71f   : > { %v6137_v35 = vpop.f32.mrf.mxu0  ;;  %v11942_v20 = vadd.f32 %v6282_v5, %v6234_v15  ;;  %v12541_v15 = vld [vmem:[#allocation25_spill] sm:$0xff]  ;;  %v8714_v5 = vld [vmem:[#allocation8 + $0x78] sm:$0xf0] }
 0x720   : > { %v6138_v42 = vadd.f32 %v6137_v35, %v11922_v59  ;;  %v10178_v35 = vld [vmem:[#allocation8 + $0x36c] sm:$0xf] }
 0x722   : > { %v6187_v45 = vadd.f32 %v6186_v61, %v6138_v42  ;;  %v10082_v61 = vld [vmem:[#allocation8 + $0x6c] sm:$0xf]  ;;  %v9098_v42 = vld [vmem:[#allocation8 + $0x378] sm:$0xf0] }
 0x723   : > { %v8717_v46 = vor.u32 %v10082_v61, %v8714_v5 }
 0x724   : > { %v6235_v2 = vpop.f32.mrf.mxu2  ;;  %v6189_v23 = vpop.f32.mrf.mxu1 }
 0x725   : > { %v6236_v29 = vadd.f32 %v6235_v2, %v6187_v45  ;;  %v8973_v2 = vor.u32 %v10146_v33, %v8970_v26  ;;  %6517 = vmatpush.bf16.msra.mxu0 %v8717_v46  ;;  %v12543_v46 = vld [vmem:[#allocation56_spill] sm:$0xff] }
 0x726   : > { %v6284_v39 = vpop.f32.mrf.mxu3 }
 0x727   : > { %v6140_v7 = vpop.f32.mrf.mxu0  ;;  %v11945_v57 = vadd.f32 %v6284_v39, %v6236_v29  ;;  %6384 = vmatmul.bf16.gmra.mxu1 %v12539_v14  ;;  %v9101_v29 = vor.u32 %v10178_v35, %v9098_v42  ;;  %6615 = vmatpush.bf16.msra.mxu2 %v8973_v2 }
 0x728   : > { %v6141_v6 = vadd.f32 %v6140_v7, %v11922_v59 }
 0x729   : > { %6433 = vmatmul.bf16.gmra.mxu2 %v12540_v19  ;;  %6664 = vmatpush.bf16.msra.mxu3 %v9101_v29  ;;  %v8842_v19 = vld [vmem:[#allocation8 + $0x178] sm:$0xf0]  ;;  %v12544_v29 = vld [vmem:[#allocation64_spill] sm:$0xff] }
 0x72a   : > { %v6190_v53 = vadd.f32 %v6189_v23, %v6141_v6  ;;  %6335 = vmatmul.bf16.gmra.mxu0 %v12538_v48 }
 0x72b   : > { %6482 = vmatmul.bf16.gmra.mxu3 %v12541_v15  ;;  %v10114_v15 = vld [vmem:[#allocation8 + $0x16c] sm:$0xf] }
 0x72c   : > { %v6238_v45 = vpop.f32.mrf.mxu2  ;;  %v6191_v56 = vpop.f32.mrf.mxu1  ;;  %v8845_v26 = vor.u32 %v10114_v15, %v8842_v19  ;;  %v8954_v19 = vld [vmem:[#allocation8 + $0x258] sm:$0xf0]  ;;  %v10078_v15 = vld [vmem:[#allocation8 + $0x4c] sm:$0xf] }
 0x72d   : > { %v6239_v39 = vadd.f32 %v6238_v45, %v6190_v53  ;;  %v12542_v45 = vld [vmem:[#allocation48_spill] sm:$0xff] }
 0x72e   : > { %v6287_v7 = vpop.f32.mrf.mxu3  ;;  %6566 = vmatpush.bf16.msra.mxu1 %v8845_v26 }
 0x72f   : > { %v6142_v6 = vpop.f32.mrf.mxu0  ;;  %v11952_v54 = vadd.f32 %v6287_v7, %v6239_v39  ;;  %v12545_v39 = vld [vmem:[#allocation32_spill] sm:$0xff]  ;;  %v8698_v7 = vld [vmem:[#allocation8 + $0x58] sm:$0xf0] }
 0x730   : > { %v6143_v23 = vadd.f32 %v6142_v6, %v11922_v59  ;;  %v10174_v6 = vld [vmem:[#allocation8 + $0x34c] sm:$0xf]  ;;  %v8701_v26 = vor.u32 %v10078_v15, %v8698_v7 }
 0x732   : > { %v6192_v33 = vadd.f32 %v6191_v56, %v6143_v23  ;;  %v10142_v56 = vld [vmem:[#allocation8 + $0x24c] sm:$0xf]  ;;  %v9082_v23 = vld [vmem:[#allocation8 + $0x358] sm:$0xf0]  ;;  %6518 = vmatpush.bf16.msra.mxu0 %v8701_v26  ;;  %v12547_v26 = vld [vmem:[#allocation57_spill] sm:$0xff] }
 0x734   : > { %v6240_v14 = vpop.f32.mrf.mxu2  ;;  %v6194_v35 = vpop.f32.mrf.mxu1 }
 0x735   : > { %v6241_v48 = vadd.f32 %v6240_v14, %v6192_v33  ;;  %v8957_v14 = vor.u32 %v10142_v56, %v8954_v19 }
 0x736   : > { %v6289_v61 = vpop.f32.mrf.mxu3 }
 0x737   : > { %v6145_v5 = vpop.f32.mrf.mxu0  ;;  %v11955_v2 = vadd.f32 %v6289_v61, %v6241_v48  ;;  %6389 = vmatmul.bf16.gmra.mxu1 %v12543_v46  ;;  %v9085_v48 = vor.u32 %v10174_v6, %v9082_v23  ;;  %6616 = vmatpush.bf16.msra.mxu2 %v8957_v14 }
 0x738   : > { %v6146_v53 = vadd.f32 %v6145_v5, %v11922_v59 }
 0x739   : > { %6438 = vmatmul.bf16.gmra.mxu2 %v12544_v29  ;;  %6665 = vmatpush.bf16.msra.mxu3 %v9085_v48  ;;  %v10110_v29 = vld [vmem:[#allocation8 + $0x14c] sm:$0xf]  ;;  %v12548_v48 = vld [vmem:[#allocation65_spill] sm:$0xff] }
 0x73a   : > { %v6195_v42 = vadd.f32 %v6194_v35, %v6146_v53  ;;  %6340 = vmatmul.bf16.gmra.mxu0 %v12542_v45  ;;  %v8826_v45 = vld [vmem:[#allocation8 + $0x158] sm:$0xf0] }
 0x73b   : > { %6487 = vmatmul.bf16.gmra.mxu3 %v12545_v39  ;;  %v8829_v19 = vor.u32 %v10110_v29, %v8826_v45  ;;  %v10138_v45 = vld [vmem:[#allocation8 + $0x22c] sm:$0xf] }
 0x73c   : > { %v6243_v33 = vpop.f32.mrf.mxu2  ;;  %v6196_v46 = vpop.f32.mrf.mxu1  ;;  %v10074_v29 = vld [vmem:[#allocation8 + $0x2c] sm:$0xf] }
 0x73d   : > { %v6244_v61 = vadd.f32 %v6243_v33, %v6195_v42  ;;  %6567 = vmatpush.bf16.msra.mxu1 %v8829_v19  ;;  %v12546_v33 = vld [vmem:[#allocation49_spill] sm:$0xff] }
 0x73e   : > { %v6292_v5 = vpop.f32.mrf.mxu3 }
 0x73f   : > { %v6147_v53 = vpop.f32.mrf.mxu0  ;;  %v11962_v39 = vadd.f32 %v6292_v5, %v6244_v61  ;;  %v12549_v61 = vld [vmem:[#allocation39_spill] sm:$0xff]  ;;  %v8682_v5 = vld [vmem:[#allocation8 + $0x38] sm:$0xf0] }
 0x740   : > { %v6148_v35 = vadd.f32 %v6147_v53, %v11922_v59  ;;  %v10170_v53 = vld [vmem:[#allocation8 + $0x32c] sm:$0xf]  ;;  %v8685_v19 = vor.u32 %v10074_v29, %v8682_v5 }
 0x742   : > { %v6197_v56 = vadd.f32 %v6196_v46, %v6148_v35  ;;  %v8938_v46 = vld [vmem:[#allocation8 + $0x238] sm:$0xf0]  ;;  %6519 = vmatpush.bf16.msra.mxu0 %v8685_v19 }
 0x743   : > { %v9066_v35 = vld [vmem:[#allocation8 + $0x338] sm:$0xf0] }
 0x744   : > { %v6245_v12 = vpop.f32.mrf.mxu2  ;;  %v6199_v6 = vpop.f32.mrf.mxu1  ;;  %v12551_v19 = vld [vmem:[#allocation58_spill] sm:$0xff] }
 0x745   : > { %v6246_v63 = vadd.f32 %v6245_v12, %v6197_v56  ;;  %v8941_v12 = vor.u32 %v10138_v45, %v8938_v46 }
 0x746   : > { %v6294_v15 = vpop.f32.mrf.mxu3 }
 0x747   : > { %v6150_v7 = vpop.f32.mrf.mxu0  ;;  %v11965_v14 = vadd.f32 %v6294_v15, %v6246_v63  ;;  %6394 = vmatmul.bf16.gmra.mxu1 %v12547_v26  ;;  %v9069_v63 = vor.u32 %v10170_v53, %v9066_v35  ;;  %6617 = vmatpush.bf16.msra.mxu2 %v8941_v12 }
 0x748   : > { %v6151_v42 = vadd.f32 %v6150_v7, %v11922_v59 }
 0x749   : > { %6443 = vmatmul.bf16.gmra.mxu2 %v12548_v48  ;;  %6666 = vmatpush.bf16.msra.mxu3 %v9069_v63  ;;  %v10106_v48 = vld [vmem:[#allocation8 + $0x12c] sm:$0xf]  ;;  %v12552_v63 = vld [vmem:[#allocation66_spill] sm:$0xff] }
 0x74a   : > { %v6200_v23 = vadd.f32 %v6199_v6, %v6151_v42  ;;  %6345 = vmatmul.bf16.gmra.mxu0 %v12546_v33  ;;  %v8810_v33 = vld [vmem:[#allocation8 + $0x138] sm:$0xf0] }
 0x74b   : > { %6492 = vmatmul.bf16.gmra.mxu3 %v12549_v61  ;;  %v8813_v46 = vor.u32 %v10106_v48, %v8810_v33  ;;  %v10134_v33 = vld [vmem:[#allocation8 + $0x20c] sm:$0xf] }
 0x74c   : > { %v6248_v56 = vpop.f32.mrf.mxu2  ;;  %v6201_v26 = vpop.f32.mrf.mxu1  ;;  %v10070_v48 = vld [vmem:[#allocation8 + $0xc] sm:$0xf] }
 0x74d   : > { %v6249_v15 = vadd.f32 %v6248_v56, %v6200_v23  ;;  %6568 = vmatpush.bf16.msra.mxu1 %v8813_v46  ;;  %v12550_v56 = vld [vmem:[#allocation50_spill] sm:$0xff] }
 0x74e   : > { %v6297_v7 = vpop.f32.mrf.mxu3 }
 0x74f   : > { %v6152_v42 = vpop.f32.mrf.mxu0  ;;  %v11972_v61 = vadd.f32 %v6297_v7, %v6249_v15  ;;  %v12553_v15 = vld [vmem:[#allocation20_spill] sm:$0xff]  ;;  %v8666_v7 = vld [vmem:[#allocation8 + $0x18] sm:$0xf0] }
 0x750   : > { %v6153_v6 = vadd.f32 %v6152_v42, %v11922_v59  ;;  %v10166_v42 = vld [vmem:[#allocation8 + $0x30c] sm:$0xf]  ;;  %v8669_v46 = vor.u32 %v10070_v48, %v8666_v7 }
 0x752   : > { %v6202_v45 = vadd.f32 %v6201_v26, %v6153_v6  ;;  %v8922_v26 = vld [vmem:[#allocation8 + $0x218] sm:$0xf0]  ;;  %6520 = vmatpush.bf16.msra.mxu0 %v8669_v46  ;;  %v12555_v46 = vld [vmem:[#allocation59_spill] sm:$0xff] }
 0x753   : > { %v9050_v6 = vld [vmem:[#allocation8 + $0x318] sm:$0xf0] }
 0x754   : > { %v6250_v16 = vpop.f32.mrf.mxu2  ;;  %v6204_v53 = vpop.f32.mrf.mxu1 }
 0x755   : > { %v6251_v28 = vadd.f32 %v6250_v16, %v6202_v45  ;;  %v8925_v16 = vor.u32 %v10134_v33, %v8922_v26 }
 0x756   : > { %v6299_v29 = vpop.f32.mrf.mxu3 }
 0x757   : > { %v6155_v5 = vpop.f32.mrf.mxu0  ;;  %v11975_v12 = vadd.f32 %v6299_v29, %v6251_v28  ;;  %6399 = vmatmul.bf16.gmra.mxu1 %v12551_v19  ;;  %v9053_v28 = vor.u32 %v10166_v42, %v9050_v6  ;;  %6618 = vmatpush.bf16.msra.mxu2 %v8925_v16 }
 0x758   : > { %v6156_v23 = vadd.f32 %v6155_v5, %v11922_v59 }
 0x759   : > { %6448 = vmatmul.bf16.gmra.mxu2 %v12552_v63  ;;  %6667 = vmatpush.bf16.msra.mxu3 %v9053_v28  ;;  %v10102_v63 = vld [vmem:[#allocation8 + $0x10c] sm:$0xf]  ;;  %v12556_v28 = vld [vmem:[#allocation67_spill] sm:$0xff] }
 0x75a   : > { %v6205_v35 = vadd.f32 %v6204_v53, %v6156_v23  ;;  %6350 = vmatmul.bf16.gmra.mxu0 %v12550_v56  ;;  %v8794_v56 = vld [vmem:[#allocation8 + $0x118] sm:$0xf0] }
 0x75b   : > { %6497 = vmatmul.bf16.gmra.mxu3 %v12553_v15  ;;  %v8797_v26 = vor.u32 %v10102_v63, %v8794_v56  ;;  %v10290_v56 = vld [vmem:[#allocation8 + $0x6ec] sm:$0xf] }
 0x75c   : > { %v6253_v45 = vpop.f32.mrf.mxu2  ;;  %v6206_v19 = vpop.f32.mrf.mxu1  ;;  %v10226_v63 = vld [vmem:[#allocation8 + $0x4ec] sm:$0xf] }
 0x75d   : > { %v6254_v29 = vadd.f32 %v6253_v45, %v6205_v35  ;;  %6569 = vmatpush.bf16.msra.mxu1 %v8797_v26  ;;  %v12554_v45 = vld [vmem:[#allocation51_spill] sm:$0xff] }
 0x75e   : > { %v6302_v5 = vpop.f32.mrf.mxu3 }
 0x75f   : > { %v6157_v23 = vpop.f32.mrf.mxu0  ;;  %v11982_v15 = vadd.f32 %v6302_v5, %v6254_v29  ;;  %v12557_v29 = vld [vmem:[#allocation26_spill] sm:$0xff] }
 0x760   : > { %v6158_v53 = vadd.f32 %v6157_v23, %v11922_v59  ;;  %v9290_v5 = vld [vmem:[#allocation8 + $0x4f8] sm:$0xf0]  ;;  %v10322_v23 = vld [vmem:[#allocation8 + $0x7ec] sm:$0xf] }
 0x761   : > { %v9293_v26 = vor.u32 %v10226_v63, %v9290_v5 }
 0x762   : > { %v6207_v33 = vadd.f32 %v6206_v19, %v6158_v53  ;;  %v9546_v19 = vld [vmem:[#allocation8 + $0x6f8] sm:$0xf0] }
 0x763   : > { %v9674_v53 = vld [vmem:[#allocation8 + $0x7f8] sm:$0xf0]  ;;  %6709 = vmatpush.bf16.msrb.mxu0 %v9293_v26  ;;  %v12559_v26 = vld [vmem:[#allocation60_spill] sm:$0xff] }
 0x764   : > { %v6255_v30 = vpop.f32.mrf.mxu2  ;;  %v6209_v42 = vpop.f32.mrf.mxu1 }
 0x765   : > { %v6256_v24 = vadd.f32 %v6255_v30, %v6207_v33  ;;  %v9549_v30 = vor.u32 %v10290_v56, %v9546_v19  ;;  %v9418_v56 = vld [vmem:[#allocation8 + $0x5f8] sm:$0xf0] }
 0x766   : > { %v6304_v48 = vpop.f32.mrf.mxu3 }
 0x767   : > { %v6160_v7 = vpop.f32.mrf.mxu0  ;;  %v11985_v16 = vadd.f32 %v6304_v48, %v6256_v24  ;;  %6404 = vmatmul.bf16.gmra.mxu1 %v12555_v46  ;;  %v9677_v24 = vor.u32 %v10322_v23, %v9674_v53  ;;  %6807 = vmatpush.bf16.msrb.mxu2 %v9549_v30 }
 0x768   : > { %v6161_v35 = vadd.f32 %v6160_v7, %v11922_v59 }
 0x769   : > { %6453 = vmatmul.bf16.gmra.mxu2 %v12556_v28  ;;  %6856 = vmatpush.bf16.msrb.mxu3 %v9677_v24  ;;  %v12560_v24 = vld [vmem:[#allocation68_spill] sm:$0xff] }
 0x76a   : > { %v6210_v6 = vadd.f32 %v6209_v42, %v6161_v35  ;;  %6355 = vmatmul.bf16.gmra.mxu0 %v12554_v45  ;;  %v10258_v45 = vld [vmem:[#allocation8 + $0x5ec] sm:$0xf] }
 0x76b   : > { %6502 = vmatmul.bf16.gmra.mxu3 %v12557_v29  ;;  %v9421_v19 = vor.u32 %v10258_v45, %v9418_v56  ;;  %v10286_v45 = vld [vmem:[#allocation8 + $0x6cc] sm:$0xf]  ;;  %v9658_v56 = vld [vmem:[#allocation8 + $0x7d8] sm:$0xf0] }
 0x76c   : > { %v6258_v33 = vpop.f32.mrf.mxu2  ;;  %v6211_v46 = vpop.f32.mrf.mxu1 }
 0x76d   : > { %v6259_v48 = vadd.f32 %v6258_v33, %v6210_v6  ;;  %6758 = vmatpush.bf16.msrb.mxu1 %v9421_v19  ;;  %v12558_v33 = vld [vmem:[#allocation52_spill] sm:$0xff] }
 0x76e   : > { %v6307_v7 = vpop.f32.mrf.mxu3 }
 0x76f   : > { %v6162_v35 = vpop.f32.mrf.mxu0  ;;  %v11992_v29 = vadd.f32 %v6307_v7, %v6259_v48  ;;  %v9530_v48 = vld [vmem:[#allocation8 + $0x6d8] sm:$0xf0]  ;;  %v10222_v7 = vld [vmem:[#allocation8 + $0x4cc] sm:$0xf] }
 0x770   : > { %v6163_v42 = vadd.f32 %v6162_v35, %v11922_v59  ;;  %v9274_v35 = vld [vmem:[#allocation8 + $0x4d8] sm:$0xf0] }
 0x772   : > { %v6212_v28 = vadd.f32 %v6211_v46, %v6163_v42  ;;  %v12561_v46 = vld [vmem:[#allocation33_spill] sm:$0xff]  ;;  %v10318_v42 = vld [vmem:[#allocation8 + $0x7cc] sm:$0xf] }
 0x774   : > { %v6260_v22 = vpop.f32.mrf.mxu2  ;;  %v6214_v23 = vpop.f32.mrf.mxu1 }
 0x775   : > { %v6261_v37 = vadd.f32 %v6260_v22, %v6212_v28  ;;  %v9533_v28 = vor.u32 %v10286_v45, %v9530_v48 }
 0x776   : > { %v6309_v63 = vpop.f32.mrf.mxu3 }
 0x777   : > { %v6165_v5 = vpop.f32.mrf.mxu0  ;;  %v11995_v30 = vadd.f32 %v6309_v63, %v6261_v37  ;;  %6409 = vmatmul.bf16.gmra.mxu1 %v12559_v26  ;;  %6808 = vmatpush.bf16.msrb.mxu2 %v9533_v28  ;;  %v12562_v28 = vld [vmem:[#allocation31_spill] sm:$0xff] }
 0x778   : > { %v6166_v6 = vadd.f32 %v6165_v5, %v11922_v59  ;;  %v9277_v5 = vor.u32 %v10222_v7, %v9274_v35 }
 0x779   : > { %6458 = vmatmul.bf16.gmra.mxu2 %v12560_v24 }
 0x77a   : > { %v6215_v53 = vadd.f32 %v6214_v23, %v6166_v6  ;;  %6360 = vmatmul.bf16.gmra.mxu0 %v12558_v33  ;;  %v9661_v6 = vor.u32 %v10318_v42, %v9658_v56  ;;  %v10254_v33 = vld [vmem:[#allocation8 + $0x5cc] sm:$0xf] }
 0x77b   : > { %6507 = vmatmul.bf16.gmra.mxu3 %v12561_v46  ;;  %6710 = vmatpush.bf16.msrb.mxu0 %v9277_v5  ;;  %v9405_v45 = vor.u32 %v10254_v33, %v9402_v38  ;;  %v10282_v38 = vld [vmem:[#allocation8 + $0x6ac] sm:$0xf]  ;;  %v9514_v33 = vld [vmem:[#allocation8 + $0x6b8] sm:$0xf0] }
 0x77c   : > { %v6263_v22 = vpop.f32.mrf.mxu2  ;;  %v6216_v26 = vpop.f32.mrf.mxu1  ;;  %6857 = vmatpush.bf16.msrb.mxu3 %v9661_v6  ;;  %v10218_v56 = vld [vmem:[#allocation8 + $0x4ac] sm:$0xf] }
 0x77d   : > { %v6264_v19 = vadd.f32 %v6263_v22, %v6215_v53  ;;  %6759 = vmatpush.bf16.msrb.mxu1 %v9405_v45 }
 0x77e   : > { %v6312_v37 = vpop.f32.mrf.mxu3 }
 0x77f   : > { %v6167_v63 = vpop.f32.mrf.mxu0  ;;  %v12002_v24 = vadd.f32 %v6312_v37, %v6264_v19  ;;  %v9258_v19 = vld [vmem:[#allocation8 + $0x4b8] sm:$0xf0]  ;;  %v10314_v37 = vld [vmem:[#allocation8 + $0x7ac] sm:$0xf] }
 0x780   : > { %v6168_v23 = vadd.f32 %v6167_v63, %v11922_v59  ;;  %v9642_v63 = vld [vmem:[#allocation8 + $0x7b8] sm:$0xf0]  ;;  %v9261_v5 = vor.u32 %v10218_v56, %v9258_v19 }
 0x782   : > { %v6217_v46 = vadd.f32 %v6216_v26, %v6168_v23  ;;  %v12563_v26 = vld [vmem:[#allocation38_spill] sm:$0xff]  ;;  %6711 = vmatpush.bf16.msrb.mxu0 %v9261_v5  ;;  %v10214_v5 = vld [vmem:[#allocation8 + $0x48c] sm:$0xf] }
 0x784   : > { %v6265_v48 = vpop.f32.mrf.mxu2  ;;  %v6375_v35 = vpop.f32.mrf.mxu1 }
 0x785   : > { %v6266_v21 = vadd.f32 %v6265_v48, %v6217_v46  ;;  %v9517_v46 = vor.u32 %v10282_v38, %v9514_v33 }
 0x786   : > { %v6314_v53 = vpop.f32.mrf.mxu3 }
 0x787   : > { %v6326_v22 = vpop.f32.mrf.mxu0  ;;  %v12005_v42 = vadd.f32 %v6314_v53, %v6266_v21  ;;  %6570 = vmatmul.bf16.vlgmr.msra.gmra.mxu1 %v11171_v32  ;;  %v9645_v21 = vor.u32 %v10314_v37, %v9642_v63  ;;  %6809 = vmatpush.bf16.msrb.mxu2 %v9517_v46  ;;  %v10278_v63 = vld [vmem:[#allocation8 + $0x68c] sm:$0xf] }
 0x788   : > { %v6327_v7 = vadd.f32 %v6326_v22, %v11932_v47  ;;  %v10250_v22 = vld [vmem:[#allocation8 + $0x5ac] sm:$0xf] }
 0x789   : > { %6619 = vmatmul.bf16.vlgmr.msra.gmra.mxu2 %v12562_v28  ;;  %6858 = vmatpush.bf16.msrb.mxu3 %v9645_v21 }
 0x78a   : > { %v6376_v59 = vadd.f32 %v6375_v35, %v6327_v7  ;;  %6521 = vmatmul.bf16.vlgmr.msra.gmra.mxu0 %v11104_v62  ;;  %v9386_v7 = vld [vmem:[#allocation8 + $0x5b8] sm:$0xf0] }
 0x78b   : > { %6668 = vmatmul.bf16.vlgmr.msra.gmra.mxu3 %v12563_v26  ;;  %v9389_v35 = vor.u32 %v10250_v22, %v9386_v7 }
 0x78c   : > { %v6424_v47 = vpop.f32.mrf.mxu2  ;;  %v6377_v32 = vpop.f32.mrf.mxu1 }
 0x78d   : > { %v6425_v6 = vadd.f32 %v6424_v47, %v6376_v59  ;;  %6760 = vmatpush.bf16.msrb.mxu1 %v9389_v35  ;;  %v9498_v47 = vld [vmem:[#allocation8 + $0x698] sm:$0xf0]  ;;  %v10246_v35 = vld [vmem:[#allocation8 + $0x58c] sm:$0xf] }
 0x78e   : > { %v6473_v23 = vpop.f32.mrf.mxu3 }
 0x78f   : > { %v6328_v45 = vpop.f32.mrf.mxu0  ;;  %v6474_v48 = vadd.f32 %v6473_v23, %v6425_v6  ;;  %v9501_v6 = vor.u32 %v10278_v63, %v9498_v47  ;;  %v10310_v23 = vld [vmem:[#allocation8 + $0x78c] sm:$0xf] }
 0x790   : > { %v6329_v62 = vadd.f32 %v6328_v45, %v11935_v17  ;;  %v9626_v45 = vld [vmem:[#allocation8 + $0x798] sm:$0xf0]  ;;  %v10274_v47 = vld [vmem:[#allocation8 + $0x66c] sm:$0xf] }
 0x791   : > { %v6907_v17 = vmax.f32 %v6474_v48, 0.0  ;;  %6810 = vmatpush.bf16.msrb.mxu2 %v9501_v6  ;;  %v10210_v6 = vld [vmem:[#allocation8 + $0x46c] sm:$0xf] }
 0x792   : > { %v6378_v53 = vadd.f32 %v6377_v32, %v6329_v62 }
 0x794   : > { %v6426_v28 = vpop.f32.mrf.mxu2  ;;  %v6380_v56 = vpop.f32.mrf.mxu1 }
 0x795   : > { %v6427_v26 = vadd.f32 %v6426_v28, %v6378_v53  ;;  %v9370_v28 = vld [vmem:[#allocation8 + $0x598] sm:$0xf0] }
 0x796   : > { %v6475_v38 = vpop.f32.mrf.mxu3 }
 0x797   : > { %v6331_v33 = vpop.f32.mrf.mxu0  ;;  %v6476_v19 = vadd.f32 %v6475_v38, %v6427_v26  ;;  %6575 = vmatmul.bf16.gmra.mxu1 %v11179_v1  ;;  %v9373_v26 = vor.u32 %v10246_v35, %v9370_v28 }
 0x798   : > { %v6332_v59 = vadd.f32 %v6331_v33, %v11942_v20  ;;  %v9242_v20 = vld [vmem:[#allocation8 + $0x498] sm:$0xf0] }
 0x799   : > { %v6911_v37 = vmax.f32 %v6476_v19, 0.0  ;;  %6624 = vmatmul.bf16.gmra.mxu2 %v11248_v4  ;;  %v9245_v32 = vor.u32 %v10214_v5, %v9242_v20  ;;  %6761 = vmatpush.bf16.msrb.mxu1 %v9373_v26  ;;  %v9482_v5 = vld [vmem:[#allocation8 + $0x678] sm:$0xf0] }
 0x79a   : > { %v6381_v46 = vadd.f32 %v6380_v56, %v6332_v59  ;;  %6526 = vmatmul.bf16.gmra.mxu0 %v11112_v0  ;;  %v9629_v0 = vor.u32 %v10310_v23, %v9626_v45  ;;  %v9485_v20 = vor.u32 %v10274_v47, %v9482_v5  ;;  %v9226_v23 = vld [vmem:[#allocation8 + $0x478] sm:$0xf0]  ;;  %v10306_v45 = vld [vmem:[#allocation8 + $0x76c] sm:$0xf] }
 0x79b   : > { %6673 = vmatmul.bf16.gmra.mxu3 %v11315_v36  ;;  %v12017_v21 = vpack.c.bf16 %v6911_v37, %v6907_v17  ;;  %6712 = vmatpush.bf16.msrb.mxu0 %v9245_v32  ;;  %v9210_v47 = vld [vmem:[#allocation8 + $0x458] sm:$0xf0]  ;;  %v10302_v5 = vld [vmem:[#allocation8 + $0x74c] sm:$0xf] }
 0x79c   : > { %v6429_v62 = vpop.f32.mrf.mxu2  ;;  %v6382_v4 = vpop.f32.mrf.mxu1  ;;  %6859 = vmatpush.bf16.msrb.mxu3 %v9629_v0  ;;  %v9229_v0 = vor.u32 %v10210_v6, %v9226_v23  ;;  %6811 = vmatpush.bf16.msrb.mxu2 %v9485_v20 }
 0x79d   : > { %v6430_v48 = vadd.f32 %v6429_v62, %v6381_v46 }
 0x79e   : > { %v6478_v53 = vpop.f32.mrf.mxu3 }
 0x79f   : > { %v6333_v22 = vpop.f32.mrf.mxu0  ;;  %v6479_v36 = vadd.f32 %v6478_v53, %v6430_v48  ;;  %6713 = vmatpush.bf16.msrb.mxu0 %v9229_v0 }
 0x7a0   : > { %v6334_v1 = vadd.f32 %v6333_v22, %v11945_v57 }
 0x7a1   : > { %v6915_v57 = vmax.f32 %v6479_v36, 0.0  ;;  %v9354_v36 = vld [vmem:[#allocation8 + $0x578] sm:$0xf0] }
 0x7a2   : > { %v6383_v7 = vadd.f32 %v6382_v4, %v6334_v1  ;;  %v10242_v4 = vld [vmem:[#allocation8 + $0x56c] sm:$0xf] }
 0x7a4   : > { %v6431_v38 = vpop.f32.mrf.mxu2  ;;  %v6385_v46 = vpop.f32.mrf.mxu1 }
 0x7a5   : > { %v6432_v33 = vadd.f32 %v6431_v38, %v6383_v7  ;;  %v9357_v7 = vor.u32 %v10242_v4, %v9354_v36 }
 0x7a6   : > { %v6480_v59 = vpop.f32.mrf.mxu3 }
 0x7a7   : > { %v6336_v56 = vpop.f32.mrf.mxu0  ;;  %v6481_v17 = vadd.f32 %v6480_v59, %v6432_v33  ;;  %6580 = vmatmul.bf16.gmra.mxu1 %v12431_v3 }
 0x7a8   : > { %v6337_v19 = vadd.f32 %v6336_v56, %v11952_v54  ;;  %v9610_v54 = vld [vmem:[#allocation8 + $0x778] sm:$0xf0]  ;;  %6762 = vmatpush.bf16.msrb.mxu1 %v9357_v7 }
 0x7a9   : > { %v6919_v63 = vmax.f32 %v6481_v17, 0.0  ;;  %6629 = vmatmul.bf16.gmra.mxu2 %v12432_v50  ;;  %v10270_v17 = vld [vmem:[#allocation8 + $0x64c] sm:$0xf] }
 0x7aa   : > { %v6386_v37 = vadd.f32 %v6385_v46, %v6337_v19  ;;  %6531 = vmatmul.bf16.gmra.mxu0 %v12430_v41  ;;  %v9613_v41 = vor.u32 %v10306_v45, %v9610_v54 }
 0x7ab   : > { %6678 = vmatmul.bf16.gmra.mxu3 %v12433_v13  ;;  %v12025_v62 = vpack.c.bf16 %v6919_v63, %v6915_v57  ;;  %v10206_v57 = vld [vmem:[#allocation8 + $0x44c] sm:$0xf] }
 0x7ac   : > { %v6434_v32 = vpop.f32.mrf.mxu2  ;;  %v6387_v50 = vpop.f32.mrf.mxu1  ;;  %6860 = vmatpush.bf16.msrb.mxu3 %v9613_v41  ;;  %v9213_v23 = vor.u32 %v10206_v57, %v9210_v47  ;;  %v10238_v41 = vld [vmem:[#allocation8 + $0x54c] sm:$0xf] }
 0x7ad   : > { %v6435_v48 = vadd.f32 %v6434_v32, %v6386_v37  ;;  %v9466_v37 = vld [vmem:[#allocation8 + $0x658] sm:$0xf0]  ;;  %v10234_v47 = vld [vmem:[#allocation8 + $0x52c] sm:$0xf] }
 0x7ae   : > { %v6483_v53 = vpop.f32.mrf.mxu3  ;;  %v9469_v63 = vor.u32 %v10270_v17, %v9466_v37  ;;  %6714 = vmatpush.bf16.msrb.mxu0 %v9213_v23 }
 0x7af   : > { %v6338_v22 = vpop.f32.mrf.mxu0  ;;  %v6484_v13 = vadd.f32 %v6483_v53, %v6435_v48  ;;  %v9338_v48 = vld [vmem:[#allocation8 + $0x558] sm:$0xf0] }
 0x7b0   : > { %v6339_v3 = vadd.f32 %v6338_v22, %v11955_v2  ;;  %6812 = vmatpush.bf16.msrb.mxu2 %v9469_v63  ;;  %v9341_v53 = vor.u32 %v10238_v41, %v9338_v48  ;;  %v9434_v41 = vld [vmem:[#allocation8 + $0x618] sm:$0xf0]  ;;  %v10198_v48 = vld [vmem:[#allocation8 + $0x40c] sm:$0xf] }
 0x7b1   : > { %v6923_v2 = vmax.f32 %v6484_v13, 0.0 }
 0x7b2   : > { %v6388_v1 = vadd.f32 %v6387_v50, %v6339_v3  ;;  %6763 = vmatpush.bf16.msrb.mxu1 %v9341_v53 }
 0x7b4   : > { %v6436_v35 = vpop.f32.mrf.mxu2  ;;  %v6390_v59 = vpop.f32.mrf.mxu1 }
 0x7b5   : > { %v6437_v28 = vadd.f32 %v6436_v35, %v6388_v1 }
 0x7b6   : > { %v6485_v26 = vpop.f32.mrf.mxu3 }
 0x7b7   : > { %v6341_v38 = vpop.f32.mrf.mxu0  ;;  %v6486_v56 = vadd.f32 %v6485_v26, %v6437_v28  ;;  %6585 = vmatmul.bf16.gmra.mxu1 %v12436_v11  ;;  %v10266_v28 = vld [vmem:[#allocation8 + $0x62c] sm:$0xf]  ;;  %v9450_v26 = vld [vmem:[#allocation8 + $0x638] sm:$0xf0] }
 0x7b8   : > { %v6342_v33 = vadd.f32 %v6341_v38, %v11962_v39  ;;  %v9594_v39 = vld [vmem:[#allocation8 + $0x758] sm:$0xf0]  ;;  %v10202_v38 = vld [vmem:[#allocation8 + $0x42c] sm:$0xf] }
 0x7b9   : > { %v6927_v46 = vmax.f32 %v6486_v56, 0.0  ;;  %6634 = vmatmul.bf16.gmra.mxu2 %v12437_v49  ;;  %v10298_v56 = vld [vmem:[#allocation8 + $0x72c] sm:$0xf] }
 0x7ba   : > { %v6391_v19 = vadd.f32 %v6390_v59, %v6342_v33  ;;  %6536 = vmatmul.bf16.gmra.mxu0 %v12435_v25  ;;  %v9597_v25 = vor.u32 %v10302_v5, %v9594_v39  ;;  %v9453_v33 = vor.u32 %v10266_v28, %v9450_v26  ;;  %v9194_v59 = vld [vmem:[#allocation8 + $0x438] sm:$0xf0] }
 0x7bb   : > { %6683 = vmatmul.bf16.gmra.mxu3 %v12438_v40  ;;  %v12033_v6 = vpack.c.bf16 %v6927_v46, %v6923_v2  ;;  %v9197_v46 = vor.u32 %v10202_v38, %v9194_v59  ;;  %v9322_v5 = vld [vmem:[#allocation8 + $0x538] sm:$0xf0] }
 0x7bc   : > { %v6439_v20 = vpop.f32.mrf.mxu2  ;;  %v6392_v49 = vpop.f32.mrf.mxu1  ;;  %6861 = vmatpush.bf16.msrb.mxu3 %v9597_v25  ;;  %6813 = vmatpush.bf16.msrb.mxu2 %v9453_v33  ;;  %v9325_v39 = vor.u32 %v10234_v47, %v9322_v5  ;;  %v9306_v28 = vld [vmem:[#allocation8 + $0x518] sm:$0xf0] }
 0x7bd   : > { %v6440_v45 = vadd.f32 %v6439_v20, %v6391_v19  ;;  %6715 = vmatpush.bf16.msrb.mxu0 %v9197_v46 }
 0x7be   : > { %v6488_v54 = vpop.f32.mrf.mxu3  ;;  %6764 = vmatpush.bf16.msrb.mxu1 %v9325_v39 }
 0x7bf   : > { %v6343_v32 = vpop.f32.mrf.mxu0  ;;  %v6489_v40 = vadd.f32 %v6488_v54, %v6440_v45 }
 0x7c0   : > { %v6344_v11 = vadd.f32 %v6343_v32, %v11965_v14 }
 0x7c1   : > { %v6931_v14 = vmax.f32 %v6489_v40, 0.0 }
 0x7c2   : > { %v6393_v0 = vadd.f32 %v6392_v49, %v6344_v11 }
 0x7c4   : > { %v6441_v22 = vpop.f32.mrf.mxu2  ;;  %v6395_v4 = vpop.f32.mrf.mxu1 }
 0x7c5   : > { %v6442_v3 = vadd.f32 %v6441_v22, %v6393_v0  ;;  %v10262_v0 = vld [vmem:[#allocation8 + $0x60c] sm:$0xf]  ;;  %v9178_v22 = vld [vmem:[#allocation8 + $0x418] sm:$0xf0] }
 0x7c6   : > { %v6490_v50 = vpop.f32.mrf.mxu3  ;;  %v9437_v53 = vor.u32 %v10262_v0, %v9434_v41 }
 0x7c7   : > { %v6346_v13 = vpop.f32.mrf.mxu0  ;;  %v6491_v36 = vadd.f32 %v6490_v50, %v6442_v3  ;;  %6590 = vmatmul.bf16.gmra.mxu1 %v12441_v9  ;;  %v10294_v3 = vld [vmem:[#allocation8 + $0x70c] sm:$0xf] }
 0x7c8   : > { %v6347_v1 = vadd.f32 %v6346_v13, %v11972_v61  ;;  %v9578_v61 = vld [vmem:[#allocation8 + $0x738] sm:$0xf0]  ;;  %6814 = vmatpush.bf16.msrb.mxu2 %v9437_v53 }
 0x7c9   : > { %v6935_v35 = vmax.f32 %v6491_v36, 0.0  ;;  %6639 = vmatmul.bf16.gmra.mxu2 %v12442_v10  ;;  %v10332_v53 = vld [vmem:[#allocation11 + $0x38] sm:$0xff] }
 0x7ca   : > { %v6396_v7 = vadd.f32 %v6395_v4, %v6347_v1  ;;  %6541 = vmatmul.bf16.gmra.mxu0 %v12440_v8  ;;  %v9581_v8 = vor.u32 %v10298_v56, %v9578_v61  ;;  %v9181_v1 = vor.u32 %v10198_v48, %v9178_v22  ;;  %v10356_v22 = vld [vmem:[#allocation11 + $0xf8] sm:$0xff] }
 0x7cb   : > { %6688 = vmatmul.bf16.gmra.mxu3 %v12443_v27  ;;  %v12041_v19 = vpack.c.bf16 %v6935_v35, %v6931_v14  ;;  %v10230_v35 = vld [vmem:[#allocation8 + $0x50c] sm:$0xf] }
 0x7cc   : > { %v6444_v2 = vpop.f32.mrf.mxu2  ;;  %v6397_v10 = vpop.f32.mrf.mxu1  ;;  %6862 = vmatpush.bf16.msrb.mxu3 %v9581_v8  ;;  %6716 = vmatpush.bf16.msrb.mxu0 %v9181_v1  ;;  %v9309_v26 = vor.u32 %v10230_v35, %v9306_v28  ;;  %v12567_v28 = vld [vmem:[#allocation53_spill] sm:$0xff] }
 0x7cd   : > { %v6445_v17 = vadd.f32 %v6444_v2, %v6396_v7 }
 0x7ce   : > { %v6493_v37 = vpop.f32.mrf.mxu3  ;;  %6765 = vmatpush.bf16.msrb.mxu1 %v9309_v26  ;;  %v12568_v26 = vld [vmem:[#allocation61_spill] sm:$0xff] }
 0x7cf   : > { %v6348_v57 = vpop.f32.mrf.mxu0  ;;  %v6494_v27 = vadd.f32 %v6493_v37, %v6445_v17 }
 0x7d0   : > { %v6349_v9 = vadd.f32 %v6348_v57, %v11975_v12  ;;  %7261 = vmatpush.bf16.msra.mxu0 %v10332_v53 }
 0x7d1   : > { %v6939_v12 = vmax.f32 %v6494_v27, 0.0 }
 0x7d2   : > { %v6398_v63 = vadd.f32 %v6397_v10, %v6349_v9 }
 0x7d4   : > { %v6446_v20 = vpop.f32.mrf.mxu2  ;;  %v6400_v32 = vpop.f32.mrf.mxu1 }
 0x7d5   : > { %v6447_v23 = vadd.f32 %v6446_v20, %v6398_v63 }
 0x7d6   : > { %v6495_v25 = vpop.f32.mrf.mxu3 }
 0x7d7   : > { %v6351_v45 = vpop.f32.mrf.mxu0  ;;  %v6496_v11 = vadd.f32 %v6495_v25, %v6447_v23  ;;  %6595 = vmatmul.bf16.gmra.mxu1 %v12446_v51 }
 0x7d8   : > { %v6352_v54 = vadd.f32 %v6351_v45, %v11982_v15  ;;  %v9562_v15 = vld [vmem:[#allocation8 + $0x718] sm:$0xf0] }
 0x7d9   : > { %v6943_v40 = vmax.f32 %v6496_v11, 0.0  ;;  %6644 = vmatmul.bf16.gmra.mxu2 %v12447_v31  ;;  %v10348_v11 = vld [vmem:[#allocation11 + $0xb8] sm:$0xff] }
 0x7da   : > { %v6401_v49 = vadd.f32 %v6400_v32, %v6352_v54  ;;  %6546 = vmatmul.bf16.gmra.mxu0 %v12445_v43  ;;  %v9565_v43 = vor.u32 %v10294_v3, %v9562_v15  ;;  %v12564_v32 = vld [vmem:[#allocation37_spill] sm:$0xff]  ;;  %7359 = vmatpush.bf16.msra.mxu2 %v10348_v11  ;;  %v10469_v15 = vld [vmem:[#allocation10] sm:$0xf] }
 0x7db   : > { %6693 = vmatmul.bf16.gmra.mxu3 %v12448_v34  ;;  %v12049_v50 = vpack.c.bf16 %v6943_v40, %v6939_v12 }
 0x7dc   : > { %v6449_v13 = vpop.f32.mrf.mxu2  ;;  %v6402_v31 = vpop.f32.mrf.mxu1  ;;  %6863 = vmatpush.bf16.msrb.mxu3 %v9565_v43 }
 0x7dd   : > { %v6450_v4 = vadd.f32 %v6449_v13, %v6401_v49  ;;  %v12068_v13 = vperm.slane %v10469_v15, 3 }
 0x7de   : > { %v6498_v36 = vpop.f32.mrf.mxu3 }
 0x7df   : > { %v6353_v7 = vpop.f32.mrf.mxu0  ;;  %v6499_v34 = vadd.f32 %v6498_v36, %v6450_v4 }
 0x7e0   : > { %v6354_v51 = vadd.f32 %v6353_v7, %v11985_v16  ;;  %7408 = vmatpush.bf16.msra.mxu3 %v10356_v22 }
 0x7e1   : > { %v6947_v16 = vmax.f32 %v6499_v34, 0.0  ;;  %v12566_v34 = vld [vmem:[#allocation45_spill] sm:$0xff] }
 0x7e2   : > { %v6403_v14 = vadd.f32 %v6402_v31, %v6354_v51 }
 0x7e4   : > { %v6451_v38 = vpop.f32.mrf.mxu2  ;;  %v6405_v2 = vpop.f32.mrf.mxu1 }
 0x7e5   : > { %v6452_v33 = vadd.f32 %v6451_v38, %v6403_v14  ;;  %v12569_v38 = vld [vmem:[#allocation69_spill] sm:$0xff] }
 0x7e6   : > { %v6500_v59 = vpop.f32.mrf.mxu3 }
 0x7e7   : > { %v6356_v56 = vpop.f32.mrf.mxu0  ;;  %v6501_v46 = vadd.f32 %v6500_v59, %v6452_v33  ;;  %6600 = vmatmul.bf16.gmra.mxu1 %v12480_v58  ;;  %v10347_v33 = vld [vmem:[#allocation11 + $0xb0] sm:$0xff] }
 0x7e8   : > { %v6357_v61 = vadd.f32 %v6356_v56, %v11992_v29  ;;  %7360 = vmatpush.bf16.msra.mxu2 %v10347_v33 }
 0x7e9   : > { %v6951_v17 = vmax.f32 %v6501_v46, 0.0  ;;  %6649 = vmatmul.bf16.gmra.mxu2 %v12481_v55 }
 0x7ea   : > { %v6406_v8 = vadd.f32 %v6405_v2, %v6357_v61  ;;  %6551 = vmatmul.bf16.gmra.mxu0 %v12479_v60 }
 0x7eb   : > { %6698 = vmatmul.bf16.gmra.mxu3 %v12482_v52  ;;  %v12057_v37 = vpack.c.bf16 %v6951_v17, %v6947_v16 }
 0x7ec   : > { %v6454_v57 = vpop.f32.mrf.mxu2  ;;  %v6407_v63 = vpop.f32.mrf.mxu1 }
 0x7ed   : > { %v6455_v9 = vadd.f32 %v6454_v57, %v6406_v8  ;;  %v10331_v57 = vld [vmem:[#allocation11 + $0x30] sm:$0xff] }
 0x7ee   : > { %v6503_v10 = vpop.f32.mrf.mxu3  ;;  %7262 = vmatpush.bf16.msra.mxu0 %v10331_v57 }
 0x7ef   : > { %v6358_v27 = vpop.f32.mrf.mxu0  ;;  %v6504_v47 = vadd.f32 %v6503_v10, %v6455_v9  ;;  %v10355_v9 = vld [vmem:[#allocation11 + $0xf0] sm:$0xff] }
 0x7f0   : > { %v6359_v29 = vadd.f32 %v6358_v27, %v11995_v30  ;;  %v12565_v30 = vld [vmem:[#allocation44_spill] sm:$0xff]  ;;  %v10339_v27 = vld [vmem:[#allocation11 + $0x70] sm:$0xff]  ;;  %7409 = vmatpush.bf16.msra.mxu3 %v10355_v9 }
 0x7f1   : > { %v6955_v45 = vmax.f32 %v6504_v47, 0.0 }
 0x7f2   : > { %v6408_v5 = vadd.f32 %v6407_v63, %v6359_v29 }
 0x7f4   : > { %v6456_v60 = vpop.f32.mrf.mxu2  ;;  %v6410_v55 = vpop.f32.mrf.mxu1 }
 0x7f5   : > { %v6457_v39 = vadd.f32 %v6456_v60, %v6408_v5 }
 0x7f6   : > { %v6505_v20 = vpop.f32.mrf.mxu3 }
 0x7f7   : > { %v6361_v23 = vpop.f32.mrf.mxu0  ;;  %v6506_v25 = vadd.f32 %v6505_v20, %v6457_v39  ;;  %6605 = vmatmul.bf16.gmra.mxu1 %v12525_v18  ;;  %v10340_v18 = vld [vmem:[#allocation11 + $0x78] sm:$0xff] }
 0x7f8   : > { %v6362_v58 = vadd.f32 %v6361_v23, %v12002_v24  ;;  %7310 = vmatpush.bf16.msra.mxu1 %v10340_v18 }
 0x7f9   : > { %v6959_v54 = vmax.f32 %v6506_v25, 0.0  ;;  %6654 = vmatmul.bf16.gmra.mxu2 %v12564_v32  ;;  %v12572_v25 = vld [vmem:[#allocation62_spill] sm:$0xff] }
 0x7fa   : > { %v6411_v52 = vadd.f32 %v6410_v55, %v6362_v58  ;;  %6556 = vmatmul.bf16.gmra.mxu0 %v12484_v44  ;;  %v12570_v58 = vld [vmem:[#allocation46_spill] sm:$0xff] }
 0x7fb   : > { %6703 = vmatmul.bf16.gmra.mxu3 %v12565_v30  ;;  %v12065_v49 = vpack.c.bf16 %v6959_v54, %v6955_v45  ;;  %v12571_v55 = vld [vmem:[#allocation54_spill] sm:$0xff]  ;;  %v10346_v45 = vld [vmem:[#allocation11 + $0xa8] sm:$0xff] }
 0x7fc   : > { %v6459_v12 = vpop.f32.mrf.mxu2  ;;  %v6412_v48 = vpop.f32.mrf.mxu1  ;;  %7311 = vmatpush.bf16.msra.mxu1 %v10339_v27  ;;  %7361 = vmatpush.bf16.msra.mxu2 %v10346_v45 }
 0x7fd   : > { %v6460_v40 = vadd.f32 %v6459_v12, %v6411_v52  ;;  %v12573_v52 = vld [vmem:[#allocation19_spill] sm:$0xff] }
 0x7fe   : > { %v6508_v24 = vpop.f32.mrf.mxu3 }
 0x7ff   : > { %v6363_v0 = vpop.f32.mrf.mxu0  ;;  %v6509_v44 = vadd.f32 %v6508_v24, %v6460_v40 }
 0x800   : > { %v6364_v41 = vadd.f32 %v6363_v0, %v12005_v42  ;;  %v10330_v0 = vld [vmem:[#allocation11 + $0x28] sm:$0xff] }
 0x801   : > { %v6963_v14 = vmax.f32 %v6509_v44, 0.0  ;;  %v10338_v44 = vld [vmem:[#allocation11 + $0x68] sm:$0xff]  ;;  %7263 = vmatpush.bf16.msra.mxu0 %v10330_v0 }
 0x802   : > { %v6413_v3 = vadd.f32 %v6412_v48, %v6364_v41  ;;  %v10354_v41 = vld [vmem:[#allocation11 + $0xe8] sm:$0xff]  ;;  %7312 = vmatpush.bf16.msra.mxu1 %v10338_v44 }
 0x803   : > { %7410 = vmatpush.bf16.msra.mxu3 %v10354_v41 }
 0x804   : > { %v6461_v1 = vpop.f32.mrf.mxu2  ;;  %v6571_v51 = vpop.f32.mrf.mxu1 }
 0x805   : > { %v6462_v43 = vadd.f32 %v6461_v1, %v6413_v3 }
 0x806   : > { %v6510_v4 = vpop.f32.mrf.mxu3 }
 0x807   : > { %v6522_v36 = vpop.f32.mrf.mxu0  ;;  %v6511_v42 = vadd.f32 %v6510_v4, %v6462_v43  ;;  %6766 = vmatmul.bf16.vlgmr.msrb.gmra.mxu1 %v12567_v28 }
 0x808   : > { %v6523_v7 = vadd.f32 %v6522_v36, %v12068_v13  ;;  %v12574_v36 = vld [vmem:[#allocation47_spill] sm:$0xff] }
 0x809   : > { %v6967_v35 = vmax.f32 %v6511_v42, 0.0  ;;  %6815 = vmatmul.bf16.vlgmr.msrb.gmra.mxu2 %v12568_v26  ;;  %v12577_v42 = vld [vmem:[#allocation25_spill] sm:$0xff] }
 0x80a   : > { %v6572_v31 = vadd.f32 %v6571_v51, %v6523_v7  ;;  %6717 = vmatmul.bf16.vlgmr.msrb.gmra.mxu0 %v12566_v34  ;;  %v12575_v7 = vld [vmem:[#allocation55_spill] sm:$0xff] }
 0x80b   : > { %6864 = vmatmul.bf16.vlgmr.msrb.gmra.mxu3 %v12569_v38  ;;  %v12075_v59 = vpack.c.bf16 %v6967_v35, %v6963_v14  ;;  %v12576_v51 = vld [vmem:[#allocation63_spill] sm:$0xff] }
 0x80c   : > { %v6620_v56 = vpop.f32.mrf.mxu2  ;;  %v6573_v16 = vpop.f32.mrf.mxu1 }
 0x80d   : > { %v6621_v61 = vadd.f32 %v6620_v56, %v6572_v31  ;;  %v10345_v31 = vld [vmem:[#allocation11 + $0xa0] sm:$0xff] }
 0x80e   : > { %v6669_v2 = vpop.f32.mrf.mxu3  ;;  %7362 = vmatpush.bf16.msra.mxu2 %v10345_v31  ;;  %v10329_v56 = vld [vmem:[#allocation11 + $0x20] sm:$0xff] }
 0x80f   : > { %v6524_v46 = vpop.f32.mrf.mxu0  ;;  %v12078_v17 = vadd.f32 %v6669_v2, %v6621_v61  ;;  %v10353_v61 = vld [vmem:[#allocation11 + $0xe0] sm:$0xff]  ;;  %7264 = vmatpush.bf16.msra.mxu0 %v10329_v56 }
 0x810   : > { %v6525_v8 = vadd.f32 %v6524_v46, %v12068_v13  ;;  %v10337_v46 = vld [vmem:[#allocation11 + $0x60] sm:$0xff]  ;;  %7411 = vmatpush.bf16.msra.mxu3 %v10353_v61  ;;  %v10335_v61 = vld [vmem:[#allocation11 + $0x50] sm:$0xff] }
 0x811   : > { %7313 = vmatpush.bf16.msra.mxu1 %v10337_v46 }
 0x812   : > { %v6574_v10 = vadd.f32 %v6573_v16, %v6525_v8 }
 0x814   : > { %v6622_v29 = vpop.f32.mrf.mxu2  ;;  %v6576_v39 = vpop.f32.mrf.mxu1 }
 0x815   : > { %v6623_v63 = vadd.f32 %v6622_v29, %v6574_v10 }
 0x816   : > { %v6671_v47 = vpop.f32.mrf.mxu3 }
 0x817   : > { %v6527_v5 = vpop.f32.mrf.mxu0  ;;  %v12081_v20 = vadd.f32 %v6671_v47, %v6623_v63  ;;  %6771 = vmatmul.bf16.gmra.mxu1 %v12571_v55  ;;  %v12578_v47 = vld [vmem:[#allocation48_spill] sm:$0xff] }
 0x818   : > { %v6528_v60 = vadd.f32 %v6527_v5, %v12068_v13  ;;  %v12579_v5 = vld [vmem:[#allocation56_spill] sm:$0xff] }
 0x819   : > { %6820 = vmatmul.bf16.gmra.mxu2 %v12572_v25 }
 0x81a   : > { %v6577_v23 = vadd.f32 %v6576_v39, %v6528_v60  ;;  %6722 = vmatmul.bf16.gmra.mxu0 %v12570_v58  ;;  %v12580_v60 = vld [vmem:[#allocation64_spill] sm:$0xff] }
 0x81b   : > { %6869 = vmatmul.bf16.gmra.mxu3 %v12573_v52  ;;  %v12581_v39 = vld [vmem:[#allocation32_spill] sm:$0xff] }
 0x81c   : > { %v6625_v54 = vpop.f32.mrf.mxu2  ;;  %v6578_v40 = vpop.f32.mrf.mxu1 }
 0x81d   : > { %v6626_v32 = vadd.f32 %v6625_v54, %v6577_v23  ;;  %v10344_v23 = vld [vmem:[#allocation11 + $0x98] sm:$0xff] }
 0x81e   : > { %v6674_v30 = vpop.f32.mrf.mxu3  ;;  %7363 = vmatpush.bf16.msra.mxu2 %v10344_v23 }
 0x81f   : > { %v6529_v11 = vpop.f32.mrf.mxu0  ;;  %v12088_v24 = vadd.f32 %v6674_v30, %v6626_v32  ;;  %v10328_v30 = vld [vmem:[#allocation11 + $0x18] sm:$0xff] }
 0x820   : > { %v6530_v12 = vadd.f32 %v6529_v11, %v12068_v13  ;;  %v10352_v11 = vld [vmem:[#allocation11 + $0xd8] sm:$0xff]  ;;  %7265 = vmatpush.bf16.msra.mxu0 %v10328_v30  ;;  %v10350_v30 = vld [vmem:[#allocation11 + $0xc8] sm:$0xff] }
 0x821   : > { %7412 = vmatpush.bf16.msra.mxu3 %v10352_v11 }
 0x822   : > { %v6579_v48 = vadd.f32 %v6578_v40, %v6530_v12  ;;  %v10336_v40 = vld [vmem:[#allocation11 + $0x58] sm:$0xff] }
 0x823   : > { %7314 = vmatpush.bf16.msra.mxu1 %v10336_v40 }
 0x824   : > { %v6627_v53 = vpop.f32.mrf.mxu2  ;;  %v6581_v1 = vpop.f32.mrf.mxu1 }
 0x825   : > { %v6628_v22 = vadd.f32 %v6627_v53, %v6579_v48 }
 0x826   : > { %v6676_v3 = vpop.f32.mrf.mxu3 }
 0x827   : > { %v6532_v18 = vpop.f32.mrf.mxu0  ;;  %v12091_v43 = vadd.f32 %v6676_v3, %v6628_v22  ;;  %6776 = vmatmul.bf16.gmra.mxu1 %v12575_v7  ;;  %v10343_v7 = vld [vmem:[#allocation11 + $0x90] sm:$0xff] }
 0x828   : > { %v6533_v15 = vadd.f32 %v6532_v18, %v12068_v13  ;;  %7364 = vmatpush.bf16.msra.mxu2 %v10343_v7  ;;  %7315 = vmatpush.bf16.msra.mxu1 %v10335_v61  ;;  %v12592_v7 = vld [vmem:[#allocation67_spill] sm:$0xff] }
 0x829   : > { %6825 = vmatmul.bf16.gmra.mxu2 %v12576_v51  ;;  %v10349_v61 = vld [vmem:[#allocation11 + $0xc0] sm:$0xff] }
 0x82a   : > { %v6582_v4 = vadd.f32 %v6581_v1, %v6533_v15  ;;  %6727 = vmatmul.bf16.gmra.mxu0 %v12574_v36  ;;  %v12582_v15 = vld [vmem:[#allocation49_spill] sm:$0xff]  ;;  %v12585_v36 = vld [vmem:[#allocation39_spill] sm:$0xff] }
 0x82b   : > { %6874 = vmatmul.bf16.gmra.mxu3 %v12577_v42  ;;  %v12583_v1 = vld [vmem:[#allocation57_spill] sm:$0xff] }
 0x82c   : > { %v6630_v34 = vpop.f32.mrf.mxu2  ;;  %v6583_v38 = vpop.f32.mrf.mxu1 }
 0x82d   : > { %v6631_v14 = vadd.f32 %v6630_v34, %v6582_v4  ;;  %v12584_v4 = vld [vmem:[#allocation65_spill] sm:$0xff] }
 0x82e   : > { %v6679_v35 = vpop.f32.mrf.mxu3 }
 0x82f   : > { %v6534_v28 = vpop.f32.mrf.mxu0  ;;  %v12098_v33 = vadd.f32 %v6679_v35, %v6631_v14 }
 0x830   : > { %v6535_v26 = vadd.f32 %v6534_v28, %v12068_v13 }
 0x832   : > { %v6584_v2 = vadd.f32 %v6583_v38, %v6535_v26  ;;  %v10327_v26 = vld [vmem:[#allocation11 + $0x10] sm:$0xff] }
 0x833   : > { %v10351_v38 = vld [vmem:[#allocation11 + $0xd0] sm:$0xff]  ;;  %7266 = vmatpush.bf16.msra.mxu0 %v10327_v26 }
 0x834   : > { %v6632_v8 = vpop.f32.mrf.mxu2  ;;  %v6586_v27 = vpop.f32.mrf.mxu1  ;;  %7413 = vmatpush.bf16.msra.mxu3 %v10351_v38 }
 0x835   : > { %v6633_v16 = vadd.f32 %v6632_v8, %v6584_v2 }
 0x836   : > { %v6681_v57 = vpop.f32.mrf.mxu3 }
 0x837   : > { %v6537_v9 = vpop.f32.mrf.mxu0  ;;  %v12101_v29 = vadd.f32 %v6681_v57, %v6633_v16  ;;  %6781 = vmatmul.bf16.gmra.mxu1 %v12579_v5  ;;  %v12589_v5 = vld [vmem:[#allocation20_spill] sm:$0xff] }
 0x838   : > { %v6538_v10 = vadd.f32 %v6537_v9, %v12068_v13  ;;  %7414 = vmatpush.bf16.msra.mxu3 %v10350_v30 }
 0x839   : > { %6830 = vmatmul.bf16.gmra.mxu2 %v12580_v60  ;;  %v10342_v60 = vld [vmem:[#allocation11 + $0x88] sm:$0xff] }
 0x83a   : > { %v6587_v63 = vadd.f32 %v6586_v27, %v6538_v10  ;;  %6732 = vmatmul.bf16.gmra.mxu0 %v12578_v47  ;;  %v12586_v27 = vld [vmem:[#allocation50_spill] sm:$0xff]  ;;  %7365 = vmatpush.bf16.msra.mxu2 %v10342_v60  ;;  %v12596_v60 = vld [vmem:[#allocation68_spill] sm:$0xff] }
 0x83b   : > { %6879 = vmatmul.bf16.gmra.mxu3 %v12581_v39  ;;  %v12588_v47 = vld [vmem:[#allocation66_spill] sm:$0xff] }
 0x83c   : > { %v6635_v58 = vpop.f32.mrf.mxu2  ;;  %v6588_v54 = vpop.f32.mrf.mxu1  ;;  %7415 = vmatpush.bf16.msra.mxu3 %v10349_v61 }
 0x83d   : > { %v6636_v55 = vadd.f32 %v6635_v58, %v6587_v63  ;;  %v12587_v63 = vld [vmem:[#allocation58_spill] sm:$0xff] }
 0x83e   : > { %v6684_v25 = vpop.f32.mrf.mxu3 }
 0x83f   : > { %v6539_v52 = vpop.f32.mrf.mxu0  ;;  %v12108_v32 = vadd.f32 %v6684_v25, %v6636_v55 }
 0x840   : > { %v6540_v45 = vadd.f32 %v6539_v52, %v12068_v13 }
 0x842   : > { %v6589_v12 = vadd.f32 %v6588_v54, %v6540_v45  ;;  %v10326_v54 = vld [vmem:[#allocation11 + $0x8] sm:$0xff] }
 0x843   : > { %7267 = vmatpush.bf16.msra.mxu0 %v10326_v54 }
 0x844   : > { %v6637_v0 = vpop.f32.mrf.mxu2  ;;  %v6591_v22 = vpop.f32.mrf.mxu1 }
 0x845   : > { %v6638_v41 = vadd.f32 %v6637_v0, %v6589_v12  ;;  %v10334_v12 = vld [vmem:[#allocation11 + $0x48] sm:$0xff] }
 0x846   : > { %v6686_v48 = vpop.f32.mrf.mxu3  ;;  %7316 = vmatpush.bf16.msra.mxu1 %v10334_v12 }
 0x847   : > { %v6542_v44 = vpop.f32.mrf.mxu0  ;;  %v12111_v3 = vadd.f32 %v6686_v48, %v6638_v41  ;;  %6786 = vmatmul.bf16.gmra.mxu1 %v12583_v1 }
 0x848   : > { %v6543_v53 = vadd.f32 %v6542_v44, %v12068_v13  ;;  %v10325_v44 = vld [vmem:[#allocation11] sm:$0xff] }
 0x849   : > { %6835 = vmatmul.bf16.gmra.mxu2 %v12584_v4  ;;  %7268 = vmatpush.bf16.msra.mxu0 %v10325_v44  ;;  %v12590_v4 = vld [vmem:[#allocation51_spill] sm:$0xff] }
 0x84a   : > { %v6592_v18 = vadd.f32 %v6591_v22, %v6543_v53  ;;  %6737 = vmatmul.bf16.gmra.mxu0 %v12582_v15  ;;  %v10333_v53 = vld [vmem:[#allocation11 + $0x40] sm:$0xff] }
 0x84b   : > { %6884 = vmatmul.bf16.gmra.mxu3 %v12585_v36  ;;  %v10341_v22 = vld [vmem:[#allocation11 + $0x80] sm:$0xff]  ;;  %7317 = vmatpush.bf16.msra.mxu1 %v10333_v53 }
 0x84c   : > { %v6640_v51 = vpop.f32.mrf.mxu2  ;;  %v6593_v35 = vpop.f32.mrf.mxu1  ;;  %7366 = vmatpush.bf16.msra.mxu2 %v10341_v22  ;;  %v12591_v36 = vld [vmem:[#allocation59_spill] sm:$0xff]  ;;  %v12598_v22 = vld [vmem:[#allocation40_spill] sm:$0xff] }
 0x84d   : > { %v6641_v42 = vadd.f32 %v6640_v51, %v6592_v18  ;;  %v12593_v51 = vld [vmem:[#allocation26_spill] sm:$0xff] }
 0x84e   : > { %v6689_v31 = vpop.f32.mrf.mxu3 }
 0x84f   : > { %v6544_v34 = vpop.f32.mrf.mxu0  ;;  %v12118_v28 = vadd.f32 %v6689_v31, %v6641_v42 }
 0x850   : > { %v6545_v14 = vadd.f32 %v6544_v34, %v12068_v13 }
 0x852   : > { %v6594_v56 = vadd.f32 %v6593_v35, %v6545_v14 }
 0x854   : > { %v6642_v2 = vpop.f32.mrf.mxu2  ;;  %v6596_v9 = vpop.f32.mrf.mxu1 }
 0x855   : > { %v12120_v46 = vadd.f32 %v6642_v2, %v6594_v56 }
 0x856   : > { %v12122_v8 = vpop.f32.mrf.mxu3 }
 0x857   : > { %v6547_v16 = vpop.f32.mrf.mxu0  ;;  %6791 = vmatmul.bf16.gmra.mxu1 %v12587_v63 }
 0x858   : > { %v6548_v57 = vadd.f32 %v6547_v16, %v12068_v13 }
 0x859   : > { %6840 = vmatmul.bf16.gmra.mxu2 %v12588_v47  ;;  %v12594_v47 = vld [vmem:[#allocation52_spill] sm:$0xff] }
 0x85a   : > { %v6597_v10 = vadd.f32 %v6596_v9, %v6548_v57  ;;  %6742 = vmatmul.bf16.gmra.mxu0 %v12586_v27 }
 0x85b   : > { %6889 = vmatmul.bf16.gmra.mxu3 %v12589_v5  ;;  %v12595_v5 = vld [vmem:[#allocation60_spill] sm:$0xff] }
 0x85c   : > { %v6645_v39 = vpop.f32.mrf.mxu2  ;;  %v6598_v52 = vpop.f32.mrf.mxu1 }
 0x85d   : > { %v6646_v23 = vadd.f32 %v6645_v39, %v6597_v10  ;;  %v12597_v39 = vld [vmem:[#allocation33_spill] sm:$0xff] }
 0x85e   : > { %v6694_v58 = vpop.f32.mrf.mxu3 }
 0x85f   : > { %v6549_v55 = vpop.f32.mrf.mxu0  ;;  %v12130_v45 = vadd.f32 %v6694_v58, %v6646_v23 }
 0x860   : > { %v6550_v25 = vadd.f32 %v6549_v55, %v12068_v13 }
 0x862   : > { %v6599_v11 = vadd.f32 %v6598_v52, %v6550_v25 }
 0x864   : > { %v6647_v40 = vpop.f32.mrf.mxu2  ;;  %v6601_v15 = vpop.f32.mrf.mxu1 }
 0x865   : > { %v12132_v0 = vadd.f32 %v6647_v40, %v6599_v11 }
 0x866   : > { %v12134_v41 = vpop.f32.mrf.mxu3 }
 0x867   : > { %v6552_v48 = vpop.f32.mrf.mxu0  ;;  %6796 = vmatmul.bf16.gmra.mxu1 %v12591_v36 }
 0x868   : > { %v6553_v18 = vadd.f32 %v6552_v48, %v12068_v13 }
 0x869   : > { %6845 = vmatmul.bf16.gmra.mxu2 %v12592_v7 }
 0x86a   : > { %v6602_v1 = vadd.f32 %v6601_v15, %v6553_v18  ;;  %6747 = vmatmul.bf16.gmra.mxu0 %v12590_v4  ;;  %v12599_v18 = vld [vmem:[#allocation42_spill] sm:$0xff] }
 0x86b   : > { %6894 = vmatmul.bf16.gmra.mxu3 %v12593_v51 }
 0x86c   : > { %v6650_v42 = vpop.f32.mrf.mxu2  ;;  %v6603_v26 = vpop.f32.mrf.mxu1 }
 0x86d   : > { %v6651_v31 = vadd.f32 %v6650_v42, %v6602_v1 }
 0x86e   : > { %v6699_v34 = vpop.f32.mrf.mxu3 }
 0x86f   : > { %v6554_v14 = vpop.f32.mrf.mxu0  ;;  %v12142_v38 = vadd.f32 %v6699_v34, %v6651_v31 }
 0x870   : > { %v6555_v35 = vadd.f32 %v6554_v14, %v12068_v13 }
 0x872   : > { %v6604_v56 = vadd.f32 %v6603_v26, %v6555_v35 }
 0x874   : > { %v6652_v2 = vpop.f32.mrf.mxu2  ;;  %v6606_v27 = vpop.f32.mrf.mxu1 }
 0x875   : > { %v12144_v16 = vadd.f32 %v6652_v2, %v6604_v56 }
 0x876   : > { %v12146_v57 = vpop.f32.mrf.mxu3 }
 0x877   : > { %v6557_v9 = vpop.f32.mrf.mxu0  ;;  %6801 = vmatmul.bf16.gmra.mxu1 %v12595_v5 }
 0x878   : > { %v6558_v10 = vadd.f32 %v6557_v9, %v12068_v13  ;;  %v12600_v9 = vld [vmem:[#allocation21_spill] sm:$0xff] }
 0x879   : > { %6850 = vmatmul.bf16.gmra.mxu2 %v12596_v60 }
 0x87a   : > { %v6607_v63 = vadd.f32 %v6606_v27, %v6558_v10  ;;  %6752 = vmatmul.bf16.gmra.mxu0 %v12594_v47  ;;  %v12601_v10 = vld [vmem:[#allocation23_spill] sm:$0xff] }
 0x87b   : > { %6899 = vmatmul.bf16.gmra.mxu3 %v12597_v39 }
 0x87c   : > { %v6655_v23 = vpop.f32.mrf.mxu2  ;;  %v6608_v54 = vpop.f32.mrf.mxu1 }
 0x87d   : > { %v6656_v58 = vadd.f32 %v6655_v23, %v6607_v63 }
 0x87e   : > { %v6704_v55 = vpop.f32.mrf.mxu3 }
 0x87f   : > { %v6559_v25 = vpop.f32.mrf.mxu0  ;;  %v12154_v30 = vadd.f32 %v6704_v55, %v6656_v58 }
 0x880   : > { %v6560_v52 = vadd.f32 %v6559_v25, %v12068_v13 }
 0x882   : > { %v6609_v11 = vadd.f32 %v6608_v54, %v6560_v52 }
 0x884   : > { %v6657_v12 = vpop.f32.mrf.mxu2  ;;  %v6767_v53 = vpop.f32.mrf.mxu1 }
 0x885   : > { %v12156_v40 = vadd.f32 %v6657_v12, %v6609_v11 }
 0x886   : > { %v12158_v48 = vpop.f32.mrf.mxu3 }
 0x887   : > { %v6718_v44 = vpop.f32.mrf.mxu0  ;;  %7318 = vmatmul.bf16.vlgmr.msra.gmra.mxu1 %v12599_v18  ;;  %v12603_v18 = vld [vmem:[#allocation29_spill] sm:$0xff] }
 0x888   : > { %v6719_v15 = vadd.f32 %v6718_v44, %v12078_v17 }
 0x889   : > { %7367 = vmatmul.bf16.vlgmr.msra.gmra.mxu2 %v12017_v21 }
 0x88a   : > { %7269 = vmatmul.bf16.vlgmr.msra.gmra.mxu0 %v12598_v22  ;;  %v6768_v7 = vadd.f32 %v6767_v53, %v6719_v15  ;;  %v12602_v53 = vld [vmem:[#allocation27_spill] sm:$0xff] }
 0x88c   : > { %v6816_v13 = vpop.f32.mrf.mxu2  ;;  %v6769_v36 = vpop.f32.mrf.mxu1 }
 0x88d   : > { %v6817_v42 = vadd.f32 %v6816_v13, %v6768_v7 }
 0x88e   : > { %v6865_v1 = vpop.f32.mrf.mxu3 }
 0x88f   : > { %v6720_v4 = vpop.f32.mrf.mxu0  ;;  %v6866_v14 = vadd.f32 %v6865_v1, %v6817_v42 }
 0x890   : > { %v6721_v51 = vadd.f32 %v6720_v4, %v12081_v20 }
 0x891   : > { %v6908_v21 = vmax.f32 %v6866_v14, 0.0 }
 0x892   : > { %v6770_v31 = vadd.f32 %v6769_v36, %v6721_v51 }
 0x894   : > { %v6818_v34 = vpop.f32.mrf.mxu2  ;;  %v6772_v61 = vpop.f32.mrf.mxu1 }
 0x895   : > { %v6819_v35 = vadd.f32 %v6818_v34, %v6770_v31 }
 0x896   : > { %v6867_v26 = vpop.f32.mrf.mxu3 }
 0x897   : > { %v6723_v56 = vpop.f32.mrf.mxu0  ;;  %v6868_v2 = vadd.f32 %v6867_v26, %v6819_v35  ;;  %7323 = vmatmul.bf16.gmra.mxu1 %v12601_v10 }
 0x898   : > { %v6724_v20 = vadd.f32 %v6723_v56, %v12088_v24 }
 0x899   : > { %v6912_v17 = vmax.f32 %v6868_v2, 0.0  ;;  %7372 = vmatmul.bf16.gmra.mxu2 %v12025_v62  ;;  %v12604_v2 = vld [vmem:[#allocation34_spill] sm:$0xff] }
 0x89a   : > { %7274 = vmatmul.bf16.gmra.mxu0 %v12600_v9  ;;  %v6773_v39 = vadd.f32 %v6772_v61, %v6724_v20 }
 0x89b   : > { %v6972_v27 = vpack.c.bf16 %v6912_v17, %v6908_v21  ;;  %v12605_v21 = vld [vmem:[#allocation36_spill] sm:$0xff] }
 0x89c   : > { %v6821_v63 = vpop.f32.mrf.mxu2  ;;  %v6774_v60 = vpop.f32.mrf.mxu1 }
 0x89d   : > { %7416 = vmatmul.bf16.vlgmr.msra.gmra.mxu3 %v6972_v27  ;;  %v6822_v58 = vadd.f32 %v6821_v63, %v6773_v39 }
 0x89e   : > { %v6870_v47 = vpop.f32.mrf.mxu3 }
 0x89f   : > { %v6725_v5 = vpop.f32.mrf.mxu0  ;;  %v6871_v52 = vadd.f32 %v6870_v47, %v6822_v58 }
 0x8a0   : > { %v6726_v23 = vadd.f32 %v6725_v5, %v12091_v43 }
 0x8a1   : > { %v6916_v24 = vmax.f32 %v6871_v52, 0.0 }
 0x8a2   : > { %v6775_v55 = vadd.f32 %v6774_v60, %v6726_v23 }
 0x8a4   : > { %v6823_v25 = vpop.f32.mrf.mxu2  ;;  %v6777_v44 = vpop.f32.mrf.mxu1 }
 0x8a5   : > { %v6824_v54 = vadd.f32 %v6823_v25, %v6775_v55 }
 0x8a6   : > { %v6872_v11 = vpop.f32.mrf.mxu3 }
 0x8a7   : > { %v6728_v12 = vpop.f32.mrf.mxu0  ;;  %v6873_v62 = vadd.f32 %v6872_v11, %v6824_v54  ;;  %7328 = vmatmul.bf16.gmra.mxu1 %v12603_v18  ;;  %v12606_v11 = vld [vmem:[#allocation41_spill] sm:$0xff] }
 0x8a8   : > { %v6729_v15 = vadd.f32 %v6728_v12, %v12098_v33 }
 0x8a9   : > { %v6920_v22 = vmax.f32 %v6873_v62, 0.0  ;;  %7377 = vmatmul.bf16.gmra.mxu2 %v12033_v6 }
 0x8aa   : > { %7279 = vmatmul.bf16.gmra.mxu0 %v12602_v53  ;;  %v6778_v7 = vadd.f32 %v6777_v44, %v6729_v15  ;;  %v12607_v44 = vld [vmem:[#allocation43_spill] sm:$0xff] }
 0x8ab   : > { %v6976_v43 = vpack.c.bf16 %v6920_v22, %v6916_v24  ;;  %v6692_v24 = vadd.f32 %v12122_v8, %v12120_v46  ;;  %v12609_v46 = vld [vmem:[#allocation24_spill] sm:$0xff] }
 0x8ac   : > { %v6826_v13 = vpop.f32.mrf.mxu2  ;;  %v6779_v36 = vpop.f32.mrf.mxu1 }
 0x8ad   : > { %7421 = vmatmul.bf16.gmra.mxu3 %v6976_v43  ;;  %v6827_v42 = vadd.f32 %v6826_v13, %v6778_v7 }
 0x8ae   : > { %v6875_v1 = vpop.f32.mrf.mxu3 }
 0x8af   : > { %v6730_v4 = vpop.f32.mrf.mxu0  ;;  %v6876_v14 = vadd.f32 %v6875_v1, %v6827_v42 }
 0x8b0   : > { %v6731_v51 = vadd.f32 %v6730_v4, %v12101_v29 }
 0x8b1   : > { %v6924_v33 = vmax.f32 %v6876_v14, 0.0 }
 0x8b2   : > { %v6780_v31 = vadd.f32 %v6779_v36, %v6731_v51 }
 0x8b4   : > { %v6828_v34 = vpop.f32.mrf.mxu2  ;;  %v6782_v61 = vpop.f32.mrf.mxu1 }
 0x8b5   : > { %v6829_v35 = vadd.f32 %v6828_v34, %v6780_v31  ;;  %v12608_v34 = vld [vmem:[#allocation22_spill] sm:$0xff] }
 0x8b6   : > { %v6877_v26 = vpop.f32.mrf.mxu3 }
 0x8b7   : > { %v6733_v56 = vpop.f32.mrf.mxu0  ;;  %v6878_v6 = vadd.f32 %v6877_v26, %v6829_v35  ;;  %7333 = vmatmul.bf16.gmra.mxu1 %v12605_v21 }
 0x8b8   : > { %v6734_v17 = vadd.f32 %v6733_v56, %v12108_v32 }
 0x8b9   : > { %v6928_v9 = vmax.f32 %v6878_v6, 0.0  ;;  %7382 = vmatmul.bf16.gmra.mxu2 %v12041_v19 }
 0x8ba   : > { %7284 = vmatmul.bf16.gmra.mxu0 %v12604_v2  ;;  %v6783_v47 = vadd.f32 %v6782_v61, %v6734_v17  ;;  %v6697_v61 = vadd.f32 %v12134_v41, %v12132_v0  ;;  %v12611_v0 = vld [vmem:[#allocation30_spill] sm:$0xff] }
 0x8bb   : > { %v6980_v29 = vpack.c.bf16 %v6928_v9, %v6924_v33 }
 0x8bc   : > { %v6831_v10 = vpop.f32.mrf.mxu2  ;;  %v6784_v63 = vpop.f32.mrf.mxu1 }
 0x8bd   : > { %7426 = vmatmul.bf16.gmra.mxu3 %v6980_v29  ;;  %v6832_v60 = vadd.f32 %v6831_v10, %v6783_v47 }
 0x8be   : > { %v6880_v27 = vpop.f32.mrf.mxu3 }
 0x8bf   : > { %v6735_v20 = vpop.f32.mrf.mxu0  ;;  %v6881_v58 = vadd.f32 %v6880_v27, %v6832_v60 }
 0x8c0   : > { %v6736_v5 = vadd.f32 %v6735_v20, %v12111_v3 }
 0x8c1   : > { %v6932_v32 = vmax.f32 %v6881_v58, 0.0 }
 0x8c2   : > { %v6785_v39 = vadd.f32 %v6784_v63, %v6736_v5 }
 0x8c4   : > { %v6833_v23 = vpop.f32.mrf.mxu2  ;;  %v6787_v54 = vpop.f32.mrf.mxu1 }
 0x8c5   : > { %v6834_v55 = vadd.f32 %v6833_v23, %v6785_v39 }
 0x8c6   : > { %v6882_v25 = vpop.f32.mrf.mxu3 }
 0x8c7   : > { %v6738_v52 = vpop.f32.mrf.mxu0  ;;  %v6883_v19 = vadd.f32 %v6882_v25, %v6834_v55  ;;  %7338 = vmatmul.bf16.gmra.mxu1 %v12607_v44  ;;  %v6702_v55 = vadd.f32 %v12146_v57, %v12144_v16  ;;  %v12613_v16 = vld [vmem:[#allocation70_spill] sm:$0xff] }
 0x8c8   : > { %v6739_v62 = vadd.f32 %v6738_v52, %v12118_v28 }
 0x8c9   : > { %v6936_v12 = vmax.f32 %v6883_v19, 0.0  ;;  %7387 = vmatmul.bf16.gmra.mxu2 %v12049_v50 }
 0x8ca   : > { %7289 = vmatmul.bf16.gmra.mxu0 %v12606_v11  ;;  %v6788_v43 = vadd.f32 %v6787_v54, %v6739_v62 }
 0x8cb   : > { %v6984_v3 = vpack.c.bf16 %v6936_v12, %v6932_v32 }
 0x8cc   : > { %v6836_v53 = vpop.f32.mrf.mxu2  ;;  %v6789_v15 = vpop.f32.mrf.mxu1 }
 0x8cd   : > { %7431 = vmatmul.bf16.gmra.mxu3 %v6984_v3  ;;  %v6837_v1 = vadd.f32 %v6836_v53, %v6788_v43 }
 0x8ce   : > { %v6885_v22 = vpop.f32.mrf.mxu3 }
 0x8cf   : > { %v6740_v18 = vpop.f32.mrf.mxu0  ;;  %v6886_v7 = vadd.f32 %v6885_v22, %v6837_v1  ;;  %v6707_v1 = vadd.f32 %v12158_v48, %v12156_v40 }
 0x8d0   : > { %v6741_v13 = vadd.f32 %v6740_v18, %v6692_v24 }
 0x8d1   : > { %v6940_v14 = vmax.f32 %v6886_v7, 0.0 }
 0x8d2   : > { %v6790_v4 = vadd.f32 %v6789_v15, %v6741_v13 }
 0x8d4   : > { %v6838_v36 = vpop.f32.mrf.mxu2  ;;  %v6792_v31 = vpop.f32.mrf.mxu1 }
 0x8d5   : > { %v6839_v51 = vadd.f32 %v6838_v36, %v6790_v4 }
 0x8d6   : > { %v6887_v42 = vpop.f32.mrf.mxu3 }
 0x8d7   : > { %v6743_v50 = vpop.f32.mrf.mxu0  ;;  %v6888_v28 = vadd.f32 %v6887_v42, %v6839_v51  ;;  %7343 = vmatmul.bf16.gmra.mxu1 %v12609_v46 }
 0x8d8   : > { %v6744_v26 = vadd.f32 %v6743_v50, %v12130_v45  ;;  %v12610_v45 = vld [vmem:[#allocation28_spill] sm:$0xff] }
 0x8d9   : > { %v6944_v35 = vmax.f32 %v6888_v28, 0.0  ;;  %7392 = vmatmul.bf16.gmra.mxu2 %v12057_v37 }
 0x8da   : > { %7294 = vmatmul.bf16.gmra.mxu0 %v12608_v34  ;;  %v6793_v9 = vadd.f32 %v6792_v31, %v6744_v26 }
 0x8db   : > { %v6988_v8 = vpack.c.bf16 %v6944_v35, %v6940_v14 }
 0x8dc   : > { %v6841_v56 = vpop.f32.mrf.mxu2  ;;  %v6794_v33 = vpop.f32.mrf.mxu1 }
 0x8dd   : > { %7436 = vmatmul.bf16.gmra.mxu3 %v6988_v8  ;;  %v6842_v17 = vadd.f32 %v6841_v56, %v6793_v9 }
 0x8de   : > { %v6890_v6 = vpop.f32.mrf.mxu3 }
 0x8df   : > { %v6745_v2 = vpop.f32.mrf.mxu0  ;;  %v6891_v27 = vadd.f32 %v6890_v6, %v6842_v17 }
 0x8e0   : > { %v6746_v21 = vadd.f32 %v6745_v2, %v6697_v61  ;;  %v12207_v2 = vld [vmem:[%s12284_s6] ss:$0 sm:$0xff] }
 0x8e1   : > { %v6948_v60 = vmax.f32 %v6891_v27, 0.0 }
 0x8e2   : > { %v6795_v29 = vadd.f32 %v6794_v33, %v6746_v21 }
 0x8e4   : > { %v6843_v10 = vpop.f32.mrf.mxu2  ;;  %v6797_v47 = vpop.f32.mrf.mxu1 }
 0x8e5   : > { %v6844_v20 = vadd.f32 %v6843_v10, %v6795_v29 }
 0x8e6   : > { %v6892_v63 = vpop.f32.mrf.mxu3 }
 0x8e7   : > { %v6748_v37 = vpop.f32.mrf.mxu0  ;;  %v6893_v5 = vadd.f32 %v6892_v63, %v6844_v20  ;;  %7348 = vmatmul.bf16.gmra.mxu1 %v12611_v0 }
 0x8e8   : > { %v6749_v23 = vadd.f32 %v6748_v37, %v12142_v38  ;;  %v12612_v38 = vld [vmem:[#allocation35_spill] sm:$0xff] }
 0x8e9   : > { %v6952_v39 = vmax.f32 %v6893_v5, 0.0  ;;  %7397 = vmatmul.bf16.gmra.mxu2 %v12065_v49 }
 0x8ea   : > { %7299 = vmatmul.bf16.gmra.mxu0 %v12610_v45  ;;  %v6798_v19 = vadd.f32 %v6797_v47, %v6749_v23 }
 0x8eb   : > { %v6992_v41 = vpack.c.bf16 %v6952_v39, %v6948_v60 }
 0x8ec   : > { %v6846_v58 = vpop.f32.mrf.mxu2  ;;  %v6799_v54 = vpop.f32.mrf.mxu1 }
 0x8ed   : > { %7441 = vmatmul.bf16.gmra.mxu3 %v6992_v41  ;;  %v6847_v32 = vadd.f32 %v6846_v58, %v6798_v19 }
 0x8ee   : > { %v6895_v25 = vpop.f32.mrf.mxu3 }
 0x8ef   : > { %v6750_v52 = vpop.f32.mrf.mxu0  ;;  %v6896_v62 = vadd.f32 %v6895_v25, %v6847_v32 }
 0x8f0   : > { %v6751_v11 = vadd.f32 %v6750_v52, %v6702_v55 }
 0x8f1   : > { %v6956_v18 = vmax.f32 %v6896_v62, 0.0 }
 0x8f2   : > { %v6800_v12 = vadd.f32 %v6799_v54, %v6751_v11 }
 0x8f4   : > { %v6848_v44 = vpop.f32.mrf.mxu2  ;;  %v6802_v24 = vpop.f32.mrf.mxu1 }
 0x8f5   : > { %v6849_v3 = vadd.f32 %v6848_v44, %v6800_v12 }
 0x8f6   : > { %v6897_v53 = vpop.f32.mrf.mxu3 }
 0x8f7   : > { %v6753_v49 = vpop.f32.mrf.mxu0  ;;  %v6898_v22 = vadd.f32 %v6897_v53, %v6849_v3  ;;  %7353 = vmatmul.bf16.gmra.mxu1 %v12613_v16 }
 0x8f8   : > { %v6754_v43 = vadd.f32 %v6753_v49, %v12154_v30 }
 0x8f9   : > { %v6960_v15 = vmax.f32 %v6898_v22, 0.0  ;;  %7402 = vmatmul.bf16.gmra.mxu2 %v12075_v59 }
 0x8fa   : > { %7304 = vmatmul.bf16.gmra.mxu0 %v12612_v38  ;;  %v6803_v51 = vadd.f32 %v6802_v24, %v6754_v43 }
 0x8fb   : > { %v6996_v57 = vpack.c.bf16 %v6960_v15, %v6956_v18 }
 0x8fc   : > { %v6851_v13 = vpop.f32.mrf.mxu2  ;;  %v6804_v7 = vpop.f32.mrf.mxu1 }
 0x8fd   : > { %7446 = vmatmul.bf16.gmra.mxu3 %v6996_v57  ;;  %v6852_v50 = vadd.f32 %v6851_v13, %v6803_v51 }
 0x8fe   : > { %v6900_v4 = vpop.f32.mrf.mxu3 }
 0x8ff   : > { %v6755_v36 = vpop.f32.mrf.mxu0  ;;  %v6901_v34 = vadd.f32 %v6900_v4, %v6852_v50 }
 0x900   : > { %v6756_v42 = vadd.f32 %v6755_v36, %v6707_v1 }
 0x901   : > { %v6964_v30 = vmax.f32 %v6901_v34, 0.0 }
 0x902   : > { %v6805_v31 = vadd.f32 %v6804_v7, %v6756_v42 }
 0x904   : > { %v6853_v28 = vpop.f32.mrf.mxu2  ;;  %v7319_v46 = vpop.f32.mrf.mxu1 }
 0x905   : > { %v6854_v14 = vadd.f32 %v6853_v28, %v6805_v31 }
 0x906   : > { %v6902_v59 = vpop.f32.mrf.mxu3 }
 0x907   : > { %v7270_v35 = vpop.f32.mrf.mxu0  ;;  %v6903_v8 = vadd.f32 %v6902_v59, %v6854_v14 }
 0x908   : > { %v7271_v21 = vadd.f32 %v12207_v2, %v7270_v35 }
 0x909   : > { %v6968_v26 = vmax.f32 %v6903_v8, 0.0 }
 0x90a   : > { %v7320_v29 = vadd.f32 %v7319_v46, %v7271_v21 }
 0x90b   : > { %v7000_v56 = vpack.c.bf16 %v6968_v26, %v6964_v30 }
 0x90c   : > { %v7368_v40 = vpop.f32.mrf.mxu2  ;;  %v7321_v61 = vpop.f32.mrf.mxu1 }
 0x90d   : > { %7451 = vmatmul.bf16.gmra.mxu3 %v7000_v56  ;;  %v7369_v20 = vadd.f32 %v7368_v40, %v7320_v29 }
 0x90f   : > { %v7272_v48 = vpop.f32.mrf.mxu0 }
 0x910   : > { %v7273_v37 = vadd.f32 %v12207_v2, %v7272_v48 }
 0x912   : > { %v7322_v45 = vadd.f32 %v7321_v61, %v7273_v37 }
 0x914   : > { %v7370_v6 = vpop.f32.mrf.mxu2  ;;  %v7324_v9 = vpop.f32.mrf.mxu1 }
 0x915   : > { %v7371_v0 = vadd.f32 %v7370_v6, %v7322_v45 }
 0x917   : > { %v7275_v33 = vpop.f32.mrf.mxu0 }
 0x918   : > { %v7276_v23 = vadd.f32 %v12207_v2, %v7275_v33 }
 0x91a   : > { %v7325_v25 = vadd.f32 %v7324_v9, %v7276_v23 }
 0x91c   : > { %v7373_v17 = vpop.f32.mrf.mxu2  ;;  %v7326_v27 = vpop.f32.mrf.mxu1 }
 0x91d   : > { %v7374_v54 = vadd.f32 %v7373_v17, %v7325_v25 }
 0x91f   : > { %v7277_v10 = vpop.f32.mrf.mxu0 }
 0x920   : > { %v7417_v63 = vpop.f32.mrf.mxu3  ;;  %v7278_v32 = vadd.f32 %v12207_v2, %v7277_v10 }
 0x921   : > { %v7418_v47 = vadd.f32 %v7417_v63, %v7369_v20 }
 0x922   : > { %v7327_v62 = vadd.f32 %v7326_v27, %v7278_v32 }
 0x923   : > { %7457 = vst [vmem:[%s12212_s28] sm:$0xff] %v7418_v47 }
 0x924   : > { %v7375_v5 = vpop.f32.mrf.mxu2  ;;  %v7329_v39 = vpop.f32.mrf.mxu1 }
 0x925   : > { %v7376_v53 = vadd.f32 %v7375_v5, %v7327_v62 }
 0x927   : > { %v7280_v60 = vpop.f32.mrf.mxu0 }
 0x928   : > { %v7419_v41 = vpop.f32.mrf.mxu3  ;;  %v7281_v24 = vadd.f32 %v12207_v2, %v7280_v60 }
 0x929   : > { %v7420_v58 = vadd.f32 %v7419_v41, %v7371_v0 }
 0x92a   : > { %v7330_v15 = vadd.f32 %v7329_v39, %v7281_v24 }
 0x92b   : > { %7458 = vst [vmem:[%s12212_s28 + $0x8] sm:$0xff] %v7420_v58 }
 0x92c   : > { %v7378_v55 = vpop.f32.mrf.mxu2  ;;  %v7331_v19 = vpop.f32.mrf.mxu1 }
 0x92d   : > { %v7379_v57 = vadd.f32 %v7378_v55, %v7330_v15 }
 0x92f   : > { %v7282_v52 = vpop.f32.mrf.mxu0 }
 0x930   : > { %v7422_v11 = vpop.f32.mrf.mxu3  ;;  %v7283_v13 = vadd.f32 %v12207_v2, %v7282_v52 }
 0x931   : > { %v7423_v12 = vadd.f32 %v7422_v11, %v7374_v54 }
 0x932   : > { %v7332_v7 = vadd.f32 %v7331_v19, %v7283_v13 }
 0x933   : > { %7459 = vst [vmem:[%s12212_s28 + $0x10] sm:$0xff] %v7423_v12 }
 0x934   : > { %v7380_v44 = vpop.f32.mrf.mxu2  ;;  %v7334_v22 = vpop.f32.mrf.mxu1 }
 0x935   : > { %v7381_v51 = vadd.f32 %v7380_v44, %v7332_v7 }
 0x937   : > { %v7285_v3 = vpop.f32.mrf.mxu0 }
 0x938   : > { %v7424_v49 = vpop.f32.mrf.mxu3  ;;  %v7286_v31 = vadd.f32 %v12207_v2, %v7285_v3 }
 0x939   : > { %v7425_v38 = vadd.f32 %v7424_v49, %v7376_v53 }
 0x93a   : > { %v7335_v34 = vadd.f32 %v7334_v22, %v7286_v31 }
 0x93b   : > { %7460 = vst [vmem:[%s12212_s28 + $0x18] sm:$0xff] %v7425_v38 }
 0x93c   : > { %v7383_v18 = vpop.f32.mrf.mxu2  ;;  %v7336_v4 = vpop.f32.mrf.mxu1 }
 0x93d   : > { %v7384_v59 = vadd.f32 %v7383_v18, %v7335_v34 }
 0x93f   : > { %v7287_v16 = vpop.f32.mrf.mxu0 }
 0x940   : > { %v7427_v43 = vpop.f32.mrf.mxu3  ;;  %v7288_v8 = vadd.f32 %v12207_v2, %v7287_v16 }
 0x941   : > { %v7428_v1 = vadd.f32 %v7427_v43, %v7379_v57 }
 0x942   : > { %v7337_v56 = vadd.f32 %v7336_v4, %v7288_v8 }
 0x943   : > { %7461 = vst [vmem:[%s12212_s28 + $0x20] sm:$0xff] %v7428_v1 }
 0x944   : > { %v7385_v36 = vpop.f32.mrf.mxu2  ;;  %v7339_v14 = vpop.f32.mrf.mxu1 }
 0x945   : > { %v7386_v40 = vadd.f32 %v7385_v36, %v7337_v56 }
 0x947   : > { %v7290_v42 = vpop.f32.mrf.mxu0 }
 0x948   : > { %v7429_v50 = vpop.f32.mrf.mxu3  ;;  %v7291_v33 = vadd.f32 %v12207_v2, %v7290_v42 }
 0x949   : > { %v7430_v28 = vadd.f32 %v7429_v50, %v7381_v51 }
 0x94a   : > { %v7340_v17 = vadd.f32 %v7339_v14, %v7291_v33 }
 0x94b   : > { %7462 = vst [vmem:[%s12212_s28 + $0x28] sm:$0xff] %v7430_v28 }
 0x94c   : > { %v7388_v35 = vpop.f32.mrf.mxu2  ;;  %v7341_v48 = vpop.f32.mrf.mxu1 }
 0x94d   : > { %v7389_v29 = vadd.f32 %v7388_v35, %v7340_v17 }
 0x94f   : > { %v7292_v26 = vpop.f32.mrf.mxu0 }
 0x950   : > { %v7432_v46 = vpop.f32.mrf.mxu3  ;;  %v7293_v27 = vadd.f32 %v12207_v2, %v7292_v26 }
 0x951   : > { %v7433_v30 = vadd.f32 %v7432_v46, %v7384_v59 }
 0x952   : > { %v7342_v47 = vadd.f32 %v7341_v48, %v7293_v27 }
 0x953   : > { %7463 = vst [vmem:[%s12212_s28 + $0x30] sm:$0xff] %v7433_v30 }
 0x954   : > { %v7390_v61 = vpop.f32.mrf.mxu2  ;;  %v7344_v20 = vpop.f32.mrf.mxu1 }
 0x955   : > { %v7391_v45 = vadd.f32 %v7390_v61, %v7342_v47 }
 0x957   : > { %v7295_v21 = vpop.f32.mrf.mxu0 }
 0x958   : > { %v7434_v6 = vpop.f32.mrf.mxu3  ;;  %v7296_v39 = vadd.f32 %v12207_v2, %v7295_v21 }
 0x959   : > { %v7435_v9 = vadd.f32 %v7434_v6, %v7386_v40 }
 0x95a   : > { %v7345_v58 = vadd.f32 %v7344_v20, %v7296_v39 }
 0x95b   : > { %7464 = vst [vmem:[%s12212_s28 + $0x38] sm:$0xff] %v7435_v9 }
 0x95c   : > { %v7393_v37 = vpop.f32.mrf.mxu2  ;;  %v7346_v41 = vpop.f32.mrf.mxu1 }
 0x95d   : > { %v7394_v55 = vadd.f32 %v7393_v37, %v7345_v58 }
 0x95f   : > { %v7297_v5 = vpop.f32.mrf.mxu0 }
 0x960   : > { %v7437_v10 = vpop.f32.mrf.mxu3  ;;  %v7298_v54 = vadd.f32 %v12207_v2, %v7297_v5 }
 0x961   : > { %v7438_v63 = vadd.f32 %v7437_v10, %v7389_v29 }
 0x962   : > { %v7347_v11 = vadd.f32 %v7346_v41, %v7298_v54 }
 0x963   : > { %7465 = vst [vmem:[%s12212_s28 + $0x40] sm:$0xff] %v7438_v63 }
 0x964   : > { %v7395_v23 = vpop.f32.mrf.mxu2  ;;  %v7349_v32 = vpop.f32.mrf.mxu1 }
 0x965   : > { %v7396_v44 = vadd.f32 %v7395_v23, %v7347_v11 }
 0x967   : > { %v7300_v25 = vpop.f32.mrf.mxu0 }
 0x968   : > { %v7439_v60 = vpop.f32.mrf.mxu3  ;;  %v7301_v3 = vadd.f32 %v12207_v2, %v7300_v25 }
 0x969   : > { %v7440_v0 = vadd.f32 %v7439_v60, %v7391_v45 }
 0x96a   : > { %v7350_v24 = vadd.f32 %v7349_v32, %v7301_v3 }
 0x96b   : > { %7466 = vst [vmem:[%s12212_s28 + $0x48] sm:$0xff] %v7440_v0 }
 0x96c   : > { %v7398_v12 = vpop.f32.mrf.mxu2  ;;  %v7351_v38 = vpop.f32.mrf.mxu1 }
 0x96d   : > { %v7399_v22 = vadd.f32 %v7398_v12, %v7350_v24 }
 0x96f   : > { %v7302_v49 = vpop.f32.mrf.mxu0 }
 0x970   : > { %v7442_v52 = vpop.f32.mrf.mxu3  ;;  %v7303_v16 = vadd.f32 %v12207_v2, %v7302_v49 }
 0x971   : > { %v7443_v19 = vadd.f32 %v7442_v52, %v7394_v55 }
 0x972   : > { %v7352_v13 = vadd.f32 %v7351_v38, %v7303_v16 }
 0x973   : > { %7467 = vst [vmem:[%s12212_s28 + $0x50] sm:$0xff] %v7443_v19 }
 0x974   : > { %v7400_v18 = vpop.f32.mrf.mxu2  ;;  %v7354_v51 = vpop.f32.mrf.mxu1 }
 0x975   : > { %v7401_v1 = vadd.f32 %v7400_v18, %v7352_v13 }
 0x977   : > { %v7305_v43 = vpop.f32.mrf.mxu0 }
 0x978   : > { %v7444_v62 = vpop.f32.mrf.mxu3  ;;  %v7306_v36 = vadd.f32 %v12207_v2, %v7305_v43 }
 0x979   : > { %v7445_v53 = vadd.f32 %v7444_v62, %v7396_v44 }
 0x97a   : > { %v7355_v50 = vadd.f32 %v7354_v51, %v7306_v36 }
 0x97b   : > { %7468 = vst [vmem:[%s12212_s28 + $0x58] sm:$0xff] %v7445_v53 }
 0x97c   : > { %v7403_v42 = vpop.f32.mrf.mxu2  ;;  %v7356_v59 = vpop.f32.mrf.mxu1 }
 0x97d   : > { %v7404_v28 = vadd.f32 %v7403_v42, %v7355_v50 }
 0x97f   : > { %v7307_v31 = vpop.f32.mrf.mxu0 }
 0x980   : > { %v7447_v15 = vpop.f32.mrf.mxu3  ;;  %v7308_v14 = vadd.f32 %v12207_v2, %v7307_v31 }
 0x981   : > { %v7448_v57 = vadd.f32 %v7447_v15, %v7399_v22 }
 0x982   : > { %v7357_v8 = vadd.f32 %v7356_v59, %v7308_v14 }
 0x983   : > { %7469 = vst [vmem:[%s12212_s28 + $0x60] sm:$0xff] %v7448_v57 }
 0x984   : > { %v7405_v46 = vpop.f32.mrf.mxu2 }
 0x985   : > { %v7406_v30 = vadd.f32 %v7405_v46, %v7357_v8 }
 0x988   : > { %v7449_v4 = vpop.f32.mrf.mxu3 }
 0x989   : > { %v7450_v7 = vadd.f32 %v7449_v4, %v7401_v1 }
 0x98b   : > { %7470 = vst [vmem:[%s12212_s28 + $0x68] sm:$0xff] %v7450_v7 }
 0x990   : > { %v7452_v34 = vpop.f32.mrf.mxu3 }
 0x991   : > { %v7453_v35 = vadd.f32 %v7452_v34, %v7404_v28 }
 0x993   : > { %7471 = vst [vmem:[%s12212_s28 + $0x70] sm:$0xff] %v7453_v35 }
 0x998   : > { %v7454_v26 = vpop.f32.mrf.mxu3 }
 0x999   : > { %v7455_v56 = vadd.f32 %v7454_v26, %v7406_v30 }
 0x99b   : > { %7472 = vst [vmem:[%s12212_s28 + $0x78] sm:$0xff] %v7455_v56 }
 0x99c   : > { %10677 = shalt.err (!%p10674_p9)
}
 0x99d   : > { %s10741_s20 = smov 128   ;;  %s10742_s28 = smov 8  }
 0x99e   : > { %10380 = dma.vmem_to_hbm [thread:$0]  (%p10872_p13), %s7487_s23, 2048, %s7489_s14, %s7474_s8, %s10741_s20, %s10741_s20, %s10742_s28  }
 0x99f PF: > { %s7503_s13 = sand.u32 1, %s10716_s24   ;;  %p12614_p10 = scmp.ge.s32.totalorder %s10728_s27, 2 }
 0x9a0   : > { %s7504_s29 = scalar_lea.sflag [#allocation4], %s7503_s13 }
 0x9a1   : > { %p10403_p11 = pnand %p12614_p10, %p10877_p4 }
 0x9a3   : > { %p10404_p0 = pneg %p10403_p11 }
 0x9a5   : > { %10711 = dma.done.wait (%p10404_p0), %s7504_s29, 2048  }
 0x9a6   : > { %10713 = vsyncadd (%p10404_p0), %s7504_s29, 4294965248  ;;  %p23_p2 = scmp.ge.s32.totalorder %s10852_s10, 4   ;;  %s12615_s24 = smov %s10720_s25 }
 0x9a7   : > { %s12616_s25 = smov %s10724_s26  ;;  %s12617_s26 = smov %s10864_s30 }
 0x9a8   : > { %s12618_s27 = smov %s10852_s10  ;;  %25 = sbr.rel (!%p23_p2) target bundleno = 10 (0xa), region = 113 }
 0x9ad   :  { %7510 = vsyncpa [#allocation3], 1 }
 0x9ae   :  { %7512 = vsyncpa [#allocation3 + $0x1], 1 }
 0x9af   :  { %7513 = vsyncpa [#allocation6], 1 }
 0x9b0   :  { %7514 = vsyncpa [#allocation9], 1 }
 0x9b1   :  { %7515 = vsyncpa [#allocation12], 1 }
 0x9b2   :  { %7516 = vsyncpa [#allocation4], 1 }
 0x9b3   :  { %7518 = vsyncpa [#allocation4 + $0x1], 1 }

</bundles_post_ra>
